<compile_context>
chip_gen: v7x
topology: tpu7x:2x2x1
jax: 0.10.0
libtpu: 0.0.40
codegen_flags: <defaults>
</compile_context>

<pallas_src>
import math

import jax
import jax.numpy as jnp
from jax.experimental import pallas as pl
from jax.experimental.pallas import tpu as pltpu

EPS = 1e-5


# ----------------------------------------------------------------------------
# Pallas kernels
# ----------------------------------------------------------------------------
def _conv_bn_relu_kernel(w_ref, x_ref, s_ref, t_ref, o_ref):
    # o[C_out, tm] = relu((W @ cols_tile) * scale + shift)   (bias+BN folded)
    y = jnp.dot(w_ref[...], x_ref[...], preferred_element_type=jnp.float32)
    o_ref[...] = jnp.maximum(y * s_ref[...] + t_ref[...], 0.0).astype(o_ref.dtype)


def _fc_bn_relu_kernel(x_ref, w_ref, s_ref, t_ref, o_ref, acc_ref):
    # Streams the weight over K tiles, accumulates in f32 VMEM scratch,
    # applies BN scale/shift + ReLU on the last K step.
    @pl.when(pl.program_id(1) == 0)
    def _():
        acc_ref[...] = jnp.zeros_like(acc_ref)

    acc_ref[...] += jnp.dot(x_ref[...], w_ref[...],
                            preferred_element_type=jnp.float32)

    @pl.when(pl.program_id(1) == pl.num_programs(1) - 1)
    def _():
        o_ref[...] = jnp.maximum(
            acc_ref[...] * s_ref[...] + t_ref[...], 0.0).astype(o_ref.dtype)


def _head_tail_kernel(x_ref, w2_ref, s2_ref, t2_ref, w3_ref, b3_ref, o_ref):
    # fc2 + BN + ReLU + fc3 + log-softmax fused in one call.
    h = jnp.dot(x_ref[...], w2_ref[...], preferred_element_type=jnp.float32)
    h = jnp.maximum(h * s2_ref[...] + t2_ref[...], 0.0)
    y = jnp.dot(h.astype(w3_ref.dtype), w3_ref[...],
                preferred_element_type=jnp.float32) + b3_ref[...]
    m = jnp.max(y, axis=-1, keepdims=True)
    z = y - m
    o_ref[...] = z - jnp.log(jnp.sum(jnp.exp(z), axis=-1, keepdims=True))


# ----------------------------------------------------------------------------
# Pallas wrappers
# ----------------------------------------------------------------------------
def conv_bn_relu(cols, w, scale, shift, tm=256):
    """cols: (K, M) bf16, w: (C_out, K) bf16, scale/shift: (C_out, 1) f32.

    Returns (C_out, M) bf16 = relu((w @ cols) * scale + shift).
    M is padded to a multiple of tm with at least 2 tiles (v7x megacore)."""
    K, M = cols.shape
    C_out = w.shape[0]
    Mp = max(-(-M // tm) * tm, 2 * tm)
    if Mp != M:
        cols = jnp.pad(cols, ((0, 0), (0, Mp - M)))
    out = pl.pallas_call(
        _conv_bn_relu_kernel,
        out_shape=jax.ShapeDtypeStruct((C_out, Mp), jnp.bfloat16),
        grid_spec=pltpu.PrefetchScalarGridSpec(
            num_scalar_prefetch=0,
            grid=(Mp // tm,),
            in_specs=[
                pl.BlockSpec((C_out, K), lambda j: (0, 0)),
                pl.BlockSpec((K, tm), lambda j: (0, j)),
                pl.BlockSpec((C_out, 1), lambda j: (0, 0)),
                pl.BlockSpec((C_out, 1), lambda j: (0, 0)),
            ],
            out_specs=pl.BlockSpec((C_out, tm), lambda j: (0, j)),
        ),
        compiler_params=pltpu.CompilerParams(
            dimension_semantics=("parallel",)),
    )(w, cols, scale, shift)
    return out[:, :M]


def fc_bn_relu(x, w, scale, shift, tn=512, tk=640):
    """x: (M, K) bf16, w: (K, N) bf16, scale/shift: (1, N) f32 -> (M, N) bf16."""
    M, K = x.shape
    N = w.shape[1]
    assert K % tk == 0 and N % tn == 0
    return pl.pallas_call(
        _fc_bn_relu_kernel,
        out_shape=jax.ShapeDtypeStruct((M, N), jnp.bfloat16),
        grid_spec=pltpu.PrefetchScalarGridSpec(
            num_scalar_prefetch=0,
            grid=(N // tn, K // tk),          # (parallel out-cols, reduction)
            in_specs=[
                pl.BlockSpec((M, tk), lambda j, kk: (0, kk)),
                pl.BlockSpec((tk, tn), lambda j, kk: (kk, j)),
                pl.BlockSpec((1, tn), lambda j, kk: (0, j)),
                pl.BlockSpec((1, tn), lambda j, kk: (0, j)),
            ],
            out_specs=pl.BlockSpec((M, tn), lambda j, kk: (0, j)),
            scratch_shapes=[pltpu.VMEM((M, tn), jnp.float32)],
        ),
        compiler_params=pltpu.CompilerParams(
            dimension_semantics=("parallel", "arbitrary"),
            vmem_limit_bytes=32 * 1024 * 1024,   # explicit budget, fits v5e..v7x
        ),
    )(x, w, scale, shift)


def head_tail(x, w2, s2, t2, w3, b3):
    """Fused fc2+BN+ReLU+fc3+log_softmax. x: (M, K) bf16 -> (M, 2) f32."""
    M, K = x.shape
    H = w2.shape[1]
    C = w3.shape[1]
    return pl.pallas_call(
        _head_tail_kernel,
        out_shape=jax.ShapeDtypeStruct((M, C), jnp.float32),
        grid_spec=pltpu.PrefetchScalarGridSpec(
            num_scalar_prefetch=0,
            grid=(1,),
            in_specs=[
                pl.BlockSpec((M, K), lambda i: (0, 0)),
                pl.BlockSpec((K, H), lambda i: (0, 0)),
                pl.BlockSpec((1, H), lambda i: (0, 0)),
                pl.BlockSpec((1, H), lambda i: (0, 0)),
                pl.BlockSpec((H, C), lambda i: (0, 0)),
                pl.BlockSpec((1, C), lambda i: (0, 0)),
            ],
            out_specs=pl.BlockSpec((M, C), lambda i: (0, 0)),
        ),
    )(x, w2, s2, t2, w3, b3)


# ----------------------------------------------------------------------------
# Host-side glue: transposed im2col (K-major patches), 2x2 max-pool
# ----------------------------------------------------------------------------
def im2col_T(x, k, stride, pad):
    """x: (C, N, H, W) channel-major -> (C*k*k, N*Ho*Wo) bf16.

    K ordering is (C, kh, kw), matching torch weight.reshape(C_out, C_in*k*k)."""
    if pad:
        x = jnp.pad(x, ((0, 0), (0, 0), (pad, pad), (pad, pad)))
    C, N, H, W = x.shape
    Ho = (H - k) // stride + 1
    Wo = (W - k) // stride + 1
    assert Ho > 0 and Wo > 0
    taps = []
    for i in range(k):
        for j in range(k):
            taps.append(x[:, :, i:i + stride * Ho:stride, j:j + stride * Wo:stride])
    cols = jnp.stack(taps, axis=1)                     # (C, k*k, N, Ho, Wo)
    return cols.reshape(C * k * k, N * Ho * Wo), Ho, Wo


def maxpool2(x):
    C, N, H, W = x.shape
    assert H % 2 == 0 and W % 2 == 0
    return x.reshape(C, N, H // 2, 2, W // 2, 2).max(axis=(3, 5))


# ----------------------------------------------------------------------------
# Deterministic parameter initialization (shapes from the PyTorch __init__)
# ----------------------------------------------------------------------------
def _bn_fold(bias):
    # Eval-mode BN with gamma=1, beta=0, running_mean=0, running_var=1:
    #   y = (x + bias) / sqrt(1 + eps)  ->  scale = 1/sqrt(1+eps), shift = b*scale
    # NOTE: if trained torch weights are ever loaded, recompute from real stats.
    s = jnp.full_like(bias, 1.0 / math.sqrt(1.0 + EPS))
    return s, bias * s


def init_params(key):
    p = {}
    keys = jax.random.split(key, 10)

    def u(k, shape, fan_in):
        lim = 1.0 / math.sqrt(fan_in)
        return jax.random.uniform(k, shape, jnp.float32, -lim, lim)

    # FeatureExtractor convs: weights stored (C_out, C_in*k*k) bf16.
    conv_defs = [("1", 1, 5, 16), ("2", 16, 5, 32), ("3", 32, 3, 64), ("4", 64, 3, 128)]
    for i, (name, cin, k, cout) in enumerate(conv_defs):
        kw_, kb_ = jax.random.split(keys[i])
        fan = cin * k * k
        w = u(kw_, (cout, fan), fan)
        b = u(kb_, (cout,), fan)
        s, t = _bn_fold(b)
        p["w" + name] = w.astype(jnp.bfloat16)
        p["s" + name] = s.reshape(cout, 1)
        p["t" + name] = t.reshape(cout, 1)

    def dense(k, fin, fout):
        kw_, kb_ = jax.random.split(k)
        return u(kw_, (fin, fout), fin), u(kb_, (fout,), fin)

    # Classifier: 3200 -> 1024 -> 128 -> 2
    w, b = dense(keys[4], 128 * 5 * 5, 1024); s, t = _bn_fold(b)
    p["c_w1"], p["c_s1"], p["c_t1"] = w.astype(jnp.bfloat16), s.reshape(1, -1), t.reshape(1, -1)
    w, b = dense(keys[5], 1024, 128); s, t = _bn_fold(b)
    p["c_w2"], p["c_s2"], p["c_t2"] = w.astype(jnp.bfloat16), s.reshape(1, -1), t.reshape(1, -1)
    w, b = dense(keys[6], 128, 2)
    p["c_w3"], p["c_b3"] = w.astype(jnp.bfloat16), b.reshape(1, -1)

    # Discriminator: 3200 -> 2048 -> 100 -> 2  (hidden 100 zero-padded to 128;
    # padded units are exact zeros so the output is unchanged).
    w, b = dense(keys[7], 128 * 5 * 5, 2048); s, t = _bn_fold(b)
    p["d_w1"], p["d_s1"], p["d_t1"] = w.astype(jnp.bfloat16), s.reshape(1, -1), t.reshape(1, -1)
    w, b = dense(keys[8], 2048, 100); s, t = _bn_fold(b)
    p["d_w2"] = jnp.pad(w, ((0, 0), (0, 28))).astype(jnp.bfloat16)
    p["d_s2"] = jnp.pad(s.reshape(1, -1), ((0, 0), (0, 28)))
    p["d_t2"] = jnp.pad(t.reshape(1, -1), ((0, 0), (0, 28)))
    w, b = dense(keys[9], 100, 2)
    p["d_w3"] = jnp.pad(w, ((0, 28), (0, 0))).astype(jnp.bfloat16)
    p["d_b3"] = b.reshape(1, -1)
    return p


# ----------------------------------------------------------------------------
# DANN forward
# ----------------------------------------------------------------------------
def dann_forward(x, params, alpha=1.0, stop=False):
    """x: (N, 96, 96) f32 -> (class_output (N, 2), domain_output (N, 2))."""
    N = x.shape[0]
    assert x.shape[1:] == (96, 96)
    h = x[None].astype(jnp.bfloat16)                      # (1, N, 96, 96) C-major

    # ---- FeatureExtractor ----
    cols, Ho, Wo = im2col_T(h, 5, 3, 1)                   # conv1 -> 32x32
    h = conv_bn_relu(cols, params["w1"], params["s1"], params["t1"]).reshape(16, N, Ho, Wo)

    cols, Ho, Wo = im2col_T(h, 5, 1, 0)                   # conv2 -> 28x28
    h = conv_bn_relu(cols, params["w2"], params["s2"], params["t2"]).reshape(32, N, Ho, Wo)
    h = maxpool2(h)                                       # -> 14x14

    cols, Ho, Wo = im2col_T(h, 3, 1, 0)                   # conv3 -> 12x12
    h = conv_bn_relu(cols, params["w3"], params["s3"], params["t3"]).reshape(64, N, Ho, Wo)

    cols, Ho, Wo = im2col_T(h, 3, 1, 0)                   # conv4 -> 10x10
    h = conv_bn_relu(cols, params["w4"], params["s4"], params["t4"]).reshape(128, N, Ho, Wo)
    h = maxpool2(h)                                       # -> (128, N, 5, 5)

    # Flatten in torch NCHW order -> (N, 3200), kept bf16 for the FC matmuls.
    feat = jnp.transpose(h, (1, 0, 2, 3)).reshape(N, 128 * 5 * 5)

    # ---- Classifier ----
    c = fc_bn_relu(feat, params["c_w1"], params["c_s1"], params["c_t1"])
    class_output = head_tail(c, params["c_w2"], params["c_s2"], params["c_t2"],
                             params["c_w3"], params["c_b3"])

    # ---- Discriminator (GRL / detach are identity in the forward pass) ----
    d = fc_bn_relu(feat, params["d_w1"], params["d_s1"], params["d_t1"])
    domain_output = head_tail(d, params["d_w2"], params["d_s2"], params["d_t2"],
                              params["d_w3"], params["d_b3"])

    return class_output, domain_output


if __name__ == "__main__":
    key = jax.random.PRNGKey(0)
    k_param, k_data = jax.random.split(key)
    params = init_params(k_param)

    # The module's conv arithmetic requires 96x96 spatial input.
    x = jax.random.normal(k_data, (2, 96, 96), jnp.float32)

    class_out, domain_out = jax.jit(dann_forward)(x, params)
    jax.block_until_ready((class_out, domain_out))

    assert class_out.shape == (2, 2) and domain_out.shape == (2, 2)
    # log-softmax rows must sum to 1 in probability space
    assert jnp.allclose(jnp.exp(class_out).sum(-1), 1.0, atol=1e-4)
    assert jnp.allclose(jnp.exp(domain_out).sum(-1), 1.0, atol=1e-4)
    print("KERNEL_OK")
</pallas_src>

<mosaic_0001>
module attributes {stable_mosaic.version = 11 : i64} {
  func.func @_conv_bn_relu_kernel(%arg0: i32, %arg1: memref<16x25xbf16, #tpu.memory_space<vmem>>, %arg2: memref<25x256xbf16, #tpu.memory_space<vmem>>, %arg3: memref<16x1xf32, #tpu.memory_space<vmem>>, %arg4: memref<16x1xf32, #tpu.memory_space<vmem>>, %arg5: memref<16x256xbf16, #tpu.memory_space<vmem>>) attributes {dimension_semantics = [#tpu.dimension_semantics<parallel>], iteration_bounds = array<i64: 8>, scalar_prefetch = 0 : i64, scratch_operands = 0 : i64, tpu.core_type = #tpu.core_type<tc>, window_params = [{pipeline_mode = #tpu.pipeline_mode<synchronous>, transform_indices = @transform_0, window_bounds = array<i64: 16, 25>}, {transform_indices = @transform_1, window_bounds = array<i64: 25, 256>}, {pipeline_mode = #tpu.pipeline_mode<synchronous>, transform_indices = @transform_2, window_bounds = array<i64: 16, 1>}, {pipeline_mode = #tpu.pipeline_mode<synchronous>, transform_indices = @transform_3, window_bounds = array<i64: 16, 1>}, {transform_indices = @transform_4, window_bounds = array<i64: 16, 256>}]} {
    %c0 = arith.constant 0 : index
    %c0_0 = arith.constant 0 : index
    %0 = vector.load %arg1[%c0, %c0_0] : memref<16x25xbf16, #tpu.memory_space<vmem>>, vector<16x25xbf16>
    %c0_1 = arith.constant 0 : index
    %c0_2 = arith.constant 0 : index
    %1 = vector.load %arg2[%c0_1, %c0_2] : memref<25x256xbf16, #tpu.memory_space<vmem>>, vector<25x256xbf16>
    %cst = arith.constant dense<0.000000e+00> : vector<16x256xf32>
    %2 = tpu.matmul %0, %1, %cst {dimension_numbers = #tpu.dot_dimension_numbers<[1], [0], [0], [1], [0, 0, 1, 1], [], []>} : vector<16x25xbf16>, vector<25x256xbf16>, vector<16x256xf32> -> vector<16x256xf32>
    %c0_3 = arith.constant 0 : index
    %c0_4 = arith.constant 0 : index
    %3 = vector.load %arg3[%c0_3, %c0_4] : memref<16x1xf32, #tpu.memory_space<vmem>>, vector<16x1xf32>
    %4 = vector.broadcast %3 : vector<16x1xf32> to vector<16x256xf32>
    %5 = arith.mulf %2, %4 : vector<16x256xf32>
    %c0_5 = arith.constant 0 : index
    %c0_6 = arith.constant 0 : index
    %6 = vector.load %arg4[%c0_5, %c0_6] : memref<16x1xf32, #tpu.memory_space<vmem>>, vector<16x1xf32>
    %7 = vector.broadcast %6 : vector<16x1xf32> to vector<16x256xf32>
    %8 = arith.addf %5, %7 : vector<16x256xf32>
    %cst_7 = arith.constant 0.000000e+00 : f32
    %9 = vector.broadcast %cst_7 : f32 to vector<16x256xf32>
    %10 = arith.maximumf %8, %9 : vector<16x256xf32>
    %11 = arith.truncf %10 : vector<16x256xf32> to vector<16x256xbf16>
    %c0_8 = arith.constant 0 : index
    %c0_9 = arith.constant 0 : index
    %12 = vector.load %arg5[%c0_8, %c0_9] : memref<16x256xbf16, #tpu.memory_space<vmem>>, vector<16x256xbf16>
    tpu.vector_store %arg5[%c0_8, %c0_9], %11 {strides = array<i32>} : memref<16x256xbf16, #tpu.memory_space<vmem>>, vector<16x256xbf16>,
    return
  }
  func.func @transform_0(%arg0: i32) -> (i32, i32) {
    %c0_i32 = arith.constant 0 : i32
    %c0_i32_0 = arith.constant 0 : i32
    %c0_i32_1 = arith.constant 0 : i32
    return %c0_i32, %c0_i32_0 : i32, i32
  }
  func.func @transform_1(%arg0: i32) -> (i32, i32) {
    %c0_i32 = arith.constant 0 : i32
    %c0_i32_0 = arith.constant 0 : i32
    return %c0_i32, %arg0 : i32, i32
  }
  func.func @transform_2(%arg0: i32) -> (i32, i32) {
    %c0_i32 = arith.constant 0 : i32
    %c0_i32_0 = arith.constant 0 : i32
    %c0_i32_1 = arith.constant 0 : i32
    return %c0_i32, %c0_i32_0 : i32, i32
  }
  func.func @transform_3(%arg0: i32) -> (i32, i32) {
    %c0_i32 = arith.constant 0 : i32
    %c0_i32_0 = arith.constant 0 : i32
    %c0_i32_1 = arith.constant 0 : i32
    return %c0_i32, %c0_i32_0 : i32, i32
  }
  func.func @transform_4(%arg0: i32) -> (i32, i32) {
    %c0_i32 = arith.constant 0 : i32
    %c0_i32_0 = arith.constant 0 : i32
    return %c0_i32, %arg0 : i32, i32
  }
}

module attributes {stable_mosaic.version = 11 : i64} {
  func.func @_conv_bn_relu_kernel(%arg0: i32, %arg1: memref<32x400xbf16, #tpu.memory_space<vmem>>, %arg2: memref<400x256xbf16, #tpu.memory_space<vmem>>, %arg3: memref<32x1xf32, #tpu.memory_space<vmem>>, %arg4: memref<32x1xf32, #tpu.memory_space<vmem>>, %arg5: memref<32x256xbf16, #tpu.memory_space<vmem>>) attributes {dimension_semantics = [#tpu.dimension_semantics<parallel>], iteration_bounds = array<i64: 7>, scalar_prefetch = 0 : i64, scratch_operands = 0 : i64, tpu.core_type = #tpu.core_type<tc>, window_params = [{pipeline_mode = #tpu.pipeline_mode<synchronous>, transform_indices = @transform_0, window_bounds = array<i64: 32, 400>}, {transform_indices = @transform_1, window_bounds = array<i64: 400, 256>}, {pipeline_mode = #tpu.pipeline_mode<synchronous>, transform_indices = @transform_2, window_bounds = array<i64: 32, 1>}, {pipeline_mode = #tpu.pipeline_mode<synchronous>, transform_indices = @transform_3, window_bounds = array<i64: 32, 1>}, {transform_indices = @transform_4, window_bounds = array<i64: 32, 256>}]} {
    %c0 = arith.constant 0 : index
    %c0_0 = arith.constant 0 : index
    %0 = vector.load %arg1[%c0, %c0_0] : memref<32x400xbf16, #tpu.memory_space<vmem>>, vector<32x400xbf16>
    %c0_1 = arith.constant 0 : index
    %c0_2 = arith.constant 0 : index
    %1 = vector.load %arg2[%c0_1, %c0_2] : memref<400x256xbf16, #tpu.memory_space<vmem>>, vector<400x256xbf16>
    %cst = arith.constant dense<0.000000e+00> : vector<32x256xf32>
    %2 = tpu.matmul %0, %1, %cst {dimension_numbers = #tpu.dot_dimension_numbers<[1], [0], [0], [1], [0, 0, 1, 1], [], []>} : vector<32x400xbf16>, vector<400x256xbf16>, vector<32x256xf32> -> vector<32x256xf32>
    %c0_3 = arith.constant 0 : index
    %c0_4 = arith.constant 0 : index
    %3 = vector.load %arg3[%c0_3, %c0_4] : memref<32x1xf32, #tpu.memory_space<vmem>>, vector<32x1xf32>
    %4 = vector.broadcast %3 : vector<32x1xf32> to vector<32x256xf32>
    %5 = arith.mulf %2, %4 : vector<32x256xf32>
    %c0_5 = arith.constant 0 : index
    %c0_6 = arith.constant 0 : index
    %6 = vector.load %arg4[%c0_5, %c0_6] : memref<32x1xf32, #tpu.memory_space<vmem>>, vector<32x1xf32>
    %7 = vector.broadcast %6 : vector<32x1xf32> to vector<32x256xf32>
    %8 = arith.addf %5, %7 : vector<32x256xf32>
    %cst_7 = arith.constant 0.000000e+00 : f32
    %9 = vector.broadcast %cst_7 : f32 to vector<32x256xf32>
    %10 = arith.maximumf %8, %9 : vector<32x256xf32>
    %11 = arith.truncf %10 : vector<32x256xf32> to vector<32x256xbf16>
    %c0_8 = arith.constant 0 : index
    %c0_9 = arith.constant 0 : index
    %12 = vector.load %arg5[%c0_8, %c0_9] : memref<32x256xbf16, #tpu.memory_space<vmem>>, vector<32x256xbf16>
    tpu.vector_store %arg5[%c0_8, %c0_9], %11 {strides = array<i32>} : memref<32x256xbf16, #tpu.memory_space<vmem>>, vector<32x256xbf16>,
    return
  }
  func.func @transform_0(%arg0: i32) -> (i32, i32) {
    %c0_i32 = arith.constant 0 : i32
    %c0_i32_0 = arith.constant 0 : i32
    %c0_i32_1 = arith.constant 0 : i32
    return %c0_i32, %c0_i32_0 : i32, i32
  }
  func.func @transform_1(%arg0: i32) -> (i32, i32) {
    %c0_i32 = arith.constant 0 : i32
    %c0_i32_0 = arith.constant 0 : i32
    return %c0_i32, %arg0 : i32, i32
  }
  func.func @transform_2(%arg0: i32) -> (i32, i32) {
    %c0_i32 = arith.constant 0 : i32
    %c0_i32_0 = arith.constant 0 : i32
    %c0_i32_1 = arith.constant 0 : i32
    return %c0_i32, %c0_i32_0 : i32, i32
  }
  func.func @transform_3(%arg0: i32) -> (i32, i32) {
    %c0_i32 = arith.constant 0 : i32
    %c0_i32_0 = arith.constant 0 : i32
    %c0_i32_1 = arith.constant 0 : i32
    return %c0_i32, %c0_i32_0 : i32, i32
  }
  func.func @transform_4(%arg0: i32) -> (i32, i32) {
    %c0_i32 = arith.constant 0 : i32
    %c0_i32_0 = arith.constant 0 : i32
    return %c0_i32, %arg0 : i32, i32
  }
}

module attributes {stable_mosaic.version = 11 : i64} {
  func.func @_conv_bn_relu_kernel(%arg0: i32, %arg1: memref<64x288xbf16, #tpu.memory_space<vmem>>, %arg2: memref<288x256xbf16, #tpu.memory_space<vmem>>, %arg3: memref<64x1xf32, #tpu.memory_space<vmem>>, %arg4: memref<64x1xf32, #tpu.memory_space<vmem>>, %arg5: memref<64x256xbf16, #tpu.memory_space<vmem>>) attributes {dimension_semantics = [#tpu.dimension_semantics<parallel>], iteration_bounds = array<i64: 2>, scalar_prefetch = 0 : i64, scratch_operands = 0 : i64, tpu.core_type = #tpu.core_type<tc>, window_params = [{pipeline_mode = #tpu.pipeline_mode<synchronous>, transform_indices = @transform_0, window_bounds = array<i64: 64, 288>}, {transform_indices = @transform_1, window_bounds = array<i64: 288, 256>}, {pipeline_mode = #tpu.pipeline_mode<synchronous>, transform_indices = @transform_2, window_bounds = array<i64: 64, 1>}, {pipeline_mode = #tpu.pipeline_mode<synchronous>, transform_indices = @transform_3, window_bounds = array<i64: 64, 1>}, {transform_indices = @transform_4, window_bounds = array<i64: 64, 256>}]} {
    %c0 = arith.constant 0 : index
    %c0_0 = arith.constant 0 : index
    %0 = vector.load %arg1[%c0, %c0_0] : memref<64x288xbf16, #tpu.memory_space<vmem>>, vector<64x288xbf16>
    %c0_1 = arith.constant 0 : index
    %c0_2 = arith.constant 0 : index
    %1 = vector.load %arg2[%c0_1, %c0_2] : memref<288x256xbf16, #tpu.memory_space<vmem>>, vector<288x256xbf16>
    %cst = arith.constant dense<0.000000e+00> : vector<64x256xf32>
    %2 = tpu.matmul %0, %1, %cst {dimension_numbers = #tpu.dot_dimension_numbers<[1], [0], [0], [1], [0, 0, 1, 1], [], []>} : vector<64x288xbf16>, vector<288x256xbf16>, vector<64x256xf32> -> vector<64x256xf32>
    %c0_3 = arith.constant 0 : index
    %c0_4 = arith.constant 0 : index
    %3 = vector.load %arg3[%c0_3, %c0_4] : memref<64x1xf32, #tpu.memory_space<vmem>>, vector<64x1xf32>
    %4 = vector.broadcast %3 : vector<64x1xf32> to vector<64x256xf32>
    %5 = arith.mulf %2, %4 : vector<64x256xf32>
    %c0_5 = arith.constant 0 : index
    %c0_6 = arith.constant 0 : index
    %6 = vector.load %arg4[%c0_5, %c0_6] : memref<64x1xf32, #tpu.memory_space<vmem>>, vector<64x1xf32>
    %7 = vector.broadcast %6 : vector<64x1xf32> to vector<64x256xf32>
    %8 = arith.addf %5, %7 : vector<64x256xf32>
    %cst_7 = arith.constant 0.000000e+00 : f32
    %9 = vector.broadcast %cst_7 : f32 to vector<64x256xf32>
    %10 = arith.maximumf %8, %9 : vector<64x256xf32>
    %11 = arith.truncf %10 : vector<64x256xf32> to vector<64x256xbf16>
    %c0_8 = arith.constant 0 : index
    %c0_9 = arith.constant 0 : index
    %12 = vector.load %arg5[%c0_8, %c0_9] : memref<64x256xbf16, #tpu.memory_space<vmem>>, vector<64x256xbf16>
    tpu.vector_store %arg5[%c0_8, %c0_9], %11 {strides = array<i32>} : memref<64x256xbf16, #tpu.memory_space<vmem>>, vector<64x256xbf16>,
    return
  }
  func.func @transform_0(%arg0: i32) -> (i32, i32) {
    %c0_i32 = arith.constant 0 : i32
    %c0_i32_0 = arith.constant 0 : i32
    %c0_i32_1 = arith.constant 0 : i32
    return %c0_i32, %c0_i32_0 : i32, i32
  }
  func.func @transform_1(%arg0: i32) -> (i32, i32) {
    %c0_i32 = arith.constant 0 : i32
    %c0_i32_0 = arith.constant 0 : i32
    return %c0_i32, %arg0 : i32, i32
  }
  func.func @transform_2(%arg0: i32) -> (i32, i32) {
    %c0_i32 = arith.constant 0 : i32
    %c0_i32_0 = arith.constant 0 : i32
    %c0_i32_1 = arith.constant 0 : i32
    return %c0_i32, %c0_i32_0 : i32, i32
  }
  func.func @transform_3(%arg0: i32) -> (i32, i32) {
    %c0_i32 = arith.constant 0 : i32
    %c0_i32_0 = arith.constant 0 : i32
    %c0_i32_1 = arith.constant 0 : i32
    return %c0_i32, %c0_i32_0 : i32, i32
  }
  func.func @transform_4(%arg0: i32) -> (i32, i32) {
    %c0_i32 = arith.constant 0 : i32
    %c0_i32_0 = arith.constant 0 : i32
    return %c0_i32, %arg0 : i32, i32
  }
}

module attributes {stable_mosaic.version = 11 : i64} {
  func.func @_conv_bn_relu_kernel(%arg0: i32, %arg1: memref<128x576xbf16, #tpu.memory_space<vmem>>, %arg2: memref<576x256xbf16, #tpu.memory_space<vmem>>, %arg3: memref<128x1xf32, #tpu.memory_space<vmem>>, %arg4: memref<128x1xf32, #tpu.memory_space<vmem>>, %arg5: memref<128x256xbf16, #tpu.memory_space<vmem>>) attributes {dimension_semantics = [#tpu.dimension_semantics<parallel>], iteration_bounds = array<i64: 2>, scalar_prefetch = 0 : i64, scratch_operands = 0 : i64, tpu.core_type = #tpu.core_type<tc>, window_params = [{pipeline_mode = #tpu.pipeline_mode<synchronous>, transform_indices = @transform_0, window_bounds = array<i64: 128, 576>}, {transform_indices = @transform_1, window_bounds = array<i64: 576, 256>}, {pipeline_mode = #tpu.pipeline_mode<synchronous>, transform_indices = @transform_2, window_bounds = array<i64: 128, 1>}, {pipeline_mode = #tpu.pipeline_mode<synchronous>, transform_indices = @transform_3, window_bounds = array<i64: 128, 1>}, {transform_indices = @transform_4, window_bounds = array<i64: 128, 256>}]} {
    %c0 = arith.constant 0 : index
    %c0_0 = arith.constant 0 : index
    %0 = vector.load %arg1[%c0, %c0_0] : memref<128x576xbf16, #tpu.memory_space<vmem>>, vector<128x576xbf16>
    %c0_1 = arith.constant 0 : index
    %c0_2 = arith.constant 0 : index
    %1 = vector.load %arg2[%c0_1, %c0_2] : memref<576x256xbf16, #tpu.memory_space<vmem>>, vector<576x256xbf16>
    %cst = arith.constant dense<0.000000e+00> : vector<128x256xf32>
    %2 = tpu.matmul %0, %1, %cst {dimension_numbers = #tpu.dot_dimension_numbers<[1], [0], [0], [1], [0, 0, 1, 1], [], []>} : vector<128x576xbf16>, vector<576x256xbf16>, vector<128x256xf32> -> vector<128x256xf32>
    %c0_3 = arith.constant 0 : index
    %c0_4 = arith.constant 0 : index
    %3 = vector.load %arg3[%c0_3, %c0_4] : memref<128x1xf32, #tpu.memory_space<vmem>>, vector<128x1xf32>
    %4 = vector.broadcast %3 : vector<128x1xf32> to vector<128x256xf32>
    %5 = arith.mulf %2, %4 : vector<128x256xf32>
    %c0_5 = arith.constant 0 : index
    %c0_6 = arith.constant 0 : index
    %6 = vector.load %arg4[%c0_5, %c0_6] : memref<128x1xf32, #tpu.memory_space<vmem>>, vector<128x1xf32>
    %7 = vector.broadcast %6 : vector<128x1xf32> to vector<128x256xf32>
    %8 = arith.addf %5, %7 : vector<128x256xf32>
    %cst_7 = arith.constant 0.000000e+00 : f32
    %9 = vector.broadcast %cst_7 : f32 to vector<128x256xf32>
    %10 = arith.maximumf %8, %9 : vector<128x256xf32>
    %11 = arith.truncf %10 : vector<128x256xf32> to vector<128x256xbf16>
    %c0_8 = arith.constant 0 : index
    %c0_9 = arith.constant 0 : index
    %12 = vector.load %arg5[%c0_8, %c0_9] : memref<128x256xbf16, #tpu.memory_space<vmem>>, vector<128x256xbf16>
    tpu.vector_store %arg5[%c0_8, %c0_9], %11 {strides = array<i32>} : memref<128x256xbf16, #tpu.memory_space<vmem>>, vector<128x256xbf16>,
    return
  }
  func.func @transform_0(%arg0: i32) -> (i32, i32) {
    %c0_i32 = arith.constant 0 : i32
    %c0_i32_0 = arith.constant 0 : i32
    %c0_i32_1 = arith.constant 0 : i32
    return %c0_i32, %c0_i32_0 : i32, i32
  }
  func.func @transform_1(%arg0: i32) -> (i32, i32) {
    %c0_i32 = arith.constant 0 : i32
    %c0_i32_0 = arith.constant 0 : i32
    return %c0_i32, %arg0 : i32, i32
  }
  func.func @transform_2(%arg0: i32) -> (i32, i32) {
    %c0_i32 = arith.constant 0 : i32
    %c0_i32_0 = arith.constant 0 : i32
    %c0_i32_1 = arith.constant 0 : i32
    return %c0_i32, %c0_i32_0 : i32, i32
  }
  func.func @transform_3(%arg0: i32) -> (i32, i32) {
    %c0_i32 = arith.constant 0 : i32
    %c0_i32_0 = arith.constant 0 : i32
    %c0_i32_1 = arith.constant 0 : i32
    return %c0_i32, %c0_i32_0 : i32, i32
  }
  func.func @transform_4(%arg0: i32) -> (i32, i32) {
    %c0_i32 = arith.constant 0 : i32
    %c0_i32_0 = arith.constant 0 : i32
    return %c0_i32, %arg0 : i32, i32
  }
}

module attributes {stable_mosaic.version = 11 : i64} {
  func.func @_fc_bn_relu_kernel(%arg0: i32, %arg1: i32, %arg2: memref<2x640xbf16, #tpu.memory_space<vmem>>, %arg3: memref<640x512xbf16, #tpu.memory_space<vmem>>, %arg4: memref<1x512xf32, #tpu.memory_space<vmem>>, %arg5: memref<1x512xf32, #tpu.memory_space<vmem>>, %arg6: memref<2x512xbf16, #tpu.memory_space<vmem>>, %arg7: memref<2x512xf32, #tpu.memory_space<vmem>>) attributes {dimension_semantics = [#tpu.dimension_semantics<parallel>, #tpu.dimension_semantics<arbitrary>], iteration_bounds = array<i64: 4, 5>, scalar_prefetch = 0 : i64, scratch_operands = 1 : i64, tpu.core_type = #tpu.core_type<tc>, window_params = [{transform_indices = @transform_0, window_bounds = array<i64: 2, 640>}, {transform_indices = @transform_1, window_bounds = array<i64: 640, 512>}, {transform_indices = @transform_2, window_bounds = array<i64: 1, 512>}, {transform_indices = @transform_3, window_bounds = array<i64: 1, 512>}, {transform_indices = @transform_4, window_bounds = array<i64: 2, 512>}]} {
    %c0_i32 = arith.constant 0 : i32
    %0 = arith.cmpi eq, %arg1, %c0_i32 : i32
    %1 = arith.extui %0 : i1 to i32
    %c0_i32_0 = arith.constant 0 : i32
    %2 = arith.cmpi ne, %1, %c0_i32_0 : i32
    scf.if %2 {
      %cst_9 = arith.constant 0.000000e+00 : f32
      %12 = vector.broadcast %cst_9 : f32 to vector<2x512xf32>
      %c0_10 = arith.constant 0 : index
      %c0_11 = arith.constant 0 : index
      %13 = vector.load %arg7[%c0_10, %c0_11] : memref<2x512xf32, #tpu.memory_space<vmem>>, vector<2x512xf32>
      tpu.vector_store %arg7[%c0_10, %c0_11], %12 {strides = array<i32>} : memref<2x512xf32, #tpu.memory_space<vmem>>, vector<2x512xf32>,
    } else {
    }
    %c0 = arith.constant 0 : index
    %c0_1 = arith.constant 0 : index
    %3 = vector.load %arg7[%c0, %c0_1] : memref<2x512xf32, #tpu.memory_space<vmem>>, vector<2x512xf32>
    %c0_2 = arith.constant 0 : index
    %c0_3 = arith.constant 0 : index
    %4 = vector.load %arg2[%c0_2, %c0_3] : memref<2x640xbf16, #tpu.memory_space<vmem>>, vector<2x640xbf16>
    %c0_4 = arith.constant 0 : index
    %c0_5 = arith.constant 0 : index
    %5 = vector.load %arg3[%c0_4, %c0_5] : memref<640x512xbf16, #tpu.memory_space<vmem>>, vector<640x512xbf16>
    %cst = arith.constant dense<0.000000e+00> : vector<2x512xf32>
    %6 = tpu.matmul %4, %5, %cst {dimension_numbers = #tpu.dot_dimension_numbers<[1], [0], [0], [1], [0, 0, 1, 1], [], []>} : vector<2x640xbf16>, vector<640x512xbf16>, vector<2x512xf32> -> vector<2x512xf32>
    %7 = arith.addf %3, %6 : vector<2x512xf32>
    %c0_6 = arith.constant 0 : index
    %c0_7 = arith.constant 0 : index
    %8 = vector.load %arg7[%c0_6, %c0_7] : memref<2x512xf32, #tpu.memory_space<vmem>>, vector<2x512xf32>
    tpu.vector_store %arg7[%c0_6, %c0_7], %7 {strides = array<i32>} : memref<2x512xf32, #tpu.memory_space<vmem>>, vector<2x512xf32>,
    %c4_i32 = arith.constant 4 : i32
    %9 = arith.cmpi eq, %arg1, %c4_i32 : i32
    %10 = arith.extui %9 : i1 to i32
    %c0_i32_8 = arith.constant 0 : i32
    %11 = arith.cmpi ne, %10, %c0_i32_8 : i32
    scf.if %11 {
      %c0_9 = arith.constant 0 : index
      %c0_10 = arith.constant 0 : index
      %12 = vector.load %arg7[%c0_9, %c0_10] : memref<2x512xf32, #tpu.memory_space<vmem>>, vector<2x512xf32>
      %c0_11 = arith.constant 0 : index
      %c0_12 = arith.constant 0 : index
      %13 = vector.load %arg4[%c0_11, %c0_12] : memref<1x512xf32, #tpu.memory_space<vmem>>, vector<1x512xf32>
      %14 = vector.broadcast %13 : vector<1x512xf32> to vector<2x512xf32>
      %15 = arith.mulf %12, %14 : vector<2x512xf32>
      %c0_13 = arith.constant 0 : index
      %c0_14 = arith.constant 0 : index
      %16 = vector.load %arg5[%c0_13, %c0_14] : memref<1x512xf32, #tpu.memory_space<vmem>>, vector<1x512xf32>
      %17 = vector.broadcast %16 : vector<1x512xf32> to vector<2x512xf32>
      %18 = arith.addf %15, %17 : vector<2x512xf32>
      %cst_15 = arith.constant 0.000000e+00 : f32
      %19 = vector.broadcast %cst_15 : f32 to vector<2x512xf32>
      %20 = arith.maximumf %18, %19 : vector<2x512xf32>
      %21 = arith.truncf %20 : vector<2x512xf32> to vector<2x512xbf16>
      %c0_16 = arith.constant 0 : index
      %c0_17 = arith.constant 0 : index
      %22 = vector.load %arg6[%c0_16, %c0_17] : memref<2x512xbf16, #tpu.memory_space<vmem>>, vector<2x512xbf16>
      tpu.vector_store %arg6[%c0_16, %c0_17], %21 {strides = array<i32>} : memref<2x512xbf16, #tpu.memory_space<vmem>>, vector<2x512xbf16>,
    } else {
    }
    return
  }
  func.func @transform_0(%arg0: i32, %arg1: i32) -> (i32, i32) {
    %c0_i32 = arith.constant 0 : i32
    %c0_i32_0 = arith.constant 0 : i32
    return %c0_i32, %arg1 : i32, i32
  }
  func.func @transform_1(%arg0: i32, %arg1: i32) -> (i32, i32) {
    %c0_i32 = arith.constant 0 : i32
    return %arg1, %arg0 : i32, i32
  }
  func.func @transform_2(%arg0: i32, %arg1: i32) -> (i32, i32) {
    %c0_i32 = arith.constant 0 : i32
    %c0_i32_0 = arith.constant 0 : i32
    return %c0_i32, %arg0 : i32, i32
  }
  func.func @transform_3(%arg0: i32, %arg1: i32) -> (i32, i32) {
    %c0_i32 = arith.constant 0 : i32
    %c0_i32_0 = arith.constant 0 : i32
    return %c0_i32, %arg0 : i32, i32
  }
  func.func @transform_4(%arg0: i32, %arg1: i32) -> (i32, i32) {
    %c0_i32 = arith.constant 0 : i32
    %c0_i32_0 = arith.constant 0 : i32
    return %c0_i32, %arg0 : i32, i32
  }
}

module attributes {stable_mosaic.version = 11 : i64} {
  func.func @_head_tail_kernel(%arg0: i32, %arg1: memref<2x2048xbf16, #tpu.memory_space<vmem>>, %arg2: memref<2048x128xbf16, #tpu.memory_space<vmem>>, %arg3: memref<1x128xf32, #tpu.memory_space<vmem>>, %arg4: memref<1x128xf32, #tpu.memory_space<vmem>>, %arg5: memref<128x2xbf16, #tpu.memory_space<vmem>>, %arg6: memref<1x2xf32, #tpu.memory_space<vmem>>, %arg7: memref<2x2xf32, #tpu.memory_space<vmem>>) attributes {dimension_semantics = [#tpu.dimension_semantics<arbitrary>], iteration_bounds = array<i64: 1>, scalar_prefetch = 0 : i64, scratch_operands = 0 : i64, tpu.core_type = #tpu.core_type<tc>, window_params = [{pipeline_mode = #tpu.pipeline_mode<synchronous>, transform_indices = @transform_0, window_bounds = array<i64: 2, 2048>}, {pipeline_mode = #tpu.pipeline_mode<synchronous>, transform_indices = @transform_1, window_bounds = array<i64: 2048, 128>}, {pipeline_mode = #tpu.pipeline_mode<synchronous>, transform_indices = @transform_2, window_bounds = array<i64: 1, 128>}, {pipeline_mode = #tpu.pipeline_mode<synchronous>, transform_indices = @transform_3, window_bounds = array<i64: 1, 128>}, {pipeline_mode = #tpu.pipeline_mode<synchronous>, transform_indices = @transform_4, window_bounds = array<i64: 128, 2>}, {pipeline_mode = #tpu.pipeline_mode<synchronous>, transform_indices = @transform_5, window_bounds = array<i64: 1, 2>}, {pipeline_mode = #tpu.pipeline_mode<synchronous>, transform_indices = @transform_6, window_bounds = array<i64: 2, 2>}]} {
    %c0 = arith.constant 0 : index
    %c0_0 = arith.constant 0 : index
    %0 = vector.load %arg1[%c0, %c0_0] : memref<2x2048xbf16, #tpu.memory_space<vmem>>, vector<2x2048xbf16>
    %c0_1 = arith.constant 0 : index
    %c0_2 = arith.constant 0 : index
    %1 = vector.load %arg2[%c0_1, %c0_2] : memref<2048x128xbf16, #tpu.memory_space<vmem>>, vector<2048x128xbf16>
    %cst = arith.constant dense<0.000000e+00> : vector<2x128xf32>
    %2 = tpu.matmul %0, %1, %cst {dimension_numbers = #tpu.dot_dimension_numbers<[1], [0], [0], [1], [0, 0, 1, 1], [], []>} : vector<2x2048xbf16>, vector<2048x128xbf16>, vector<2x128xf32> -> vector<2x128xf32>
    %c0_3 = arith.constant 0 : index
    %c0_4 = arith.constant 0 : index
    %3 = vector.load %arg3[%c0_3, %c0_4] : memref<1x128xf32, #tpu.memory_space<vmem>>, vector<1x128xf32>
    %4 = vector.broadcast %3 : vector<1x128xf32> to vector<2x128xf32>
    %5 = arith.mulf %2, %4 : vector<2x128xf32>
    %c0_5 = arith.constant 0 : index
    %c0_6 = arith.constant 0 : index
    %6 = vector.load %arg4[%c0_5, %c0_6] : memref<1x128xf32, #tpu.memory_space<vmem>>, vector<1x128xf32>
    %7 = vector.broadcast %6 : vector<1x128xf32> to vector<2x128xf32>
    %8 = arith.addf %5, %7 : vector<2x128xf32>
    %cst_7 = arith.constant 0.000000e+00 : f32
    %9 = vector.broadcast %cst_7 : f32 to vector<2x128xf32>
    %10 = arith.maximumf %8, %9 : vector<2x128xf32>
    %11 = arith.truncf %10 : vector<2x128xf32> to vector<2x128xbf16>
    %c0_8 = arith.constant 0 : index
    %c0_9 = arith.constant 0 : index
    %12 = vector.load %arg5[%c0_8, %c0_9] : memref<128x2xbf16, #tpu.memory_space<vmem>>, vector<128x2xbf16>
    %cst_10 = arith.constant dense<0.000000e+00> : vector<2x2xf32>
    %13 = tpu.matmul %11, %12, %cst_10 {dimension_numbers = #tpu.dot_dimension_numbers<[1], [0], [0], [1], [0, 0, 1, 1], [], []>} : vector<2x128xbf16>, vector<128x2xbf16>, vector<2x2xf32> -> vector<2x2xf32>
    %c0_11 = arith.constant 0 : index
    %c0_12 = arith.constant 0 : index
    %14 = vector.load %arg6[%c0_11, %c0_12] : memref<1x2xf32, #tpu.memory_space<vmem>>, vector<1x2xf32>
    %15 = vector.broadcast %14 : vector<1x2xf32> to vector<2x2xf32>
    %16 = arith.addf %13, %15 : vector<2x2xf32>
    %cst_13 = arith.constant dense<0xFF800000> : vector<2xf32>
    %17 = vector.multi_reduction <maximumf>, %16, %cst_13 [1] : vector<2x2xf32> to vector<2xf32>
    %18 = vector.shape_cast %17 : vector<2xf32> to vector<2x1xf32>
    %19 = vector.broadcast %18 : vector<2x1xf32> to vector<2x2xf32>
    %20 = arith.subf %16, %19 : vector<2x2xf32>
    %21 = math.exp %20 : vector<2x2xf32>
    %cst_14 = arith.constant dense<0.000000e+00> : vector<2xf32>
    %22 = vector.multi_reduction <add>, %21, %cst_14 [1] : vector<2x2xf32> to vector<2xf32>
    %23 = vector.shape_cast %22 : vector<2xf32> to vector<2x1xf32>
    %24 = math.log %23 : vector<2x1xf32>
    %25 = vector.broadcast %24 : vector<2x1xf32> to vector<2x2xf32>
    %26 = arith.subf %20, %25 : vector<2x2xf32>
    %c0_15 = arith.constant 0 : index
    %c0_16 = arith.constant 0 : index
    %27 = vector.load %arg7[%c0_15, %c0_16] : memref<2x2xf32, #tpu.memory_space<vmem>>, vector<2x2xf32>
    tpu.vector_store %arg7[%c0_15, %c0_16], %26 {strides = array<i32>} : memref<2x2xf32, #tpu.memory_space<vmem>>, vector<2x2xf32>,
    return
  }
  func.func @transform_0(%arg0: i32) -> (i32, i32) {
    %c0_i32 = arith.constant 0 : i32
    %c0_i32_0 = arith.constant 0 : i32
    %c0_i32_1 = arith.constant 0 : i32
    return %c0_i32, %c0_i32_0 : i32, i32
  }
  func.func @transform_1(%arg0: i32) -> (i32, i32) {
    %c0_i32 = arith.constant 0 : i32
    %c0_i32_0 = arith.constant 0 : i32
    %c0_i32_1 = arith.constant 0 : i32
    return %c0_i32, %c0_i32_0 : i32, i32
  }
  func.func @transform_2(%arg0: i32) -> (i32, i32) {
    %c0_i32 = arith.constant 0 : i32
    %c0_i32_0 = arith.constant 0 : i32
    %c0_i32_1 = arith.constant 0 : i32
    return %c0_i32, %c0_i32_0 : i32, i32
  }
  func.func @transform_3(%arg0: i32) -> (i32, i32) {
    %c0_i32 = arith.constant 0 : i32
    %c0_i32_0 = arith.constant 0 : i32
    %c0_i32_1 = arith.constant 0 : i32
    return %c0_i32, %c0_i32_0 : i32, i32
  }
  func.func @transform_4(%arg0: i32) -> (i32, i32) {
    %c0_i32 = arith.constant 0 : i32
    %c0_i32_0 = arith.constant 0 : i32
    %c0_i32_1 = arith.constant 0 : i32
    return %c0_i32, %c0_i32_0 : i32, i32
  }
  func.func @transform_5(%arg0: i32) -> (i32, i32) {
    %c0_i32 = arith.constant 0 : i32
    %c0_i32_0 = arith.constant 0 : i32
    %c0_i32_1 = arith.constant 0 : i32
    return %c0_i32, %c0_i32_0 : i32, i32
  }
  func.func @transform_6(%arg0: i32) -> (i32, i32) {
    %c0_i32 = arith.constant 0 : i32
    %c0_i32_0 = arith.constant 0 : i32
    %c0_i32_1 = arith.constant 0 : i32
    return %c0_i32, %c0_i32_0 : i32, i32
  }
}

module attributes {stable_mosaic.version = 11 : i64} {
  func.func @_fc_bn_relu_kernel(%arg0: i32, %arg1: i32, %arg2: memref<2x640xbf16, #tpu.memory_space<vmem>>, %arg3: memref<640x512xbf16, #tpu.memory_space<vmem>>, %arg4: memref<1x512xf32, #tpu.memory_space<vmem>>, %arg5: memref<1x512xf32, #tpu.memory_space<vmem>>, %arg6: memref<2x512xbf16, #tpu.memory_space<vmem>>, %arg7: memref<2x512xf32, #tpu.memory_space<vmem>>) attributes {dimension_semantics = [#tpu.dimension_semantics<parallel>, #tpu.dimension_semantics<arbitrary>], iteration_bounds = array<i64: 2, 5>, scalar_prefetch = 0 : i64, scratch_operands = 1 : i64, tpu.core_type = #tpu.core_type<tc>, window_params = [{transform_indices = @transform_0, window_bounds = array<i64: 2, 640>}, {transform_indices = @transform_1, window_bounds = array<i64: 640, 512>}, {transform_indices = @transform_2, window_bounds = array<i64: 1, 512>}, {transform_indices = @transform_3, window_bounds = array<i64: 1, 512>}, {transform_indices = @transform_4, window_bounds = array<i64: 2, 512>}]} {
    %c0_i32 = arith.constant 0 : i32
    %0 = arith.cmpi eq, %arg1, %c0_i32 : i32
    %1 = arith.extui %0 : i1 to i32
    %c0_i32_0 = arith.constant 0 : i32
    %2 = arith.cmpi ne, %1, %c0_i32_0 : i32
    scf.if %2 {
      %cst_9 = arith.constant 0.000000e+00 : f32
      %12 = vector.broadcast %cst_9 : f32 to vector<2x512xf32>
      %c0_10 = arith.constant 0 : index
      %c0_11 = arith.constant 0 : index
      %13 = vector.load %arg7[%c0_10, %c0_11] : memref<2x512xf32, #tpu.memory_space<vmem>>, vector<2x512xf32>
      tpu.vector_store %arg7[%c0_10, %c0_11], %12 {strides = array<i32>} : memref<2x512xf32, #tpu.memory_space<vmem>>, vector<2x512xf32>,
    } else {
    }
    %c0 = arith.constant 0 : index
    %c0_1 = arith.constant 0 : index
    %3 = vector.load %arg7[%c0, %c0_1] : memref<2x512xf32, #tpu.memory_space<vmem>>, vector<2x512xf32>
    %c0_2 = arith.constant 0 : index
    %c0_3 = arith.constant 0 : index
    %4 = vector.load %arg2[%c0_2, %c0_3] : memref<2x640xbf16, #tpu.memory_space<vmem>>, vector<2x640xbf16>
    %c0_4 = arith.constant 0 : index
    %c0_5 = arith.constant 0 : index
    %5 = vector.load %arg3[%c0_4, %c0_5] : memref<640x512xbf16, #tpu.memory_space<vmem>>, vector<640x512xbf16>
    %cst = arith.constant dense<0.000000e+00> : vector<2x512xf32>
    %6 = tpu.matmul %4, %5, %cst {dimension_numbers = #tpu.dot_dimension_numbers<[1], [0], [0], [1], [0, 0, 1, 1], [], []>} : vector<2x640xbf16>, vector<640x512xbf16>, vector<2x512xf32> -> vector<2x512xf32>
    %7 = arith.addf %3, %6 : vector<2x512xf32>
    %c0_6 = arith.constant 0 : index
    %c0_7 = arith.constant 0 : index
    %8 = vector.load %arg7[%c0_6, %c0_7] : memref<2x512xf32, #tpu.memory_space<vmem>>, vector<2x512xf32>
    tpu.vector_store %arg7[%c0_6, %c0_7], %7 {strides = array<i32>} : memref<2x512xf32, #tpu.memory_space<vmem>>, vector<2x512xf32>,
    %c4_i32 = arith.constant 4 : i32
    %9 = arith.cmpi eq, %arg1, %c4_i32 : i32
    %10 = arith.extui %9 : i1 to i32
    %c0_i32_8 = arith.constant 0 : i32
    %11 = arith.cmpi ne, %10, %c0_i32_8 : i32
    scf.if %11 {
      %c0_9 = arith.constant 0 : index
      %c0_10 = arith.constant 0 : index
      %12 = vector.load %arg7[%c0_9, %c0_10] : memref<2x512xf32, #tpu.memory_space<vmem>>, vector<2x512xf32>
      %c0_11 = arith.constant 0 : index
      %c0_12 = arith.constant 0 : index
      %13 = vector.load %arg4[%c0_11, %c0_12] : memref<1x512xf32, #tpu.memory_space<vmem>>, vector<1x512xf32>
      %14 = vector.broadcast %13 : vector<1x512xf32> to vector<2x512xf32>
      %15 = arith.mulf %12, %14 : vector<2x512xf32>
      %c0_13 = arith.constant 0 : index
      %c0_14 = arith.constant 0 : index
      %16 = vector.load %arg5[%c0_13, %c0_14] : memref<1x512xf32, #tpu.memory_space<vmem>>, vector<1x512xf32>
      %17 = vector.broadcast %16 : vector<1x512xf32> to vector<2x512xf32>
      %18 = arith.addf %15, %17 : vector<2x512xf32>
      %cst_15 = arith.constant 0.000000e+00 : f32
      %19 = vector.broadcast %cst_15 : f32 to vector<2x512xf32>
      %20 = arith.maximumf %18, %19 : vector<2x512xf32>
      %21 = arith.truncf %20 : vector<2x512xf32> to vector<2x512xbf16>
      %c0_16 = arith.constant 0 : index
      %c0_17 = arith.constant 0 : index
      %22 = vector.load %arg6[%c0_16, %c0_17] : memref<2x512xbf16, #tpu.memory_space<vmem>>, vector<2x512xbf16>
      tpu.vector_store %arg6[%c0_16, %c0_17], %21 {strides = array<i32>} : memref<2x512xbf16, #tpu.memory_space<vmem>>, vector<2x512xbf16>,
    } else {
    }
    return
  }
  func.func @transform_0(%arg0: i32, %arg1: i32) -> (i32, i32) {
    %c0_i32 = arith.constant 0 : i32
    %c0_i32_0 = arith.constant 0 : i32
    return %c0_i32, %arg1 : i32, i32
  }
  func.func @transform_1(%arg0: i32, %arg1: i32) -> (i32, i32) {
    %c0_i32 = arith.constant 0 : i32
    return %arg1, %arg0 : i32, i32
  }
  func.func @transform_2(%arg0: i32, %arg1: i32) -> (i32, i32) {
    %c0_i32 = arith.constant 0 : i32
    %c0_i32_0 = arith.constant 0 : i32
    return %c0_i32, %arg0 : i32, i32
  }
  func.func @transform_3(%arg0: i32, %arg1: i32) -> (i32, i32) {
    %c0_i32 = arith.constant 0 : i32
    %c0_i32_0 = arith.constant 0 : i32
    return %c0_i32, %arg0 : i32, i32
  }
  func.func @transform_4(%arg0: i32, %arg1: i32) -> (i32, i32) {
    %c0_i32 = arith.constant 0 : i32
    %c0_i32_0 = arith.constant 0 : i32
    return %c0_i32, %arg0 : i32, i32
  }
}

module attributes {stable_mosaic.version = 11 : i64} {
  func.func @_head_tail_kernel(%arg0: i32, %arg1: memref<2x1024xbf16, #tpu.memory_space<vmem>>, %arg2: memref<1024x128xbf16, #tpu.memory_space<vmem>>, %arg3: memref<1x128xf32, #tpu.memory_space<vmem>>, %arg4: memref<1x128xf32, #tpu.memory_space<vmem>>, %arg5: memref<128x2xbf16, #tpu.memory_space<vmem>>, %arg6: memref<1x2xf32, #tpu.memory_space<vmem>>, %arg7: memref<2x2xf32, #tpu.memory_space<vmem>>) attributes {dimension_semantics = [#tpu.dimension_semantics<arbitrary>], iteration_bounds = array<i64: 1>, scalar_prefetch = 0 : i64, scratch_operands = 0 : i64, tpu.core_type = #tpu.core_type<tc>, window_params = [{pipeline_mode = #tpu.pipeline_mode<synchronous>, transform_indices = @transform_0, window_bounds = array<i64: 2, 1024>}, {pipeline_mode = #tpu.pipeline_mode<synchronous>, transform_indices = @transform_1, window_bounds = array<i64: 1024, 128>}, {pipeline_mode = #tpu.pipeline_mode<synchronous>, transform_indices = @transform_2, window_bounds = array<i64: 1, 128>}, {pipeline_mode = #tpu.pipeline_mode<synchronous>, transform_indices = @transform_3, window_bounds = array<i64: 1, 128>}, {pipeline_mode = #tpu.pipeline_mode<synchronous>, transform_indices = @transform_4, window_bounds = array<i64: 128, 2>}, {pipeline_mode = #tpu.pipeline_mode<synchronous>, transform_indices = @transform_5, window_bounds = array<i64: 1, 2>}, {pipeline_mode = #tpu.pipeline_mode<synchronous>, transform_indices = @transform_6, window_bounds = array<i64: 2, 2>}]} {
    %c0 = arith.constant 0 : index
    %c0_0 = arith.constant 0 : index
    %0 = vector.load %arg1[%c0, %c0_0] : memref<2x1024xbf16, #tpu.memory_space<vmem>>, vector<2x1024xbf16>
    %c0_1 = arith.constant 0 : index
    %c0_2 = arith.constant 0 : index
    %1 = vector.load %arg2[%c0_1, %c0_2] : memref<1024x128xbf16, #tpu.memory_space<vmem>>, vector<1024x128xbf16>
    %cst = arith.constant dense<0.000000e+00> : vector<2x128xf32>
    %2 = tpu.matmul %0, %1, %cst {dimension_numbers = #tpu.dot_dimension_numbers<[1], [0], [0], [1], [0, 0, 1, 1], [], []>} : vector<2x1024xbf16>, vector<1024x128xbf16>, vector<2x128xf32> -> vector<2x128xf32>
    %c0_3 = arith.constant 0 : index
    %c0_4 = arith.constant 0 : index
    %3 = vector.load %arg3[%c0_3, %c0_4] : memref<1x128xf32, #tpu.memory_space<vmem>>, vector<1x128xf32>
    %4 = vector.broadcast %3 : vector<1x128xf32> to vector<2x128xf32>
    %5 = arith.mulf %2, %4 : vector<2x128xf32>
    %c0_5 = arith.constant 0 : index
    %c0_6 = arith.constant 0 : index
    %6 = vector.load %arg4[%c0_5, %c0_6] : memref<1x128xf32, #tpu.memory_space<vmem>>, vector<1x128xf32>
    %7 = vector.broadcast %6 : vector<1x128xf32> to vector<2x128xf32>
    %8 = arith.addf %5, %7 : vector<2x128xf32>
    %cst_7 = arith.constant 0.000000e+00 : f32
    %9 = vector.broadcast %cst_7 : f32 to vector<2x128xf32>
    %10 = arith.maximumf %8, %9 : vector<2x128xf32>
    %11 = arith.truncf %10 : vector<2x128xf32> to vector<2x128xbf16>
    %c0_8 = arith.constant 0 : index
    %c0_9 = arith.constant 0 : index
    %12 = vector.load %arg5[%c0_8, %c0_9] : memref<128x2xbf16, #tpu.memory_space<vmem>>, vector<128x2xbf16>
    %cst_10 = arith.constant dense<0.000000e+00> : vector<2x2xf32>
    %13 = tpu.matmul %11, %12, %cst_10 {dimension_numbers = #tpu.dot_dimension_numbers<[1], [0], [0], [1], [0, 0, 1, 1], [], []>} : vector<2x128xbf16>, vector<128x2xbf16>, vector<2x2xf32> -> vector<2x2xf32>
    %c0_11 = arith.constant 0 : index
    %c0_12 = arith.constant 0 : index
    %14 = vector.load %arg6[%c0_11, %c0_12] : memref<1x2xf32, #tpu.memory_space<vmem>>, vector<1x2xf32>
    %15 = vector.broadcast %14 : vector<1x2xf32> to vector<2x2xf32>
    %16 = arith.addf %13, %15 : vector<2x2xf32>
    %cst_13 = arith.constant dense<0xFF800000> : vector<2xf32>
    %17 = vector.multi_reduction <maximumf>, %16, %cst_13 [1] : vector<2x2xf32> to vector<2xf32>
    %18 = vector.shape_cast %17 : vector<2xf32> to vector<2x1xf32>
    %19 = vector.broadcast %18 : vector<2x1xf32> to vector<2x2xf32>
    %20 = arith.subf %16, %19 : vector<2x2xf32>
    %21 = math.exp %20 : vector<2x2xf32>
    %cst_14 = arith.constant dense<0.000000e+00> : vector<2xf32>
    %22 = vector.multi_reduction <add>, %21, %cst_14 [1] : vector<2x2xf32> to vector<2xf32>
    %23 = vector.shape_cast %22 : vector<2xf32> to vector<2x1xf32>
    %24 = math.log %23 : vector<2x1xf32>
    %25 = vector.broadcast %24 : vector<2x1xf32> to vector<2x2xf32>
    %26 = arith.subf %20, %25 : vector<2x2xf32>
    %c0_15 = arith.constant 0 : index
    %c0_16 = arith.constant 0 : index
    %27 = vector.load %arg7[%c0_15, %c0_16] : memref<2x2xf32, #tpu.memory_space<vmem>>, vector<2x2xf32>
    tpu.vector_store %arg7[%c0_15, %c0_16], %26 {strides = array<i32>} : memref<2x2xf32, #tpu.memory_space<vmem>>, vector<2x2xf32>,
    return
  }
  func.func @transform_0(%arg0: i32) -> (i32, i32) {
    %c0_i32 = arith.constant 0 : i32
    %c0_i32_0 = arith.constant 0 : i32
    %c0_i32_1 = arith.constant 0 : i32
    return %c0_i32, %c0_i32_0 : i32, i32
  }
  func.func @transform_1(%arg0: i32) -> (i32, i32) {
    %c0_i32 = arith.constant 0 : i32
    %c0_i32_0 = arith.constant 0 : i32
    %c0_i32_1 = arith.constant 0 : i32
    return %c0_i32, %c0_i32_0 : i32, i32
  }
  func.func @transform_2(%arg0: i32) -> (i32, i32) {
    %c0_i32 = arith.constant 0 : i32
    %c0_i32_0 = arith.constant 0 : i32
    %c0_i32_1 = arith.constant 0 : i32
    return %c0_i32, %c0_i32_0 : i32, i32
  }
  func.func @transform_3(%arg0: i32) -> (i32, i32) {
    %c0_i32 = arith.constant 0 : i32
    %c0_i32_0 = arith.constant 0 : i32
    %c0_i32_1 = arith.constant 0 : i32
    return %c0_i32, %c0_i32_0 : i32, i32
  }
  func.func @transform_4(%arg0: i32) -> (i32, i32) {
    %c0_i32 = arith.constant 0 : i32
    %c0_i32_0 = arith.constant 0 : i32
    %c0_i32_1 = arith.constant 0 : i32
    return %c0_i32, %c0_i32_0 : i32, i32
  }
  func.func @transform_5(%arg0: i32) -> (i32, i32) {
    %c0_i32 = arith.constant 0 : i32
    %c0_i32_0 = arith.constant 0 : i32
    %c0_i32_1 = arith.constant 0 : i32
    return %c0_i32, %c0_i32_0 : i32, i32
  }
  func.func @transform_6(%arg0: i32) -> (i32, i32) {
    %c0_i32 = arith.constant 0 : i32
    %c0_i32_0 = arith.constant 0 : i32
    %c0_i32_1 = arith.constant 0 : i32
    return %c0_i32, %c0_i32_0 : i32, i32
  }
}

</mosaic_0001>

<bundles_post_ra>
// kernel: dann_forward.8
= control target key start
LH: loop header
LB: loop body
LE: loop exit
PB: predicated region body
PF: predicated region fallthrough
CT: control target
= control target key end

     0   :  { %9 = vsyncpa [#allocation3], 0  ;;  %s670_s15 = smov 0   ;;  %s672_s16 = smov 0   ;;  %s787_s0 = inlined_call_operand.hbm [shape: bf16[16,25], index: 0, kind: input, shape index: {}]   ;;  %s788_s1 = inlined_call_operand.vmem [shape: bf16[25,2048], index: 1, kind: input, shape index: {}]   ;;  %s789_s2 = inlined_call_operand.vmem [shape: f32[16,1], index: 2, kind: input, shape index: {}]   ;;  %s790_s3 = inlined_call_operand.vmem [shape: f32[16,1], index: 3, kind: input, shape index: {}]   ;;  %s791_s4 = inlined_call_operand.vmem [shape: bf16[16,2048], index: 4, kind: output, shape index: {}]  }
   0x1   :  { %s674_s17 = smov 0  }
   0x2 LB: > { %s686_s18 = sadd.s32 4294967295, %s638_s17   ;;  %s689_s19 = sadd.s32 1, %s638_s17   ;;  %s638_s17 = sphi %s674_s17, %s805_s17   ;;  %s634_s16 = sphi %s672_s16, %s804_s16   ;;  %s630_s15 = sphi %s670_s15, %s803_s15  }
   0x3   : > { %s40_s20 = ssub.s32 %s638_s17, %s689_s19  ;;  %s43_s21 = sadd.s32 1, %s634_s16 }
   0x4   : > { %p41_p0 = scmp.eq.s32.totalorder %s40_s20, 0  ;;  %p50_p1 = scmp.ne.s32.totalorder %s634_s16, %s630_s15 }
   0x5   : > { %p51_p2 = scmp.eq.s32.totalorder %s638_s17, 0  ;;  %p122_p3 = scmp.eq.s32.totalorder %s686_s18, 7 }
   0x6   : > { %s699_s22 = scalar_select %p41_p0, %s634_s16, %s43_s21  }
   0x7   : > { %p701_p4 = por %p51_p2, %p50_p1  ;;  %p705_p5 = por %p122_p3, %p50_p1 }
   0x8   : > { %p509_p6 = scmp.ge.s32.totalorder %s638_s17, 1  ;;  %p135_p7 = scmp.lt.s32.totalorder %s638_s17, 9 }
   0x9   : > { %s794_s23 = scalar_select %p701_p4, 1, 0 }
   0xa   : > { %s795_s24 = scalar_select %p705_p5, 1, 0 }
   0xb   : > { %p792_p8 = scmp.eq.s32.totalorder %s686_s18, 0  ;;  %p712_p9 = pnand %p509_p6, %p135_p7 }
   0xc   : > { %s640_s26 = smov [#allocation2]   ;;  %s584_s5 = scalar_lea.hbm %s787_s0, 128 }
   0xd   : > { %s796_s25 = scalar_select %p712_p9, 1, 0 }
   0xe   : > { %s147_s27 = sshll.u32 %s640_s26, 4  ;;  %p540_p10 = pneg %p712_p9  ;;  %s148_s27 = int_to_ptr.vmem [resolvable:$true] %s147_s27 }
   0xf   : > { %p585_p12 = scmp.ne.s32.totalorder %s787_s0, %s584_s5  ;;  %p591_p2 = scmp.lt.u32.totalorder %s584_s5, %s787_s0 }
  0x10   : > { %p720_p11 = pnand %p792_p8, %p540_p10 }
  0x12   : > { %p586_p13 = pneg %p720_p11 }
  0x14   : > { %p587_p0 = pnand %p586_p13, %p585_p12 }
  0x16   : > { %p588_p1 = pneg %p587_p0 }
  0x18   : > { %p593_p3 = pnand %p591_p2, %p588_p1 }
  0x1a   : > { %596 = shalt.err (!%p593_p3)
}
  0x1b   : > { %s597_s10 = scalar_lea.vmem %s148_s27, 128  ;;  %p605_p8 = scmp.lt.s32.totalorder %s148_s27, %s148_s27 }
  0x1c   : > { %p598_p6 = scmp.ne.s32.totalorder %s148_s27, %s597_s10  ;;  %p606_p5 = scmp.lt.s32.totalorder %s597_s10, %s597_s10 }
  0x1e   : > { %p600_p7 = pnand %p598_p6, %p586_p13  ;;  %p607_p9 = por %p606_p5, %p605_p8 }
  0x20   : > { %p601_p10 = pneg %p600_p7 }
  0x22   : > { %p608_p4 = pnand %p607_p9, %p601_p10 }
  0x24   : > { %611 = shalt.err (!%p608_p4)
}
  0x25   : > { %s641_s11 = smov 64   ;;  %s642_s12 = smov 4  }
  0x26   : > { %543 = dma.hbm_to_vmem [thread:$0]  (!%p720_p11), %s787_s0, 128, %s148_s27, [#allocation3], %s641_s11, %s641_s11, %s642_s12  }
  0x27   : > { %p511_p12 = scmp.ge.s32.totalorder %s638_s17, 8 }
  0x28   : > { %p798_p0 = scmp.ne.s32.totalorder (!%p511_p12), %s794_s23, 0 }
  0x29   : > { %163 = sbr.rel (%p511_p12) target bundleno = 56 (0x38), region = 28 }
  0x30   : > { %166 = sbr.rel (!%p798_p0) target bundleno = 56 (0x38), region = 32  ;;  %s168_s20 = sand.u32 (%p798_p0), 1, %s634_s16  }
  0x31   : > { %s532_s21 = sshll.u32 (%p798_p0), %s638_s17, 3  ;;  %s512_s26 = sshll.u32 (%p798_p0), %s168_s20, 5 }
  0x32   : > { %s173_s5 = scalar_lea.vmem (%p798_p0), %s788_s1, %s532_s21  ;;  %s170_s28 = scalar_lea.vmem (%p798_p0), [#allocation4], %s512_s26 }
  0x33   : > { %v207_v0 = vld [vmem:[%s173_s5] sm:$0xff] (%p798_p0) }
  0x34   : > { %v209_v1 = vld [vmem:[%s173_s5 + $0x40] sm:$0xff] (%p798_p0)  ;;  %208 = vst [vmem:[%s170_s28] sm:$0xff] (%p798_p0), %v207_v0 }
  0x35   : > { %v211_v2 = vld [vmem:[%s173_s5 + $0x80] sm:$0xff] (%p798_p0)  ;;  %210 = vst [vmem:[%s170_s28 + $0x8] sm:$0xff] (%p798_p0), %v209_v1 }
  0x36   : > { %212 = vst [vmem:[%s170_s28 + $0x10] sm:$0xff] (%p798_p0), %v211_v2  ;;  %v213_v3 = vld [vmem:[%s173_s5 + $0xc0] sm:$0xff] (%p798_p0) }
  0x37   : > { %214 = vst [vmem:[%s170_s28 + $0x18] sm:$0xff] %v213_v3 }
  0x38 PF: > { %p799_p4 = scmp.ne.s32.totalorder %s796_s25, 0 }
  0x39   : > { %p800_p5 = scmp.eq.s32.totalorder (!%p799_p4), %s686_s18, 0 }
  0x3a   : > { %223 = sbr.rel (%p799_p4) target bundleno = 310 (0x136), region = 70 }
  0x41   : > { %625 = dma.done.wait (%p800_p5), [#allocation3], 128   ;;  %p801_p8 = pmov %p800_p5 }
  0x42   : > { %s230_s17 = sand.u32 1, %s630_s15   ;;  %vm290_vm0 = vcmask 1043456   ;;  %v643_v4 = vmov 0   ;;  %vm291_vm1 = vcmask 1044480   ;;  %v644_v5 = vmov 65535   ;;  %v343_v14 = vld [vmem:[%s789_s2] sm:$0xff] }
  0x43   : > { %627 = vsyncadd (%p801_p8), [#allocation3], 4294967168  ;;  %s517_s23 = sshll.u32 %s230_s17, 5  ;;  %332 = vmatprep.mubr.bf16.mxu0 %v643_v4  ;;  %575 = vset.pattern.permute.xlu0 %v643_v4  ;;  %v292_v6 = vsel %vm290_vm0, 4294967295, %v644_v5  ;;  %v359_v15 = vld [vmem:[%s790_s3] sm:$0xff]  ;;  %v344_v17 = vld [vmem:[%s789_s2 + $0x8] sm:$0xff] }
  0x44   : > { %576 = vset.pattern.permute.xlu1 %v643_v4  ;;  %s232_s25 = scalar_lea.vmem [#allocation4], %s517_s23  ;;  %v293_v9 = vsel %vm291_vm1, %v292_v6, 0  ;;  %347 = vperm.xlu0 %575, %v343_v14   ;;  %v583_v16 = vld [vmem:[#allocation2] sm:$0xff]   ;;  %v360_v18 = vld [vmem:[%s790_s3 + $0x8] sm:$0xff]  ;;  %vm286_vm2 = vcmask 203776   ;;  %s518_s13 = sshll.u32 %s230_s17, 4 }
  0x45   : > { %v577_v7 = vld [vmem:[%s232_s25 + $0x4] ss:$8 sps:$4 sm:$0xff]   ;;  %v579_v8 = vld [vmem:[%s232_s25] ss:$8 sps:$4 sm:$0xff]   ;;  %363 = vperm.xlu1 %576, %v359_v15   ;;  %s253_s14 = scalar_lea.vmem [#allocation5], %s518_s13  ;;  %p802_p9 = scmp.ne.s32.totalorder %s795_s24, 0 }
  0x46   : > { %300 = vmatprep.subr.bf16.mxu0 %v577_v7  ;;  %v580_v10 = vld [vmem:[%s232_s25 + $0x14] ss:$8 sps:$4 sm:$0x1f]   ;;  %v582_v11 = vld [vmem:[%s232_s25 + $0x10] ss:$8 sps:$4 sm:$0x1f]  }
  0x47   : > { %301 = vmatpush1.bf16.msra.mxu0 %v579_v8  ;;  %v298_v12 = vand.u32 %v580_v10, %v293_v9  ;;  %v295_v13 = vand.u32 %v582_v11, %v293_v9  ;;  %s535_s15 = sshll.u32 (%p802_p9), %s686_s18, 3 }
  0x48   : > { %352 = vperm.xlu0 %575, %v344_v17   ;;  %s402_s26 = scalar_lea.vmem (%p802_p9), %s791_s4, %s535_s15 }
  0x49   : > { %302 = vmatprep.subr.bf16.mxu0 %v298_v12  ;;  %368 = vperm.xlu1 %576, %v360_v18  }
  0x4b   : > { %303 = vmatpush1.bf16.msra.mxu0 %v295_v13 }
  0x4e   : > { %524 = vmatmul.mubr.msk.bf16.vlgmr.msra.gmra.mrb[0].mxu0 %vm286_vm2, %v583_v16 }
  0xc3   : > { %v348_v19 = vpop.permute.xlu0 %347 }
  0xc4   : > { %v364_v20 = vpop.permute.xlu1 %363 }
  0xc7   : > { %v353_v24 = vpop.permute.xlu0 %352 }
  0xc8   : > { %v369_v30 = vpop.permute.xlu1 %368 }
 0x121   : > { %v334_v21 = vpop.f32.mrb[0].mxu0 }
 0x122   : > { %v355_v22 = vmul.f32 %v348_v19, %v334_v21  ;;  %v336_v23 = vpop.f32.mrb[1].mxu0 }
 0x123   : > { %v356_v25 = vmul.f32 %v348_v19, %v336_v23  ;;  %v338_v26 = vpop.f32.mrb[2].mxu0 }
 0x124   : > { %v371_v27 = vadd.f32 %v364_v20, %v355_v22  ;;  %v357_v28 = vmul.f32 %v353_v24, %v338_v26  ;;  %v340_v29 = vpop.f32.mrb[3].mxu0 }
 0x125   : > { %v372_v31 = vadd.f32 %v364_v20, %v356_v25  ;;  %v358_v32 = vmul.f32 %v353_v24, %v340_v29 }
 0x126   : > { %v375_v33 = vmax.f32 %v371_v27, 0.0  ;;  %v373_v34 = vadd.f32 %v369_v30, %v357_v28 }
 0x127   : > { %v376_v35 = vmax.f32 %v372_v31, 0.0  ;;  %v374_v36 = vadd.f32 %v369_v30, %v358_v32  ;;  %399 = sbr.rel (!%p802_p9) target bundleno = 310 (0x136), region = 82 }
 0x128   : > { %v377_v37 = vmax.f32 %v373_v34, 0.0 }
 0x129   : > { %v533_v38 = vpack.c.bf16 %v376_v35, %v375_v33  ;;  %v378_v39 = vmax.f32 %v374_v36, 0.0 }
 0x12b   : > { %391 = vst [vmem:[%s253_s14] sm:$0xff] %v533_v38  ;;  %v534_v40 = vpack.c.bf16 %v378_v39, %v377_v37 }
 0x12d   : > { %392 = vst [vmem:[%s253_s14 + $0x8] sm:$0xff] %v534_v40 }
 0x132   : > { %v432_v41 = vld [vmem:[%s253_s14] sm:$0xff] }
 0x133   : > { %433 = vst [vmem:[%s402_s26] sm:$0xff] %v432_v41 }
 0x134   : > { %v434_v42 = vld [vmem:[%s253_s14 + $0x8] sm:$0xff] }
 0x135   : > { %435 = vst [vmem:[%s402_s26 + $0x40] sm:$0xff] %v434_v42 }
 0x136 PF: > { %p12_p11 = scmp.ge.s32.totalorder %s689_s19, 10   ;;  %s803_s15 = smov %s634_s16 }
 0x137   : > { %s804_s16 = smov %s699_s22  ;;  %s805_s17 = smov %s689_s19 }
 0x138   :  { %14 = sbr.rel (!%p12_p11) target bundleno = 2 (0x2), region = 152 }
 0x13f   :  { %451 = vsyncpa [#allocation3], 1 }
 0x140   :  { %453 = vsyncpa [#allocation3 + $0x1], 1 }

// kernel: dann_forward.9
= control target key start
LH: loop header
LB: loop body
LE: loop exit
PB: predicated region body
PF: predicated region fallthrough
CT: control target
= control target key end

     0   :  { %s1352_s15 = smov 0   ;;  %s1354_s16 = smov 0   ;;  %s1622_s0 = inlined_call_operand.vmem [shape: bf16[32,400], index: 0, kind: input, shape index: {}]   ;;  %s1623_s1 = inlined_call_operand.vmem [shape: bf16[400,1792], index: 1, kind: input, shape index: {}]   ;;  %s1624_s2 = inlined_call_operand.vmem [shape: f32[32,1], index: 2, kind: input, shape index: {}]   ;;  %s1625_s3 = inlined_call_operand.vmem [shape: f32[32,1], index: 3, kind: input, shape index: {}]   ;;  %s1626_s4 = inlined_call_operand.vmem [shape: bf16[32,1792], index: 4, kind: output, shape index: {}]  }
   0x1   :  { %s1356_s17 = smov 0  }
   0x2 LB: > { %s1095_s18 = sadd.s32 4294967295, %s1324_s17   ;;  %s1369_s19 = sadd.s32 1, %s1324_s17   ;;  %s1324_s17 = sphi %s1356_s17, %s1630_s17   ;;  %s1320_s16 = sphi %s1354_s16, %s1629_s16   ;;  %s1316_s15 = sphi %s1352_s15, %s1628_s15  }
   0x3   : > { %s39_s20 = ssub.s32 %s1324_s17, %s1369_s19  ;;  %s42_s21 = sadd.s32 1, %s1320_s16 }
   0x4   : > { %p40_p0 = scmp.eq.s32.totalorder %s39_s20, 0  ;;  %p49_p1 = scmp.ne.s32.totalorder %s1320_s16, %s1316_s15 }
   0x5   : > { %p50_p2 = scmp.eq.s32.totalorder %s1324_s17, 0  ;;  %p121_p3 = scmp.eq.s32.totalorder %s1095_s18, 6 }
   0x6   : > { %s1380_s22 = scalar_select %p40_p0, %s1320_s16, %s42_s21  }
   0x7   : > { %p51_p4 = por %p50_p2, %p49_p1  ;;  %p1382_p5 = por %p121_p3, %p49_p1 }
   0x8   : > { %p1098_p6 = scmp.ge.s32.totalorder %s1324_s17, 7 }
   0xa   : > { %152 = sbr.rel (%p1098_p6) target bundleno = 47 (0x2f), region = 28 }
  0x11   : > { %155 = sbr.rel (!%p51_p4) target bundleno = 47 (0x2f), region = 32  ;;  %s157_s24 = sand.u32 (%p51_p4), 1, %s1320_s16  }
  0x12   : > { %s1172_s25 = sshll.u32 (%p51_p4), %s1324_s17, 3  ;;  %s1186_s26 = smul.u32 (%p51_p4), 400, %s157_s24 }
  0x13   : > { %s1392_s29 = scalar_lea.vmem (%p51_p4), %s1623_s1, %s1172_s25 }
  0x14   : > { %v288_v0 = vld [vmem:[%s1392_s29] sm:$0xff] (%p51_p4)  ;;  %v290_v1 = vld [vmem:[%s1392_s29 + $0x38] sm:$0xff] (%p51_p4)  ;;  %v292_v2 = vld [vmem:[%s1392_s29 + $0x70] sm:$0xff] (%p51_p4)  ;;  %s1400_s30 = scalar_lea.vmem (%p51_p4), [#allocation2], %s1186_s26 }
  0x15   : > { %v294_v3 = vld [vmem:[%s1392_s29 + $0xa8] sm:$0xff] (%p51_p4)  ;;  %v296_v4 = vld [vmem:[%s1392_s29 + $0xe0] sm:$0xff] (%p51_p4)  ;;  %v298_v5 = vld [vmem:[%s1392_s29 + $0x118] sm:$0xff] (%p51_p4)  ;;  %289 = vst [vmem:[%s1400_s30] sm:$0xff] (%p51_p4), %v288_v0 }
  0x16   : > { %291 = vst [vmem:[%s1400_s30 + $0x8] sm:$0xff] (%p51_p4), %v290_v1  ;;  %293 = vst [vmem:[%s1400_s30 + $0x10] sm:$0xff] (%p51_p4), %v292_v2  ;;  %v300_v6 = vld [vmem:[%s1392_s29 + $0x150] sm:$0xff] (%p51_p4)  ;;  %v302_v7 = vld [vmem:[%s1392_s29 + $0x188] sm:$0xff] (%p51_p4) }
  0x17   : > { %295 = vst [vmem:[%s1400_s30 + $0x18] sm:$0xff] (%p51_p4), %v294_v3  ;;  %297 = vst [vmem:[%s1400_s30 + $0x20] sm:$0xff] (%p51_p4), %v296_v4  ;;  %v304_v8 = vld [vmem:[%s1392_s29 + $0x1c0] sm:$0xff] (%p51_p4)  ;;  %v306_v9 = vld [vmem:[%s1392_s29 + $0x1f8] sm:$0xff] (%p51_p4) }
  0x18   : > { %299 = vst [vmem:[%s1400_s30 + $0x28] sm:$0xff] %v298_v5  ;;  %301 = vst [vmem:[%s1400_s30 + $0x30] sm:$0xff] %v300_v6  ;;  %v308_v10 = vld [vmem:[%s1392_s29 + $0x230] sm:$0xff]  ;;  %v310_v11 = vld [vmem:[%s1392_s29 + $0x268] sm:$0xff] }
  0x19   : > { %303 = vst [vmem:[%s1400_s30 + $0x38] sm:$0xff] %v302_v7  ;;  %305 = vst [vmem:[%s1400_s30 + $0x40] sm:$0xff] %v304_v8  ;;  %v312_v12 = vld [vmem:[%s1392_s29 + $0x2a0] sm:$0xff]  ;;  %v314_v13 = vld [vmem:[%s1392_s29 + $0x2d8] sm:$0xff] }
  0x1a   : > { %307 = vst [vmem:[%s1400_s30 + $0x48] sm:$0xff] %v306_v9  ;;  %309 = vst [vmem:[%s1400_s30 + $0x50] sm:$0xff] %v308_v10  ;;  %v316_v14 = vld [vmem:[%s1392_s29 + $0x310] sm:$0xff]  ;;  %v318_v15 = vld [vmem:[%s1392_s29 + $0x348] sm:$0xff] }
  0x1b   : > { %311 = vst [vmem:[%s1400_s30 + $0x58] sm:$0xff] %v310_v11  ;;  %313 = vst [vmem:[%s1400_s30 + $0x60] sm:$0xff] %v312_v12  ;;  %v320_v16 = vld [vmem:[%s1392_s29 + $0x380] sm:$0xff]  ;;  %v322_v17 = vld [vmem:[%s1392_s29 + $0x3b8] sm:$0xff] }
  0x1c   : > { %315 = vst [vmem:[%s1400_s30 + $0x68] sm:$0xff] %v314_v13  ;;  %317 = vst [vmem:[%s1400_s30 + $0x70] sm:$0xff] %v316_v14  ;;  %v324_v18 = vld [vmem:[%s1392_s29 + $0x3f0] sm:$0xff]  ;;  %v326_v19 = vld [vmem:[%s1392_s29 + $0x428] sm:$0xff] }
  0x1d   : > { %319 = vst [vmem:[%s1400_s30 + $0x78] sm:$0xff] %v318_v15  ;;  %321 = vst [vmem:[%s1400_s30 + $0x80] sm:$0xff] %v320_v16  ;;  %v328_v20 = vld [vmem:[%s1392_s29 + $0x460] sm:$0xff]  ;;  %v330_v21 = vld [vmem:[%s1392_s29 + $0x498] sm:$0xff] }
  0x1e   : > { %323 = vst [vmem:[%s1400_s30 + $0x88] sm:$0xff] %v322_v17  ;;  %325 = vst [vmem:[%s1400_s30 + $0x90] sm:$0xff] %v324_v18  ;;  %v332_v22 = vld [vmem:[%s1392_s29 + $0x4d0] sm:$0xff]  ;;  %v334_v23 = vld [vmem:[%s1392_s29 + $0x508] sm:$0xff] }
  0x1f   : > { %327 = vst [vmem:[%s1400_s30 + $0x98] sm:$0xff] %v326_v19  ;;  %329 = vst [vmem:[%s1400_s30 + $0xa0] sm:$0xff] %v328_v20  ;;  %v336_v24 = vld [vmem:[%s1392_s29 + $0x540] sm:$0xff]  ;;  %v338_v25 = vld [vmem:[%s1392_s29 + $0x578] sm:$0xff] }
  0x20   : > { %331 = vst [vmem:[%s1400_s30 + $0xa8] sm:$0xff] %v330_v21  ;;  %333 = vst [vmem:[%s1400_s30 + $0xb0] sm:$0xff] %v332_v22  ;;  %v340_v26 = vld [vmem:[%s1392_s29 + $0x5b0] sm:$0xff]  ;;  %v342_v27 = vld [vmem:[%s1392_s29 + $0x5e8] sm:$0xff] }
  0x21   : > { %335 = vst [vmem:[%s1400_s30 + $0xb8] sm:$0xff] %v334_v23  ;;  %337 = vst [vmem:[%s1400_s30 + $0xc0] sm:$0xff] %v336_v24  ;;  %v344_v28 = vld [vmem:[%s1392_s29 + $0x620] sm:$0xff]  ;;  %v346_v29 = vld [vmem:[%s1392_s29 + $0x658] sm:$0xff] }
  0x22   : > { %339 = vst [vmem:[%s1400_s30 + $0xc8] sm:$0xff] %v338_v25  ;;  %341 = vst [vmem:[%s1400_s30 + $0xd0] sm:$0xff] %v340_v26  ;;  %v348_v30 = vld [vmem:[%s1392_s29 + $0x690] sm:$0xff]  ;;  %v350_v31 = vld [vmem:[%s1392_s29 + $0x6c8] sm:$0xff] }
  0x23   : > { %343 = vst [vmem:[%s1400_s30 + $0xd8] sm:$0xff] %v342_v27  ;;  %345 = vst [vmem:[%s1400_s30 + $0xe0] sm:$0xff] %v344_v28  ;;  %v352_v32 = vld [vmem:[%s1392_s29 + $0x700] sm:$0xff]  ;;  %v354_v33 = vld [vmem:[%s1392_s29 + $0x738] sm:$0xff] }
  0x24   : > { %347 = vst [vmem:[%s1400_s30 + $0xe8] sm:$0xff] %v346_v29  ;;  %349 = vst [vmem:[%s1400_s30 + $0xf0] sm:$0xff] %v348_v30  ;;  %v356_v34 = vld [vmem:[%s1392_s29 + $0x770] sm:$0xff]  ;;  %v358_v35 = vld [vmem:[%s1392_s29 + $0x7a8] sm:$0xff] }
  0x25   : > { %351 = vst [vmem:[%s1400_s30 + $0xf8] sm:$0xff] %v350_v31  ;;  %353 = vst [vmem:[%s1400_s30 + $0x100] sm:$0xff] %v352_v32  ;;  %v360_v36 = vld [vmem:[%s1392_s29 + $0x7e0] sm:$0xff]  ;;  %v362_v37 = vld [vmem:[%s1392_s29 + $0x818] sm:$0xff] }
  0x26   : > { %355 = vst [vmem:[%s1400_s30 + $0x108] sm:$0xff] %v354_v33  ;;  %357 = vst [vmem:[%s1400_s30 + $0x110] sm:$0xff] %v356_v34  ;;  %v364_v38 = vld [vmem:[%s1392_s29 + $0x850] sm:$0xff]  ;;  %v366_v39 = vld [vmem:[%s1392_s29 + $0x888] sm:$0xff] }
  0x27   : > { %359 = vst [vmem:[%s1400_s30 + $0x118] sm:$0xff] %v358_v35  ;;  %361 = vst [vmem:[%s1400_s30 + $0x120] sm:$0xff] %v360_v36  ;;  %v368_v40 = vld [vmem:[%s1392_s29 + $0x8c0] sm:$0xff]  ;;  %v370_v41 = vld [vmem:[%s1392_s29 + $0x8f8] sm:$0xff] }
  0x28   : > { %363 = vst [vmem:[%s1400_s30 + $0x128] sm:$0xff] %v362_v37  ;;  %365 = vst [vmem:[%s1400_s30 + $0x130] sm:$0xff] %v364_v38  ;;  %v372_v42 = vld [vmem:[%s1392_s29 + $0x930] sm:$0xff]  ;;  %v374_v43 = vld [vmem:[%s1392_s29 + $0x968] sm:$0xff] }
  0x29   : > { %367 = vst [vmem:[%s1400_s30 + $0x138] sm:$0xff] %v366_v39  ;;  %369 = vst [vmem:[%s1400_s30 + $0x140] sm:$0xff] %v368_v40  ;;  %v376_v44 = vld [vmem:[%s1392_s29 + $0x9a0] sm:$0xff]  ;;  %v378_v45 = vld [vmem:[%s1392_s29 + $0x9d8] sm:$0xff] }
  0x2a   : > { %371 = vst [vmem:[%s1400_s30 + $0x148] sm:$0xff] %v370_v41  ;;  %373 = vst [vmem:[%s1400_s30 + $0x150] sm:$0xff] %v372_v42  ;;  %v380_v46 = vld [vmem:[%s1392_s29 + $0xa10] sm:$0xff]  ;;  %v382_v47 = vld [vmem:[%s1392_s29 + $0xa48] sm:$0xff] }
  0x2b   : > { %375 = vst [vmem:[%s1400_s30 + $0x158] sm:$0xff] %v374_v43  ;;  %377 = vst [vmem:[%s1400_s30 + $0x160] sm:$0xff] %v376_v44  ;;  %v384_v48 = vld [vmem:[%s1392_s29 + $0xa80] sm:$0xff]  ;;  %v386_v49 = vld [vmem:[%s1392_s29 + $0xab8] sm:$0xff] }
  0x2c   : > { %379 = vst [vmem:[%s1400_s30 + $0x168] sm:$0xff] %v378_v45  ;;  %381 = vst [vmem:[%s1400_s30 + $0x170] sm:$0xff] %v380_v46 }
  0x2d   : > { %383 = vst [vmem:[%s1400_s30 + $0x178] sm:$0xff] %v382_v47  ;;  %385 = vst [vmem:[%s1400_s30 + $0x180] sm:$0xff] %v384_v48 }
  0x2e   : > { %387 = vst [vmem:[%s1400_s30 + $0x188] sm:$0xff] %v386_v49 }
  0x2f PF: > { %p1101_p7 = scmp.ge.s32.totalorder %s1324_s17, 1  ;;  %p392_p8 = scmp.lt.s32.totalorder %s1324_s17, 8 }
  0x31   : > { %p393_p9 = pnand %p1101_p7, %p392_p8 }
  0x32   : > { %s399_s5 = sand.u32 (!%p393_p9), 1, %s1316_s15   ;;  %vm772_vm0 = vcmask (!%p393_p9), 130048   ;;  %v1291_v50 = vld [vmem:[%s1622_s0 + $0xc] ss:$16 sps:$4 sm:$0xff] (!%p393_p9)   ;;  %v1295_v51 = vld [vmem:[%s1622_s0 + $0x4] ss:$16 sps:$4 sm:$0xff] (!%p393_p9)  }
  0x33   : > { %396 = sbr.rel (%p393_p9) target bundleno = 362 (0x16a), region = 70  ;;  %v1326_v52 = vmov (!%p393_p9), 0   ;;  %1161 = vmatprep.mubr.msk.bf16.mxu0 (!%p393_p9), %vm772_vm0, %v1291_v50  ;;  %811 = vmatprep.mubr.bf16.mxu1 (!%p393_p9), %v1295_v51  ;;  %v887_v23 = vld [vmem:[%s1624_s2 + $0x10] sm:$0xff] (!%p393_p9)  ;;  %v885_v25 = vld [vmem:[%s1624_s2] sm:$0xff] (!%p393_p9)  ;;  %v888_v27 = vld [vmem:[%s1624_s2 + $0x18] sm:$0xff] (!%p393_p9) }
  0x34   : > { %s1187_s6 = smul.u32 (!%p393_p9), 400, %s399_s5  ;;  %1214 = vset.pattern.permute.xlu1 (!%p393_p9), %v1326_v52  ;;  %1213 = vset.pattern.permute.xlu0 (!%p393_p9), %v1326_v52  ;;  %v886_v29 = vld [vmem:[%s1624_s2 + $0x8] sm:$0xff] (!%p393_p9)  ;;  %v917_v35 = vld [vmem:[%s1625_s3] sm:$0xff] (!%p393_p9)  ;;  %v920_v39 = vld [vmem:[%s1625_s3 + $0x18] sm:$0xff] (!%p393_p9) }
  0x35   : > { %901 = vperm.xlu1 (!%p393_p9), %1214, %v887_v23   ;;  %891 = vperm.xlu0 (!%p393_p9), %1213, %v885_v25   ;;  %v918_v33 = vld [vmem:[%s1625_s3 + $0x8] sm:$0xff] (!%p393_p9)  ;;  %v919_v41 = vld [vmem:[%s1625_s3 + $0x10] sm:$0xff] (!%p393_p9) }
  0x36   : > { %s1508_s11 = scalar_lea.vmem (!%p393_p9), [#allocation2], %s1187_s6  ;;  %v1289_v38 = vld [vmem:[%s1622_s0 + $0x8] ss:$16 sps:$4 sm:$0xff] (!%p393_p9)   ;;  %v1296_v40 = vld [vmem:[%s1622_s0 + $0x2c] ss:$16 sps:$4 sm:$0xff] (!%p393_p9)  }
  0x37   : > { %v1215_v53 = vld [vmem:[%s1508_s11 + $0x4] ss:$8 sps:$4 sm:$0xff] (!%p393_p9)   ;;  %v1217_v54 = vld [vmem:[%s1508_s11] ss:$8 sps:$4 sm:$0xff] (!%p393_p9)   ;;  %v1218_v55 = vld [vmem:[%s1508_s11 + $0x14] ss:$8 sps:$4 sm:$0xff] (!%p393_p9)  }
  0x38   : > { %779 = vmatprep.subr.bf16.mxu1 (!%p393_p9), %v1215_v53  ;;  %v1220_v56 = vld [vmem:[%s1508_s11 + $0x10] ss:$8 sps:$4 sm:$0xff] (!%p393_p9)   ;;  %v1221_v57 = vld [vmem:[%s1508_s11 + $0x24] ss:$8 sps:$4 sm:$0xff] (!%p393_p9)   ;;  %v1223_v58 = vld [vmem:[%s1508_s11 + $0x20] ss:$8 sps:$4 sm:$0xff] (!%p393_p9)  }
  0x39   : > { %780 = vmatpush1.bf16.msra.mxu1 (!%p393_p9), %v1217_v54  ;;  %v1224_v59 = vld [vmem:[%s1508_s11 + $0x34] ss:$8 sps:$4 sm:$0xff] (!%p393_p9)   ;;  %v1236_v60 = vld [vmem:[%s1508_s11 + $0x104] ss:$8 sps:$4 sm:$0xff] (!%p393_p9)   ;;  %v1238_v61 = vld [vmem:[%s1508_s11 + $0x100] ss:$8 sps:$4 sm:$0xff] (!%p393_p9)   ;;  %906 = vperm.xlu1 (!%p393_p9), %1214, %v888_v27  }
  0x3a   : > { %781 = vmatprep.subr.bf16.mxu1 %v1218_v55  ;;  %v1226_v62 = vld [vmem:[%s1508_s11 + $0x30] ss:$8 sps:$4 sm:$0xff]   ;;  %v1227_v63 = vld [vmem:[%s1508_s11 + $0x44] ss:$8 sps:$4 sm:$0xff]   ;;  %832 = vmatprep.subr.bf16.mxu0 %v1236_v60  ;;  %v1242_v0 = vld [vmem:[%s1508_s11 + $0x114] ss:$8 sps:$4 sm:$0xff]  }
  0x3b   : > { %833 = vmatpush1.bf16.msra.mxu0 %v1238_v61  ;;  %v1244_v1 = vld [vmem:[%s1508_s11 + $0x110] ss:$8 sps:$4 sm:$0xff]   ;;  %v1229_v2 = vld [vmem:[%s1508_s11 + $0x40] ss:$8 sps:$4 sm:$0xff]   ;;  %v1248_v3 = vld [vmem:[%s1508_s11 + $0x124] ss:$8 sps:$4 sm:$0xff]   ;;  %896 = vperm.xlu0 %1213, %v886_v29  }
  0x3c   : > { %834 = vmatprep.subr.bf16.mxu0 %v1242_v0  ;;  %v1230_v4 = vld [vmem:[%s1508_s11 + $0x54] ss:$8 sps:$4 sm:$0xff]   ;;  %v1250_v5 = vld [vmem:[%s1508_s11 + $0x120] ss:$8 sps:$4 sm:$0xff]   ;;  %v1232_v7 = vld [vmem:[%s1508_s11 + $0x50] ss:$8 sps:$4 sm:$0xff]  }
  0x3d   : > { %782 = vmatpush1.bf16.msra.mxu1 %v1220_v56  ;;  %v1254_v6 = vld [vmem:[%s1508_s11 + $0x134] ss:$8 sps:$4 sm:$0xff]   ;;  %v1233_v8 = vld [vmem:[%s1508_s11 + $0x64] ss:$8 sps:$4 sm:$0xff]   ;;  %v1256_v9 = vld [vmem:[%s1508_s11 + $0x130] ss:$8 sps:$4 sm:$0xff]   ;;  %928 = vperm.xlu1 %1214, %v918_v33  }
  0x3e   : > { %783 = vmatprep.subr.bf16.mxu1 %v1221_v57  ;;  %v1260_v10 = vld [vmem:[%s1508_s11 + $0x144] ss:$8 sps:$4 sm:$0xff]   ;;  %v1235_v11 = vld [vmem:[%s1508_s11 + $0x60] ss:$8 sps:$4 sm:$0xff]   ;;  %v1239_v12 = vld [vmem:[%s1508_s11 + $0x74] ss:$8 sps:$4 sm:$0xff]  }
  0x3f   : > { %835 = vmatpush1.bf16.msra.mxu0 %v1244_v1  ;;  %v1262_v13 = vld [vmem:[%s1508_s11 + $0x140] ss:$8 sps:$4 sm:$0xff]   ;;  %v1266_v14 = vld [vmem:[%s1508_s11 + $0x154] ss:$8 sps:$4 sm:$0xff]   ;;  %v1241_v15 = vld [vmem:[%s1508_s11 + $0x70] ss:$8 sps:$4 sm:$0xff]   ;;  %923 = vperm.xlu0 %1213, %v917_v35  }
  0x40   : > { %836 = vmatprep.subr.bf16.mxu0 %v1248_v3  ;;  %v1245_v16 = vld [vmem:[%s1508_s11 + $0x84] ss:$8 sps:$4 sm:$0xff]   ;;  %v1268_v17 = vld [vmem:[%s1508_s11 + $0x150] ss:$8 sps:$4 sm:$0xff]   ;;  %v1247_v19 = vld [vmem:[%s1508_s11 + $0x80] ss:$8 sps:$4 sm:$0xff]  }
  0x41   : > { %784 = vmatpush1.bf16.msra.mxu1 %v1223_v58  ;;  %v1272_v18 = vld [vmem:[%s1508_s11 + $0x164] ss:$8 sps:$4 sm:$0xff]   ;;  %v1251_v20 = vld [vmem:[%s1508_s11 + $0x94] ss:$8 sps:$4 sm:$0xff]   ;;  %v1274_v21 = vld [vmem:[%s1508_s11 + $0x160] ss:$8 sps:$4 sm:$0xff]   ;;  %938 = vperm.xlu1 %1214, %v920_v39  }
  0x42   : > { %785 = vmatprep.subr.bf16.mxu1 %v1224_v59  ;;  %v1278_v22 = vld [vmem:[%s1508_s11 + $0x174] ss:$8 sps:$4 sm:$0xff]   ;;  %v1253_v24 = vld [vmem:[%s1508_s11 + $0x90] ss:$8 sps:$4 sm:$0xff]   ;;  %v1257_v26 = vld [vmem:[%s1508_s11 + $0xa4] ss:$8 sps:$4 sm:$0xff]  }
  0x43   : > { %837 = vmatpush1.bf16.msra.mxu0 %v1250_v5  ;;  %v1280_v28 = vld [vmem:[%s1508_s11 + $0x170] ss:$8 sps:$4 sm:$0xff]   ;;  %v1284_v30 = vld [vmem:[%s1508_s11 + $0x184] ss:$8 sps:$4 sm:$0xff]   ;;  %v1259_v31 = vld [vmem:[%s1508_s11 + $0xa0] ss:$8 sps:$4 sm:$0xff]   ;;  %933 = vperm.xlu0 %1213, %v919_v41  }
  0x44   : > { %838 = vmatprep.subr.bf16.mxu0 %v1254_v6  ;;  %v1263_v32 = vld [vmem:[%s1508_s11 + $0xb4] ss:$8 sps:$4 sm:$0xff]   ;;  %v1286_v34 = vld [vmem:[%s1508_s11 + $0x180] ss:$8 sps:$4 sm:$0xff]   ;;  %v1265_v36 = vld [vmem:[%s1508_s11 + $0xb0] ss:$8 sps:$4 sm:$0xff]  }
  0x45   : > { %786 = vmatpush1.bf16.msra.mxu1 %v1226_v62  ;;  %v1269_v37 = vld [vmem:[%s1508_s11 + $0xc4] ss:$8 sps:$4 sm:$0xff]   ;;  %v1271_v42 = vld [vmem:[%s1508_s11 + $0xc0] ss:$8 sps:$4 sm:$0xff]   ;;  %v1275_v43 = vld [vmem:[%s1508_s11 + $0xd4] ss:$8 sps:$4 sm:$0xff]  }
  0x46   : > { %787 = vmatprep.subr.bf16.mxu1 %v1227_v63  ;;  %v1277_v44 = vld [vmem:[%s1508_s11 + $0xd0] ss:$8 sps:$4 sm:$0xff]   ;;  %v1281_v45 = vld [vmem:[%s1508_s11 + $0xe4] ss:$8 sps:$4 sm:$0xff]   ;;  %v1283_v47 = vld [vmem:[%s1508_s11 + $0xe0] ss:$8 sps:$4 sm:$0xff]  }
  0x47   : > { %839 = vmatpush1.bf16.msra.mxu0 %v1256_v9  ;;  %v1298_v46 = vld [vmem:[%s1622_s0 + $0x28] ss:$16 sps:$4 sm:$0xff]   ;;  %v1287_v48 = vld [vmem:[%s1508_s11 + $0xf4] ss:$8 sps:$4 sm:$0xff]   ;;  %v1293_v50 = vld [vmem:[%s1622_s0] ss:$16 sps:$4 sm:$0xff]  }
  0x48   : > { %840 = vmatprep.subr.bf16.mxu0 %v1260_v10  ;;  %v1292_v49 = vld [vmem:[%s1508_s11 + $0xf0] ss:$8 sps:$4 sm:$0xff]   ;;  %v1299_v51 = vld [vmem:[%s1622_s0 + $0x24] ss:$16 sps:$4 sm:$0xff]   ;;  %s1102_s11 = sshll.u32 %s399_s5, 5  ;;  %s1177_s15 = sshll.u32 (%p1382_p5), %s1095_s18, 3 }
  0x49   : > { %788 = vmatpush1.bf16.msra.mxu1 %v1229_v2  ;;  %v1301_v52 = vld [vmem:[%s1622_s0 + $0x20] ss:$16 sps:$4 sm:$0xff]   ;;  %s422_s30 = scalar_lea.vmem [#allocation3], %s1102_s11  ;;  %s994_s7 = scalar_lea.vmem (%p1382_p5), %s1626_s4, %s1177_s15 }
  0x4a   : > { %789 = vmatprep.subr.bf16.mxu1 %v1230_v4 }
  0x4b   : > { %841 = vmatpush1.bf16.msra.mxu0 %v1262_v13 }
  0x4c   : > { %842 = vmatprep.subr.bf16.mxu0 %v1266_v14 }
  0x4d   : > { %790 = vmatpush1.bf16.msra.mxu1 %v1232_v7 }
  0x4e   : > { %791 = vmatprep.subr.bf16.mxu1 %v1233_v8 }
  0x4f   : > { %843 = vmatpush1.bf16.msra.mxu0 %v1268_v17 }
  0x50   : > { %844 = vmatprep.subr.bf16.mxu0 %v1272_v18 }
  0x51   : > { %792 = vmatpush1.bf16.msra.mxu1 %v1235_v11 }
  0x52   : > { %793 = vmatprep.subr.bf16.mxu1 %v1239_v12 }
  0x53   : > { %845 = vmatpush1.bf16.msra.mxu0 %v1274_v21 }
  0x54   : > { %846 = vmatprep.subr.bf16.mxu0 %v1278_v22 }
  0x55   : > { %794 = vmatpush1.bf16.msra.mxu1 %v1241_v15 }
  0x56   : > { %795 = vmatprep.subr.bf16.mxu1 %v1245_v16 }
  0x57   : > { %847 = vmatpush1.bf16.msra.mxu0 %v1280_v28 }
  0x58   : > { %848 = vmatprep.subr.bf16.mxu0 %v1284_v30 }
  0x59   : > { %796 = vmatpush1.bf16.msra.mxu1 %v1247_v19 }
  0x5a   : > { %797 = vmatprep.subr.bf16.mxu1 %v1251_v20 }
  0x5b   : > { %849 = vmatpush1.bf16.msra.mxu0 %v1286_v34 }
  0x5d   : > { %798 = vmatpush1.bf16.msra.mxu1 %v1253_v24 }
  0x5e   : > { %799 = vmatprep.subr.bf16.mxu1 %v1257_v26  ;;  %865 = vmatmul.mubr.bf16.vlgmr.msra.gmra.mrb[0].mxu0 %v1289_v38 }
  0x5f   : > { %1162 = vmatprep.mubr.msk.bf16.mxu0 %vm772_vm0, %v1296_v40 }
  0x61   : > { %800 = vmatpush1.bf16.msra.mxu1 %v1259_v31 }
  0x62   : > { %801 = vmatprep.subr.bf16.mxu1 %v1263_v32 }
  0x65   : > { %802 = vmatpush1.bf16.msra.mxu1 %v1265_v36 }
  0x66   : > { %803 = vmatprep.subr.bf16.mxu1 %v1269_v37  ;;  %875 = vmatmul.mubr.bf16.gmra.mrb[4].mxu0 %v1298_v46 }
  0x69   : > { %804 = vmatpush1.bf16.msra.mxu1 %v1271_v42 }
  0x6a   : > { %805 = vmatprep.subr.bf16.mxu1 %v1275_v43 }
  0x6d   : > { %806 = vmatpush1.bf16.msra.mxu1 %v1277_v44 }
  0x6e   : > { %807 = vmatprep.subr.bf16.mxu1 %v1281_v45 }
  0x71   : > { %808 = vmatpush1.bf16.msra.mxu1 %v1283_v47 }
  0x72   : > { %809 = vmatprep.subr.bf16.mxu1 %v1287_v48 }
  0x75   : > { %810 = vmatpush1.bf16.msra.mxu1 %v1292_v49 }
  0x78   : > { %812 = vmatmul.mubr.bf16.vlgmr.msra.gmra.mrb[0].mxu1 %v1293_v50 }
  0x79   : > { %821 = vmatprep.mubr.bf16.mxu1 %v1299_v51 }
  0x80   : > { %822 = vmatmul.mubr.bf16.gmra.mrb[4].mxu1 %v1301_v52 }
  0xb4   : > { %v892_v59 = vpop.permute.xlu0 %891  ;;  %v902_v62 = vpop.permute.xlu1 %901 }
  0xb8   : > { %v907_v0 = vpop.permute.xlu1 %906 }
  0xba   : > { %v897_v63 = vpop.permute.xlu0 %896 }
  0xbc   : > { %v929_v14 = vpop.permute.xlu1 %928 }
  0xbe   : > { %v924_v9 = vpop.permute.xlu0 %923 }
  0xc0   : > { %v939_v38 = vpop.permute.xlu1 %938 }
  0xc2   : > { %v934_v32 = vpop.permute.xlu0 %933 }
 0x131   : > { %v866_v53 = vpop.f32.mrb[0].mxu0 }
 0x132   : > { %v868_v54 = vpop.f32.mrb[1].mxu0 }
 0x133   : > { %v870_v55 = vpop.f32.mrb[2].mxu0 }
 0x134   : > { %v872_v56 = vpop.f32.mrb[3].mxu0 }
 0x139   : > { %v876_v57 = vpop.f32.mrb[4].mxu0 }
 0x13a   : > { %v878_v58 = vpop.f32.mrb[5].mxu0 }
 0x13b   : > { %v880_v60 = vpop.f32.mrb[6].mxu0 }
 0x13c   : > { %v882_v61 = vpop.f32.mrb[7].mxu0 }
 0x14b   : > { %v813_v1 = vpop.f32.mrb[0].mxu1 }
 0x14c   : > { %v867_v2 = vadd.f32 %v866_v53, %v813_v1  ;;  %v815_v3 = vpop.f32.mrb[1].mxu1 }
 0x14d   : > { %v869_v4 = vadd.f32 %v868_v54, %v815_v3  ;;  %v817_v5 = vpop.f32.mrb[2].mxu1 }
 0x14e   : > { %v909_v6 = vmul.f32 %v892_v59, %v867_v2  ;;  %v871_v7 = vadd.f32 %v870_v55, %v817_v5  ;;  %v819_v8 = vpop.f32.mrb[3].mxu1 }
 0x14f   : > { %v910_v10 = vmul.f32 %v892_v59, %v869_v4  ;;  %v873_v11 = vadd.f32 %v872_v56, %v819_v8 }
 0x150   : > { %v941_v12 = vadd.f32 %v924_v9, %v909_v6  ;;  %v911_v13 = vmul.f32 %v897_v63, %v871_v7 }
 0x151   : > { %v942_v15 = vadd.f32 %v924_v9, %v910_v10  ;;  %v912_v16 = vmul.f32 %v897_v63, %v873_v11 }
 0x152   : > { %v949_v17 = vmax.f32 %v941_v12, 0.0  ;;  %v943_v18 = vadd.f32 %v929_v14, %v911_v13 }
 0x153   : > { %v950_v19 = vmax.f32 %v942_v15, 0.0  ;;  %v944_v20 = vadd.f32 %v929_v14, %v912_v16  ;;  %v823_v21 = vpop.f32.mrb[4].mxu1 }
 0x154   : > { %v951_v22 = vmax.f32 %v943_v18, 0.0  ;;  %v877_v23 = vadd.f32 %v876_v57, %v823_v21  ;;  %v825_v24 = vpop.f32.mrb[5].mxu1 }
 0x155   : > { %v1173_v25 = vpack.c.bf16 %v950_v19, %v949_v17  ;;  %v952_v26 = vmax.f32 %v944_v20, 0.0  ;;  %v879_v27 = vadd.f32 %v878_v58, %v825_v24  ;;  %v827_v28 = vpop.f32.mrb[6].mxu1 }
 0x156   : > { %v913_v29 = vmul.f32 %v902_v62, %v877_v23  ;;  %v881_v30 = vadd.f32 %v880_v60, %v827_v28  ;;  %v829_v31 = vpop.f32.mrb[7].mxu1 }
 0x157   : > { %981 = vst [vmem:[%s422_s30] sm:$0xff] %v1173_v25  ;;  %v1174_v33 = vpack.c.bf16 %v952_v26, %v951_v22  ;;  %v914_v34 = vmul.f32 %v902_v62, %v879_v27  ;;  %v883_v35 = vadd.f32 %v882_v61, %v829_v31 }
 0x158   : > { %v945_v36 = vadd.f32 %v934_v32, %v913_v29  ;;  %v915_v37 = vmul.f32 %v907_v0, %v881_v30 }
 0x159   : > { %982 = vst [vmem:[%s422_s30 + $0x8] sm:$0xff] %v1174_v33  ;;  %v946_v39 = vadd.f32 %v934_v32, %v914_v34  ;;  %v916_v40 = vmul.f32 %v907_v0, %v883_v35 }
 0x15a   : > { %v953_v41 = vmax.f32 %v945_v36, 0.0  ;;  %v947_v42 = vadd.f32 %v939_v38, %v915_v37 }
 0x15b   : > { %v954_v43 = vmax.f32 %v946_v39, 0.0  ;;  %v948_v44 = vadd.f32 %v939_v38, %v916_v40  ;;  %991 = sbr.rel (!%p1382_p5) target bundleno = 362 (0x16a), region = 78 }
 0x15c   : > { %v955_v45 = vmax.f32 %v947_v42, 0.0 }
 0x15d   : > { %v1175_v46 = vpack.c.bf16 %v954_v43, %v953_v41  ;;  %v956_v47 = vmax.f32 %v948_v44, 0.0 }
 0x15e   : > { %v1028_v49 = vld [vmem:[%s422_s30] sm:$0xff] (%p1382_p5) }
 0x15f   : > { %983 = vst [vmem:[%s422_s30 + $0x10] sm:$0xff] %v1175_v46  ;;  %v1176_v48 = vpack.c.bf16 %v956_v47, %v955_v45  ;;  %1029 = vst [vmem:[%s994_s7] sm:$0xff] (%p1382_p5), %v1028_v49 }
 0x160   : > { %v1030_v50 = vld [vmem:[%s422_s30 + $0x8] sm:$0xff] (%p1382_p5) }
 0x161   : > { %984 = vst [vmem:[%s422_s30 + $0x18] sm:$0xff] %v1176_v48  ;;  %1031 = vst [vmem:[%s994_s7 + $0x38] sm:$0xff] (%p1382_p5), %v1030_v50 }
 0x166   : > { %v1032_v51 = vld [vmem:[%s422_s30 + $0x10] sm:$0xff] }
 0x167   : > { %1033 = vst [vmem:[%s994_s7 + $0x70] sm:$0xff] %v1032_v51 }
 0x168   : > { %v1034_v52 = vld [vmem:[%s422_s30 + $0x18] sm:$0xff] }
 0x169   : > { %1035 = vst [vmem:[%s994_s7 + $0xa8] sm:$0xff] %v1034_v52 }
 0x16a PF: > { %p11_p10 = scmp.ge.s32.totalorder %s1369_s19, 9   ;;  %s1628_s15 = smov %s1320_s16 }
 0x16b   : > { %s1629_s16 = smov %s1380_s22  ;;  %s1630_s17 = smov %s1369_s19 }
 0x16c   :  { %13 = sbr.rel (!%p11_p10) target bundleno = 2 (0x2), region = 147 }

// kernel: dann_forward.10
= control target key start
LH: loop header
LB: loop body
LE: loop exit
PB: predicated region body
PF: predicated region fallthrough
CT: control target
= control target key end

     0   :  { %s1395_s15 = smov 0   ;;  %s1397_s16 = smov 0   ;;  %s1725_s0 = inlined_call_operand.vmem [shape: bf16[64,288], index: 0, kind: input, shape index: {}]   ;;  %s1726_s1 = inlined_call_operand.vmem [shape: bf16[288,512], index: 1, kind: input, shape index: {}]   ;;  %s1727_s2 = inlined_call_operand.vmem [shape: f32[64,1], index: 2, kind: input, shape index: {}]   ;;  %s1728_s3 = inlined_call_operand.vmem [shape: f32[64,1], index: 3, kind: input, shape index: {}]   ;;  %s1729_s4 = inlined_call_operand.vmem [shape: bf16[64,512], index: 4, kind: output, shape index: {}]  }
   0x1   :  { %s1399_s17 = smov 0  }
   0x2 LB: > { %s1147_s18 = sadd.s32 4294967295, %s1367_s17   ;;  %s1412_s19 = sadd.s32 1, %s1367_s17   ;;  %s1367_s17 = sphi %s1399_s17, %s1733_s17   ;;  %s1363_s16 = sphi %s1397_s16, %s1732_s16   ;;  %s1359_s15 = sphi %s1395_s15, %s1731_s15  }
   0x3   : > { %s39_s20 = ssub.s32 %s1367_s17, %s1412_s19  ;;  %s42_s21 = sadd.s32 1, %s1363_s16 }
   0x4   : > { %p40_p0 = scmp.eq.s32.totalorder %s39_s20, 0  ;;  %p49_p1 = scmp.ne.s32.totalorder %s1363_s16, %s1359_s15 }
   0x5   : > { %p50_p2 = scmp.eq.s32.totalorder %s1367_s17, 0  ;;  %p121_p3 = scmp.eq.s32.totalorder %s1147_s18, 1 }
   0x6   : > { %s1423_s22 = scalar_select %p40_p0, %s1363_s16, %s42_s21  }
   0x7   : > { %p51_p4 = por %p50_p2, %p49_p1  ;;  %p1425_p5 = por %p121_p3, %p49_p1 }
   0x8   : > { %p1150_p6 = scmp.ge.s32.totalorder %s1367_s17, 2 }
   0xa   : > { %152 = sbr.rel (%p1150_p6) target bundleno = 39 (0x27), region = 28 }
  0x11   : > { %155 = sbr.rel (!%p51_p4) target bundleno = 39 (0x27), region = 32  ;;  %s157_s24 = sand.u32 (%p51_p4), 1, %s1363_s16  }
  0x12   : > { %s1220_s25 = sshll.u32 (%p51_p4), %s1367_s17, 3  ;;  %s1246_s26 = smul.u32 (%p51_p4), 288, %s157_s24 }
  0x13   : > { %s1435_s29 = scalar_lea.vmem (%p51_p4), %s1726_s1, %s1220_s25 }
  0x14   : > { %v260_v0 = vld [vmem:[%s1435_s29] sm:$0xff] (%p51_p4)  ;;  %v262_v1 = vld [vmem:[%s1435_s29 + $0x10] sm:$0xff] (%p51_p4)  ;;  %s1443_s30 = scalar_lea.vmem (%p51_p4), [#allocation2], %s1246_s26 }
  0x15   : > { %v264_v2 = vld [vmem:[%s1435_s29 + $0x20] sm:$0xff] (%p51_p4)  ;;  %v266_v3 = vld [vmem:[%s1435_s29 + $0x30] sm:$0xff] (%p51_p4)  ;;  %261 = vst [vmem:[%s1443_s30] sm:$0xff] (%p51_p4), %v260_v0  ;;  %263 = vst [vmem:[%s1443_s30 + $0x8] sm:$0xff] (%p51_p4), %v262_v1 }
  0x16   : > { %v268_v4 = vld [vmem:[%s1435_s29 + $0x40] sm:$0xff] (%p51_p4)  ;;  %v270_v5 = vld [vmem:[%s1435_s29 + $0x50] sm:$0xff] (%p51_p4)  ;;  %265 = vst [vmem:[%s1443_s30 + $0x10] sm:$0xff] (%p51_p4), %v264_v2  ;;  %267 = vst [vmem:[%s1443_s30 + $0x18] sm:$0xff] (%p51_p4), %v266_v3 }
  0x17   : > { %269 = vst [vmem:[%s1443_s30 + $0x20] sm:$0xff] (%p51_p4), %v268_v4  ;;  %271 = vst [vmem:[%s1443_s30 + $0x28] sm:$0xff] (%p51_p4), %v270_v5  ;;  %v272_v6 = vld [vmem:[%s1435_s29 + $0x60] sm:$0xff] (%p51_p4)  ;;  %v274_v7 = vld [vmem:[%s1435_s29 + $0x70] sm:$0xff] (%p51_p4) }
  0x18   : > { %v276_v8 = vld [vmem:[%s1435_s29 + $0x80] sm:$0xff]  ;;  %273 = vst [vmem:[%s1443_s30 + $0x30] sm:$0xff] %v272_v6  ;;  %275 = vst [vmem:[%s1443_s30 + $0x38] sm:$0xff] %v274_v7  ;;  %v278_v9 = vld [vmem:[%s1435_s29 + $0x90] sm:$0xff] }
  0x19   : > { %277 = vst [vmem:[%s1443_s30 + $0x40] sm:$0xff] %v276_v8  ;;  %v280_v10 = vld [vmem:[%s1435_s29 + $0xa0] sm:$0xff]  ;;  %v282_v11 = vld [vmem:[%s1435_s29 + $0xb0] sm:$0xff]  ;;  %279 = vst [vmem:[%s1443_s30 + $0x48] sm:$0xff] %v278_v9 }
  0x1a   : > { %281 = vst [vmem:[%s1443_s30 + $0x50] sm:$0xff] %v280_v10  ;;  %283 = vst [vmem:[%s1443_s30 + $0x58] sm:$0xff] %v282_v11  ;;  %v284_v12 = vld [vmem:[%s1435_s29 + $0xc0] sm:$0xff]  ;;  %v286_v13 = vld [vmem:[%s1435_s29 + $0xd0] sm:$0xff] }
  0x1b   : > { %v288_v14 = vld [vmem:[%s1435_s29 + $0xe0] sm:$0xff]  ;;  %285 = vst [vmem:[%s1443_s30 + $0x60] sm:$0xff] %v284_v12  ;;  %287 = vst [vmem:[%s1443_s30 + $0x68] sm:$0xff] %v286_v13  ;;  %v290_v15 = vld [vmem:[%s1435_s29 + $0xf0] sm:$0xff] }
  0x1c   : > { %289 = vst [vmem:[%s1443_s30 + $0x70] sm:$0xff] %v288_v14  ;;  %v292_v16 = vld [vmem:[%s1435_s29 + $0x100] sm:$0xff]  ;;  %v294_v17 = vld [vmem:[%s1435_s29 + $0x110] sm:$0xff]  ;;  %291 = vst [vmem:[%s1443_s30 + $0x78] sm:$0xff] %v290_v15 }
  0x1d   : > { %293 = vst [vmem:[%s1443_s30 + $0x80] sm:$0xff] %v292_v16  ;;  %295 = vst [vmem:[%s1443_s30 + $0x88] sm:$0xff] %v294_v17  ;;  %v296_v18 = vld [vmem:[%s1435_s29 + $0x120] sm:$0xff]  ;;  %v298_v19 = vld [vmem:[%s1435_s29 + $0x130] sm:$0xff] }
  0x1e   : > { %v300_v20 = vld [vmem:[%s1435_s29 + $0x140] sm:$0xff]  ;;  %297 = vst [vmem:[%s1443_s30 + $0x90] sm:$0xff] %v296_v18  ;;  %299 = vst [vmem:[%s1443_s30 + $0x98] sm:$0xff] %v298_v19  ;;  %v302_v21 = vld [vmem:[%s1435_s29 + $0x150] sm:$0xff] }
  0x1f   : > { %301 = vst [vmem:[%s1443_s30 + $0xa0] sm:$0xff] %v300_v20  ;;  %v304_v22 = vld [vmem:[%s1435_s29 + $0x160] sm:$0xff]  ;;  %v306_v23 = vld [vmem:[%s1435_s29 + $0x170] sm:$0xff]  ;;  %303 = vst [vmem:[%s1443_s30 + $0xa8] sm:$0xff] %v302_v21 }
  0x20   : > { %305 = vst [vmem:[%s1443_s30 + $0xb0] sm:$0xff] %v304_v22  ;;  %307 = vst [vmem:[%s1443_s30 + $0xb8] sm:$0xff] %v306_v23  ;;  %v308_v24 = vld [vmem:[%s1435_s29 + $0x180] sm:$0xff]  ;;  %v310_v25 = vld [vmem:[%s1435_s29 + $0x190] sm:$0xff] }
  0x21   : > { %v312_v26 = vld [vmem:[%s1435_s29 + $0x1a0] sm:$0xff]  ;;  %309 = vst [vmem:[%s1443_s30 + $0xc0] sm:$0xff] %v308_v24  ;;  %311 = vst [vmem:[%s1443_s30 + $0xc8] sm:$0xff] %v310_v25  ;;  %v314_v27 = vld [vmem:[%s1435_s29 + $0x1b0] sm:$0xff] }
  0x22   : > { %313 = vst [vmem:[%s1443_s30 + $0xd0] sm:$0xff] %v312_v26  ;;  %v316_v28 = vld [vmem:[%s1435_s29 + $0x1c0] sm:$0xff]  ;;  %v318_v29 = vld [vmem:[%s1435_s29 + $0x1d0] sm:$0xff]  ;;  %315 = vst [vmem:[%s1443_s30 + $0xd8] sm:$0xff] %v314_v27 }
  0x23   : > { %317 = vst [vmem:[%s1443_s30 + $0xe0] sm:$0xff] %v316_v28  ;;  %319 = vst [vmem:[%s1443_s30 + $0xe8] sm:$0xff] %v318_v29  ;;  %v320_v30 = vld [vmem:[%s1435_s29 + $0x1e0] sm:$0xff]  ;;  %v322_v31 = vld [vmem:[%s1435_s29 + $0x1f0] sm:$0xff] }
  0x24   : > { %v324_v32 = vld [vmem:[%s1435_s29 + $0x200] sm:$0xff]  ;;  %321 = vst [vmem:[%s1443_s30 + $0xf0] sm:$0xff] %v320_v30  ;;  %323 = vst [vmem:[%s1443_s30 + $0xf8] sm:$0xff] %v322_v31  ;;  %v326_v33 = vld [vmem:[%s1435_s29 + $0x210] sm:$0xff] }
  0x25   : > { %325 = vst [vmem:[%s1443_s30 + $0x100] sm:$0xff] %v324_v32  ;;  %v328_v34 = vld [vmem:[%s1435_s29 + $0x220] sm:$0xff]  ;;  %v330_v35 = vld [vmem:[%s1435_s29 + $0x230] sm:$0xff]  ;;  %327 = vst [vmem:[%s1443_s30 + $0x108] sm:$0xff] %v326_v33 }
  0x26   : > { %329 = vst [vmem:[%s1443_s30 + $0x110] sm:$0xff] %v328_v34  ;;  %331 = vst [vmem:[%s1443_s30 + $0x118] sm:$0xff] %v330_v35 }
  0x27 PF: > { %p1153_p7 = scmp.ge.s32.totalorder %s1367_s17, 1  ;;  %p336_p8 = scmp.lt.s32.totalorder %s1367_s17, 3 }
  0x29   : > { %p337_p9 = pnand %p1153_p7, %p336_p8 }
  0x2a   : > { %s343_s5 = sand.u32 (!%p337_p9), 1, %s1359_s15   ;;  %v1369_v36 = vmov (!%p337_p9), 0   ;;  %v1332_v37 = vld [vmem:[%s1725_s0 + $0x4] ss:$12 sps:$4 sm:$0xff] (!%p337_p9)   ;;  %v1329_v57 = vld [vmem:[%s1725_s0 + $0x8] ss:$12 sps:$4 sm:$0xff] (!%p337_p9)  }
  0x2b   : > { %340 = sbr.rel (%p337_p9) target bundleno = 370 (0x172), region = 70  ;;  %780 = vmatprep.mubr.bf16.mxu0 (!%p337_p9), %v1369_v36  ;;  %1274 = vset.pattern.permute.xlu1 (!%p337_p9), %v1369_v36  ;;  %vm662_vm0 = vcmask (!%p337_p9), 261120   ;;  %v823_v60 = vld [vmem:[%s1727_s2 + $0x10] sm:$0xff] (!%p337_p9)  ;;  %v821_v61 = vld [vmem:[%s1727_s2] sm:$0xff] (!%p337_p9)  ;;  %v824_v63 = vld [vmem:[%s1727_s2 + $0x18] sm:$0xff] (!%p337_p9)  ;;  %s1154_s12 = sshll.u32 (!%p337_p9), %s343_s5, 6 }
  0x2c   : > { %s1247_s6 = smul.u32 (!%p337_p9), 288, %s343_s5  ;;  %1273 = vset.pattern.permute.xlu0 (!%p337_p9), %v1369_v36  ;;  %707 = vmatprep.mubr.bf16.mxu1 (!%p337_p9), %v1332_v37  ;;  %v822_v1 = vld [vmem:[%s1727_s2 + $0x8] sm:$0xff] (!%p337_p9)  ;;  %v825_v6 = vld [vmem:[%s1727_s2 + $0x20] sm:$0xff] (!%p337_p9)  ;;  %v828_v8 = vld [vmem:[%s1727_s2 + $0x38] sm:$0xff] (!%p337_p9)  ;;  %s1674_s15 = scalar_lea.vmem (!%p337_p9), [#allocation3], %s1154_s12 }
  0x2d   : > { %841 = vperm.xlu1 (!%p337_p9), %1274, %v823_v60   ;;  %831 = vperm.xlu0 (!%p337_p9), %1273, %v821_v61   ;;  %v1333_v2 = vld [vmem:[%s1725_s0 + $0x20] ss:$12 sps:$4 sm:$0xff] (!%p337_p9)   ;;  %v827_v10 = vld [vmem:[%s1727_s2 + $0x30] sm:$0xff] (!%p337_p9)  ;;  %v1337_v11 = vld [vmem:[%s1725_s0 + $0x38] ss:$12 sps:$4 sm:$0xff] (!%p337_p9)  }
  0x2e   : > { %s1522_s9 = scalar_lea.vmem (!%p337_p9), [#allocation2], %s1247_s6  ;;  %v826_v4 = vld [vmem:[%s1727_s2 + $0x28] sm:$0xff] (!%p337_p9)  ;;  %v885_v15 = vld [vmem:[%s1728_s3] sm:$0xff] (!%p337_p9)  ;;  %v888_v17 = vld [vmem:[%s1728_s3 + $0x18] sm:$0xff] (!%p337_p9) }
  0x2f   : > { %v1275_v38 = vld [vmem:[%s1522_s9 + $0x4] ss:$8 sps:$4 sm:$0xff] (!%p337_p9)   ;;  %v1277_v39 = vld [vmem:[%s1522_s9] ss:$8 sps:$4 sm:$0xff] (!%p337_p9)   ;;  %v1278_v40 = vld [vmem:[%s1522_s9 + $0x14] ss:$8 sps:$4 sm:$0xff] (!%p337_p9)  }
  0x30   : > { %675 = vmatprep.subr.bf16.mxu1 (!%p337_p9), %v1275_v38  ;;  %v1280_v41 = vld [vmem:[%s1522_s9 + $0x10] ss:$8 sps:$4 sm:$0xff] (!%p337_p9)   ;;  %v1281_v42 = vld [vmem:[%s1522_s9 + $0x24] ss:$8 sps:$4 sm:$0xff] (!%p337_p9)   ;;  %v1283_v43 = vld [vmem:[%s1522_s9 + $0x20] ss:$8 sps:$4 sm:$0xff] (!%p337_p9)  }
  0x31   : > { %676 = vmatpush1.bf16.msra.mxu1 (!%p337_p9), %v1277_v39  ;;  %v1284_v44 = vld [vmem:[%s1522_s9 + $0x34] ss:$8 sps:$4 sm:$0xff] (!%p337_p9)   ;;  %v1286_v45 = vld [vmem:[%s1522_s9 + $0x30] ss:$8 sps:$4 sm:$0xff] (!%p337_p9)   ;;  %v1287_v46 = vld [vmem:[%s1522_s9 + $0x44] ss:$8 sps:$4 sm:$0xff] (!%p337_p9)   ;;  %846 = vperm.xlu1 (!%p337_p9), %1274, %v824_v63  }
  0x32   : > { %677 = vmatprep.subr.bf16.mxu1 %v1278_v40  ;;  %v1289_v47 = vld [vmem:[%s1522_s9 + $0x40] ss:$8 sps:$4 sm:$0xff]   ;;  %v1290_v48 = vld [vmem:[%s1522_s9 + $0x54] ss:$8 sps:$4 sm:$0xff]   ;;  %v1292_v49 = vld [vmem:[%s1522_s9 + $0x50] ss:$8 sps:$4 sm:$0xff]   ;;  %836 = vperm.xlu0 %1273, %v822_v1  }
  0x33   : > { %v1317_v50 = vld [vmem:[%s1522_s9 + $0x104] ss:$8 sps:$4 sm:$0xff]   ;;  %v1319_v51 = vld [vmem:[%s1522_s9 + $0x100] ss:$8 sps:$4 sm:$0xff]   ;;  %v1323_v53 = vld [vmem:[%s1522_s9 + $0x114] ss:$8 sps:$4 sm:$0xff]  }
  0x34   : > { %v1293_v52 = vld [vmem:[%s1522_s9 + $0x64] ss:$8 sps:$4 sm:$0xff]   ;;  %748 = vmatprep.subr.bf16.mxu0 %v1317_v50  ;;  %v1325_v54 = vld [vmem:[%s1522_s9 + $0x110] ss:$8 sps:$4 sm:$0xff]   ;;  %v1295_v55 = vld [vmem:[%s1522_s9 + $0x60] ss:$8 sps:$4 sm:$0xff]  }
  0x35   : > { %678 = vmatpush1.bf16.msra.mxu1 %v1280_v41  ;;  %749 = vmatpush1.bf16.msra.mxu0 %v1319_v51  ;;  %v1296_v56 = vld [vmem:[%s1522_s9 + $0x74] ss:$8 sps:$4 sm:$0xff]   ;;  %v1298_v58 = vld [vmem:[%s1522_s9 + $0x70] ss:$8 sps:$4 sm:$0xff]   ;;  %v1299_v59 = vld [vmem:[%s1522_s9 + $0x84] ss:$8 sps:$4 sm:$0xff]  }
  0x36   : > { %679 = vmatprep.subr.bf16.mxu1 %v1281_v42  ;;  %750 = vmatprep.subr.bf16.mxu0 %v1323_v53  ;;  %v1301_v62 = vld [vmem:[%s1522_s9 + $0x80] ss:$8 sps:$4 sm:$0xff]   ;;  %v1302_v0 = vld [vmem:[%s1522_s9 + $0x94] ss:$8 sps:$4 sm:$0xff]   ;;  %v1304_v3 = vld [vmem:[%s1522_s9 + $0x90] ss:$8 sps:$4 sm:$0xff]  }
  0x37   : > { %v1305_v5 = vld [vmem:[%s1522_s9 + $0xa4] ss:$8 sps:$4 sm:$0xff]   ;;  %856 = vperm.xlu1 %1274, %v826_v4   ;;  %v1307_v7 = vld [vmem:[%s1522_s9 + $0xa0] ss:$8 sps:$4 sm:$0xff]   ;;  %851 = vperm.xlu0 %1273, %v825_v6   ;;  %v1308_v9 = vld [vmem:[%s1522_s9 + $0xb4] ss:$8 sps:$4 sm:$0xff]  }
  0x38   : > { %v1310_v12 = vld [vmem:[%s1522_s9 + $0xb0] ss:$8 sps:$4 sm:$0xff]   ;;  %v886_v13 = vld [vmem:[%s1728_s3 + $0x8] sm:$0xff]  ;;  %v1314_v18 = vld [vmem:[%s1522_s9 + $0xd4] ss:$8 sps:$4 sm:$0xff]   ;;  %s1229_s5 = sshll.u32 (%p1425_p5), %s1147_s18, 3 }
  0x39   : > { %680 = vmatpush1.bf16.msra.mxu1 %v1283_v43  ;;  %751 = vmatpush1.bf16.msra.mxu0 %v1325_v54  ;;  %v1311_v14 = vld [vmem:[%s1522_s9 + $0xc4] ss:$8 sps:$4 sm:$0xff]   ;;  %v1313_v16 = vld [vmem:[%s1522_s9 + $0xc0] ss:$8 sps:$4 sm:$0xff]   ;;  %v887_v19 = vld [vmem:[%s1728_s3 + $0x10] sm:$0xff]  ;;  %s1030_s20 = scalar_lea.vmem (%p1425_p5), %s1729_s4, %s1229_s5 }
  0x3a   : > { %681 = vmatprep.subr.bf16.mxu1 %v1284_v44  ;;  %v1341_v20 = vld [vmem:[%s1725_s0 + $0x50] ss:$12 sps:$4 sm:$0xff]   ;;  %v890_v22 = vld [vmem:[%s1728_s3 + $0x28] sm:$0xff]  ;;  %v889_v24 = vld [vmem:[%s1728_s3 + $0x20] sm:$0xff] }
  0x3b   : > { %866 = vperm.xlu1 %1274, %v828_v8   ;;  %861 = vperm.xlu0 %1273, %v827_v10   ;;  %v1316_v21 = vld [vmem:[%s1522_s9 + $0xd0] ss:$8 sps:$4 sm:$0xff]   ;;  %v1320_v23 = vld [vmem:[%s1522_s9 + $0xe4] ss:$8 sps:$4 sm:$0xff]   ;;  %v1322_v25 = vld [vmem:[%s1522_s9 + $0xe0] ss:$8 sps:$4 sm:$0xff]  }
  0x3c   : > { %1203 = vmatmul.mubr.msk.bf16.vlgmr.msra.gmra.mrb[0].mxu0 %vm662_vm0, %v1329_v57  ;;  %v892_v26 = vld [vmem:[%s1728_s3 + $0x38] sm:$0xff]  ;;  %v891_v28 = vld [vmem:[%s1728_s3 + $0x30] sm:$0xff]  ;;  %v1330_v30 = vld [vmem:[%s1725_s0] ss:$12 sps:$4 sm:$0xff]  }
  0x3d   : > { %682 = vmatpush1.bf16.msra.mxu1 %v1286_v45  ;;  %790 = vmatprep.mubr.bf16.mxu0 %v1369_v36  ;;  %v1326_v27 = vld [vmem:[%s1522_s9 + $0xf4] ss:$8 sps:$4 sm:$0xff]   ;;  %v1328_v29 = vld [vmem:[%s1522_s9 + $0xf0] ss:$8 sps:$4 sm:$0xff]  }
  0x3e   : > { %683 = vmatprep.subr.bf16.mxu1 %v1287_v46  ;;  %v1334_v31 = vld [vmem:[%s1725_s0 + $0x1c] ss:$12 sps:$4 sm:$0xff]   ;;  %v1336_v32 = vld [vmem:[%s1725_s0 + $0x18] ss:$12 sps:$4 sm:$0xff]   ;;  %v1338_v33 = vld [vmem:[%s1725_s0 + $0x34] ss:$12 sps:$4 sm:$0xff]  }
  0x3f   : > { %900 = vperm.xlu1 %1274, %v886_v13   ;;  %895 = vperm.xlu0 %1273, %v885_v15   ;;  %v1340_v34 = vld [vmem:[%s1725_s0 + $0x30] ss:$12 sps:$4 sm:$0xff]   ;;  %v1342_v35 = vld [vmem:[%s1725_s0 + $0x4c] ss:$12 sps:$4 sm:$0xff]  }
  0x41   : > { %684 = vmatpush1.bf16.msra.mxu1 %v1289_v47 }
  0x42   : > { %685 = vmatprep.subr.bf16.mxu1 %v1290_v48 }
  0x43   : > { %910 = vperm.xlu1 %1274, %v888_v17   ;;  %905 = vperm.xlu0 %1273, %v887_v19  }
  0x44   : > { %1204 = vmatmul.mubr.msk.bf16.gmra.mrb[4].mxu0 %vm662_vm0, %v1333_v2 }
  0x45   : > { %686 = vmatpush1.bf16.msra.mxu1 %v1292_v49  ;;  %800 = vmatprep.mubr.bf16.mxu0 %v1369_v36 }
  0x46   : > { %687 = vmatprep.subr.bf16.mxu1 %v1293_v52 }
  0x47   : > { %920 = vperm.xlu1 %1274, %v890_v22   ;;  %915 = vperm.xlu0 %1273, %v889_v24  }
  0x49   : > { %688 = vmatpush1.bf16.msra.mxu1 %v1295_v55 }
  0x4a   : > { %689 = vmatprep.subr.bf16.mxu1 %v1296_v56 }
  0x4b   : > { %930 = vperm.xlu1 %1274, %v892_v26   ;;  %925 = vperm.xlu0 %1273, %v891_v28  }
  0x4c   : > { %1205 = vmatmul.mubr.msk.bf16.gmra.mrb[8].mxu0 %vm662_vm0, %v1337_v11 }
  0x4d   : > { %690 = vmatpush1.bf16.msra.mxu1 %v1298_v58  ;;  %810 = vmatprep.mubr.bf16.mxu0 %v1369_v36  ;;  %v1344_v36 = vld [vmem:[%s1725_s0 + $0x48] ss:$12 sps:$4 sm:$0xff]  }
  0x4e   : > { %691 = vmatprep.subr.bf16.mxu1 %v1299_v59 }
  0x51   : > { %692 = vmatpush1.bf16.msra.mxu1 %v1301_v62 }
  0x52   : > { %693 = vmatprep.subr.bf16.mxu1 %v1302_v0 }
  0x54   : > { %1206 = vmatmul.mubr.msk.bf16.gmra.mrb[12].mxu0 %vm662_vm0, %v1341_v20 }
  0x55   : > { %694 = vmatpush1.bf16.msra.mxu1 %v1304_v3 }
  0x56   : > { %695 = vmatprep.subr.bf16.mxu1 %v1305_v5 }
  0x59   : > { %696 = vmatpush1.bf16.msra.mxu1 %v1307_v7 }
  0x5a   : > { %697 = vmatprep.subr.bf16.mxu1 %v1308_v9 }
  0x5d   : > { %698 = vmatpush1.bf16.msra.mxu1 %v1310_v12 }
  0x5e   : > { %699 = vmatprep.subr.bf16.mxu1 %v1311_v14 }
  0x61   : > { %700 = vmatpush1.bf16.msra.mxu1 %v1313_v16 }
  0x62   : > { %701 = vmatprep.subr.bf16.mxu1 %v1314_v18 }
  0x65   : > { %702 = vmatpush1.bf16.msra.mxu1 %v1316_v21 }
  0x66   : > { %703 = vmatprep.subr.bf16.mxu1 %v1320_v23 }
  0x69   : > { %704 = vmatpush1.bf16.msra.mxu1 %v1322_v25 }
  0x6a   : > { %705 = vmatprep.subr.bf16.mxu1 %v1326_v27 }
  0x6d   : > { %706 = vmatpush1.bf16.msra.mxu1 %v1328_v29 }
  0x70   : > { %708 = vmatmul.mubr.bf16.vlgmr.msra.gmra.mrb[0].mxu1 %v1330_v30 }
  0x71   : > { %717 = vmatprep.mubr.bf16.mxu1 %v1334_v31 }
  0x78   : > { %718 = vmatmul.mubr.bf16.gmra.mrb[4].mxu1 %v1336_v32 }
  0x79   : > { %727 = vmatprep.mubr.bf16.mxu1 %v1338_v33 }
  0x80   : > { %728 = vmatmul.mubr.bf16.gmra.mrb[8].mxu1 %v1340_v34 }
  0x81   : > { %737 = vmatprep.mubr.bf16.mxu1 %v1342_v35 }
  0x88   : > { %738 = vmatmul.mubr.bf16.gmra.mrb[12].mxu1 %v1344_v36 }
  0xac   : > { %v832_v46 = vpop.permute.xlu0 %831  ;;  %v842_v49 = vpop.permute.xlu1 %841 }
  0xb0   : > { %v847_v53 = vpop.permute.xlu1 %846 }
  0xb1   : > { %v837_v51 = vpop.permute.xlu0 %836 }
  0xb6   : > { %v1664_v57 = vpop.permute.xlu0 %851  ;;  %v1666_v58 = vpop.permute.xlu1 %856 }
  0xba   : > { %v1668_v59 = vpop.permute.xlu0 %861  ;;  %v1670_v60 = vpop.permute.xlu1 %866 }
  0xbe   : > { %v896_v5 = vpop.permute.xlu0 %895  ;;  %v901_v10 = vpop.permute.xlu1 %900 }
  0xc2   : > { %v906_v28 = vpop.permute.xlu0 %905  ;;  %v911_v34 = vpop.permute.xlu1 %910 }
 0x10f   : > { %v782_v37 = vpop.f32.mrb[0].mxu0 }
 0x110   : > { %v784_v38 = vpop.f32.mrb[1].mxu0 }
 0x111   : > { %v786_v39 = vpop.f32.mrb[2].mxu0 }
 0x112   : > { %v788_v40 = vpop.f32.mrb[3].mxu0 }
 0x117   : > { %v792_v41 = vpop.f32.mrb[4].mxu0 }
 0x118   : > { %v794_v42 = vpop.f32.mrb[5].mxu0 }
 0x119   : > { %v796_v43 = vpop.f32.mrb[6].mxu0 }
 0x11a   : > { %v798_v44 = vpop.f32.mrb[7].mxu0 }
 0x11f   : > { %v1648_v45 = vpop.f32.mrb[8].mxu0 }
 0x120   : > { %v1650_v47 = vpop.f32.mrb[9].mxu0 }
 0x121   : > { %v1652_v48 = vpop.f32.mrb[10].mxu0 }
 0x122   : > { %v1654_v50 = vpop.f32.mrb[11].mxu0 }
 0x127   : > { %v1656_v52 = vpop.f32.mrb[12].mxu0 }
 0x128   : > { %v1658_v54 = vpop.f32.mrb[13].mxu0 }
 0x129   : > { %v1660_v55 = vpop.f32.mrb[14].mxu0 }
 0x12a   : > { %v1662_v56 = vpop.f32.mrb[15].mxu0 }
 0x143   : > { %v709_v61 = vpop.f32.mrb[0].mxu1 }
 0x144   : > { %v783_v62 = vadd.f32 %v782_v37, %v709_v61  ;;  %v711_v63 = vpop.f32.mrb[1].mxu1 }
 0x145   : > { %v785_v0 = vadd.f32 %v784_v38, %v711_v63  ;;  %v713_v1 = vpop.f32.mrb[2].mxu1 }
 0x146   : > { %v869_v2 = vmul.f32 %v832_v46, %v783_v62  ;;  %v787_v3 = vadd.f32 %v786_v39, %v713_v1  ;;  %v715_v4 = vpop.f32.mrb[3].mxu1 }
 0x147   : > { %v870_v6 = vmul.f32 %v832_v46, %v785_v0  ;;  %v789_v7 = vadd.f32 %v788_v40, %v715_v4  ;;  %v916_v0 = vpop.permute.xlu0 %915 }
 0x148   : > { %v933_v8 = vadd.f32 %v896_v5, %v869_v2  ;;  %v871_v9 = vmul.f32 %v837_v51, %v787_v3 }
 0x149   : > { %v934_v11 = vadd.f32 %v896_v5, %v870_v6  ;;  %v872_v12 = vmul.f32 %v837_v51, %v789_v7  ;;  %v921_v5 = vpop.permute.xlu1 %920 }
 0x14a   : > { %v949_v13 = vmax.f32 %v933_v8, 0.0  ;;  %v935_v14 = vadd.f32 %v901_v10, %v871_v9 }
 0x14b   : > { %v950_v15 = vmax.f32 %v934_v11, 0.0  ;;  %v936_v16 = vadd.f32 %v901_v10, %v872_v12  ;;  %v719_v17 = vpop.f32.mrb[4].mxu1 }
 0x14c   : > { %v951_v18 = vmax.f32 %v935_v14, 0.0  ;;  %v793_v19 = vadd.f32 %v792_v41, %v719_v17  ;;  %v721_v20 = vpop.f32.mrb[5].mxu1 }
 0x14d   : > { %v1221_v21 = vpack.c.bf16 %v950_v15, %v949_v13  ;;  %v952_v22 = vmax.f32 %v936_v16, 0.0  ;;  %v795_v23 = vadd.f32 %v794_v42, %v721_v20  ;;  %v723_v24 = vpop.f32.mrb[6].mxu1 }
 0x14e   : > { %v873_v25 = vmul.f32 %v842_v49, %v793_v19  ;;  %v797_v26 = vadd.f32 %v796_v43, %v723_v24  ;;  %v725_v27 = vpop.f32.mrb[7].mxu1 }
 0x14f   : > { %1013 = vst [vmem:[%s1674_s15] sm:$0xff] %v1221_v21  ;;  %v1222_v29 = vpack.c.bf16 %v952_v22, %v951_v18  ;;  %v874_v30 = vmul.f32 %v842_v49, %v795_v23  ;;  %v799_v31 = vadd.f32 %v798_v44, %v725_v27  ;;  %v926_v18 = vpop.permute.xlu0 %925  ;;  %v931_v23 = vpop.permute.xlu1 %930 }
 0x150   : > { %v937_v32 = vadd.f32 %v906_v28, %v873_v25  ;;  %v875_v33 = vmul.f32 %v847_v53, %v797_v26 }
 0x151   : > { %1014 = vst [vmem:[%s1674_s15 + $0x8] sm:$0xff] %v1222_v29  ;;  %v938_v35 = vadd.f32 %v906_v28, %v874_v30  ;;  %v876_v36 = vmul.f32 %v847_v53, %v799_v31 }
 0x152   : > { %v953_v37 = vmax.f32 %v937_v32, 0.0  ;;  %v939_v38 = vadd.f32 %v911_v34, %v875_v33 }
 0x153   : > { %v954_v39 = vmax.f32 %v938_v35, 0.0  ;;  %v940_v40 = vadd.f32 %v911_v34, %v876_v36  ;;  %v729_v41 = vpop.f32.mrb[8].mxu1 }
 0x154   : > { %v955_v42 = vmax.f32 %v939_v38, 0.0  ;;  %v803_v43 = vadd.f32 %v1648_v45, %v729_v41  ;;  %v731_v46 = vpop.f32.mrb[9].mxu1 }
 0x155   : > { %v1223_v51 = vpack.c.bf16 %v954_v39, %v953_v37  ;;  %v956_v49 = vmax.f32 %v940_v40, 0.0  ;;  %v805_v44 = vadd.f32 %v1650_v47, %v731_v46  ;;  %v733_v61 = vpop.f32.mrb[10].mxu1 }
 0x156   : > { %v877_v62 = vmul.f32 %v1664_v57, %v803_v43  ;;  %v807_v53 = vadd.f32 %v1652_v48, %v733_v61  ;;  %v735_v63 = vpop.f32.mrb[11].mxu1 }
 0x157   : > { %1015 = vst [vmem:[%s1674_s15 + $0x10] sm:$0xff] %v1223_v51  ;;  %v1224_v1 = vpack.c.bf16 %v956_v49, %v955_v42  ;;  %v878_v2 = vmul.f32 %v1664_v57, %v805_v44  ;;  %v809_v3 = vadd.f32 %v1654_v50, %v735_v63 }
 0x158   : > { %v941_v45 = vadd.f32 %v916_v0, %v877_v62  ;;  %v879_v4 = vmul.f32 %v1666_v58, %v807_v53 }
 0x159   : > { %1016 = vst [vmem:[%s1674_s15 + $0x18] sm:$0xff] %v1224_v1  ;;  %v942_v6 = vadd.f32 %v916_v0, %v878_v2  ;;  %v880_v47 = vmul.f32 %v1666_v58, %v809_v3 }
 0x15a   : > { %v957_v7 = vmax.f32 %v941_v45, 0.0  ;;  %v943_v8 = vadd.f32 %v921_v5, %v879_v4 }
 0x15b   : > { %v958_v48 = vmax.f32 %v942_v6, 0.0  ;;  %v944_v9 = vadd.f32 %v921_v5, %v880_v47  ;;  %v739_v10 = vpop.f32.mrb[12].mxu1 }
 0x15c   : > { %v959_v11 = vmax.f32 %v943_v8, 0.0  ;;  %v813_v12 = vadd.f32 %v1656_v52, %v739_v10  ;;  %v741_v57 = vpop.f32.mrb[13].mxu1 }
 0x15d   : > { %v1225_v50 = vpack.c.bf16 %v958_v48, %v957_v7  ;;  %v960_v13 = vmax.f32 %v944_v9, 0.0  ;;  %v815_v14 = vadd.f32 %v1658_v54, %v741_v57  ;;  %v743_v15 = vpop.f32.mrb[14].mxu1 }
 0x15e   : > { %v881_v16 = vmul.f32 %v1668_v59, %v813_v12  ;;  %v817_v58 = vadd.f32 %v1660_v55, %v743_v15  ;;  %v745_v17 = vpop.f32.mrb[15].mxu1  ;;  %v1076_v31 = vld [vmem:[%s1674_s15 + $0x10] sm:$0xff] (%p1425_p5) }
 0x15f   : > { %1017 = vst [vmem:[%s1674_s15 + $0x20] sm:$0xff] %v1225_v50  ;;  %v1226_v19 = vpack.c.bf16 %v960_v13, %v959_v11  ;;  %v882_v20 = vmul.f32 %v1668_v59, %v815_v14  ;;  %v819_v52 = vadd.f32 %v1662_v56, %v745_v17  ;;  %v1072_v56 = vld [vmem:[%s1674_s15] sm:$0xff] (%p1425_p5)  ;;  %1077 = vst [vmem:[%s1030_s20 + $0x20] sm:$0xff] (%p1425_p5), %v1076_v31 }
 0x160   : > { %v945_v21 = vadd.f32 %v926_v18, %v881_v16  ;;  %v883_v22 = vmul.f32 %v1670_v60, %v817_v58  ;;  %v1078_v32 = vld [vmem:[%s1674_s15 + $0x18] sm:$0xff] (%p1425_p5)  ;;  %1073 = vst [vmem:[%s1030_s20] sm:$0xff] (%p1425_p5), %v1072_v56 }
 0x161   : > { %1018 = vst [vmem:[%s1674_s15 + $0x28] sm:$0xff] %v1226_v19  ;;  %v946_v54 = vadd.f32 %v926_v18, %v882_v20  ;;  %v884_v24 = vmul.f32 %v1670_v60, %v819_v52  ;;  %v1074_v60 = vld [vmem:[%s1674_s15 + $0x8] sm:$0xff] (%p1425_p5)  ;;  %1079 = vst [vmem:[%s1030_s20 + $0x30] sm:$0xff] (%p1425_p5), %v1078_v32 }
 0x162   : > { %v961_v25 = vmax.f32 %v945_v21, 0.0  ;;  %v947_v55 = vadd.f32 %v931_v23, %v883_v22  ;;  %1075 = vst [vmem:[%s1030_s20 + $0x10] sm:$0xff] (%p1425_p5), %v1074_v60 }
 0x163   : > { %v962_v26 = vmax.f32 %v946_v54, 0.0  ;;  %v948_v27 = vadd.f32 %v931_v23, %v884_v24  ;;  %1027 = sbr.rel (!%p1425_p5) target bundleno = 370 (0x172), region = 78 }
 0x164   : > { %v963_v28 = vmax.f32 %v947_v55, 0.0 }
 0x165   : > { %v1227_v29 = vpack.c.bf16 %v962_v26, %v961_v25  ;;  %v964_v30 = vmax.f32 %v948_v27, 0.0 }
 0x166   : > { %v1080_v33 = vld [vmem:[%s1674_s15 + $0x20] sm:$0xff] (%p1425_p5) }
 0x167   : > { %1019 = vst [vmem:[%s1674_s15 + $0x30] sm:$0xff] %v1227_v29  ;;  %v1228_v59 = vpack.c.bf16 %v964_v30, %v963_v28  ;;  %1081 = vst [vmem:[%s1030_s20 + $0x40] sm:$0xff] (%p1425_p5), %v1080_v33 }
 0x168   : > { %v1082_v34 = vld [vmem:[%s1674_s15 + $0x28] sm:$0xff] (%p1425_p5) }
 0x169   : > { %1020 = vst [vmem:[%s1674_s15 + $0x38] sm:$0xff] %v1228_v59  ;;  %1083 = vst [vmem:[%s1030_s20 + $0x50] sm:$0xff] (%p1425_p5), %v1082_v34 }
 0x16e   : > { %v1084_v35 = vld [vmem:[%s1674_s15 + $0x30] sm:$0xff] }
 0x16f   : > { %1085 = vst [vmem:[%s1030_s20 + $0x60] sm:$0xff] %v1084_v35 }
 0x170   : > { %v1086_v36 = vld [vmem:[%s1674_s15 + $0x38] sm:$0xff] }
 0x171   : > { %1087 = vst [vmem:[%s1030_s20 + $0x70] sm:$0xff] %v1086_v36 }
 0x172 PF: > { %p11_p10 = scmp.ge.s32.totalorder %s1412_s19, 4   ;;  %s1731_s15 = smov %s1363_s16 }
 0x173   : > { %s1732_s16 = smov %s1423_s22  ;;  %s1733_s17 = smov %s1412_s19 }
 0x174   :  { %13 = sbr.rel (!%p11_p10) target bundleno = 2 (0x2), region = 147 }

// kernel: dann_forward.11
= control target key start
LH: loop header
LB: loop body
LE: loop exit
PB: predicated region body
PF: predicated region fallthrough
CT: control target
= control target key end

     0   :  { %s2622_s15 = smov 0   ;;  %s2624_s16 = smov 0   ;;  %s3384_s0 = inlined_call_operand.vmem [shape: bf16[128,576], index: 0, kind: input, shape index: {}]   ;;  %s3385_s1 = inlined_call_operand.vmem [shape: bf16[576,512], index: 1, kind: input, shape index: {}]   ;;  %s3386_s2 = inlined_call_operand.vmem [shape: f32[128,1], index: 2, kind: input, shape index: {}]   ;;  %s3387_s3 = inlined_call_operand.vmem [shape: f32[128,1], index: 3, kind: input, shape index: {}]   ;;  %s3388_s4 = inlined_call_operand.vmem [shape: bf16[128,512], index: 4, kind: output, shape index: {}]  }
   0x1   :  { %s2626_s17 = smov 0  }
   0x2 LB: > { %s2116_s18 = sadd.s32 4294967295, %s2594_s17   ;;  %s2639_s19 = sadd.s32 1, %s2594_s17   ;;  %s2594_s17 = sphi %s2626_s17, %s3392_s17   ;;  %s2590_s16 = sphi %s2624_s16, %s3391_s16   ;;  %s2586_s15 = sphi %s2622_s15, %s3390_s15  }
   0x3   : > { %s39_s20 = ssub.s32 %s2594_s17, %s2639_s19  ;;  %s42_s21 = sadd.s32 1, %s2590_s16 }
   0x4   : > { %p40_p0 = scmp.eq.s32.totalorder %s39_s20, 0  ;;  %p49_p1 = scmp.ne.s32.totalorder %s2590_s16, %s2586_s15 }
   0x5   : > { %p50_p2 = scmp.eq.s32.totalorder %s2594_s17, 0  ;;  %p121_p3 = scmp.eq.s32.totalorder %s2116_s18, 1 }
   0x6   : > { %s2650_s22 = scalar_select %p40_p0, %s2590_s16, %s42_s21  }
   0x7   : > { %p51_p4 = por %p50_p2, %p49_p1  ;;  %p2652_p5 = por %p121_p3, %p49_p1 }
   0x8   : > { %p2119_p6 = scmp.ge.s32.totalorder %s2594_s17, 2 }
   0xa   : > { %152 = sbr.rel (%p2119_p6) target bundleno = 57 (0x39), region = 28 }
  0x11   : > { %155 = sbr.rel (!%p51_p4) target bundleno = 57 (0x39), region = 32  ;;  %s157_s24 = sand.u32 (%p51_p4), 1, %s2590_s16  }
  0x12   : > { %s2265_s25 = sshll.u32 (%p51_p4), %s2594_s17, 3  ;;  %s2379_s26 = smul.u32 (%p51_p4), 576, %s157_s24 }
  0x13   : > { %s2662_s29 = scalar_lea.vmem (%p51_p4), %s3385_s1, %s2265_s25 }
  0x14   : > { %v332_v0 = vld [vmem:[%s2662_s29] sm:$0xff] (%p51_p4)  ;;  %v334_v1 = vld [vmem:[%s2662_s29 + $0x10] sm:$0xff] (%p51_p4)  ;;  %s2670_s30 = scalar_lea.vmem (%p51_p4), [#allocation2], %s2379_s26 }
  0x15   : > { %v336_v2 = vld [vmem:[%s2662_s29 + $0x20] sm:$0xff] (%p51_p4)  ;;  %v338_v3 = vld [vmem:[%s2662_s29 + $0x30] sm:$0xff] (%p51_p4)  ;;  %333 = vst [vmem:[%s2670_s30] sm:$0xff] (%p51_p4), %v332_v0  ;;  %335 = vst [vmem:[%s2670_s30 + $0x8] sm:$0xff] (%p51_p4), %v334_v1 }
  0x16   : > { %v340_v4 = vld [vmem:[%s2662_s29 + $0x40] sm:$0xff] (%p51_p4)  ;;  %v342_v5 = vld [vmem:[%s2662_s29 + $0x50] sm:$0xff] (%p51_p4)  ;;  %337 = vst [vmem:[%s2670_s30 + $0x10] sm:$0xff] (%p51_p4), %v336_v2  ;;  %339 = vst [vmem:[%s2670_s30 + $0x18] sm:$0xff] (%p51_p4), %v338_v3 }
  0x17   : > { %341 = vst [vmem:[%s2670_s30 + $0x20] sm:$0xff] (%p51_p4), %v340_v4  ;;  %343 = vst [vmem:[%s2670_s30 + $0x28] sm:$0xff] (%p51_p4), %v342_v5  ;;  %v344_v6 = vld [vmem:[%s2662_s29 + $0x60] sm:$0xff] (%p51_p4)  ;;  %v346_v7 = vld [vmem:[%s2662_s29 + $0x70] sm:$0xff] (%p51_p4) }
  0x18   : > { %v348_v8 = vld [vmem:[%s2662_s29 + $0x80] sm:$0xff]  ;;  %345 = vst [vmem:[%s2670_s30 + $0x30] sm:$0xff] %v344_v6  ;;  %347 = vst [vmem:[%s2670_s30 + $0x38] sm:$0xff] %v346_v7  ;;  %v350_v9 = vld [vmem:[%s2662_s29 + $0x90] sm:$0xff] }
  0x19   : > { %349 = vst [vmem:[%s2670_s30 + $0x40] sm:$0xff] %v348_v8  ;;  %v352_v10 = vld [vmem:[%s2662_s29 + $0xa0] sm:$0xff]  ;;  %v354_v11 = vld [vmem:[%s2662_s29 + $0xb0] sm:$0xff]  ;;  %351 = vst [vmem:[%s2670_s30 + $0x48] sm:$0xff] %v350_v9 }
  0x1a   : > { %353 = vst [vmem:[%s2670_s30 + $0x50] sm:$0xff] %v352_v10  ;;  %355 = vst [vmem:[%s2670_s30 + $0x58] sm:$0xff] %v354_v11  ;;  %v356_v12 = vld [vmem:[%s2662_s29 + $0xc0] sm:$0xff]  ;;  %v358_v13 = vld [vmem:[%s2662_s29 + $0xd0] sm:$0xff] }
  0x1b   : > { %v360_v14 = vld [vmem:[%s2662_s29 + $0xe0] sm:$0xff]  ;;  %357 = vst [vmem:[%s2670_s30 + $0x60] sm:$0xff] %v356_v12  ;;  %359 = vst [vmem:[%s2670_s30 + $0x68] sm:$0xff] %v358_v13  ;;  %v362_v15 = vld [vmem:[%s2662_s29 + $0xf0] sm:$0xff] }
  0x1c   : > { %361 = vst [vmem:[%s2670_s30 + $0x70] sm:$0xff] %v360_v14  ;;  %v364_v16 = vld [vmem:[%s2662_s29 + $0x100] sm:$0xff]  ;;  %v366_v17 = vld [vmem:[%s2662_s29 + $0x110] sm:$0xff]  ;;  %363 = vst [vmem:[%s2670_s30 + $0x78] sm:$0xff] %v362_v15 }
  0x1d   : > { %365 = vst [vmem:[%s2670_s30 + $0x80] sm:$0xff] %v364_v16  ;;  %367 = vst [vmem:[%s2670_s30 + $0x88] sm:$0xff] %v366_v17  ;;  %v368_v18 = vld [vmem:[%s2662_s29 + $0x120] sm:$0xff]  ;;  %v370_v19 = vld [vmem:[%s2662_s29 + $0x130] sm:$0xff] }
  0x1e   : > { %v372_v20 = vld [vmem:[%s2662_s29 + $0x140] sm:$0xff]  ;;  %369 = vst [vmem:[%s2670_s30 + $0x90] sm:$0xff] %v368_v18  ;;  %371 = vst [vmem:[%s2670_s30 + $0x98] sm:$0xff] %v370_v19  ;;  %v374_v21 = vld [vmem:[%s2662_s29 + $0x150] sm:$0xff] }
  0x1f   : > { %373 = vst [vmem:[%s2670_s30 + $0xa0] sm:$0xff] %v372_v20  ;;  %v376_v22 = vld [vmem:[%s2662_s29 + $0x160] sm:$0xff]  ;;  %v378_v23 = vld [vmem:[%s2662_s29 + $0x170] sm:$0xff]  ;;  %375 = vst [vmem:[%s2670_s30 + $0xa8] sm:$0xff] %v374_v21 }
  0x20   : > { %377 = vst [vmem:[%s2670_s30 + $0xb0] sm:$0xff] %v376_v22  ;;  %379 = vst [vmem:[%s2670_s30 + $0xb8] sm:$0xff] %v378_v23  ;;  %v380_v24 = vld [vmem:[%s2662_s29 + $0x180] sm:$0xff]  ;;  %v382_v25 = vld [vmem:[%s2662_s29 + $0x190] sm:$0xff] }
  0x21   : > { %v384_v26 = vld [vmem:[%s2662_s29 + $0x1a0] sm:$0xff]  ;;  %381 = vst [vmem:[%s2670_s30 + $0xc0] sm:$0xff] %v380_v24  ;;  %383 = vst [vmem:[%s2670_s30 + $0xc8] sm:$0xff] %v382_v25  ;;  %v386_v27 = vld [vmem:[%s2662_s29 + $0x1b0] sm:$0xff] }
  0x22   : > { %385 = vst [vmem:[%s2670_s30 + $0xd0] sm:$0xff] %v384_v26  ;;  %v388_v28 = vld [vmem:[%s2662_s29 + $0x1c0] sm:$0xff]  ;;  %v390_v29 = vld [vmem:[%s2662_s29 + $0x1d0] sm:$0xff]  ;;  %387 = vst [vmem:[%s2670_s30 + $0xd8] sm:$0xff] %v386_v27 }
  0x23   : > { %389 = vst [vmem:[%s2670_s30 + $0xe0] sm:$0xff] %v388_v28  ;;  %391 = vst [vmem:[%s2670_s30 + $0xe8] sm:$0xff] %v390_v29  ;;  %v392_v30 = vld [vmem:[%s2662_s29 + $0x1e0] sm:$0xff]  ;;  %v394_v31 = vld [vmem:[%s2662_s29 + $0x1f0] sm:$0xff] }
  0x24   : > { %v396_v32 = vld [vmem:[%s2662_s29 + $0x200] sm:$0xff]  ;;  %393 = vst [vmem:[%s2670_s30 + $0xf0] sm:$0xff] %v392_v30  ;;  %395 = vst [vmem:[%s2670_s30 + $0xf8] sm:$0xff] %v394_v31  ;;  %v398_v33 = vld [vmem:[%s2662_s29 + $0x210] sm:$0xff] }
  0x25   : > { %397 = vst [vmem:[%s2670_s30 + $0x100] sm:$0xff] %v396_v32  ;;  %v400_v34 = vld [vmem:[%s2662_s29 + $0x220] sm:$0xff]  ;;  %v402_v35 = vld [vmem:[%s2662_s29 + $0x230] sm:$0xff]  ;;  %399 = vst [vmem:[%s2670_s30 + $0x108] sm:$0xff] %v398_v33 }
  0x26   : > { %401 = vst [vmem:[%s2670_s30 + $0x110] sm:$0xff] %v400_v34  ;;  %403 = vst [vmem:[%s2670_s30 + $0x118] sm:$0xff] %v402_v35  ;;  %v404_v36 = vld [vmem:[%s2662_s29 + $0x240] sm:$0xff]  ;;  %v406_v37 = vld [vmem:[%s2662_s29 + $0x250] sm:$0xff] }
  0x27   : > { %v408_v38 = vld [vmem:[%s2662_s29 + $0x260] sm:$0xff]  ;;  %405 = vst [vmem:[%s2670_s30 + $0x120] sm:$0xff] %v404_v36  ;;  %407 = vst [vmem:[%s2670_s30 + $0x128] sm:$0xff] %v406_v37  ;;  %v410_v39 = vld [vmem:[%s2662_s29 + $0x270] sm:$0xff] }
  0x28   : > { %409 = vst [vmem:[%s2670_s30 + $0x130] sm:$0xff] %v408_v38  ;;  %v412_v40 = vld [vmem:[%s2662_s29 + $0x280] sm:$0xff]  ;;  %v414_v41 = vld [vmem:[%s2662_s29 + $0x290] sm:$0xff]  ;;  %411 = vst [vmem:[%s2670_s30 + $0x138] sm:$0xff] %v410_v39 }
  0x29   : > { %413 = vst [vmem:[%s2670_s30 + $0x140] sm:$0xff] %v412_v40  ;;  %415 = vst [vmem:[%s2670_s30 + $0x148] sm:$0xff] %v414_v41  ;;  %v416_v42 = vld [vmem:[%s2662_s29 + $0x2a0] sm:$0xff]  ;;  %v418_v43 = vld [vmem:[%s2662_s29 + $0x2b0] sm:$0xff] }
  0x2a   : > { %v420_v44 = vld [vmem:[%s2662_s29 + $0x2c0] sm:$0xff]  ;;  %417 = vst [vmem:[%s2670_s30 + $0x150] sm:$0xff] %v416_v42  ;;  %419 = vst [vmem:[%s2670_s30 + $0x158] sm:$0xff] %v418_v43  ;;  %v422_v45 = vld [vmem:[%s2662_s29 + $0x2d0] sm:$0xff] }
  0x2b   : > { %421 = vst [vmem:[%s2670_s30 + $0x160] sm:$0xff] %v420_v44  ;;  %v424_v46 = vld [vmem:[%s2662_s29 + $0x2e0] sm:$0xff]  ;;  %v426_v47 = vld [vmem:[%s2662_s29 + $0x2f0] sm:$0xff]  ;;  %423 = vst [vmem:[%s2670_s30 + $0x168] sm:$0xff] %v422_v45 }
  0x2c   : > { %425 = vst [vmem:[%s2670_s30 + $0x170] sm:$0xff] %v424_v46  ;;  %427 = vst [vmem:[%s2670_s30 + $0x178] sm:$0xff] %v426_v47  ;;  %v428_v48 = vld [vmem:[%s2662_s29 + $0x300] sm:$0xff]  ;;  %v430_v49 = vld [vmem:[%s2662_s29 + $0x310] sm:$0xff] }
  0x2d   : > { %v432_v50 = vld [vmem:[%s2662_s29 + $0x320] sm:$0xff]  ;;  %429 = vst [vmem:[%s2670_s30 + $0x180] sm:$0xff] %v428_v48  ;;  %431 = vst [vmem:[%s2670_s30 + $0x188] sm:$0xff] %v430_v49  ;;  %v434_v51 = vld [vmem:[%s2662_s29 + $0x330] sm:$0xff] }
  0x2e   : > { %433 = vst [vmem:[%s2670_s30 + $0x190] sm:$0xff] %v432_v50  ;;  %v436_v52 = vld [vmem:[%s2662_s29 + $0x340] sm:$0xff]  ;;  %v438_v53 = vld [vmem:[%s2662_s29 + $0x350] sm:$0xff]  ;;  %435 = vst [vmem:[%s2670_s30 + $0x198] sm:$0xff] %v434_v51 }
  0x2f   : > { %437 = vst [vmem:[%s2670_s30 + $0x1a0] sm:$0xff] %v436_v52  ;;  %439 = vst [vmem:[%s2670_s30 + $0x1a8] sm:$0xff] %v438_v53  ;;  %v440_v54 = vld [vmem:[%s2662_s29 + $0x360] sm:$0xff]  ;;  %v442_v55 = vld [vmem:[%s2662_s29 + $0x370] sm:$0xff] }
  0x30   : > { %v444_v56 = vld [vmem:[%s2662_s29 + $0x380] sm:$0xff]  ;;  %441 = vst [vmem:[%s2670_s30 + $0x1b0] sm:$0xff] %v440_v54  ;;  %443 = vst [vmem:[%s2670_s30 + $0x1b8] sm:$0xff] %v442_v55  ;;  %v446_v57 = vld [vmem:[%s2662_s29 + $0x390] sm:$0xff] }
  0x31   : > { %445 = vst [vmem:[%s2670_s30 + $0x1c0] sm:$0xff] %v444_v56  ;;  %v448_v58 = vld [vmem:[%s2662_s29 + $0x3a0] sm:$0xff]  ;;  %v450_v59 = vld [vmem:[%s2662_s29 + $0x3b0] sm:$0xff]  ;;  %447 = vst [vmem:[%s2670_s30 + $0x1c8] sm:$0xff] %v446_v57 }
  0x32   : > { %449 = vst [vmem:[%s2670_s30 + $0x1d0] sm:$0xff] %v448_v58  ;;  %451 = vst [vmem:[%s2670_s30 + $0x1d8] sm:$0xff] %v450_v59  ;;  %v452_v60 = vld [vmem:[%s2662_s29 + $0x3c0] sm:$0xff]  ;;  %v454_v61 = vld [vmem:[%s2662_s29 + $0x3d0] sm:$0xff] }
  0x33   : > { %v456_v62 = vld [vmem:[%s2662_s29 + $0x3e0] sm:$0xff]  ;;  %453 = vst [vmem:[%s2670_s30 + $0x1e0] sm:$0xff] %v452_v60  ;;  %455 = vst [vmem:[%s2670_s30 + $0x1e8] sm:$0xff] %v454_v61  ;;  %v458_v63 = vld [vmem:[%s2662_s29 + $0x3f0] sm:$0xff] }
  0x34   : > { %457 = vst [vmem:[%s2670_s30 + $0x1f0] sm:$0xff] %v456_v62  ;;  %v460_v0 = vld [vmem:[%s2662_s29 + $0x400] sm:$0xff]  ;;  %v462_v1 = vld [vmem:[%s2662_s29 + $0x410] sm:$0xff]  ;;  %459 = vst [vmem:[%s2670_s30 + $0x1f8] sm:$0xff] %v458_v63 }
  0x35   : > { %461 = vst [vmem:[%s2670_s30 + $0x200] sm:$0xff] %v460_v0  ;;  %463 = vst [vmem:[%s2670_s30 + $0x208] sm:$0xff] %v462_v1  ;;  %v464_v2 = vld [vmem:[%s2662_s29 + $0x420] sm:$0xff]  ;;  %v466_v3 = vld [vmem:[%s2662_s29 + $0x430] sm:$0xff] }
  0x36   : > { %v468_v4 = vld [vmem:[%s2662_s29 + $0x440] sm:$0xff]  ;;  %465 = vst [vmem:[%s2670_s30 + $0x210] sm:$0xff] %v464_v2  ;;  %467 = vst [vmem:[%s2670_s30 + $0x218] sm:$0xff] %v466_v3  ;;  %v470_v5 = vld [vmem:[%s2662_s29 + $0x450] sm:$0xff] }
  0x37   : > { %469 = vst [vmem:[%s2670_s30 + $0x220] sm:$0xff] %v468_v4  ;;  %v472_v6 = vld [vmem:[%s2662_s29 + $0x460] sm:$0xff]  ;;  %v474_v7 = vld [vmem:[%s2662_s29 + $0x470] sm:$0xff]  ;;  %471 = vst [vmem:[%s2670_s30 + $0x228] sm:$0xff] %v470_v5 }
  0x38   : > { %473 = vst [vmem:[%s2670_s30 + $0x230] sm:$0xff] %v472_v6  ;;  %475 = vst [vmem:[%s2670_s30 + $0x238] sm:$0xff] %v474_v7 }
  0x39 PF: > { %p2122_p7 = scmp.ge.s32.totalorder %s2594_s17, 1  ;;  %p480_p8 = scmp.lt.s32.totalorder %s2594_s17, 3 }
  0x3b   : > { %p481_p9 = pnand %p2122_p7, %p480_p8 }
  0x3c   : > { %s487_s5 = sand.u32 (!%p481_p9), 1, %s2586_s15   ;;  %v2506_v8 = vld [vmem:[%s3384_s0 + $0x4] ss:$20 sps:$4 sm:$0xff] (!%p481_p9)   ;;  %v2596_v9 = vmov (!%p481_p9), 0   ;;  %v2509_v10 = vld [vmem:[%s3384_s0 + $0xc] ss:$20 sps:$4 sm:$0xff] (!%p481_p9)  }
  0x3d   : > { %484 = sbr.rel (%p481_p9) target bundleno = 453 (0x1c5), region = 70  ;;  %2407 = vset.pattern.permute.xlu1 (!%p481_p9), %v2596_v9  ;;  %2406 = vset.pattern.permute.xlu0 (!%p481_p9), %v2596_v9  ;;  %vm1194_vm0 = vcmask (!%p481_p9), 523264   ;;  %s2123_s9 = sshll.u32 (!%p481_p9), %s487_s5, 7 }
  0x3e   : > { %s2380_s6 = smul.u32 (!%p481_p9), 576, %s487_s5  ;;  %1251 = vmatprep.mubr.bf16.mxu1 (!%p481_p9), %v2506_v8  ;;  %1364 = vmatprep.mubr.bf16.mxu0 (!%p481_p9), %v2509_v10  ;;  %s3298_s15 = scalar_lea.vmem (!%p481_p9), [#allocation3], %s2123_s9 }
  0x40   : > { %s2823_s11 = scalar_lea.vmem (!%p481_p9), [#allocation2], %s2380_s6 }
  0x41   : > { %v2408_v11 = vld [vmem:[%s2823_s11 + $0x4] ss:$8 sps:$4 sm:$0xff] (!%p481_p9)   ;;  %v2412_v13 = vld [vmem:[%s2823_s11] ss:$8 sps:$4 sm:$0xff] (!%p481_p9)   ;;  %v2414_v15 = vld [vmem:[%s2823_s11 + $0x14] ss:$8 sps:$4 sm:$0xff] (!%p481_p9)  }
  0x42   : > { %v2827_v12 = vld [vmem:[%s2823_s11 + $0x104] ss:$8 sps:$4 sm:$0xff] (!%p481_p9)   ;;  %1219 = vmatprep.subr.bf16.mxu1 (!%p481_p9), %v2408_v11  ;;  %v2831_v14 = vld [vmem:[%s2823_s11 + $0x100] ss:$8 sps:$4 sm:$0xff] (!%p481_p9)   ;;  %v2837_v16 = vld [vmem:[%s2823_s11 + $0x114] ss:$8 sps:$4 sm:$0xff] (!%p481_p9)  }
  0x43   : > { %1332 = vmatprep.subr.bf16.mxu0 (!%p481_p9), %v2827_v12  ;;  %1220 = vmatpush1.bf16.msra.mxu1 (!%p481_p9), %v2412_v13  ;;  %v2418_v17 = vld [vmem:[%s2823_s11 + $0x10] ss:$8 sps:$4 sm:$0xff] (!%p481_p9)   ;;  %v2420_v19 = vld [vmem:[%s2823_s11 + $0x24] ss:$8 sps:$4 sm:$0xff] (!%p481_p9)   ;;  %v2424_v21 = vld [vmem:[%s2823_s11 + $0x20] ss:$8 sps:$4 sm:$0xff] (!%p481_p9)  }
  0x44   : > { %1333 = vmatpush1.bf16.msra.mxu0 %v2831_v14  ;;  %1221 = vmatprep.subr.bf16.mxu1 %v2414_v15  ;;  %v2841_v18 = vld [vmem:[%s2823_s11 + $0x110] ss:$8 sps:$4 sm:$0xff]   ;;  %v2846_v20 = vld [vmem:[%s2823_s11 + $0x124] ss:$8 sps:$4 sm:$0xff]   ;;  %v2850_v22 = vld [vmem:[%s2823_s11 + $0x120] ss:$8 sps:$4 sm:$0xff]  }
  0x45   : > { %1334 = vmatprep.subr.bf16.mxu0 %v2837_v16  ;;  %v2426_v23 = vld [vmem:[%s2823_s11 + $0x34] ss:$8 sps:$4 sm:$0xff]   ;;  %v2430_v25 = vld [vmem:[%s2823_s11 + $0x30] ss:$8 sps:$4 sm:$0xff]   ;;  %v2432_v27 = vld [vmem:[%s2823_s11 + $0x44] ss:$8 sps:$4 sm:$0xff]  }
  0x46   : > { %v2856_v24 = vld [vmem:[%s2823_s11 + $0x134] ss:$8 sps:$4 sm:$0xff]   ;;  %v2861_v26 = vld [vmem:[%s2823_s11 + $0x130] ss:$8 sps:$4 sm:$0xff]   ;;  %v2866_v28 = vld [vmem:[%s2823_s11 + $0x144] ss:$8 sps:$4 sm:$0xff]  }
  0x47   : > { %1222 = vmatpush1.bf16.msra.mxu1 %v2418_v17  ;;  %v2436_v29 = vld [vmem:[%s2823_s11 + $0x40] ss:$8 sps:$4 sm:$0xff]   ;;  %v2438_v31 = vld [vmem:[%s2823_s11 + $0x54] ss:$8 sps:$4 sm:$0xff]   ;;  %v2442_v33 = vld [vmem:[%s2823_s11 + $0x50] ss:$8 sps:$4 sm:$0xff]  }
  0x48   : > { %1335 = vmatpush1.bf16.msra.mxu0 %v2841_v18  ;;  %1223 = vmatprep.subr.bf16.mxu1 %v2420_v19  ;;  %v2870_v30 = vld [vmem:[%s2823_s11 + $0x140] ss:$8 sps:$4 sm:$0xff]   ;;  %v2876_v32 = vld [vmem:[%s2823_s11 + $0x154] ss:$8 sps:$4 sm:$0xff]   ;;  %v2881_v34 = vld [vmem:[%s2823_s11 + $0x150] ss:$8 sps:$4 sm:$0xff]  }
  0x49   : > { %1336 = vmatprep.subr.bf16.mxu0 %v2846_v20  ;;  %v2444_v35 = vld [vmem:[%s2823_s11 + $0x64] ss:$8 sps:$4 sm:$0xff]   ;;  %v2448_v37 = vld [vmem:[%s2823_s11 + $0x60] ss:$8 sps:$4 sm:$0xff]   ;;  %v2450_v39 = vld [vmem:[%s2823_s11 + $0x74] ss:$8 sps:$4 sm:$0xff]  }
  0x4a   : > { %v2886_v36 = vld [vmem:[%s2823_s11 + $0x164] ss:$8 sps:$4 sm:$0xff]   ;;  %v2890_v38 = vld [vmem:[%s2823_s11 + $0x160] ss:$8 sps:$4 sm:$0xff]   ;;  %v2896_v40 = vld [vmem:[%s2823_s11 + $0x174] ss:$8 sps:$4 sm:$0xff]  }
  0x4b   : > { %1224 = vmatpush1.bf16.msra.mxu1 %v2424_v21  ;;  %v2454_v41 = vld [vmem:[%s2823_s11 + $0x70] ss:$8 sps:$4 sm:$0xff]   ;;  %v2456_v43 = vld [vmem:[%s2823_s11 + $0x84] ss:$8 sps:$4 sm:$0xff]   ;;  %v2460_v45 = vld [vmem:[%s2823_s11 + $0x80] ss:$8 sps:$4 sm:$0xff]  }
  0x4c   : > { %1337 = vmatpush1.bf16.msra.mxu0 %v2850_v22  ;;  %1225 = vmatprep.subr.bf16.mxu1 %v2426_v23  ;;  %v2901_v42 = vld [vmem:[%s2823_s11 + $0x170] ss:$8 sps:$4 sm:$0xff]   ;;  %v2906_v44 = vld [vmem:[%s2823_s11 + $0x184] ss:$8 sps:$4 sm:$0xff]   ;;  %v2910_v46 = vld [vmem:[%s2823_s11 + $0x180] ss:$8 sps:$4 sm:$0xff]  }
  0x4d   : > { %1338 = vmatprep.subr.bf16.mxu0 %v2856_v24  ;;  %v2462_v47 = vld [vmem:[%s2823_s11 + $0x94] ss:$8 sps:$4 sm:$0xff]   ;;  %v2466_v49 = vld [vmem:[%s2823_s11 + $0x90] ss:$8 sps:$4 sm:$0xff]   ;;  %v2468_v51 = vld [vmem:[%s2823_s11 + $0xa4] ss:$8 sps:$4 sm:$0xff]  }
  0x4e   : > { %v2916_v48 = vld [vmem:[%s2823_s11 + $0x194] ss:$8 sps:$4 sm:$0xff]   ;;  %v2921_v50 = vld [vmem:[%s2823_s11 + $0x190] ss:$8 sps:$4 sm:$0xff]   ;;  %v2926_v52 = vld [vmem:[%s2823_s11 + $0x1a4] ss:$8 sps:$4 sm:$0xff]  }
  0x4f   : > { %1226 = vmatpush1.bf16.msra.mxu1 %v2430_v25  ;;  %v2472_v53 = vld [vmem:[%s2823_s11 + $0xa0] ss:$8 sps:$4 sm:$0xff]   ;;  %v2474_v55 = vld [vmem:[%s2823_s11 + $0xb4] ss:$8 sps:$4 sm:$0xff]   ;;  %v2478_v57 = vld [vmem:[%s2823_s11 + $0xb0] ss:$8 sps:$4 sm:$0xff]  }
  0x50   : > { %1339 = vmatpush1.bf16.msra.mxu0 %v2861_v26  ;;  %1227 = vmatprep.subr.bf16.mxu1 %v2432_v27  ;;  %v2930_v54 = vld [vmem:[%s2823_s11 + $0x1a0] ss:$8 sps:$4 sm:$0xff]   ;;  %v2936_v56 = vld [vmem:[%s2823_s11 + $0x1b4] ss:$8 sps:$4 sm:$0xff]   ;;  %v2941_v58 = vld [vmem:[%s2823_s11 + $0x1b0] ss:$8 sps:$4 sm:$0xff]  }
  0x51   : > { %1340 = vmatprep.subr.bf16.mxu0 %v2866_v28  ;;  %v2480_v59 = vld [vmem:[%s2823_s11 + $0xc4] ss:$8 sps:$4 sm:$0xff]   ;;  %v2484_v61 = vld [vmem:[%s2823_s11 + $0xc0] ss:$8 sps:$4 sm:$0xff]   ;;  %v2486_v63 = vld [vmem:[%s2823_s11 + $0xd4] ss:$8 sps:$4 sm:$0xff]  }
  0x52   : > { %v2946_v60 = vld [vmem:[%s2823_s11 + $0x1c4] ss:$8 sps:$4 sm:$0xff]   ;;  %v2951_v62 = vld [vmem:[%s2823_s11 + $0x1c0] ss:$8 sps:$4 sm:$0xff]   ;;  %v2956_v0 = vld [vmem:[%s2823_s11 + $0x1d4] ss:$8 sps:$4 sm:$0xff]  }
  0x53   : > { %1228 = vmatpush1.bf16.msra.mxu1 %v2436_v29  ;;  %v2490_v1 = vld [vmem:[%s2823_s11 + $0xd0] ss:$8 sps:$4 sm:$0xff]   ;;  %v2492_v3 = vld [vmem:[%s2823_s11 + $0xe4] ss:$8 sps:$4 sm:$0xff]   ;;  %v2496_v5 = vld [vmem:[%s2823_s11 + $0xe0] ss:$8 sps:$4 sm:$0xff]  }
  0x54   : > { %1341 = vmatpush1.bf16.msra.mxu0 %v2870_v30  ;;  %1229 = vmatprep.subr.bf16.mxu1 %v2438_v31  ;;  %v2961_v2 = vld [vmem:[%s2823_s11 + $0x1d0] ss:$8 sps:$4 sm:$0xff]   ;;  %v2966_v4 = vld [vmem:[%s2823_s11 + $0x1e4] ss:$8 sps:$4 sm:$0xff]   ;;  %v2970_v6 = vld [vmem:[%s2823_s11 + $0x1e0] ss:$8 sps:$4 sm:$0xff]  }
  0x55   : > { %1342 = vmatprep.subr.bf16.mxu0 %v2876_v32  ;;  %v2498_v7 = vld [vmem:[%s2823_s11 + $0xf4] ss:$8 sps:$4 sm:$0xff]   ;;  %v2502_v10 = vld [vmem:[%s2823_s11 + $0xf0] ss:$8 sps:$4 sm:$0xff]   ;;  %v2512_v13 = vld [vmem:[%s2823_s11 + $0x204] ss:$8 sps:$4 sm:$0xff]  }
  0x56   : > { %v2976_v8 = vld [vmem:[%s2823_s11 + $0x1f4] ss:$8 sps:$4 sm:$0xff]   ;;  %v2981_v11 = vld [vmem:[%s2823_s11 + $0x1f0] ss:$8 sps:$4 sm:$0xff]   ;;  %v2510_v19 = vld [vmem:[%s2823_s11 + $0x200] ss:$8 sps:$4 sm:$0xff]  }
  0x57   : > { %1230 = vmatpush1.bf16.msra.mxu1 %v2442_v33  ;;  %v2504_v15 = vld [vmem:[%s3384_s0] ss:$20 sps:$4 sm:$0xff]   ;;  %v2507_v17 = vld [vmem:[%s3384_s0 + $0x8] ss:$20 sps:$4 sm:$0xff]   ;;  %v2519_v31 = vld [vmem:[%s2823_s11 + $0x210] ss:$8 sps:$4 sm:$0xff]  }
  0x58   : > { %1343 = vmatpush1.bf16.msra.mxu0 %v2881_v34  ;;  %1231 = vmatprep.subr.bf16.mxu1 %v2444_v35  ;;  %v1560_v21 = vld [vmem:[%s3386_s2 + $0x10] sm:$0xff]  ;;  %v1558_v23 = vld [vmem:[%s3386_s2] sm:$0xff]  ;;  %v1559_v33 = vld [vmem:[%s3386_s2 + $0x8] sm:$0xff]  ;;  %s2282_s5 = sshll.u32 (%p2652_p5), %s2116_s18, 3 }
  0x59   : > { %1344 = vmatprep.subr.bf16.mxu0 %v2886_v36  ;;  %v2513_v25 = vld [vmem:[%s3384_s0 + $0x2c] ss:$20 sps:$4 sm:$0xff]   ;;  %v2515_v27 = vld [vmem:[%s3384_s0 + $0x34] ss:$20 sps:$4 sm:$0xff]   ;;  %1586 = vperm.xlu1 %2407, %v1560_v21   ;;  %s1967_s23 = scalar_lea.vmem (%p2652_p5), %s3388_s4, %s2282_s5 }
  0x5a   : > { %v2521_v29 = vld [vmem:[%s2823_s11 + $0x214] ss:$8 sps:$4 sm:$0xff]   ;;  %1576 = vperm.xlu0 %2406, %v1558_v23   ;;  %v2530_v35 = vld [vmem:[%s2823_s11 + $0x224] ss:$8 sps:$4 sm:$0xff]  }
  0x5b   : > { %1232 = vmatpush1.bf16.msra.mxu1 %v2448_v37  ;;  %v2517_v37 = vld [vmem:[%s3384_s0 + $0x28] ss:$20 sps:$4 sm:$0xff]   ;;  %v1696_v21 = vld [vmem:[%s3387_s3 + $0x50] sm:$0xff] }
  0x5c   : > { %1345 = vmatpush1.bf16.msra.mxu0 %v2890_v38  ;;  %1233 = vmatprep.subr.bf16.mxu1 %v2450_v39  ;;  %v2524_v39 = vld [vmem:[%s3384_s0 + $0x5c] ss:$20 sps:$4 sm:$0xff]   ;;  %v1699_v23 = vld [vmem:[%s3387_s3 + $0x68] sm:$0xff] }
  0x5d   : > { %1346 = vmatprep.subr.bf16.mxu0 %v2896_v40 }
  0x5e   : > { %1581 = vperm.xlu0 %2406, %v1559_v33   ;;  %v2567_v33 = vld [vmem:[%s3384_s0 + $0x100] ss:$20 sps:$4 sm:$0xff]  }
  0x5f   : > { %1234 = vmatpush1.bf16.msra.mxu1 %v2454_v41  ;;  %v2528_v41 = vld [vmem:[%s2823_s11 + $0x220] ss:$8 sps:$4 sm:$0xff]  }
  0x60   : > { %1347 = vmatpush1.bf16.msra.mxu0 %v2901_v42  ;;  %1235 = vmatprep.subr.bf16.mxu1 %v2456_v43  ;;  %v2539_v43 = vld [vmem:[%s2823_s11 + $0x234] ss:$8 sps:$4 sm:$0xff]  }
  0x61   : > { %1348 = vmatprep.subr.bf16.mxu0 %v2906_v44 }
  0x63   : > { %1236 = vmatpush1.bf16.msra.mxu1 %v2460_v45  ;;  %v2537_v45 = vld [vmem:[%s2823_s11 + $0x230] ss:$8 sps:$4 sm:$0xff]  }
  0x64   : > { %1349 = vmatpush1.bf16.msra.mxu0 %v2910_v46  ;;  %1237 = vmatprep.subr.bf16.mxu1 %v2462_v47  ;;  %v2526_v47 = vld [vmem:[%s3384_s0 + $0x50] ss:$20 sps:$4 sm:$0xff]  }
  0x65   : > { %1350 = vmatprep.subr.bf16.mxu0 %v2916_v48 }
  0x67   : > { %1238 = vmatpush1.bf16.msra.mxu1 %v2466_v49  ;;  %v2527_v49 = vld [vmem:[%s3384_s0 + $0x58] ss:$20 sps:$4 sm:$0xff]  }
  0x68   : > { %1351 = vmatpush1.bf16.msra.mxu0 %v2921_v50  ;;  %1239 = vmatprep.subr.bf16.mxu1 %v2468_v51  ;;  %v2533_v51 = vld [vmem:[%s3384_s0 + $0x84] ss:$20 sps:$4 sm:$0xff]  }
  0x69   : > { %1352 = vmatprep.subr.bf16.mxu0 %v2926_v52 }
  0x6b   : > { %1240 = vmatpush1.bf16.msra.mxu1 %v2472_v53  ;;  %v1564_v53 = vld [vmem:[%s3386_s2 + $0x30] sm:$0xff] }
  0x6c   : > { %1353 = vmatpush1.bf16.msra.mxu0 %v2930_v54  ;;  %1241 = vmatprep.subr.bf16.mxu1 %v2474_v55  ;;  %v2536_v55 = vld [vmem:[%s3384_s0 + $0x80] ss:$20 sps:$4 sm:$0xff]  }
  0x6d   : > { %1354 = vmatprep.subr.bf16.mxu0 %v2936_v56 }
  0x6f   : > { %1242 = vmatpush1.bf16.msra.mxu1 %v2478_v57  ;;  %v1566_v57 = vld [vmem:[%s3386_s2 + $0x40] sm:$0xff] }
  0x70   : > { %1355 = vmatpush1.bf16.msra.mxu0 %v2941_v58  ;;  %1243 = vmatprep.subr.bf16.mxu1 %v2480_v59  ;;  %v1568_v59 = vld [vmem:[%s3386_s2 + $0x50] sm:$0xff] }
  0x71   : > { %1356 = vmatprep.subr.bf16.mxu0 %v2946_v60 }
  0x73   : > { %1244 = vmatpush1.bf16.msra.mxu1 %v2484_v61  ;;  %v1571_v61 = vld [vmem:[%s3386_s2 + $0x68] sm:$0xff] }
  0x74   : > { %1357 = vmatpush1.bf16.msra.mxu0 %v2951_v62  ;;  %1245 = vmatprep.subr.bf16.mxu1 %v2486_v63  ;;  %v1570_v63 = vld [vmem:[%s3386_s2 + $0x60] sm:$0xff] }
  0x75   : > { %1358 = vmatprep.subr.bf16.mxu0 %v2956_v0 }
  0x77   : > { %1246 = vmatpush1.bf16.msra.mxu1 %v2490_v1  ;;  %v1572_v1 = vld [vmem:[%s3386_s2 + $0x70] sm:$0xff] }
  0x78   : > { %1359 = vmatpush1.bf16.msra.mxu0 %v2961_v2  ;;  %1247 = vmatprep.subr.bf16.mxu1 %v2492_v3  ;;  %v2547_v3 = vld [vmem:[%s3384_s0 + $0x38] ss:$20 sps:$4 sm:$0xff]  }
  0x79   : > { %1360 = vmatprep.subr.bf16.mxu0 %v2966_v4 }
  0x7b   : > { %1248 = vmatpush1.bf16.msra.mxu1 %v2496_v5  ;;  %v1686_v5 = vld [vmem:[%s3387_s3] sm:$0xff] }
  0x7c   : > { %1361 = vmatpush1.bf16.msra.mxu0 %v2970_v6  ;;  %1249 = vmatprep.subr.bf16.mxu1 %v2498_v7  ;;  %v1688_v7 = vld [vmem:[%s3387_s3 + $0x10] sm:$0xff] }
  0x7d   : > { %1362 = vmatprep.subr.bf16.mxu0 %v2976_v8 }
  0x7f   : > { %1250 = vmatpush1.bf16.msra.mxu1 %v2502_v10  ;;  %v1691_v10 = vld [vmem:[%s3387_s3 + $0x28] sm:$0xff] }
  0x80   : > { %1363 = vmatpush1.bf16.msra.mxu0 %v2981_v11  ;;  %2283 = vmatprep.subr.bf16.mxu1 %v2827_v12  ;;  %v1561_v12 = vld [vmem:[%s3386_s2 + $0x18] sm:$0xff] }
  0x81   : > { %1445 = vmatprep.subr.bf16.mxu0 %v2512_v13  ;;  %1591 = vperm.xlu1 %2407, %v1561_v12   ;;  %v1690_v13 = vld [vmem:[%s3387_s3 + $0x20] sm:$0xff]  ;;  %v2566_v12 = vld [vmem:[%s3384_s0 + $0xf8] ss:$20 sps:$4 sm:$0xff]  }
  0x82   : > { %1252 = vmatmul.mubr.bf16.vlgmr.msra.gmra.mrb[0].mxu1 %v2504_v15  ;;  %v1692_v15 = vld [vmem:[%s3387_s3 + $0x30] sm:$0xff] }
  0x83   : > { %1365 = vmatmul.mubr.bf16.vlgmr.msra.gmra.mrb[0].mxu0 %v2507_v17  ;;  %2299 = vmatpush1.bf16.msra.mxu1 %v2831_v14  ;;  %v2518_v14 = vld [vmem:[%s3384_s0 + $0x30] ss:$20 sps:$4 sm:$0xff]   ;;  %v1695_v17 = vld [vmem:[%s3387_s3 + $0x48] sm:$0xff] }
  0x84   : > { %1446 = vmatpush1.bf16.msra.mxu0 %v2510_v19  ;;  %2284 = vmatprep.subr.bf16.mxu1 %v2837_v16  ;;  %v2522_v16 = vld [vmem:[%s3384_s0 + $0x54] ss:$20 sps:$4 sm:$0xff]   ;;  %v1694_v19 = vld [vmem:[%s3387_s3 + $0x40] sm:$0xff] }
  0x85   : > { %1261 = vmatprep.mubr.bf16.mxu1 %v2513_v25  ;;  %1374 = vmatprep.mubr.bf16.mxu0 %v2515_v27  ;;  %v1698_v25 = vld [vmem:[%s3387_s3 + $0x60] sm:$0xff]  ;;  %v1700_v27 = vld [vmem:[%s3387_s3 + $0x70] sm:$0xff] }
  0x86   : > { %1447 = vmatprep.subr.bf16.mxu0 %v2521_v29  ;;  %v2563_v29 = vld [vmem:[%s3384_s0 + $0xd8] ss:$20 sps:$4 sm:$0xff]  }
  0x87   : > { %2300 = vmatpush1.bf16.msra.mxu1 %v2841_v18  ;;  %v1563_v18 = vld [vmem:[%s3386_s2 + $0x28] sm:$0xff] }
  0x88   : > { %1448 = vmatpush1.bf16.msra.mxu0 %v2519_v31  ;;  %2285 = vmatprep.subr.bf16.mxu1 %v2846_v20  ;;  %v1562_v20 = vld [vmem:[%s3386_s2 + $0x20] sm:$0xff]  ;;  %v2564_v31 = vld [vmem:[%s3384_s0 + $0xfc] ss:$20 sps:$4 sm:$0xff]  }
  0x89   : > { %1449 = vmatprep.subr.bf16.mxu0 %v2530_v35  ;;  %1601 = vperm.xlu1 %2407, %v1563_v18   ;;  %v2568_v35 = vld [vmem:[%s3384_s0 + $0x124] ss:$20 sps:$4 sm:$0xff]  }
  0x8a   : > { %1262 = vmatmul.mubr.bf16.gmra.mrb[4].mxu1 %v2517_v37  ;;  %1596 = vperm.xlu0 %2406, %v1562_v20   ;;  %v2570_v37 = vld [vmem:[%s3384_s0 + $0x120] ss:$20 sps:$4 sm:$0xff]  }
  0x8b   : > { %1375 = vmatmul.mubr.bf16.gmra.mrb[4].mxu0 %v2518_v14  ;;  %2301 = vmatpush1.bf16.msra.mxu1 %v2850_v22  ;;  %v1565_v22 = vld [vmem:[%s3386_s2 + $0x38] sm:$0xff] }
  0x8c   : > { %1271 = vmatprep.mubr.bf16.mxu1 %v2522_v16  ;;  %2286 = vmatprep.subr.bf16.mxu1 %v2856_v24  ;;  %v2531_v24 = vld [vmem:[%s3384_s0 + $0x7c] ss:$20 sps:$4 sm:$0xff]  }
  0x8d   : > { %1384 = vmatprep.mubr.bf16.mxu0 %v2524_v39  ;;  %1450 = vmatpush1.bf16.msra.mxu0 %v2528_v41  ;;  %v2571_v14 = vld [vmem:[%s3384_s0 + $0x128] ss:$20 sps:$4 sm:$0xff]  }
  0x8e   : > { %1451 = vmatprep.subr.bf16.mxu0 %v2539_v43  ;;  %1611 = vperm.xlu1 %2407, %v1565_v22  }
  0x8f   : > { %2302 = vmatpush1.bf16.msra.mxu1 %v2861_v26  ;;  %v1567_v26 = vld [vmem:[%s3386_s2 + $0x48] sm:$0xff]  ;;  %1606 = vperm.xlu0 %2406, %v1564_v53  }
  0x90   : > { %2287 = vmatprep.subr.bf16.mxu1 %v2866_v28  ;;  %v2535_v28 = vld [vmem:[%s3384_s0 + $0x78] ss:$20 sps:$4 sm:$0xff]  }
  0x91   : > { %1452 = vmatpush1.bf16.msra.mxu0 %v2537_v45 }
  0x92   : > { %1272 = vmatmul.mubr.bf16.gmra.mrb[8].mxu1 %v2526_v47  ;;  %1621 = vperm.xlu1 %2407, %v1567_v26  }
  0x93   : > { %1385 = vmatmul.mubr.bf16.gmra.mrb[8].mxu0 %v2527_v49  ;;  %2303 = vmatpush1.bf16.msra.mxu1 %v2870_v30  ;;  %v1569_v30 = vld [vmem:[%s3386_s2 + $0x58] sm:$0xff] }
  0x94   : > { %1281 = vmatprep.mubr.bf16.mxu1 %v2531_v24  ;;  %2288 = vmatprep.subr.bf16.mxu1 %v2876_v32  ;;  %v2540_v32 = vld [vmem:[%s3384_s0 + $0xa4] ss:$20 sps:$4 sm:$0xff]  }
  0x95   : > { %1394 = vmatprep.mubr.bf16.mxu0 %v2533_v51  ;;  %1616 = vperm.xlu0 %2406, %v1566_v57  }
  0x96   : > { %1631 = vperm.xlu1 %2407, %v1569_v30  }
  0x97   : > { %2304 = vmatpush1.bf16.msra.mxu1 %v2881_v34  ;;  %v2542_v34 = vld [vmem:[%s3384_s0 + $0xa0] ss:$20 sps:$4 sm:$0xff]  }
  0x98   : > { %2289 = vmatprep.subr.bf16.mxu1 %v2886_v36  ;;  %v2543_v36 = vld [vmem:[%s3384_s0 + $0x10] ss:$20 sps:$4 sm:$0xff]  }
  0x99   : > { %1626 = vperm.xlu0 %2406, %v1568_v59  }
  0x9a   : > { %1282 = vmatmul.mubr.bf16.gmra.mrb[12].mxu1 %v2535_v28  ;;  %1641 = vperm.xlu1 %2407, %v1571_v61  }
  0x9b   : > { %1395 = vmatmul.mubr.bf16.gmra.mrb[12].mxu0 %v2536_v55  ;;  %2305 = vmatpush1.bf16.msra.mxu1 %v2890_v38  ;;  %v1573_v38 = vld [vmem:[%s3386_s2 + $0x78] sm:$0xff] }
  0x9c   : > { %1291 = vmatprep.mubr.bf16.mxu1 %v2540_v32  ;;  %2290 = vmatprep.subr.bf16.mxu1 %v2896_v40  ;;  %v2544_v40 = vld [vmem:[%s3384_s0 + $0xcc] ss:$20 sps:$4 sm:$0xff]  }
  0x9d   : > { %1477 = vmatprep.mubr.bf16.mxu0 %v2596_v9  ;;  %1636 = vperm.xlu0 %2406, %v1570_v63  }
  0x9e   : > { %1651 = vperm.xlu1 %2407, %v1573_v38  }
  0x9f   : > { %2306 = vmatpush1.bf16.msra.mxu1 %v2901_v42  ;;  %v1687_v42 = vld [vmem:[%s3387_s3 + $0x8] sm:$0xff] }
  0xa0   : > { %2291 = vmatprep.subr.bf16.mxu1 %v2906_v44  ;;  %v2546_v44 = vld [vmem:[%s3384_s0 + $0xc8] ss:$20 sps:$4 sm:$0xff]  }
  0xa1   : > { %1646 = vperm.xlu0 %2406, %v1572_v1  }
  0xa2   : > { %1292 = vmatmul.mubr.bf16.gmra.mrb[16].mxu1 %v2542_v34  ;;  %1709 = vperm.xlu1 %2407, %v1687_v42  }
  0xa3   : > { %2236 = vmatmul.mubr.msk.bf16.vlgmr.msra.gmra.mrb[0].mxu0 %vm1194_vm0, %v2543_v36  ;;  %2307 = vmatpush1.bf16.msra.mxu1 %v2910_v46  ;;  %v1689_v46 = vld [vmem:[%s3387_s3 + $0x18] sm:$0xff] }
  0xa4   : > { %1301 = vmatprep.mubr.bf16.mxu1 %v2544_v40  ;;  %2292 = vmatprep.subr.bf16.mxu1 %v2916_v48  ;;  %v2548_v48 = vld [vmem:[%s3384_s0 + $0xf4] ss:$20 sps:$4 sm:$0xff]  }
  0xa5   : > { %1487 = vmatprep.mubr.bf16.mxu0 %v2596_v9  ;;  %1704 = vperm.xlu0 %2406, %v1686_v5  }
  0xa6   : > { %1719 = vperm.xlu1 %2407, %v1689_v46  }
  0xa7   : > { %2308 = vmatpush1.bf16.msra.mxu1 %v2921_v50  ;;  %v2550_v50 = vld [vmem:[%s3384_s0 + $0xf0] ss:$20 sps:$4 sm:$0xff]  }
  0xa8   : > { %2293 = vmatprep.subr.bf16.mxu1 %v2926_v52  ;;  %v2551_v52 = vld [vmem:[%s3384_s0 + $0x60] ss:$20 sps:$4 sm:$0xff]  }
  0xa9   : > { %1714 = vperm.xlu0 %2406, %v1688_v7  }
  0xaa   : > { %1302 = vmatmul.mubr.bf16.gmra.mrb[20].mxu1 %v2546_v44  ;;  %1729 = vperm.xlu1 %2407, %v1691_v10  }
  0xab   : > { %2237 = vmatmul.mubr.msk.bf16.gmra.mrb[4].mxu0 %vm1194_vm0, %v2547_v3  ;;  %2309 = vmatpush1.bf16.msra.mxu1 %v2930_v54  ;;  %v1693_v54 = vld [vmem:[%s3387_s3 + $0x38] sm:$0xff] }
  0xac   : > { %1311 = vmatprep.mubr.bf16.mxu1 %v2548_v48  ;;  %2294 = vmatprep.subr.bf16.mxu1 %v2936_v56  ;;  %v2552_v56 = vld [vmem:[%s3384_s0 + $0x11c] ss:$20 sps:$4 sm:$0xff]  }
  0xad   : > { %1497 = vmatprep.mubr.bf16.mxu0 %v2596_v9  ;;  %1724 = vperm.xlu0 %2406, %v1690_v13  }
  0xae   : > { %1739 = vperm.xlu1 %2407, %v1693_v54  }
  0xaf   : > { %2310 = vmatpush1.bf16.msra.mxu1 %v2941_v58  ;;  %v2554_v58 = vld [vmem:[%s3384_s0 + $0x118] ss:$20 sps:$4 sm:$0xff]  }
  0xb0   : > { %2295 = vmatprep.subr.bf16.mxu1 %v2946_v60  ;;  %v2555_v60 = vld [vmem:[%s3384_s0 + $0x88] ss:$20 sps:$4 sm:$0xff]  }
  0xb1   : > { %1734 = vperm.xlu0 %2406, %v1692_v15  }
  0xb2   : > { %1312 = vmatmul.mubr.bf16.gmra.mrb[24].mxu1 %v2550_v50  ;;  %1749 = vperm.xlu1 %2407, %v1695_v17  }
  0xb3   : > { %2238 = vmatmul.mubr.msk.bf16.gmra.mrb[8].mxu0 %vm1194_vm0, %v2551_v52  ;;  %2311 = vmatpush1.bf16.msra.mxu1 %v2951_v62  ;;  %v1697_v62 = vld [vmem:[%s3387_s3 + $0x58] sm:$0xff] }
  0xb4   : > { %1321 = vmatprep.mubr.bf16.mxu1 %v2552_v56  ;;  %2296 = vmatprep.subr.bf16.mxu1 %v2956_v0  ;;  %v2558_v0 = vld [vmem:[%s3384_s0 + $0xac] ss:$20 sps:$4 sm:$0xff]  }
  0xb5   : > { %1507 = vmatprep.mubr.bf16.mxu0 %v2596_v9  ;;  %1744 = vperm.xlu0 %2406, %v1694_v19  }
  0xb6   : > { %1759 = vperm.xlu1 %2407, %v1697_v62  }
  0xb7   : > { %2312 = vmatpush1.bf16.msra.mxu1 %v2961_v2  ;;  %v2556_v2 = vld [vmem:[%s3384_s0 + $0xa8] ss:$20 sps:$4 sm:$0xff]  }
  0xb8   : > { %2297 = vmatprep.subr.bf16.mxu1 %v2966_v4  ;;  %v2559_v4 = vld [vmem:[%s3384_s0 + $0xb0] ss:$20 sps:$4 sm:$0xff]  }
  0xb9   : > { %1754 = vperm.xlu0 %2406, %v1696_v21  }
  0xba   : > { %1322 = vmatmul.mubr.bf16.gmra.mrb[28].mxu1 %v2554_v58  ;;  %1769 = vperm.xlu1 %2407, %v1699_v23  }
  0xbb   : > { %2239 = vmatmul.mubr.msk.bf16.gmra.mrb[12].mxu0 %vm1194_vm0, %v2555_v60  ;;  %2313 = vmatpush1.bf16.msra.mxu1 %v2970_v6  ;;  %v1701_v6 = vld [vmem:[%s3387_s3 + $0x78] sm:$0xff] }
  0xbc   : > { %1404 = vmatprep.mubr.bf16.mxu1 %v2558_v0  ;;  %2298 = vmatprep.subr.bf16.mxu1 %v2976_v8  ;;  %v2560_v8 = vld [vmem:[%s3384_s0 + $0xd4] ss:$20 sps:$4 sm:$0xff]  }
  0xbd   : > { %1517 = vmatprep.mubr.bf16.mxu0 %v2596_v9  ;;  %1764 = vperm.xlu0 %2406, %v1698_v25  }
  0xbe   : > { %1779 = vperm.xlu1 %2407, %v1701_v6  }
  0xbf   : > { %2314 = vmatpush1.bf16.msra.mxu1 %v2981_v11  ;;  %v2562_v11 = vld [vmem:[%s3384_s0 + $0xd0] ss:$20 sps:$4 sm:$0xff]  }
  0xc1   : > { %1774 = vperm.xlu0 %2406, %v1700_v27  }
  0xc2   : > { %1405 = vmatmul.mubr.bf16.vlgmr.msra.gmra.mrb[16].mxu1 %v2556_v2 }
  0xc3   : > { %2240 = vmatmul.mubr.msk.bf16.gmra.mrb[16].mxu0 %vm1194_vm0, %v2559_v4  ;;  %1414 = vmatprep.mubr.bf16.mxu1 %v2560_v8 }
  0xc4   : > { %1527 = vmatprep.mubr.bf16.mxu0 %v2596_v9 }
  0xca   : > { %1415 = vmatmul.mubr.bf16.gmra.mrb[20].mxu1 %v2562_v11 }
  0xcb   : > { %2241 = vmatmul.mubr.msk.bf16.gmra.mrb[20].mxu0 %vm1194_vm0, %v2563_v29  ;;  %1424 = vmatprep.mubr.bf16.mxu1 %v2564_v31 }
  0xcc   : > { %1537 = vmatprep.mubr.bf16.mxu0 %v2596_v9 }
  0xd2   : > { %1425 = vmatmul.mubr.bf16.gmra.mrb[24].mxu1 %v2566_v12 }
  0xd3   : > { %2242 = vmatmul.mubr.msk.bf16.gmra.mrb[24].mxu0 %vm1194_vm0, %v2567_v33  ;;  %1434 = vmatprep.mubr.bf16.mxu1 %v2568_v35 }
  0xd4   : > { %1547 = vmatprep.mubr.bf16.mxu0 %v2596_v9 }
  0xd8   : > { %v3251_v39 = vpop.permute.xlu1 %1586 }
  0xd9   : > { %v1577_v16 = vpop.permute.xlu0 %1576 }
  0xda   : > { %1435 = vmatmul.mubr.bf16.gmra.mrb[28].mxu1 %v2570_v37 }
  0xdb   : > { %2243 = vmatmul.mubr.msk.bf16.gmra.mrb[28].mxu0 %vm1194_vm0, %v2571_v14 }
  0xdd   : > { %v1582_v41 = vpop.permute.xlu0 %1581 }
 0x100   : > { %v3253_v43 = vpop.permute.xlu1 %1591 }
 0x108   : > { %v3257_v45 = vpop.permute.xlu1 %1601 }
 0x109   : > { %v3255_v18 = vpop.permute.xlu0 %1596 }
 0x10d   : > { %v3261_v24 = vpop.permute.xlu1 %1611 }
 0x10e   : > { %v3259_v22 = vpop.permute.xlu0 %1606 }
 0x111   : > { %v3265_v57 = vpop.permute.xlu1 %1621 }
 0x114   : > { %v3263_v55 = vpop.permute.xlu0 %1616 }
 0x115   : > { %v3277_v36 = vpop.permute.xlu1 %1631 }
 0x118   : > { %v3271_v59 = vpop.permute.xlu0 %1626 }
 0x119   : > { %v3285_v1 = vpop.permute.xlu1 %1641 }
 0x11c   : > { %v3279_v63 = vpop.permute.xlu0 %1636 }
 0x11d   : > { %v3293_v5 = vpop.permute.xlu1 %1651 }
 0x120   : > { %v3291_v3 = vpop.permute.xlu0 %1646 }
 0x121   : > { %v1710_v19 = vpop.permute.xlu1 %1709 }
 0x124   : > { %v1705_v56 = vpop.permute.xlu0 %1704 }
 0x128   : > { %v1715_v14 = vpop.permute.xlu0 %1714 }
 0x155   : > { %v1253_v9 = vpop.f32.mrb[0].mxu1 }
 0x156   : > { %v1255_v20 = vpop.f32.mrb[1].mxu1 }
 0x157   : > { %v1257_v47 = vpop.f32.mrb[2].mxu1 }
 0x158   : > { %v1259_v49 = vpop.f32.mrb[3].mxu1 }
 0x15d   : > { %v1263_v51 = vpop.f32.mrb[4].mxu1 }
 0x15e   : > { %v1265_v53 = vpop.f32.mrb[5].mxu1 }
 0x15f   : > { %v1267_v26 = vpop.f32.mrb[6].mxu1 }
 0x160   : > { %v1269_v28 = vpop.f32.mrb[7].mxu1 }
 0x165   : > { %v3267_v30 = vpop.f32.mrb[8].mxu1 }
 0x166   : > { %v3269_v32 = vpop.f32.mrb[9].mxu1 }
 0x167   : > { %v3273_v61 = vpop.f32.mrb[10].mxu1 }
 0x168   : > { %v3275_v34 = vpop.f32.mrb[11].mxu1 }
 0x16d   : > { %v3281_v38 = vpop.f32.mrb[12].mxu1 }
 0x16e   : > { %v3283_v40 = vpop.f32.mrb[13].mxu1 }
 0x16f   : > { %v3287_v42 = vpop.f32.mrb[14].mxu1 }
 0x170   : > { %v3289_v44 = vpop.f32.mrb[15].mxu1 }
 0x176   : > { %v1479_v46 = vpop.f32.mrb[0].mxu0 }
 0x177   : > { %v2315_v48 = vadd.f32 %v1479_v46, %v1253_v9  ;;  %v1481_v7 = vpop.f32.mrb[1].mxu0 }
 0x178   : > { %v2316_v10 = vadd.f32 %v1481_v7, %v1255_v20  ;;  %v1483_v50 = vpop.f32.mrb[2].mxu0 }
 0x179   : > { %v1654_v52 = vmul.f32 %v2315_v48, %v1577_v16  ;;  %v2317_v13 = vadd.f32 %v1483_v50, %v1257_v47  ;;  %v1485_v54 = vpop.f32.mrb[3].mxu0 }
 0x17a   : > { %v1655_v15 = vmul.f32 %v2316_v10, %v1577_v16  ;;  %v2318_v17 = vadd.f32 %v1485_v54, %v1259_v49  ;;  %v1720_v49 = vpop.permute.xlu1 %1719 }
 0x17b   : > { %v1782_v58 = vadd.f32 %v1705_v56, %v1654_v52  ;;  %v1656_v60 = vmul.f32 %v2317_v13, %v1582_v41 }
 0x17c   : > { %v1783_v62 = vadd.f32 %v1705_v56, %v1655_v15  ;;  %v1657_v0 = vmul.f32 %v2318_v17, %v1582_v41 }
 0x17d   : > { %v1814_v21 = vmax.f32 %v1782_v58, 0.0  ;;  %v1784_v23 = vadd.f32 %v1710_v19, %v1656_v60  ;;  %v1725_v58 = vpop.permute.xlu0 %1724 }
 0x17e   : > { %v1815_v2 = vmax.f32 %v1783_v62, 0.0  ;;  %v1785_v4 = vadd.f32 %v1710_v19, %v1657_v0  ;;  %v1489_v25 = vpop.f32.mrb[4].mxu0 }
 0x17f   : > { %v1816_v6 = vmax.f32 %v1784_v23, 0.0  ;;  %v2319_v8 = vadd.f32 %v1489_v25, %v1263_v51  ;;  %v1491_v27 = vpop.f32.mrb[5].mxu0 }
 0x180   : > { %v2266_v11 = vpack.c.bf16 %v1815_v2, %v1814_v21  ;;  %v1817_v29 = vmax.f32 %v1785_v4, 0.0  ;;  %v2320_v31 = vadd.f32 %v1491_v27, %v1265_v53  ;;  %v1493_v12 = vpop.f32.mrb[6].mxu0  ;;  %v1730_v21 = vpop.permute.xlu1 %1729 }
 0x181   : > { %v1658_v33 = vmul.f32 %v2319_v8, %v3251_v39  ;;  %v2321_v35 = vadd.f32 %v1493_v12, %v1267_v26  ;;  %v1495_v37 = vpop.f32.mrb[7].mxu0 }
 0x182   : > { %1942 = vst [vmem:[%s3298_s15] sm:$0xff] %v2266_v11  ;;  %v2267_v16 = vpack.c.bf16 %v1817_v29, %v1816_v6  ;;  %v1659_v41 = vmul.f32 %v2320_v31, %v3251_v39  ;;  %v2322_v9 = vadd.f32 %v1495_v37, %v1269_v28 }
 0x183   : > { %v1786_v20 = vadd.f32 %v1715_v14, %v1658_v33  ;;  %v1660_v47 = vmul.f32 %v2321_v35, %v3253_v43  ;;  %v1735_v35 = vpop.permute.xlu0 %1734 }
 0x184   : > { %1943 = vst [vmem:[%s3298_s15 + $0x8] sm:$0xff] %v2267_v16  ;;  %v1787_v51 = vadd.f32 %v1715_v14, %v1659_v41  ;;  %v1661_v53 = vmul.f32 %v2322_v9, %v3253_v43  ;;  %v1740_v9 = vpop.permute.xlu1 %1739 }
 0x185   : > { %v1818_v26 = vmax.f32 %v1786_v20, 0.0  ;;  %v1788_v46 = vadd.f32 %v1720_v49, %v1660_v47 }
 0x186   : > { %v1819_v48 = vmax.f32 %v1787_v51, 0.0  ;;  %v1789_v7 = vadd.f32 %v1720_v49, %v1661_v53  ;;  %v1499_v10 = vpop.f32.mrb[8].mxu0 }
 0x187   : > { %v1820_v50 = vmax.f32 %v1788_v46, 0.0  ;;  %v2323_v52 = vadd.f32 %v1499_v10, %v3267_v30  ;;  %v1501_v13 = vpop.f32.mrb[9].mxu0 }
 0x188   : > { %v2268_v39 = vpack.c.bf16 %v1819_v48, %v1818_v26  ;;  %v1821_v28 = vmax.f32 %v1789_v7, 0.0  ;;  %v2324_v54 = vadd.f32 %v1501_v13, %v3269_v32  ;;  %v1503_v56 = vpop.f32.mrb[10].mxu0 }
 0x189   : > { %v1662_v15 = vmul.f32 %v2323_v52, %v3255_v18  ;;  %v2325_v43 = vadd.f32 %v1503_v56, %v3273_v61  ;;  %v1505_v17 = vpop.f32.mrb[11].mxu0  ;;  %v1745_v56 = vpop.permute.xlu0 %1744 }
 0x18a   : > { %1944 = vst [vmem:[%s3298_s15 + $0x10] sm:$0xff] %v2268_v39  ;;  %v2269_v60 = vpack.c.bf16 %v1821_v28, %v1820_v50  ;;  %v1663_v19 = vmul.f32 %v2324_v54, %v3255_v18  ;;  %v2326_v62 = vadd.f32 %v1505_v17, %v3275_v34 }
 0x18b   : > { %v1790_v30 = vadd.f32 %v1725_v58, %v1662_v15  ;;  %v1664_v0 = vmul.f32 %v2325_v43, %v3257_v45 }
 0x18c   : > { %1945 = vst [vmem:[%s3298_s15 + $0x18] sm:$0xff] %v2269_v60  ;;  %v1791_v23 = vadd.f32 %v1725_v58, %v1663_v19  ;;  %v1665_v32 = vmul.f32 %v2326_v62, %v3257_v45  ;;  %v1750_v19 = vpop.permute.xlu1 %1749 }
 0x18d   : > { %v1822_v2 = vmax.f32 %v1790_v30, 0.0  ;;  %v1792_v4 = vadd.f32 %v1730_v21, %v1664_v0 }
 0x18e   : > { %v1823_v61 = vmax.f32 %v1791_v23, 0.0  ;;  %v1793_v25 = vadd.f32 %v1730_v21, %v1665_v32  ;;  %v1509_v6 = vpop.f32.mrb[12].mxu0 }
 0x18f   : > { %v1824_v8 = vmax.f32 %v1792_v4, 0.0  ;;  %v2327_v27 = vadd.f32 %v1509_v6, %v3281_v38  ;;  %v1511_v18 = vpop.f32.mrb[13].mxu0 }
 0x190   : > { %v2270_v34 = vpack.c.bf16 %v1823_v61, %v1822_v2  ;;  %v1825_v11 = vmax.f32 %v1793_v25, 0.0  ;;  %v2328_v29 = vadd.f32 %v1511_v18, %v3283_v40  ;;  %v1513_v31 = vpop.f32.mrb[14].mxu0 }
 0x191   : > { %v1666_v12 = vmul.f32 %v2327_v27, %v3259_v22  ;;  %v2329_v45 = vadd.f32 %v1513_v31, %v3287_v42  ;;  %v1515_v33 = vpop.f32.mrb[15].mxu0 }
 0x192   : > { %1946 = vst [vmem:[%s3298_s15 + $0x20] sm:$0xff] %v2270_v34  ;;  %v2271_v37 = vpack.c.bf16 %v1825_v11, %v1824_v8  ;;  %v1667_v14 = vmul.f32 %v2328_v29, %v3259_v22  ;;  %v2330_v16 = vadd.f32 %v1515_v33, %v3289_v44 }
 0x193   : > { %v1794_v38 = vadd.f32 %v1735_v35, %v1666_v12  ;;  %v1668_v41 = vmul.f32 %v2329_v45, %v3261_v24  ;;  %v1755_v45 = vpop.permute.xlu0 %1754 }
 0x194   : > { %1947 = vst [vmem:[%s3298_s15 + $0x28] sm:$0xff] %v2271_v37  ;;  %v1795_v20 = vadd.f32 %v1735_v35, %v1667_v14  ;;  %v1669_v40 = vmul.f32 %v2330_v16, %v3261_v24 }
 0x195   : > { %v1826_v47 = vmax.f32 %v1794_v38, 0.0  ;;  %v1796_v49 = vadd.f32 %v1740_v9, %v1668_v41  ;;  %v1406_v53 = vpop.f32.mrb[16].mxu1  ;;  %v1760_v38 = vpop.permute.xlu1 %1759 }
 0x196   : > { %v1827_v51 = vmax.f32 %v1795_v20, 0.0  ;;  %v1797_v42 = vadd.f32 %v1740_v9, %v1669_v40  ;;  %v1519_v26 = vpop.f32.mrb[16].mxu0  ;;  %v1408_v22 = vpop.f32.mrb[17].mxu1 }
 0x197   : > { %v1828_v46 = vmax.f32 %v1796_v49, 0.0  ;;  %v2331_v48 = vadd.f32 %v1519_v26, %v1406_v53  ;;  %v1521_v7 = vpop.f32.mrb[17].mxu0  ;;  %v1410_v52 = vpop.f32.mrb[18].mxu1 }
 0x198   : > { %v2272_v44 = vpack.c.bf16 %v1827_v51, %v1826_v47  ;;  %v1829_v10 = vmax.f32 %v1797_v42, 0.0  ;;  %v2332_v50 = vadd.f32 %v1521_v7, %v1408_v22  ;;  %v1523_v13 = vpop.f32.mrb[18].mxu0  ;;  %v1412_v28 = vpop.f32.mrb[19].mxu1 }
 0x199   : > { %v1670_v39 = vmul.f32 %v2331_v48, %v3263_v55  ;;  %v2333_v24 = vadd.f32 %v1523_v13, %v1410_v52  ;;  %v1525_v54 = vpop.f32.mrb[19].mxu0 }
 0x19a   : > { %1948 = vst [vmem:[%s3298_s15 + $0x30] sm:$0xff] %v2272_v44  ;;  %v2273_v15 = vpack.c.bf16 %v1829_v10, %v1828_v46  ;;  %v1671_v43 = vmul.f32 %v2332_v50, %v3263_v55  ;;  %v2334_v17 = vadd.f32 %v1525_v54, %v1412_v28 }
 0x19b   : > { %v1798_v58 = vadd.f32 %v1745_v56, %v1670_v39  ;;  %v1672_v60 = vmul.f32 %v2333_v24, %v3265_v57  ;;  %v1765_v39 = vpop.permute.xlu0 %1764 }
 0x19c   : > { %1949 = vst [vmem:[%s3298_s15 + $0x38] sm:$0xff] %v2273_v15  ;;  %v1799_v62 = vadd.f32 %v1745_v56, %v1671_v43  ;;  %v1673_v30 = vmul.f32 %v2334_v17, %v3265_v57  ;;  %v1770_v43 = vpop.permute.xlu1 %1769 }
 0x19d   : > { %v1830_v0 = vmax.f32 %v1798_v58, 0.0  ;;  %v1800_v21 = vadd.f32 %v1750_v19, %v1672_v60  ;;  %v1416_v2 = vpop.f32.mrb[20].mxu1 }
 0x19e   : > { %v1831_v23 = vmax.f32 %v1799_v62, 0.0  ;;  %v1801_v32 = vadd.f32 %v1750_v19, %v1673_v30  ;;  %v1529_v4 = vpop.f32.mrb[20].mxu0  ;;  %v1418_v6 = vpop.f32.mrb[21].mxu1 }
 0x19f   : > { %v1832_v61 = vmax.f32 %v1800_v21, 0.0  ;;  %v2335_v25 = vadd.f32 %v1529_v4, %v1416_v2  ;;  %v1531_v55 = vpop.f32.mrb[21].mxu0  ;;  %v1420_v34 = vpop.f32.mrb[22].mxu1 }
 0x1a0   : > { %v2274_v8 = vpack.c.bf16 %v1831_v23, %v1830_v0  ;;  %v1833_v27 = vmax.f32 %v1801_v32, 0.0  ;;  %v2336_v18 = vadd.f32 %v1531_v55, %v1418_v6  ;;  %v1533_v11 = vpop.f32.mrb[22].mxu0  ;;  %v1422_v31 = vpop.f32.mrb[23].mxu1 }
 0x1a1   : > { %v1674_v29 = vmul.f32 %v2335_v25, %v3271_v59  ;;  %v2337_v57 = vadd.f32 %v1533_v11, %v1420_v34  ;;  %v1535_v12 = vpop.f32.mrb[23].mxu0  ;;  %v1775_v34 = vpop.permute.xlu0 %1774 }
 0x1a2   : > { %1950 = vst [vmem:[%s3298_s15 + $0x40] sm:$0xff] %v2274_v8  ;;  %v2275_v33 = vpack.c.bf16 %v1833_v27, %v1832_v61  ;;  %v1675_v35 = vmul.f32 %v2336_v18, %v3271_v59  ;;  %v2338_v37 = vadd.f32 %v1535_v12, %v1422_v31 }
 0x1a3   : > { %v1802_v14 = vadd.f32 %v1755_v45, %v1674_v29  ;;  %v1676_v16 = vmul.f32 %v2337_v57, %v3277_v36 }
 0x1a4   : > { %1951 = vst [vmem:[%s3298_s15 + $0x48] sm:$0xff] %v2275_v33  ;;  %v1803_v41 = vadd.f32 %v1755_v45, %v1675_v35  ;;  %v1677_v9 = vmul.f32 %v2338_v37, %v3277_v36  ;;  %v1780_v45 = vpop.permute.xlu1 %1779 }
 0x1a5   : > { %v1834_v20 = vmax.f32 %v1802_v14, 0.0  ;;  %v1804_v40 = vadd.f32 %v1760_v38, %v1676_v16  ;;  %v1426_v51 = vpop.f32.mrb[24].mxu1 }
 0x1a6   : > { %v1835_v47 = vmax.f32 %v1803_v41, 0.0  ;;  %v1805_v49 = vadd.f32 %v1760_v38, %v1677_v9  ;;  %v1539_v42 = vpop.f32.mrb[24].mxu0  ;;  %v1428_v46 = vpop.f32.mrb[25].mxu1 }
 0x1a7   : > { %v1836_v53 = vmax.f32 %v1804_v40, 0.0  ;;  %v2339_v26 = vadd.f32 %v1539_v42, %v1426_v51  ;;  %v1541_v59 = vpop.f32.mrb[25].mxu0  ;;  %v1430_v44 = vpop.f32.mrb[26].mxu1  ;;  %v2033_v51 = vld [vmem:[%s3298_s15 + $0x20] sm:$0xff] (%p2652_p5)  ;;  %v2035_v42 = vld [vmem:[%s3298_s15 + $0x28] sm:$0xff] (%p2652_p5) }
 0x1a8   : > { %v2276_v48 = vpack.c.bf16 %v1835_v47, %v1834_v20  ;;  %v1837_v22 = vmax.f32 %v1805_v49, 0.0  ;;  %v2340_v7 = vadd.f32 %v1541_v59, %v1428_v46  ;;  %v1543_v10 = vpop.f32.mrb[26].mxu0  ;;  %v1432_v52 = vpop.f32.mrb[27].mxu1  ;;  %v2029_v47 = vld [vmem:[%s3298_s15 + $0x10] sm:$0xff] (%p2652_p5)  ;;  %v2031_v49 = vld [vmem:[%s3298_s15 + $0x18] sm:$0xff] (%p2652_p5)  ;;  %2034 = vst [vmem:[%s1967_s23 + $0x40] sm:$0xff] (%p2652_p5), %v2033_v51 }
 0x1a9   : > { %v1678_v50 = vmul.f32 %v2339_v26, %v3279_v63  ;;  %v2341_v36 = vadd.f32 %v1543_v10, %v1430_v44  ;;  %v1545_v13 = vpop.f32.mrb[27].mxu0  ;;  %2030 = vst [vmem:[%s1967_s23 + $0x20] sm:$0xff] (%p2652_p5), %v2029_v47  ;;  %2032 = vst [vmem:[%s1967_s23 + $0x30] sm:$0xff] (%p2652_p5), %v2031_v49  ;;  %v2039_v26 = vld [vmem:[%s3298_s15 + $0x38] sm:$0xff] (%p2652_p5)  ;;  %v2041_v46 = vld [vmem:[%s3298_s15 + $0x40] sm:$0xff] (%p2652_p5) }
 0x1aa   : > { %1952 = vst [vmem:[%s3298_s15 + $0x50] sm:$0xff] %v2276_v48  ;;  %v2277_v24 = vpack.c.bf16 %v1837_v22, %v1836_v53  ;;  %v1679_v28 = vmul.f32 %v2340_v7, %v3279_v63  ;;  %v2342_v54 = vadd.f32 %v1545_v13, %v1432_v52  ;;  %2036 = vst [vmem:[%s1967_s23 + $0x50] sm:$0xff] (%p2652_p5), %v2035_v42  ;;  %v2037_v53 = vld [vmem:[%s3298_s15 + $0x30] sm:$0xff] (%p2652_p5) }
 0x1ab   : > { %v1806_v56 = vadd.f32 %v1765_v39, %v1678_v50  ;;  %v1680_v15 = vmul.f32 %v2341_v36, %v3285_v1  ;;  %2038 = vst [vmem:[%s1967_s23 + $0x60] sm:$0xff] (%p2652_p5), %v2037_v53  ;;  %2040 = vst [vmem:[%s1967_s23 + $0x70] sm:$0xff] (%p2652_p5), %v2039_v26  ;;  %v2043_v59 = vld [vmem:[%s3298_s15 + $0x48] sm:$0xff] (%p2652_p5) }
 0x1ac   : > { %1953 = vst [vmem:[%s3298_s15 + $0x58] sm:$0xff] %v2277_v24  ;;  %v1807_v17 = vadd.f32 %v1765_v39, %v1679_v28  ;;  %v1681_v58 = vmul.f32 %v2342_v54, %v3285_v1  ;;  %2042 = vst [vmem:[%s1967_s23 + $0x80] sm:$0xff] (%p2652_p5), %v2041_v46 }
 0x1ad   : > { %v1838_v60 = vmax.f32 %v1806_v56, 0.0  ;;  %v1808_v19 = vadd.f32 %v1770_v43, %v1680_v15  ;;  %v1436_v0 = vpop.f32.mrb[28].mxu1  ;;  %2044 = vst [vmem:[%s1967_s23 + $0x90] sm:$0xff] (%p2652_p5), %v2043_v59 }
 0x1ae   : > { %v1839_v62 = vmax.f32 %v1807_v17, 0.0  ;;  %v1809_v30 = vadd.f32 %v1770_v43, %v1681_v58  ;;  %v1549_v21 = vpop.f32.mrb[28].mxu0  ;;  %v1438_v2 = vpop.f32.mrb[29].mxu1 }
 0x1af   : > { %v1840_v23 = vmax.f32 %v1808_v19, 0.0  ;;  %v2343_v32 = vadd.f32 %v1549_v21, %v1436_v0  ;;  %v1551_v63 = vpop.f32.mrb[29].mxu0  ;;  %v1440_v6 = vpop.f32.mrb[30].mxu1 }
 0x1b0   : > { %v2278_v4 = vpack.c.bf16 %v1839_v62, %v1838_v60  ;;  %v1841_v61 = vmax.f32 %v1809_v30, 0.0  ;;  %v2344_v25 = vadd.f32 %v1551_v63, %v1438_v2  ;;  %v1553_v55 = vpop.f32.mrb[30].mxu0  ;;  %v1442_v27 = vpop.f32.mrb[31].mxu1 }
 0x1b1   : > { %v1682_v8 = vmul.f32 %v2343_v32, %v3291_v3  ;;  %v2345_v1 = vadd.f32 %v1553_v55, %v1440_v6  ;;  %v1555_v18 = vpop.f32.mrb[31].mxu0  ;;  %v2045_v48 = vld [vmem:[%s3298_s15 + $0x50] sm:$0xff] (%p2652_p5) }
 0x1b2   : > { %1954 = vst [vmem:[%s3298_s15 + $0x60] sm:$0xff] %v2278_v4  ;;  %v2279_v11 = vpack.c.bf16 %v1841_v61, %v1840_v23  ;;  %v1683_v29 = vmul.f32 %v2344_v25, %v3291_v3  ;;  %v2346_v57 = vadd.f32 %v1555_v18, %v1442_v27  ;;  %v2025_v3 = vld [vmem:[%s3298_s15] sm:$0xff] (%p2652_p5)  ;;  %2046 = vst [vmem:[%s1967_s23 + $0xa0] sm:$0xff] (%p2652_p5), %v2045_v48 }
 0x1b3   : > { %v1810_v31 = vadd.f32 %v1775_v34, %v1682_v8  ;;  %v1684_v12 = vmul.f32 %v2345_v1, %v3293_v5  ;;  %2026 = vst [vmem:[%s1967_s23] sm:$0xff] (%p2652_p5), %v2025_v3  ;;  %v2047_v22 = vld [vmem:[%s3298_s15 + $0x58] sm:$0xff] (%p2652_p5) }
 0x1b4   : > { %1955 = vst [vmem:[%s3298_s15 + $0x68] sm:$0xff] %v2279_v11  ;;  %v1811_v33 = vadd.f32 %v1775_v34, %v1683_v29  ;;  %v1685_v35 = vmul.f32 %v2346_v57, %v3293_v5  ;;  %v2027_v5 = vld [vmem:[%s3298_s15 + $0x8] sm:$0xff] (%p2652_p5)  ;;  %2048 = vst [vmem:[%s1967_s23 + $0xb0] sm:$0xff] (%p2652_p5), %v2047_v22 }
 0x1b5   : > { %v1842_v37 = vmax.f32 %v1810_v31, 0.0  ;;  %v1812_v14 = vadd.f32 %v1780_v45, %v1684_v12  ;;  %2028 = vst [vmem:[%s1967_s23 + $0x10] sm:$0xff] (%p2652_p5), %v2027_v5 }
 0x1b6   : > { %v1843_v16 = vmax.f32 %v1811_v33, 0.0  ;;  %v1813_v38 = vadd.f32 %v1780_v45, %v1685_v35  ;;  %1964 = sbr.rel (!%p2652_p5) target bundleno = 453 (0x1c5), region = 78 }
 0x1b7   : > { %v1844_v41 = vmax.f32 %v1812_v14, 0.0 }
 0x1b8   : > { %v2280_v9 = vpack.c.bf16 %v1843_v16, %v1842_v37  ;;  %v1845_v20 = vmax.f32 %v1813_v38, 0.0 }
 0x1b9   : > { %v2049_v7 = vld [vmem:[%s3298_s15 + $0x60] sm:$0xff] (%p2652_p5) }
 0x1ba   : > { %1956 = vst [vmem:[%s3298_s15 + $0x70] sm:$0xff] %v2280_v9  ;;  %v2281_v40 = vpack.c.bf16 %v1845_v20, %v1844_v41  ;;  %2050 = vst [vmem:[%s1967_s23 + $0xc0] sm:$0xff] (%p2652_p5), %v2049_v7 }
 0x1bb   : > { %v2051_v44 = vld [vmem:[%s3298_s15 + $0x68] sm:$0xff] (%p2652_p5) }
 0x1bc   : > { %1957 = vst [vmem:[%s3298_s15 + $0x78] sm:$0xff] %v2281_v40  ;;  %2052 = vst [vmem:[%s1967_s23 + $0xd0] sm:$0xff] (%p2652_p5), %v2051_v44 }
 0x1c1   : > { %v2053_v10 = vld [vmem:[%s3298_s15 + $0x70] sm:$0xff] }
 0x1c2   : > { %2054 = vst [vmem:[%s1967_s23 + $0xe0] sm:$0xff] %v2053_v10 }
 0x1c3   : > { %v2055_v50 = vld [vmem:[%s3298_s15 + $0x78] sm:$0xff] }
 0x1c4   : > { %2056 = vst [vmem:[%s1967_s23 + $0xf0] sm:$0xff] %v2055_v50 }
 0x1c5 PF: > { %p11_p10 = scmp.ge.s32.totalorder %s2639_s19, 4   ;;  %s3390_s15 = smov %s2590_s16 }
 0x1c6   : > { %s3391_s16 = smov %s2650_s22  ;;  %s3392_s17 = smov %s2639_s19 }
 0x1c7   :  { %13 = sbr.rel (!%p11_p10) target bundleno = 2 (0x2), region = 147 }

// kernel: dann_forward.14
= control target key start
LH: loop header
LB: loop body
LE: loop exit
PB: predicated region body
PF: predicated region fallthrough
CT: control target
= control target key end

     0   :  { %s2711_s15 = smov 0   ;;  %s2713_s16 = smov 0   ;;  %s3352_s0 = inlined_call_operand.vmem [shape: bf16[2,3200], index: 0, kind: input, shape index: {}]   ;;  %s3353_s1 = inlined_call_operand.vmem [shape: bf16[3200,2048], index: 1, kind: input, shape index: {}]   ;;  %s3354_s2 = inlined_call_operand.vmem [shape: f32[1,2048], index: 2, kind: input, shape index: {}]   ;;  %s3355_s3 = inlined_call_operand.vmem [shape: f32[1,2048], index: 3, kind: input, shape index: {}]   ;;  %s3356_s4 = inlined_call_operand.vmem [shape: bf16[2,2048], index: 4, kind: output, shape index: {}]  }
   0x1   :  { %s2715_s17 = smov 0   ;;  %s2717_s18 = smov 0  }
   0x2   :  { %s2719_s19 = smov 0   ;;  %s2721_s20 = smov 0  }
   0x3   :  { %s2723_s21 = smov 0  }
   0x4 LB: > { %s23_s22 = sadd.s32 1, %s2672_s19  ;;  %s26_s23 = sadd.s32 1, %s2676_s20  ;;  %s2680_s21 = sphi %s2723_s21, %s14_s21   ;;  %s2676_s20 = sphi %s2721_s20, %s3362_s20   ;;  %s2672_s19 = sphi %s2719_s19, %s3361_s19   ;;  %s2668_s18 = sphi %s2717_s18, %s3360_s18   ;;  %s2664_s17 = sphi %s2715_s17, %s3359_s17   ;;  %s2660_s16 = sphi %s2713_s16, %s3358_s16   ;;  %s2656_s15 = sphi %s2711_s15, %s3357_s15  }
   0x5   : > { %p24_p0 = scmp.ge.s32.totalorder %s23_s22, 5  ;;  %p68_p1 = scmp.ne.s32.totalorder %s2660_s16, %s2656_s15 }
   0x6   : > { %p69_p2 = scmp.eq.s32.totalorder %s2680_s21, 0  ;;  %s61_s27 = sadd.s32 1, %s2660_s16 }
   0x7   : > { %s3364_s22 = smov (%p24_p0, %s23_s22), 0  ;;  %s3366_s23 = smov (!%p24_p0, %s26_s23), %s2676_s20 }
   0x8   : > { %p70_p3 = por %p69_p2, %p68_p1  ;;  %p28_p4 = scmp.ge.s32.totalorder %s3366_s23, 4 }
   0x9   : > { %s56_s24 = ssub.s32 %s2672_s19, %s3364_s22  ;;  %p2131_p6 = scmp.ge.s32.totalorder %s2680_s21, 20 }
   0xa   : > { %s3368_s23 = smov (%p28_p4, %s3366_s23), 0 }
   0xb   : > { %s57_s25 = ssub.s32 %s2676_s20, %s3368_s23  ;;  %172 = sbr.rel (%p2131_p6) target bundleno = 106 (0x6a), region = 16 }
   0xc   : > { %s58_s26 = sor.u32 %s57_s25, %s56_s24 }
   0xd   : > { %p59_p5 = scmp.eq.s32.totalorder %s58_s26, 0 }
   0xf   : > { %s2762_s28 = scalar_select %p59_p5, %s2660_s16, %s61_s27  }
  0x12   : > { %183 = sbr.rel (!%p70_p3) target bundleno = 106 (0x6a), region = 24  ;;  %s185_s29 = sand.u32 (%p70_p3), 1, %s2660_s16  }
  0x13   : > { %s2323_s30 = smul.u32 (%p70_p3), 1280, %s185_s29  ;;  %s2132_s5 = sshll.u32 (%p70_p3), %s2676_s20, 2 }
  0x14   : > { %s2306_s6 = smul.u32 (%p70_p3), 1280, %s2672_s19 }
  0x15   : > { %s2776_s12 = scalar_lea.vmem (%p70_p3), [#allocation3], %s2323_s30 }
  0x16   : > { %s191_s7 = sadd.s32 (%p70_p3), %s2306_s6, %s2132_s5 }
  0x17   : > { %s2134_s8 = sshll.u32 (%p70_p3), %s191_s7, 2 }
  0x18   : > { %s2771_s11 = scalar_lea.vmem (%p70_p3), %s3353_s1, %s2134_s8 }
  0x19   : > { %v206_v0 = vld [vmem:[%s2771_s11] sm:$0xff]  ;;  %v208_v1 = vld [vmem:[%s2771_s11 + $0x8] sm:$0xff] }
  0x1a   : > { %v210_v2 = vld [vmem:[%s2771_s11 + $0x40] sm:$0xff]  ;;  %207 = vst [vmem:[%s2776_s12] sm:$0xff] %v206_v0  ;;  %209 = vst [vmem:[%s2776_s12 + $0x8] sm:$0xff] %v208_v1  ;;  %v212_v3 = vld [vmem:[%s2771_s11 + $0x48] sm:$0xff] }
  0x1b   : > { %211 = vst [vmem:[%s2776_s12 + $0x10] sm:$0xff] %v210_v2  ;;  %v214_v4 = vld [vmem:[%s2771_s11 + $0x80] sm:$0xff]  ;;  %v216_v5 = vld [vmem:[%s2771_s11 + $0x88] sm:$0xff]  ;;  %213 = vst [vmem:[%s2776_s12 + $0x18] sm:$0xff] %v212_v3 }
  0x1c   : > { %215 = vst [vmem:[%s2776_s12 + $0x20] sm:$0xff] %v214_v4  ;;  %217 = vst [vmem:[%s2776_s12 + $0x28] sm:$0xff] %v216_v5  ;;  %v218_v6 = vld [vmem:[%s2771_s11 + $0xc0] sm:$0xff]  ;;  %v220_v7 = vld [vmem:[%s2771_s11 + $0xc8] sm:$0xff] }
  0x1d   : > { %v222_v8 = vld [vmem:[%s2771_s11 + $0x100] sm:$0xff]  ;;  %219 = vst [vmem:[%s2776_s12 + $0x30] sm:$0xff] %v218_v6  ;;  %221 = vst [vmem:[%s2776_s12 + $0x38] sm:$0xff] %v220_v7  ;;  %v224_v9 = vld [vmem:[%s2771_s11 + $0x108] sm:$0xff] }
  0x1e   : > { %223 = vst [vmem:[%s2776_s12 + $0x40] sm:$0xff] %v222_v8  ;;  %v226_v10 = vld [vmem:[%s2771_s11 + $0x140] sm:$0xff]  ;;  %v228_v11 = vld [vmem:[%s2771_s11 + $0x148] sm:$0xff]  ;;  %225 = vst [vmem:[%s2776_s12 + $0x48] sm:$0xff] %v224_v9 }
  0x1f   : > { %227 = vst [vmem:[%s2776_s12 + $0x50] sm:$0xff] %v226_v10  ;;  %229 = vst [vmem:[%s2776_s12 + $0x58] sm:$0xff] %v228_v11  ;;  %v230_v12 = vld [vmem:[%s2771_s11 + $0x180] sm:$0xff]  ;;  %v232_v13 = vld [vmem:[%s2771_s11 + $0x188] sm:$0xff] }
  0x20   : > { %v234_v14 = vld [vmem:[%s2771_s11 + $0x1c0] sm:$0xff]  ;;  %231 = vst [vmem:[%s2776_s12 + $0x60] sm:$0xff] %v230_v12  ;;  %233 = vst [vmem:[%s2776_s12 + $0x68] sm:$0xff] %v232_v13  ;;  %v236_v15 = vld [vmem:[%s2771_s11 + $0x1c8] sm:$0xff] }
  0x21   : > { %235 = vst [vmem:[%s2776_s12 + $0x70] sm:$0xff] %v234_v14  ;;  %v238_v16 = vld [vmem:[%s2771_s11 + $0x200] sm:$0xff]  ;;  %v240_v17 = vld [vmem:[%s2771_s11 + $0x208] sm:$0xff]  ;;  %237 = vst [vmem:[%s2776_s12 + $0x78] sm:$0xff] %v236_v15 }
  0x22   : > { %239 = vst [vmem:[%s2776_s12 + $0x80] sm:$0xff] %v238_v16  ;;  %241 = vst [vmem:[%s2776_s12 + $0x88] sm:$0xff] %v240_v17  ;;  %v242_v18 = vld [vmem:[%s2771_s11 + $0x240] sm:$0xff]  ;;  %v244_v19 = vld [vmem:[%s2771_s11 + $0x248] sm:$0xff] }
  0x23   : > { %v246_v20 = vld [vmem:[%s2771_s11 + $0x280] sm:$0xff]  ;;  %243 = vst [vmem:[%s2776_s12 + $0x90] sm:$0xff] %v242_v18  ;;  %245 = vst [vmem:[%s2776_s12 + $0x98] sm:$0xff] %v244_v19  ;;  %v248_v21 = vld [vmem:[%s2771_s11 + $0x288] sm:$0xff] }
  0x24   : > { %247 = vst [vmem:[%s2776_s12 + $0xa0] sm:$0xff] %v246_v20  ;;  %v250_v22 = vld [vmem:[%s2771_s11 + $0x2c0] sm:$0xff]  ;;  %v252_v23 = vld [vmem:[%s2771_s11 + $0x2c8] sm:$0xff]  ;;  %249 = vst [vmem:[%s2776_s12 + $0xa8] sm:$0xff] %v248_v21 }
  0x25   : > { %251 = vst [vmem:[%s2776_s12 + $0xb0] sm:$0xff] %v250_v22  ;;  %253 = vst [vmem:[%s2776_s12 + $0xb8] sm:$0xff] %v252_v23  ;;  %v254_v24 = vld [vmem:[%s2771_s11 + $0x300] sm:$0xff]  ;;  %v256_v25 = vld [vmem:[%s2771_s11 + $0x308] sm:$0xff] }
  0x26   : > { %v258_v26 = vld [vmem:[%s2771_s11 + $0x340] sm:$0xff]  ;;  %255 = vst [vmem:[%s2776_s12 + $0xc0] sm:$0xff] %v254_v24  ;;  %257 = vst [vmem:[%s2776_s12 + $0xc8] sm:$0xff] %v256_v25  ;;  %v260_v27 = vld [vmem:[%s2771_s11 + $0x348] sm:$0xff] }
  0x27   : > { %259 = vst [vmem:[%s2776_s12 + $0xd0] sm:$0xff] %v258_v26  ;;  %v262_v28 = vld [vmem:[%s2771_s11 + $0x380] sm:$0xff]  ;;  %v264_v29 = vld [vmem:[%s2771_s11 + $0x388] sm:$0xff]  ;;  %261 = vst [vmem:[%s2776_s12 + $0xd8] sm:$0xff] %v260_v27 }
  0x28   : > { %263 = vst [vmem:[%s2776_s12 + $0xe0] sm:$0xff] %v262_v28  ;;  %265 = vst [vmem:[%s2776_s12 + $0xe8] sm:$0xff] %v264_v29  ;;  %v266_v30 = vld [vmem:[%s2771_s11 + $0x3c0] sm:$0xff]  ;;  %v268_v31 = vld [vmem:[%s2771_s11 + $0x3c8] sm:$0xff] }
  0x29   : > { %v270_v32 = vld [vmem:[%s2771_s11 + $0x400] sm:$0xff]  ;;  %267 = vst [vmem:[%s2776_s12 + $0xf0] sm:$0xff] %v266_v30  ;;  %269 = vst [vmem:[%s2776_s12 + $0xf8] sm:$0xff] %v268_v31  ;;  %v272_v33 = vld [vmem:[%s2771_s11 + $0x408] sm:$0xff] }
  0x2a   : > { %271 = vst [vmem:[%s2776_s12 + $0x100] sm:$0xff] %v270_v32  ;;  %v274_v34 = vld [vmem:[%s2771_s11 + $0x440] sm:$0xff]  ;;  %v276_v35 = vld [vmem:[%s2771_s11 + $0x448] sm:$0xff]  ;;  %273 = vst [vmem:[%s2776_s12 + $0x108] sm:$0xff] %v272_v33 }
  0x2b   : > { %275 = vst [vmem:[%s2776_s12 + $0x110] sm:$0xff] %v274_v34  ;;  %277 = vst [vmem:[%s2776_s12 + $0x118] sm:$0xff] %v276_v35  ;;  %v278_v36 = vld [vmem:[%s2771_s11 + $0x480] sm:$0xff]  ;;  %v280_v37 = vld [vmem:[%s2771_s11 + $0x488] sm:$0xff] }
  0x2c   : > { %v282_v38 = vld [vmem:[%s2771_s11 + $0x4c0] sm:$0xff]  ;;  %279 = vst [vmem:[%s2776_s12 + $0x120] sm:$0xff] %v278_v36  ;;  %281 = vst [vmem:[%s2776_s12 + $0x128] sm:$0xff] %v280_v37  ;;  %v284_v39 = vld [vmem:[%s2771_s11 + $0x4c8] sm:$0xff] }
  0x2d   : > { %283 = vst [vmem:[%s2776_s12 + $0x130] sm:$0xff] %v282_v38  ;;  %v286_v40 = vld [vmem:[%s2771_s11 + $0x500] sm:$0xff]  ;;  %v288_v41 = vld [vmem:[%s2771_s11 + $0x508] sm:$0xff]  ;;  %285 = vst [vmem:[%s2776_s12 + $0x138] sm:$0xff] %v284_v39 }
  0x2e   : > { %287 = vst [vmem:[%s2776_s12 + $0x140] sm:$0xff] %v286_v40  ;;  %289 = vst [vmem:[%s2776_s12 + $0x148] sm:$0xff] %v288_v41  ;;  %v290_v42 = vld [vmem:[%s2771_s11 + $0x540] sm:$0xff]  ;;  %v292_v43 = vld [vmem:[%s2771_s11 + $0x548] sm:$0xff] }
  0x2f   : > { %v294_v44 = vld [vmem:[%s2771_s11 + $0x580] sm:$0xff]  ;;  %291 = vst [vmem:[%s2776_s12 + $0x150] sm:$0xff] %v290_v42  ;;  %293 = vst [vmem:[%s2776_s12 + $0x158] sm:$0xff] %v292_v43  ;;  %v296_v45 = vld [vmem:[%s2771_s11 + $0x588] sm:$0xff] }
  0x30   : > { %295 = vst [vmem:[%s2776_s12 + $0x160] sm:$0xff] %v294_v44  ;;  %v298_v46 = vld [vmem:[%s2771_s11 + $0x5c0] sm:$0xff]  ;;  %v300_v47 = vld [vmem:[%s2771_s11 + $0x5c8] sm:$0xff]  ;;  %297 = vst [vmem:[%s2776_s12 + $0x168] sm:$0xff] %v296_v45 }
  0x31   : > { %299 = vst [vmem:[%s2776_s12 + $0x170] sm:$0xff] %v298_v46  ;;  %301 = vst [vmem:[%s2776_s12 + $0x178] sm:$0xff] %v300_v47  ;;  %v302_v48 = vld [vmem:[%s2771_s11 + $0x600] sm:$0xff]  ;;  %v304_v49 = vld [vmem:[%s2771_s11 + $0x608] sm:$0xff] }
  0x32   : > { %v306_v50 = vld [vmem:[%s2771_s11 + $0x640] sm:$0xff]  ;;  %303 = vst [vmem:[%s2776_s12 + $0x180] sm:$0xff] %v302_v48  ;;  %305 = vst [vmem:[%s2776_s12 + $0x188] sm:$0xff] %v304_v49  ;;  %v308_v51 = vld [vmem:[%s2771_s11 + $0x648] sm:$0xff] }
  0x33   : > { %307 = vst [vmem:[%s2776_s12 + $0x190] sm:$0xff] %v306_v50  ;;  %v310_v52 = vld [vmem:[%s2771_s11 + $0x680] sm:$0xff]  ;;  %v312_v53 = vld [vmem:[%s2771_s11 + $0x688] sm:$0xff]  ;;  %309 = vst [vmem:[%s2776_s12 + $0x198] sm:$0xff] %v308_v51 }
  0x34   : > { %311 = vst [vmem:[%s2776_s12 + $0x1a0] sm:$0xff] %v310_v52  ;;  %313 = vst [vmem:[%s2776_s12 + $0x1a8] sm:$0xff] %v312_v53  ;;  %v314_v54 = vld [vmem:[%s2771_s11 + $0x6c0] sm:$0xff]  ;;  %v316_v55 = vld [vmem:[%s2771_s11 + $0x6c8] sm:$0xff] }
  0x35   : > { %v318_v56 = vld [vmem:[%s2771_s11 + $0x700] sm:$0xff]  ;;  %315 = vst [vmem:[%s2776_s12 + $0x1b0] sm:$0xff] %v314_v54  ;;  %317 = vst [vmem:[%s2776_s12 + $0x1b8] sm:$0xff] %v316_v55  ;;  %v320_v57 = vld [vmem:[%s2771_s11 + $0x708] sm:$0xff] }
  0x36   : > { %319 = vst [vmem:[%s2776_s12 + $0x1c0] sm:$0xff] %v318_v56  ;;  %v322_v58 = vld [vmem:[%s2771_s11 + $0x740] sm:$0xff]  ;;  %v324_v59 = vld [vmem:[%s2771_s11 + $0x748] sm:$0xff]  ;;  %321 = vst [vmem:[%s2776_s12 + $0x1c8] sm:$0xff] %v320_v57 }
  0x37   : > { %323 = vst [vmem:[%s2776_s12 + $0x1d0] sm:$0xff] %v322_v58  ;;  %325 = vst [vmem:[%s2776_s12 + $0x1d8] sm:$0xff] %v324_v59  ;;  %v326_v60 = vld [vmem:[%s2771_s11 + $0x780] sm:$0xff]  ;;  %v328_v61 = vld [vmem:[%s2771_s11 + $0x788] sm:$0xff] }
  0x38   : > { %v330_v62 = vld [vmem:[%s2771_s11 + $0x7c0] sm:$0xff]  ;;  %327 = vst [vmem:[%s2776_s12 + $0x1e0] sm:$0xff] %v326_v60  ;;  %329 = vst [vmem:[%s2776_s12 + $0x1e8] sm:$0xff] %v328_v61  ;;  %v332_v63 = vld [vmem:[%s2771_s11 + $0x7c8] sm:$0xff] }
  0x39   : > { %331 = vst [vmem:[%s2776_s12 + $0x1f0] sm:$0xff] %v330_v62  ;;  %v334_v0 = vld [vmem:[%s2771_s11 + $0x800] sm:$0xff]  ;;  %v336_v1 = vld [vmem:[%s2771_s11 + $0x808] sm:$0xff]  ;;  %333 = vst [vmem:[%s2776_s12 + $0x1f8] sm:$0xff] %v332_v63 }
  0x3a   : > { %335 = vst [vmem:[%s2776_s12 + $0x200] sm:$0xff] %v334_v0  ;;  %337 = vst [vmem:[%s2776_s12 + $0x208] sm:$0xff] %v336_v1  ;;  %v338_v2 = vld [vmem:[%s2771_s11 + $0x840] sm:$0xff]  ;;  %v340_v3 = vld [vmem:[%s2771_s11 + $0x848] sm:$0xff] }
  0x3b   : > { %v342_v4 = vld [vmem:[%s2771_s11 + $0x880] sm:$0xff]  ;;  %339 = vst [vmem:[%s2776_s12 + $0x210] sm:$0xff] %v338_v2  ;;  %341 = vst [vmem:[%s2776_s12 + $0x218] sm:$0xff] %v340_v3  ;;  %v344_v5 = vld [vmem:[%s2771_s11 + $0x888] sm:$0xff] }
  0x3c   : > { %343 = vst [vmem:[%s2776_s12 + $0x220] sm:$0xff] %v342_v4  ;;  %v346_v6 = vld [vmem:[%s2771_s11 + $0x8c0] sm:$0xff]  ;;  %v348_v7 = vld [vmem:[%s2771_s11 + $0x8c8] sm:$0xff]  ;;  %345 = vst [vmem:[%s2776_s12 + $0x228] sm:$0xff] %v344_v5 }
  0x3d   : > { %347 = vst [vmem:[%s2776_s12 + $0x230] sm:$0xff] %v346_v6  ;;  %349 = vst [vmem:[%s2776_s12 + $0x238] sm:$0xff] %v348_v7  ;;  %v350_v8 = vld [vmem:[%s2771_s11 + $0x900] sm:$0xff]  ;;  %v352_v9 = vld [vmem:[%s2771_s11 + $0x908] sm:$0xff] }
  0x3e   : > { %v354_v10 = vld [vmem:[%s2771_s11 + $0x940] sm:$0xff]  ;;  %351 = vst [vmem:[%s2776_s12 + $0x240] sm:$0xff] %v350_v8  ;;  %353 = vst [vmem:[%s2776_s12 + $0x248] sm:$0xff] %v352_v9  ;;  %v356_v11 = vld [vmem:[%s2771_s11 + $0x948] sm:$0xff] }
  0x3f   : > { %355 = vst [vmem:[%s2776_s12 + $0x250] sm:$0xff] %v354_v10  ;;  %v358_v12 = vld [vmem:[%s2771_s11 + $0x980] sm:$0xff]  ;;  %v360_v13 = vld [vmem:[%s2771_s11 + $0x988] sm:$0xff]  ;;  %357 = vst [vmem:[%s2776_s12 + $0x258] sm:$0xff] %v356_v11 }
  0x40   : > { %359 = vst [vmem:[%s2776_s12 + $0x260] sm:$0xff] %v358_v12  ;;  %361 = vst [vmem:[%s2776_s12 + $0x268] sm:$0xff] %v360_v13  ;;  %v362_v14 = vld [vmem:[%s2771_s11 + $0x9c0] sm:$0xff]  ;;  %v364_v15 = vld [vmem:[%s2771_s11 + $0x9c8] sm:$0xff] }
  0x41   : > { %v366_v16 = vld [vmem:[%s2771_s11 + $0xa00] sm:$0xff]  ;;  %363 = vst [vmem:[%s2776_s12 + $0x270] sm:$0xff] %v362_v14  ;;  %365 = vst [vmem:[%s2776_s12 + $0x278] sm:$0xff] %v364_v15  ;;  %v368_v17 = vld [vmem:[%s2771_s11 + $0xa08] sm:$0xff] }
  0x42   : > { %367 = vst [vmem:[%s2776_s12 + $0x280] sm:$0xff] %v366_v16  ;;  %v370_v18 = vld [vmem:[%s2771_s11 + $0xa40] sm:$0xff]  ;;  %v372_v19 = vld [vmem:[%s2771_s11 + $0xa48] sm:$0xff]  ;;  %369 = vst [vmem:[%s2776_s12 + $0x288] sm:$0xff] %v368_v17 }
  0x43   : > { %371 = vst [vmem:[%s2776_s12 + $0x290] sm:$0xff] %v370_v18  ;;  %373 = vst [vmem:[%s2776_s12 + $0x298] sm:$0xff] %v372_v19  ;;  %v374_v20 = vld [vmem:[%s2771_s11 + $0xa80] sm:$0xff]  ;;  %v376_v21 = vld [vmem:[%s2771_s11 + $0xa88] sm:$0xff] }
  0x44   : > { %v378_v22 = vld [vmem:[%s2771_s11 + $0xac0] sm:$0xff]  ;;  %375 = vst [vmem:[%s2776_s12 + $0x2a0] sm:$0xff] %v374_v20  ;;  %377 = vst [vmem:[%s2776_s12 + $0x2a8] sm:$0xff] %v376_v21  ;;  %v380_v23 = vld [vmem:[%s2771_s11 + $0xac8] sm:$0xff] }
  0x45   : > { %379 = vst [vmem:[%s2776_s12 + $0x2b0] sm:$0xff] %v378_v22  ;;  %v382_v24 = vld [vmem:[%s2771_s11 + $0xb00] sm:$0xff]  ;;  %v384_v25 = vld [vmem:[%s2771_s11 + $0xb08] sm:$0xff]  ;;  %381 = vst [vmem:[%s2776_s12 + $0x2b8] sm:$0xff] %v380_v23 }
  0x46   : > { %383 = vst [vmem:[%s2776_s12 + $0x2c0] sm:$0xff] %v382_v24  ;;  %385 = vst [vmem:[%s2776_s12 + $0x2c8] sm:$0xff] %v384_v25  ;;  %v386_v26 = vld [vmem:[%s2771_s11 + $0xb40] sm:$0xff]  ;;  %v388_v27 = vld [vmem:[%s2771_s11 + $0xb48] sm:$0xff] }
  0x47   : > { %v390_v28 = vld [vmem:[%s2771_s11 + $0xb80] sm:$0xff]  ;;  %387 = vst [vmem:[%s2776_s12 + $0x2d0] sm:$0xff] %v386_v26  ;;  %389 = vst [vmem:[%s2776_s12 + $0x2d8] sm:$0xff] %v388_v27  ;;  %v392_v29 = vld [vmem:[%s2771_s11 + $0xb88] sm:$0xff] }
  0x48   : > { %391 = vst [vmem:[%s2776_s12 + $0x2e0] sm:$0xff] %v390_v28  ;;  %v394_v30 = vld [vmem:[%s2771_s11 + $0xbc0] sm:$0xff]  ;;  %v396_v31 = vld [vmem:[%s2771_s11 + $0xbc8] sm:$0xff]  ;;  %393 = vst [vmem:[%s2776_s12 + $0x2e8] sm:$0xff] %v392_v29 }
  0x49   : > { %395 = vst [vmem:[%s2776_s12 + $0x2f0] sm:$0xff] %v394_v30  ;;  %397 = vst [vmem:[%s2776_s12 + $0x2f8] sm:$0xff] %v396_v31  ;;  %v398_v32 = vld [vmem:[%s2771_s11 + $0xc00] sm:$0xff]  ;;  %v400_v33 = vld [vmem:[%s2771_s11 + $0xc08] sm:$0xff] }
  0x4a   : > { %v402_v34 = vld [vmem:[%s2771_s11 + $0xc40] sm:$0xff]  ;;  %399 = vst [vmem:[%s2776_s12 + $0x300] sm:$0xff] %v398_v32  ;;  %401 = vst [vmem:[%s2776_s12 + $0x308] sm:$0xff] %v400_v33  ;;  %v404_v35 = vld [vmem:[%s2771_s11 + $0xc48] sm:$0xff] }
  0x4b   : > { %403 = vst [vmem:[%s2776_s12 + $0x310] sm:$0xff] %v402_v34  ;;  %v406_v36 = vld [vmem:[%s2771_s11 + $0xc80] sm:$0xff]  ;;  %v408_v37 = vld [vmem:[%s2771_s11 + $0xc88] sm:$0xff]  ;;  %405 = vst [vmem:[%s2776_s12 + $0x318] sm:$0xff] %v404_v35 }
  0x4c   : > { %407 = vst [vmem:[%s2776_s12 + $0x320] sm:$0xff] %v406_v36  ;;  %409 = vst [vmem:[%s2776_s12 + $0x328] sm:$0xff] %v408_v37  ;;  %v410_v38 = vld [vmem:[%s2771_s11 + $0xcc0] sm:$0xff]  ;;  %v412_v39 = vld [vmem:[%s2771_s11 + $0xcc8] sm:$0xff] }
  0x4d   : > { %v414_v40 = vld [vmem:[%s2771_s11 + $0xd00] sm:$0xff]  ;;  %411 = vst [vmem:[%s2776_s12 + $0x330] sm:$0xff] %v410_v38  ;;  %413 = vst [vmem:[%s2776_s12 + $0x338] sm:$0xff] %v412_v39  ;;  %v416_v41 = vld [vmem:[%s2771_s11 + $0xd08] sm:$0xff] }
  0x4e   : > { %415 = vst [vmem:[%s2776_s12 + $0x340] sm:$0xff] %v414_v40  ;;  %v418_v42 = vld [vmem:[%s2771_s11 + $0xd40] sm:$0xff]  ;;  %v420_v43 = vld [vmem:[%s2771_s11 + $0xd48] sm:$0xff]  ;;  %417 = vst [vmem:[%s2776_s12 + $0x348] sm:$0xff] %v416_v41 }
  0x4f   : > { %419 = vst [vmem:[%s2776_s12 + $0x350] sm:$0xff] %v418_v42  ;;  %421 = vst [vmem:[%s2776_s12 + $0x358] sm:$0xff] %v420_v43  ;;  %v422_v44 = vld [vmem:[%s2771_s11 + $0xd80] sm:$0xff]  ;;  %v424_v45 = vld [vmem:[%s2771_s11 + $0xd88] sm:$0xff] }
  0x50   : > { %v426_v46 = vld [vmem:[%s2771_s11 + $0xdc0] sm:$0xff]  ;;  %423 = vst [vmem:[%s2776_s12 + $0x360] sm:$0xff] %v422_v44  ;;  %425 = vst [vmem:[%s2776_s12 + $0x368] sm:$0xff] %v424_v45  ;;  %v428_v47 = vld [vmem:[%s2771_s11 + $0xdc8] sm:$0xff] }
  0x51   : > { %427 = vst [vmem:[%s2776_s12 + $0x370] sm:$0xff] %v426_v46  ;;  %v430_v48 = vld [vmem:[%s2771_s11 + $0xe00] sm:$0xff]  ;;  %v432_v49 = vld [vmem:[%s2771_s11 + $0xe08] sm:$0xff]  ;;  %429 = vst [vmem:[%s2776_s12 + $0x378] sm:$0xff] %v428_v47 }
  0x52   : > { %431 = vst [vmem:[%s2776_s12 + $0x380] sm:$0xff] %v430_v48  ;;  %433 = vst [vmem:[%s2776_s12 + $0x388] sm:$0xff] %v432_v49  ;;  %v434_v50 = vld [vmem:[%s2771_s11 + $0xe40] sm:$0xff]  ;;  %v436_v51 = vld [vmem:[%s2771_s11 + $0xe48] sm:$0xff] }
  0x53   : > { %v438_v52 = vld [vmem:[%s2771_s11 + $0xe80] sm:$0xff]  ;;  %435 = vst [vmem:[%s2776_s12 + $0x390] sm:$0xff] %v434_v50  ;;  %437 = vst [vmem:[%s2776_s12 + $0x398] sm:$0xff] %v436_v51  ;;  %v440_v53 = vld [vmem:[%s2771_s11 + $0xe88] sm:$0xff] }
  0x54   : > { %439 = vst [vmem:[%s2776_s12 + $0x3a0] sm:$0xff] %v438_v52  ;;  %v442_v54 = vld [vmem:[%s2771_s11 + $0xec0] sm:$0xff]  ;;  %v444_v55 = vld [vmem:[%s2771_s11 + $0xec8] sm:$0xff]  ;;  %441 = vst [vmem:[%s2776_s12 + $0x3a8] sm:$0xff] %v440_v53 }
  0x55   : > { %443 = vst [vmem:[%s2776_s12 + $0x3b0] sm:$0xff] %v442_v54  ;;  %445 = vst [vmem:[%s2776_s12 + $0x3b8] sm:$0xff] %v444_v55  ;;  %v446_v56 = vld [vmem:[%s2771_s11 + $0xf00] sm:$0xff]  ;;  %v448_v57 = vld [vmem:[%s2771_s11 + $0xf08] sm:$0xff] }
  0x56   : > { %v450_v58 = vld [vmem:[%s2771_s11 + $0xf40] sm:$0xff]  ;;  %447 = vst [vmem:[%s2776_s12 + $0x3c0] sm:$0xff] %v446_v56  ;;  %449 = vst [vmem:[%s2776_s12 + $0x3c8] sm:$0xff] %v448_v57  ;;  %v452_v59 = vld [vmem:[%s2771_s11 + $0xf48] sm:$0xff] }
  0x57   : > { %451 = vst [vmem:[%s2776_s12 + $0x3d0] sm:$0xff] %v450_v58  ;;  %v454_v60 = vld [vmem:[%s2771_s11 + $0xf80] sm:$0xff]  ;;  %v456_v61 = vld [vmem:[%s2771_s11 + $0xf88] sm:$0xff]  ;;  %453 = vst [vmem:[%s2776_s12 + $0x3d8] sm:$0xff] %v452_v59 }
  0x58   : > { %455 = vst [vmem:[%s2776_s12 + $0x3e0] sm:$0xff] %v454_v60  ;;  %457 = vst [vmem:[%s2776_s12 + $0x3e8] sm:$0xff] %v456_v61  ;;  %v458_v62 = vld [vmem:[%s2771_s11 + $0xfc0] sm:$0xff]  ;;  %v460_v63 = vld [vmem:[%s2771_s11 + $0xfc8] sm:$0xff] }
  0x59   : > { %v462_v0 = vld [vmem:[%s2771_s11 + $0x1000] sm:$0xff]  ;;  %459 = vst [vmem:[%s2776_s12 + $0x3f0] sm:$0xff] %v458_v62  ;;  %461 = vst [vmem:[%s2776_s12 + $0x3f8] sm:$0xff] %v460_v63  ;;  %v464_v1 = vld [vmem:[%s2771_s11 + $0x1008] sm:$0xff] }
  0x5a   : > { %463 = vst [vmem:[%s2776_s12 + $0x400] sm:$0xff] %v462_v0  ;;  %v466_v2 = vld [vmem:[%s2771_s11 + $0x1040] sm:$0xff]  ;;  %v468_v3 = vld [vmem:[%s2771_s11 + $0x1048] sm:$0xff]  ;;  %465 = vst [vmem:[%s2776_s12 + $0x408] sm:$0xff] %v464_v1 }
  0x5b   : > { %467 = vst [vmem:[%s2776_s12 + $0x410] sm:$0xff] %v466_v2  ;;  %469 = vst [vmem:[%s2776_s12 + $0x418] sm:$0xff] %v468_v3  ;;  %v470_v4 = vld [vmem:[%s2771_s11 + $0x1080] sm:$0xff]  ;;  %v472_v5 = vld [vmem:[%s2771_s11 + $0x1088] sm:$0xff] }
  0x5c   : > { %v474_v6 = vld [vmem:[%s2771_s11 + $0x10c0] sm:$0xff]  ;;  %471 = vst [vmem:[%s2776_s12 + $0x420] sm:$0xff] %v470_v4  ;;  %473 = vst [vmem:[%s2776_s12 + $0x428] sm:$0xff] %v472_v5  ;;  %v476_v7 = vld [vmem:[%s2771_s11 + $0x10c8] sm:$0xff] }
  0x5d   : > { %475 = vst [vmem:[%s2776_s12 + $0x430] sm:$0xff] %v474_v6  ;;  %v478_v8 = vld [vmem:[%s2771_s11 + $0x1100] sm:$0xff]  ;;  %v480_v9 = vld [vmem:[%s2771_s11 + $0x1108] sm:$0xff]  ;;  %477 = vst [vmem:[%s2776_s12 + $0x438] sm:$0xff] %v476_v7 }
  0x5e   : > { %479 = vst [vmem:[%s2776_s12 + $0x440] sm:$0xff] %v478_v8  ;;  %481 = vst [vmem:[%s2776_s12 + $0x448] sm:$0xff] %v480_v9  ;;  %v482_v10 = vld [vmem:[%s2771_s11 + $0x1140] sm:$0xff]  ;;  %v484_v11 = vld [vmem:[%s2771_s11 + $0x1148] sm:$0xff] }
  0x5f   : > { %v486_v12 = vld [vmem:[%s2771_s11 + $0x1180] sm:$0xff]  ;;  %483 = vst [vmem:[%s2776_s12 + $0x450] sm:$0xff] %v482_v10  ;;  %485 = vst [vmem:[%s2776_s12 + $0x458] sm:$0xff] %v484_v11  ;;  %v488_v13 = vld [vmem:[%s2771_s11 + $0x1188] sm:$0xff] }
  0x60   : > { %487 = vst [vmem:[%s2776_s12 + $0x460] sm:$0xff] %v486_v12  ;;  %v490_v14 = vld [vmem:[%s2771_s11 + $0x11c0] sm:$0xff]  ;;  %v492_v15 = vld [vmem:[%s2771_s11 + $0x11c8] sm:$0xff]  ;;  %489 = vst [vmem:[%s2776_s12 + $0x468] sm:$0xff] %v488_v13 }
  0x61   : > { %491 = vst [vmem:[%s2776_s12 + $0x470] sm:$0xff] %v490_v14  ;;  %493 = vst [vmem:[%s2776_s12 + $0x478] sm:$0xff] %v492_v15  ;;  %v494_v16 = vld [vmem:[%s2771_s11 + $0x1200] sm:$0xff]  ;;  %v496_v17 = vld [vmem:[%s2771_s11 + $0x1208] sm:$0xff] }
  0x62   : > { %v498_v18 = vld [vmem:[%s2771_s11 + $0x1240] sm:$0xff]  ;;  %495 = vst [vmem:[%s2776_s12 + $0x480] sm:$0xff] %v494_v16  ;;  %497 = vst [vmem:[%s2776_s12 + $0x488] sm:$0xff] %v496_v17  ;;  %v500_v19 = vld [vmem:[%s2771_s11 + $0x1248] sm:$0xff] }
  0x63   : > { %499 = vst [vmem:[%s2776_s12 + $0x490] sm:$0xff] %v498_v18  ;;  %v502_v20 = vld [vmem:[%s2771_s11 + $0x1280] sm:$0xff]  ;;  %v504_v21 = vld [vmem:[%s2771_s11 + $0x1288] sm:$0xff]  ;;  %501 = vst [vmem:[%s2776_s12 + $0x498] sm:$0xff] %v500_v19 }
  0x64   : > { %503 = vst [vmem:[%s2776_s12 + $0x4a0] sm:$0xff] %v502_v20  ;;  %505 = vst [vmem:[%s2776_s12 + $0x4a8] sm:$0xff] %v504_v21  ;;  %v506_v22 = vld [vmem:[%s2771_s11 + $0x12c0] sm:$0xff]  ;;  %v508_v23 = vld [vmem:[%s2771_s11 + $0x12c8] sm:$0xff] }
  0x65   : > { %v510_v24 = vld [vmem:[%s2771_s11 + $0x1300] sm:$0xff]  ;;  %507 = vst [vmem:[%s2776_s12 + $0x4b0] sm:$0xff] %v506_v22  ;;  %509 = vst [vmem:[%s2776_s12 + $0x4b8] sm:$0xff] %v508_v23  ;;  %v512_v25 = vld [vmem:[%s2771_s11 + $0x1308] sm:$0xff] }
  0x66   : > { %511 = vst [vmem:[%s2776_s12 + $0x4c0] sm:$0xff] %v510_v24  ;;  %v514_v26 = vld [vmem:[%s2771_s11 + $0x1340] sm:$0xff]  ;;  %v516_v27 = vld [vmem:[%s2771_s11 + $0x1348] sm:$0xff]  ;;  %513 = vst [vmem:[%s2776_s12 + $0x4c8] sm:$0xff] %v512_v25 }
  0x67   : > { %515 = vst [vmem:[%s2776_s12 + $0x4d0] sm:$0xff] %v514_v26  ;;  %517 = vst [vmem:[%s2776_s12 + $0x4d8] sm:$0xff] %v516_v27  ;;  %v518_v28 = vld [vmem:[%s2771_s11 + $0x1380] sm:$0xff]  ;;  %v520_v29 = vld [vmem:[%s2771_s11 + $0x1388] sm:$0xff] }
  0x68   : > { %v522_v30 = vld [vmem:[%s2771_s11 + $0x13c0] sm:$0xff]  ;;  %519 = vst [vmem:[%s2776_s12 + $0x4e0] sm:$0xff] %v518_v28  ;;  %521 = vst [vmem:[%s2776_s12 + $0x4e8] sm:$0xff] %v520_v29  ;;  %v524_v31 = vld [vmem:[%s2771_s11 + $0x13c8] sm:$0xff] }
  0x69   : > { %523 = vst [vmem:[%s2776_s12 + $0x4f0] sm:$0xff] %v522_v30  ;;  %525 = vst [vmem:[%s2776_s12 + $0x4f8] sm:$0xff] %v524_v31 }
  0x6a PF: > { %p2135_p7 = scmp.ge.s32.totalorder %s2680_s21, 1  ;;  %p546_p8 = scmp.lt.s32.totalorder %s2680_s21, 21 }
  0x6c   : > { %p547_p9 = pnand %p2135_p7, %p546_p8 }
  0x6d   : > { %s553_s13 = sand.u32 (!%p547_p9), 1, %s2656_s15   ;;  %s589_s14 = smul.u32 (!%p547_p9), 5, %s2664_s17 }
  0x6e   : > { %550 = sbr.rel (%p547_p9) target bundleno = 536 (0x218), region = 55  ;;  %s2136_s25 = sshll.u32 (!%p547_p9), %s2668_s18, 2 }
  0x6f   : > { %s2324_s24 = smul.u32 (!%p547_p9), 1280, %s553_s13  ;;  %p590_p10 = scmp.lt.s32.totalorder (!%p547_p9), %s589_s14, 24 }
  0x70   : > { %p597_p11 = scmp.lt.s32.totalorder (!%p547_p9), %s2136_s25, 15  ;;  %p2139_p12 = scmp.ne.s32.totalorder (!%p547_p9), %s2664_s17, 0 }
  0x71   : > { %s3120_s11 = scalar_lea.vmem (!%p547_p9), [#allocation3], %s2324_s24 }
  0x75   : > { %s3370_s14 = smov (!%p590_p10, %s589_s14), 24  ;;  %s3372_s25 = smov (!%p597_p11, %s2136_s25), 15 }
  0x76   : > { %s592_s29 = scalar_lea.vmem %s3352_s0, %s3370_s14  ;;  %s599_s15 = scalar_lea.vmem %s3354_s2, %s3372_s25  ;;  %v2682_v32 = vmov (!%p2139_p12), 0.0  }
  0x77   : > { %s604_s7 = scalar_lea.vmem %s3355_s3, %s3372_s25  ;;  %s609_s10 = scalar_lea.vmem %s3356_s4, %s3372_s25  ;;  %616 = vst [vmem:[#allocation2] sm:$0xff] (!%p2139_p12), %v2682_v32 }
  0x78   : > { %615 = sbr.rel (%p2139_p12) target bundleno = 127 (0x7f), region = 63 }
  0x7f PF: > { %v2385_v33 = vld [vmem:[%s3120_s11 + $0x4] ss:$16 sps:$4 sm:$0xff]   ;;  %v2387_v34 = vld [vmem:[%s3120_s11 + $0xc] ss:$16 sps:$4 sm:$0xff]   ;;  %v2389_v35 = vld [vmem:[%s3120_s11] ss:$16 sps:$4 sm:$0xff]   ;;  %v784_v7 = vlaneseq }
  0x80   : > { %1624 = vmatprep.subr.bf16.mxu0 %v2385_v33  ;;  %v2390_v36 = vld [vmem:[%s3120_s11 + $0x8] ss:$16 sps:$4 sm:$0xff]   ;;  %1747 = vmatprep.subr.bf16.mxu1 %v2387_v34  ;;  %v2391_v37 = vld [vmem:[%s3120_s11 + $0x24] ss:$16 sps:$4 sm:$0xff]   ;;  %v2393_v38 = vld [vmem:[%s3120_s11 + $0x2c] ss:$16 sps:$4 sm:$0xff]  }
  0x81   : > { %1625 = vmatpush1.bf16.msra.mxu0 %v2389_v35  ;;  %1748 = vmatpush1.bf16.msra.mxu1 %v2390_v36  ;;  %v2395_v39 = vld [vmem:[%s3120_s11 + $0x20] ss:$16 sps:$4 sm:$0xff]   ;;  %v2396_v40 = vld [vmem:[%s3120_s11 + $0x28] ss:$16 sps:$4 sm:$0xff]   ;;  %v2397_v41 = vld [vmem:[%s3120_s11 + $0x44] ss:$16 sps:$4 sm:$0xff]  }
  0x82   : > { %1626 = vmatprep.subr.bf16.mxu0 %v2391_v37  ;;  %1749 = vmatprep.subr.bf16.mxu1 %v2393_v38  ;;  %v2399_v42 = vld [vmem:[%s3120_s11 + $0x4c] ss:$16 sps:$4 sm:$0xff]   ;;  %v2401_v43 = vld [vmem:[%s3120_s11 + $0x40] ss:$16 sps:$4 sm:$0xff]   ;;  %v2402_v44 = vld [vmem:[%s3120_s11 + $0x48] ss:$16 sps:$4 sm:$0xff]  }
  0x83   : > { %v2403_v45 = vld [vmem:[%s3120_s11 + $0x64] ss:$16 sps:$4 sm:$0xff]   ;;  %v2405_v46 = vld [vmem:[%s3120_s11 + $0x6c] ss:$16 sps:$4 sm:$0xff]   ;;  %v2407_v47 = vld [vmem:[%s3120_s11 + $0x60] ss:$16 sps:$4 sm:$0xff]  }
  0x84   : > { %v2408_v48 = vld [vmem:[%s3120_s11 + $0x68] ss:$16 sps:$4 sm:$0xff]   ;;  %v2409_v49 = vld [vmem:[%s3120_s11 + $0x84] ss:$16 sps:$4 sm:$0xff]   ;;  %v2411_v50 = vld [vmem:[%s3120_s11 + $0x8c] ss:$16 sps:$4 sm:$0xff]  }
  0x85   : > { %1627 = vmatpush1.bf16.msra.mxu0 %v2395_v39  ;;  %1750 = vmatpush1.bf16.msra.mxu1 %v2396_v40  ;;  %v2413_v51 = vld [vmem:[%s3120_s11 + $0x80] ss:$16 sps:$4 sm:$0xff]   ;;  %v2414_v52 = vld [vmem:[%s3120_s11 + $0x88] ss:$16 sps:$4 sm:$0xff]   ;;  %v2415_v53 = vld [vmem:[%s3120_s11 + $0xa4] ss:$16 sps:$4 sm:$0xff]  }
  0x86   : > { %1628 = vmatprep.subr.bf16.mxu0 %v2397_v41  ;;  %1751 = vmatprep.subr.bf16.mxu1 %v2399_v42  ;;  %v2417_v54 = vld [vmem:[%s3120_s11 + $0xac] ss:$16 sps:$4 sm:$0xff]   ;;  %v2419_v55 = vld [vmem:[%s3120_s11 + $0xa0] ss:$16 sps:$4 sm:$0xff]   ;;  %v2420_v56 = vld [vmem:[%s3120_s11 + $0xa8] ss:$16 sps:$4 sm:$0xff]  }
  0x87   : > { %v2421_v57 = vld [vmem:[%s3120_s11 + $0xc4] ss:$16 sps:$4 sm:$0xff]   ;;  %v2423_v58 = vld [vmem:[%s3120_s11 + $0xcc] ss:$16 sps:$4 sm:$0xff]   ;;  %v2425_v59 = vld [vmem:[%s3120_s11 + $0xc0] ss:$16 sps:$4 sm:$0xff]  }
  0x88   : > { %v2426_v60 = vld [vmem:[%s3120_s11 + $0xc8] ss:$16 sps:$4 sm:$0xff]   ;;  %v2427_v61 = vld [vmem:[%s3120_s11 + $0xe4] ss:$16 sps:$4 sm:$0xff]   ;;  %v2429_v62 = vld [vmem:[%s3120_s11 + $0xec] ss:$16 sps:$4 sm:$0xff]  }
  0x89   : > { %1629 = vmatpush1.bf16.msra.mxu0 %v2401_v43  ;;  %1752 = vmatpush1.bf16.msra.mxu1 %v2402_v44  ;;  %v2431_v63 = vld [vmem:[%s3120_s11 + $0xe0] ss:$16 sps:$4 sm:$0xff]   ;;  %v2432_v0 = vld [vmem:[%s3120_s11 + $0xe8] ss:$16 sps:$4 sm:$0xff]   ;;  %v2433_v1 = vld [vmem:[%s3120_s11 + $0x104] ss:$16 sps:$4 sm:$0xff]  }
  0x8a   : > { %1630 = vmatprep.subr.bf16.mxu0 %v2403_v45  ;;  %1753 = vmatprep.subr.bf16.mxu1 %v2405_v46  ;;  %v2435_v2 = vld [vmem:[%s3120_s11 + $0x10c] ss:$16 sps:$4 sm:$0xff]   ;;  %v2437_v3 = vld [vmem:[%s3120_s11 + $0x100] ss:$16 sps:$4 sm:$0xff]   ;;  %v2438_v4 = vld [vmem:[%s3120_s11 + $0x108] ss:$16 sps:$4 sm:$0xff]  }
  0x8b   : > { %v2683_v5 = vmov 1966171168   ;;  %v2439_v8 = vld [vmem:[%s3120_s11 + $0x124] ss:$16 sps:$4 sm:$0xff]   ;;  %v2441_v9 = vld [vmem:[%s3120_s11 + $0x12c] ss:$16 sps:$4 sm:$0xff]  }
  0x8c   : > { %v782_v6 = vunpack.c.l.s4 %v2683_v5  ;;  %v2443_v10 = vld [vmem:[%s3120_s11 + $0x120] ss:$16 sps:$4 sm:$0xff]   ;;  %v3162_v12 = vshrl.u32 %v784_v7, 7  ;;  %v2444_v13 = vld [vmem:[%s3120_s11 + $0x128] ss:$16 sps:$4 sm:$0xff]   ;;  %p2300_p13 = scmp.ne.s32.totalorder %s2664_s17, 4 }
  0x8d   : > { %1631 = vmatpush1.bf16.msra.mxu0 %v2407_v47  ;;  %1754 = vmatpush1.bf16.msra.mxu1 %v2408_v48  ;;  %v2445_v14 = vld [vmem:[%s3120_s11 + $0x144] ss:$16 sps:$4 sm:$0xff]   ;;  %v2447_v15 = vld [vmem:[%s3120_s11 + $0x14c] ss:$16 sps:$4 sm:$0xff]   ;;  %v2449_v16 = vld [vmem:[%s3120_s11 + $0x140] ss:$16 sps:$4 sm:$0xff]  }
  0x8e   : > { %1632 = vmatprep.subr.bf16.mxu0 %v2409_v49  ;;  %1755 = vmatprep.subr.bf16.mxu1 %v2411_v50  ;;  %v783_v11 = vunpack.c.0.s8 %v782_v6  ;;  %v2450_v17 = vld [vmem:[%s3120_s11 + $0x148] ss:$16 sps:$4 sm:$0xff]   ;;  %v2451_v19 = vld [vmem:[%s3120_s11 + $0x164] ss:$16 sps:$4 sm:$0xff]   ;;  %v2453_v20 = vld [vmem:[%s3120_s11 + $0x16c] ss:$16 sps:$4 sm:$0xff]  }
  0x8f   : > { %v618_v21 = vld [vmem:[%s592_s29] sm:$0x1f]  ;;  %v2455_v22 = vld [vmem:[%s3120_s11 + $0x160] ss:$16 sps:$4 sm:$0xff]   ;;  %v2457_v26 = vld [vmem:[%s3120_s11 + $0x184] ss:$16 sps:$4 sm:$0xff]  }
  0x90   : > { %v3170_v18 = vsub.s32 %v783_v11, %v3162_v12  ;;  %v780_v23 = vcombine.high %v618_v21, %v618_v21  ;;  %v2456_v25 = vld [vmem:[%s3120_s11 + $0x168] ss:$16 sps:$4 sm:$0xff]   ;;  %v2459_v27 = vld [vmem:[%s3120_s11 + $0x18c] ss:$16 sps:$4 sm:$0xff]   ;;  %v2461_v30 = vld [vmem:[%s3120_s11 + $0x180] ss:$16 sps:$4 sm:$0xff]  }
  0x91   : > { %1633 = vmatpush1.bf16.msra.mxu0 %v2413_v51  ;;  %1756 = vmatpush1.bf16.msra.mxu1 %v2414_v52  ;;  %v2462_v33 = vld [vmem:[%s3120_s11 + $0x188] ss:$16 sps:$4 sm:$0xff]   ;;  %v2463_v34 = vld [vmem:[%s3120_s11 + $0x1a4] ss:$16 sps:$4 sm:$0xff]   ;;  %v2465_v35 = vld [vmem:[%s3120_s11 + $0x1ac] ss:$16 sps:$4 sm:$0xff]  }
  0x92   : > { %1634 = vmatprep.subr.bf16.mxu0 %v2415_v53  ;;  %1757 = vmatprep.subr.bf16.mxu1 %v2417_v54  ;;  %v787_v24 = vrot.slane %v618_v21, %v3170_v18  ;;  %v794_v29 = vrot.slane %v780_v23, %v3170_v18  ;;  %v2467_v36 = vld [vmem:[%s3120_s11 + $0x1a0] ss:$16 sps:$4 sm:$0xff]   ;;  %v2468_v37 = vld [vmem:[%s3120_s11 + $0x1a8] ss:$16 sps:$4 sm:$0xff]   ;;  %v2469_v38 = vld [vmem:[%s3120_s11 + $0x1c4] ss:$16 sps:$4 sm:$0xff]  }
  0x93   : > { %v2471_v39 = vld [vmem:[%s3120_s11 + $0x1cc] ss:$16 sps:$4 sm:$0xff]   ;;  %v2473_v40 = vld [vmem:[%s3120_s11 + $0x1c0] ss:$16 sps:$4 sm:$0xff]   ;;  %v2474_v41 = vld [vmem:[%s3120_s11 + $0x1c8] ss:$16 sps:$4 sm:$0xff]  }
  0x94   : > { %v795_v28 = vcombine.high %v787_v24, %v787_v24  ;;  %v3188_v32 = vrot.slane %v794_v29, %v3170_v18  ;;  %v2475_v42 = vld [vmem:[%s3120_s11 + $0x1e4] ss:$16 sps:$4 sm:$0xff]   ;;  %v2477_v43 = vld [vmem:[%s3120_s11 + $0x1ec] ss:$16 sps:$4 sm:$0xff]   ;;  %v2479_v44 = vld [vmem:[%s3120_s11 + $0x1e0] ss:$16 sps:$4 sm:$0xff]   ;;  %v3207_v49 = vrot.slane %v787_v24, %v3170_v18 }
  0x95   : > { %1635 = vmatpush1.bf16.msra.mxu0 %v2419_v55  ;;  %1758 = vmatpush1.bf16.msra.mxu1 %v2420_v56  ;;  %v2480_v45 = vld [vmem:[%s3120_s11 + $0x1e8] ss:$16 sps:$4 sm:$0xff]   ;;  %v2484_v46 = vld [vmem:[%s3120_s11 + $0x204] ss:$16 sps:$4 sm:$0xff]   ;;  %v2487_v47 = vld [vmem:[%s3120_s11 + $0x20c] ss:$16 sps:$4 sm:$0xff]  }
  0x96   : > { %1636 = vmatprep.subr.bf16.mxu0 %v2421_v57  ;;  %1759 = vmatprep.subr.bf16.mxu1 %v2423_v58  ;;  %v816_v31 = vrot.slane %v795_v28, %v3170_v18  ;;  %v2482_v48 = vld [vmem:[%s3120_s11 + $0x200] ss:$16 sps:$4 sm:$0xff]   ;;  %v2485_v50 = vld [vmem:[%s3120_s11 + $0x208] ss:$16 sps:$4 sm:$0xff]   ;;  %v2490_v51 = vld [vmem:[%s3120_s11 + $0x224] ss:$16 sps:$4 sm:$0xff]  }
  0x97   : > { %v2493_v52 = vld [vmem:[%s3120_s11 + $0x22c] ss:$16 sps:$4 sm:$0xff]   ;;  %v2488_v54 = vld [vmem:[%s3120_s11 + $0x220] ss:$16 sps:$4 sm:$0xff]   ;;  %v2491_v55 = vld [vmem:[%s3120_s11 + $0x228] ss:$16 sps:$4 sm:$0xff]  }
  0x98   : > { %1656 = vmatprep.mubr.bf16.mxu0 %v816_v31  ;;  %1779 = vmatprep.mubr.bf16.mxu1 %v816_v31  ;;  %v818_v53 = vcombine.high %v816_v31, %v816_v31  ;;  %v2496_v56 = vld [vmem:[%s3120_s11 + $0x244] ss:$16 sps:$4 sm:$0xff]   ;;  %v2499_v57 = vld [vmem:[%s3120_s11 + $0x24c] ss:$16 sps:$4 sm:$0xff]   ;;  %v2494_v58 = vld [vmem:[%s3120_s11 + $0x240] ss:$16 sps:$4 sm:$0xff]  }
  0x99   : > { %1637 = vmatpush1.bf16.msra.mxu0 %v2425_v59  ;;  %1760 = vmatpush1.bf16.msra.mxu1 %v2426_v60  ;;  %v2497_v59 = vld [vmem:[%s3120_s11 + $0x248] ss:$16 sps:$4 sm:$0xff]   ;;  %v2502_v60 = vld [vmem:[%s3120_s11 + $0x264] ss:$16 sps:$4 sm:$0xff]   ;;  %v2517_v5 = vld [vmem:[%s3120_s11 + $0x2ac] ss:$16 sps:$4 sm:$0xff]  }
  0x9a   : > { %1638 = vmatprep.subr.bf16.mxu0 %v2427_v61  ;;  %1761 = vmatprep.subr.bf16.mxu1 %v2429_v62  ;;  %v2505_v61 = vld [vmem:[%s3120_s11 + $0x26c] ss:$16 sps:$4 sm:$0xff]   ;;  %v2500_v62 = vld [vmem:[%s3120_s11 + $0x260] ss:$16 sps:$4 sm:$0xff]   ;;  %v2515_v7 = vld [vmem:[%s3120_s11 + $0x2a8] ss:$16 sps:$4 sm:$0xff]  }
  0x9b   : > { %v2512_v6 = vld [vmem:[%s3120_s11 + $0x2a0] ss:$16 sps:$4 sm:$0xff]   ;;  %v2521_v11 = vld [vmem:[%s3120_s11 + $0x2c8] ss:$16 sps:$4 sm:$0xff]   ;;  %v2541_v23 = vld [vmem:[%s3120_s11 + $0x32c] ss:$16 sps:$4 sm:$0xff]  }
  0x9c   : > { %v2533_v21 = vld [vmem:[%s3120_s11 + $0x308] ss:$16 sps:$4 sm:$0xff]   ;;  %v2536_v24 = vld [vmem:[%s3120_s11 + $0x320] ss:$16 sps:$4 sm:$0xff]   ;;  %v2553_v31 = vld [vmem:[%s3120_s11 + $0x36c] ss:$16 sps:$4 sm:$0xff]  }
  0x9d   : > { %1639 = vmatpush1.bf16.msra.mxu0 %v2431_v63  ;;  %1762 = vmatpush1.bf16.msra.mxu1 %v2432_v0  ;;  %v2503_v63 = vld [vmem:[%s3120_s11 + $0x268] ss:$16 sps:$4 sm:$0xff]   ;;  %v2508_v0 = vld [vmem:[%s3120_s11 + $0x284] ss:$16 sps:$4 sm:$0xff]   ;;  %v2542_v28 = vld [vmem:[%s3120_s11 + $0x340] ss:$16 sps:$4 sm:$0xff]  }
  0x9e   : > { %1640 = vmatprep.subr.bf16.mxu0 %v2433_v1  ;;  %1763 = vmatprep.subr.bf16.mxu1 %v2435_v2  ;;  %v2511_v1 = vld [vmem:[%s3120_s11 + $0x28c] ss:$16 sps:$4 sm:$0xff]   ;;  %v2506_v2 = vld [vmem:[%s3120_s11 + $0x280] ss:$16 sps:$4 sm:$0xff]   ;;  %v2545_v29 = vld [vmem:[%s3120_s11 + $0x348] ss:$16 sps:$4 sm:$0xff]  }
  0xa1   : > { %1641 = vmatpush1.bf16.msra.mxu0 %v2437_v3  ;;  %1764 = vmatpush1.bf16.msra.mxu1 %v2438_v4  ;;  %v2509_v3 = vld [vmem:[%s3120_s11 + $0x288] ss:$16 sps:$4 sm:$0xff]   ;;  %v2514_v4 = vld [vmem:[%s3120_s11 + $0x2a4] ss:$16 sps:$4 sm:$0xff]  }
  0xa2   : > { %1642 = vmatprep.subr.bf16.mxu0 %v2439_v8  ;;  %1765 = vmatprep.subr.bf16.mxu1 %v2441_v9  ;;  %v2520_v8 = vld [vmem:[%s3120_s11 + $0x2c4] ss:$16 sps:$4 sm:$0xff]   ;;  %v2523_v9 = vld [vmem:[%s3120_s11 + $0x2cc] ss:$16 sps:$4 sm:$0xff]  }
  0xa5   : > { %1643 = vmatpush1.bf16.msra.mxu0 %v2443_v10  ;;  %1766 = vmatpush1.bf16.msra.mxu1 %v2444_v13  ;;  %v2518_v10 = vld [vmem:[%s3120_s11 + $0x2c0] ss:$16 sps:$4 sm:$0xff]   ;;  %v2526_v13 = vld [vmem:[%s3120_s11 + $0x2e4] ss:$16 sps:$4 sm:$0xff]  }
  0xa6   : > { %1644 = vmatprep.subr.bf16.mxu0 %v2445_v14  ;;  %1767 = vmatprep.subr.bf16.mxu1 %v2447_v15  ;;  %v2529_v14 = vld [vmem:[%s3120_s11 + $0x2ec] ss:$16 sps:$4 sm:$0xff]   ;;  %v2524_v15 = vld [vmem:[%s3120_s11 + $0x2e0] ss:$16 sps:$4 sm:$0xff]  }
  0xa9   : > { %1645 = vmatpush1.bf16.msra.mxu0 %v2449_v16  ;;  %1768 = vmatpush1.bf16.msra.mxu1 %v2450_v17  ;;  %v2527_v16 = vld [vmem:[%s3120_s11 + $0x2e8] ss:$16 sps:$4 sm:$0xff]   ;;  %v2532_v17 = vld [vmem:[%s3120_s11 + $0x304] ss:$16 sps:$4 sm:$0xff]  }
  0xaa   : > { %1646 = vmatprep.subr.bf16.mxu0 %v2451_v19  ;;  %1769 = vmatprep.subr.bf16.mxu1 %v2453_v20  ;;  %v2535_v19 = vld [vmem:[%s3120_s11 + $0x30c] ss:$16 sps:$4 sm:$0xff]   ;;  %v2530_v20 = vld [vmem:[%s3120_s11 + $0x300] ss:$16 sps:$4 sm:$0xff]  }
  0xad   : > { %1647 = vmatpush1.bf16.msra.mxu0 %v2455_v22  ;;  %1770 = vmatpush1.bf16.msra.mxu1 %v2456_v25  ;;  %v2538_v22 = vld [vmem:[%s3120_s11 + $0x324] ss:$16 sps:$4 sm:$0xff]   ;;  %v2539_v25 = vld [vmem:[%s3120_s11 + $0x328] ss:$16 sps:$4 sm:$0xff]  }
  0xae   : > { %1648 = vmatprep.subr.bf16.mxu0 %v2457_v26  ;;  %1771 = vmatprep.subr.bf16.mxu1 %v2459_v27  ;;  %v2544_v26 = vld [vmem:[%s3120_s11 + $0x344] ss:$16 sps:$4 sm:$0xff]   ;;  %v2547_v27 = vld [vmem:[%s3120_s11 + $0x34c] ss:$16 sps:$4 sm:$0xff]  }
  0xb1   : > { %1649 = vmatpush1.bf16.msra.mxu0 %v2461_v30  ;;  %1772 = vmatpush1.bf16.msra.mxu1 %v2462_v33  ;;  %v2550_v30 = vld [vmem:[%s3120_s11 + $0x364] ss:$16 sps:$4 sm:$0xff]   ;;  %v2548_v33 = vld [vmem:[%s3120_s11 + $0x360] ss:$16 sps:$4 sm:$0xff]  }
  0xb2   : > { %1650 = vmatprep.subr.bf16.mxu0 %v2463_v34  ;;  %1773 = vmatprep.subr.bf16.mxu1 %v2465_v35  ;;  %v2551_v34 = vld [vmem:[%s3120_s11 + $0x368] ss:$16 sps:$4 sm:$0xff]   ;;  %v2556_v35 = vld [vmem:[%s3120_s11 + $0x384] ss:$16 sps:$4 sm:$0xff]  }
  0xb5   : > { %1651 = vmatpush1.bf16.msra.mxu0 %v2467_v36  ;;  %1774 = vmatpush1.bf16.msra.mxu1 %v2468_v37  ;;  %v2559_v36 = vld [vmem:[%s3120_s11 + $0x38c] ss:$16 sps:$4 sm:$0xff]   ;;  %v2554_v37 = vld [vmem:[%s3120_s11 + $0x380] ss:$16 sps:$4 sm:$0xff]  }
  0xb6   : > { %1652 = vmatprep.subr.bf16.mxu0 %v2469_v38  ;;  %1775 = vmatprep.subr.bf16.mxu1 %v2471_v39  ;;  %v2557_v38 = vld [vmem:[%s3120_s11 + $0x388] ss:$16 sps:$4 sm:$0xff]   ;;  %v2562_v39 = vld [vmem:[%s3120_s11 + $0x3a4] ss:$16 sps:$4 sm:$0xff]  }
  0xb9   : > { %1653 = vmatpush1.bf16.msra.mxu0 %v2473_v40  ;;  %1776 = vmatpush1.bf16.msra.mxu1 %v2474_v41  ;;  %v2565_v40 = vld [vmem:[%s3120_s11 + $0x3ac] ss:$16 sps:$4 sm:$0xff]   ;;  %v2560_v41 = vld [vmem:[%s3120_s11 + $0x3a0] ss:$16 sps:$4 sm:$0xff]  }
  0xba   : > { %1654 = vmatprep.subr.bf16.mxu0 %v2475_v42  ;;  %1777 = vmatprep.subr.bf16.mxu1 %v2477_v43  ;;  %v2563_v42 = vld [vmem:[%s3120_s11 + $0x3a8] ss:$16 sps:$4 sm:$0xff]   ;;  %v2568_v43 = vld [vmem:[%s3120_s11 + $0x3c4] ss:$16 sps:$4 sm:$0xff]  }
  0xbd   : > { %1655 = vmatpush1.bf16.msra.mxu0 %v2479_v44  ;;  %1778 = vmatpush1.bf16.msra.mxu1 %v2480_v45  ;;  %v2571_v44 = vld [vmem:[%s3120_s11 + $0x3cc] ss:$16 sps:$4 sm:$0xff]   ;;  %v2566_v45 = vld [vmem:[%s3120_s11 + $0x3c0] ss:$16 sps:$4 sm:$0xff]  }
  0xbe   : > { %1665 = vmatprep.subr.bf16.mxu0 %v2484_v46  ;;  %1788 = vmatprep.subr.bf16.mxu1 %v2487_v47  ;;  %v2569_v46 = vld [vmem:[%s3120_s11 + $0x3c8] ss:$16 sps:$4 sm:$0xff]   ;;  %v2574_v47 = vld [vmem:[%s3120_s11 + $0x3e4] ss:$16 sps:$4 sm:$0xff]  }
  0xc0   : > { %1657 = vmatmul.mubr.bf16.vlgmr.msra.gmra.mrb[0].mxu0 %v3207_v49  ;;  %1780 = vmatmul.mubr.bf16.vlgmr.msra.gmra.mrb[0].mxu1 %v3207_v49 }
  0xc1   : > { %1666 = vmatpush1.bf16.msra.mxu0 %v2482_v48  ;;  %1789 = vmatpush1.bf16.msra.mxu1 %v2485_v50  ;;  %v2577_v48 = vld [vmem:[%s3120_s11 + $0x3ec] ss:$16 sps:$4 sm:$0xff]   ;;  %v2572_v50 = vld [vmem:[%s3120_s11 + $0x3e0] ss:$16 sps:$4 sm:$0xff]  }
  0xc2   : > { %1667 = vmatprep.subr.bf16.mxu0 %v2490_v51  ;;  %1790 = vmatprep.subr.bf16.mxu1 %v2493_v52  ;;  %v2575_v51 = vld [vmem:[%s3120_s11 + $0x3e8] ss:$16 sps:$4 sm:$0xff]   ;;  %v2580_v52 = vld [vmem:[%s3120_s11 + $0x404] ss:$16 sps:$4 sm:$0xff]  }
  0xc3   : > { %1697 = vmatprep.mubr.bf16.mxu0 %v818_v53  ;;  %1820 = vmatprep.mubr.bf16.mxu1 %v818_v53  ;;  %v2583_v53 = vld [vmem:[%s3120_s11 + $0x40c] ss:$16 sps:$4 sm:$0xff]  }
  0xc5   : > { %1668 = vmatpush1.bf16.msra.mxu0 %v2488_v54  ;;  %1791 = vmatpush1.bf16.msra.mxu1 %v2491_v55  ;;  %v817_v54 = vcombine.high %v3207_v49, %v3207_v49  ;;  %v2578_v55 = vld [vmem:[%s3120_s11 + $0x400] ss:$16 sps:$4 sm:$0xff]   ;;  %v2587_v49 = vld [vmem:[%s3120_s11 + $0x428] ss:$16 sps:$4 sm:$0xff]  }
  0xc6   : > { %1669 = vmatprep.subr.bf16.mxu0 %v2496_v56  ;;  %1792 = vmatprep.subr.bf16.mxu1 %v2499_v57  ;;  %v2581_v56 = vld [vmem:[%s3120_s11 + $0x408] ss:$16 sps:$4 sm:$0xff]   ;;  %v2586_v57 = vld [vmem:[%s3120_s11 + $0x424] ss:$16 sps:$4 sm:$0xff]  }
  0xc9   : > { %1670 = vmatpush1.bf16.msra.mxu0 %v2494_v58  ;;  %1793 = vmatpush1.bf16.msra.mxu1 %v2497_v59  ;;  %v2589_v58 = vld [vmem:[%s3120_s11 + $0x42c] ss:$16 sps:$4 sm:$0xff]   ;;  %v2584_v59 = vld [vmem:[%s3120_s11 + $0x420] ss:$16 sps:$4 sm:$0xff]  }
  0xca   : > { %1671 = vmatprep.subr.bf16.mxu0 %v2502_v60  ;;  %1794 = vmatprep.subr.bf16.mxu1 %v2505_v61  ;;  %v2592_v60 = vld [vmem:[%s3120_s11 + $0x444] ss:$16 sps:$4 sm:$0xff]   ;;  %v2595_v61 = vld [vmem:[%s3120_s11 + $0x44c] ss:$16 sps:$4 sm:$0xff]  }
  0xcd   : > { %1672 = vmatpush1.bf16.msra.mxu0 %v2500_v62  ;;  %1795 = vmatpush1.bf16.msra.mxu1 %v2503_v63  ;;  %v2684_v62 = vmov 0   ;;  %v2590_v63 = vld [vmem:[%s3120_s11 + $0x440] ss:$16 sps:$4 sm:$0xff]  }
  0xce   : > { %1673 = vmatprep.subr.bf16.mxu0 %v2508_v0  ;;  %1796 = vmatprep.subr.bf16.mxu1 %v2511_v1  ;;  %v2593_v0 = vld [vmem:[%s3120_s11 + $0x448] ss:$16 sps:$4 sm:$0xff]   ;;  %v2598_v1 = vld [vmem:[%s3120_s11 + $0x464] ss:$16 sps:$4 sm:$0xff]  }
  0xd1   : > { %1674 = vmatpush1.bf16.msra.mxu0 %v2506_v2  ;;  %1797 = vmatpush1.bf16.msra.mxu1 %v2509_v3  ;;  %v2601_v2 = vld [vmem:[%s3120_s11 + $0x46c] ss:$16 sps:$4 sm:$0xff]   ;;  %v2596_v3 = vld [vmem:[%s3120_s11 + $0x460] ss:$16 sps:$4 sm:$0xff]  }
  0xd2   : > { %1675 = vmatprep.subr.bf16.mxu0 %v2514_v4  ;;  %1798 = vmatprep.subr.bf16.mxu1 %v2517_v5  ;;  %v2599_v4 = vld [vmem:[%s3120_s11 + $0x468] ss:$16 sps:$4 sm:$0xff]   ;;  %v2604_v5 = vld [vmem:[%s3120_s11 + $0x484] ss:$16 sps:$4 sm:$0xff]  }
  0xd5   : > { %1676 = vmatpush1.bf16.msra.mxu0 %v2512_v6  ;;  %1799 = vmatpush1.bf16.msra.mxu1 %v2515_v7  ;;  %v2607_v6 = vld [vmem:[%s3120_s11 + $0x48c] ss:$16 sps:$4 sm:$0xff]   ;;  %v2602_v7 = vld [vmem:[%s3120_s11 + $0x480] ss:$16 sps:$4 sm:$0xff]  }
  0xd6   : > { %1677 = vmatprep.subr.bf16.mxu0 %v2520_v8  ;;  %1800 = vmatprep.subr.bf16.mxu1 %v2523_v9  ;;  %v2605_v8 = vld [vmem:[%s3120_s11 + $0x488] ss:$16 sps:$4 sm:$0xff]   ;;  %v2610_v9 = vld [vmem:[%s3120_s11 + $0x4a4] ss:$16 sps:$4 sm:$0xff]  }
  0xd9   : > { %1678 = vmatpush1.bf16.msra.mxu0 %v2518_v10  ;;  %1801 = vmatpush1.bf16.msra.mxu1 %v2521_v11  ;;  %v2613_v10 = vld [vmem:[%s3120_s11 + $0x4ac] ss:$16 sps:$4 sm:$0xff]   ;;  %v2608_v11 = vld [vmem:[%s3120_s11 + $0x4a0] ss:$16 sps:$4 sm:$0xff]  }
  0xda   : > { %1679 = vmatprep.subr.bf16.mxu0 %v2526_v13  ;;  %1802 = vmatprep.subr.bf16.mxu1 %v2529_v14  ;;  %v2611_v13 = vld [vmem:[%s3120_s11 + $0x4a8] ss:$16 sps:$4 sm:$0xff]   ;;  %v2616_v14 = vld [vmem:[%s3120_s11 + $0x4c4] ss:$16 sps:$4 sm:$0xff]  }
  0xdd   : > { %1680 = vmatpush1.bf16.msra.mxu0 %v2524_v15  ;;  %1803 = vmatpush1.bf16.msra.mxu1 %v2527_v16  ;;  %v2619_v15 = vld [vmem:[%s3120_s11 + $0x4cc] ss:$16 sps:$4 sm:$0xff]   ;;  %v2614_v16 = vld [vmem:[%s3120_s11 + $0x4c0] ss:$16 sps:$4 sm:$0xff]  }
  0xde   : > { %1681 = vmatprep.subr.bf16.mxu0 %v2532_v17  ;;  %1804 = vmatprep.subr.bf16.mxu1 %v2535_v19  ;;  %v2617_v17 = vld [vmem:[%s3120_s11 + $0x4c8] ss:$16 sps:$4 sm:$0xff]   ;;  %v2622_v19 = vld [vmem:[%s3120_s11 + $0x4e4] ss:$16 sps:$4 sm:$0xff]  }
  0xe1   : > { %1682 = vmatpush1.bf16.msra.mxu0 %v2530_v20  ;;  %1805 = vmatpush1.bf16.msra.mxu1 %v2533_v21  ;;  %v2625_v20 = vld [vmem:[%s3120_s11 + $0x4ec] ss:$16 sps:$4 sm:$0xff]   ;;  %v2620_v21 = vld [vmem:[%s3120_s11 + $0x4e0] ss:$16 sps:$4 sm:$0xff]  }
  0xe2   : > { %1683 = vmatprep.subr.bf16.mxu0 %v2538_v22  ;;  %1806 = vmatprep.subr.bf16.mxu1 %v2541_v23  ;;  %v2623_v22 = vld [vmem:[%s3120_s11 + $0x4e8] ss:$16 sps:$4 sm:$0xff]   ;;  %v2685_v23 = vmov 1983009808  }
  0xe5   : > { %1684 = vmatpush1.bf16.msra.mxu0 %v2536_v24  ;;  %1807 = vmatpush1.bf16.msra.mxu1 %v2539_v25  ;;  %v1877_v24 = vunpack.c.l.s4 %v2685_v23 }
  0xe6   : > { %1685 = vmatprep.subr.bf16.mxu0 %v2544_v26  ;;  %1808 = vmatprep.subr.bf16.mxu1 %v2547_v27 }
  0xe7   : > { %v1878_v25 = vunpack.c.0.s8 %v1877_v24 }
  0xe9   : > { %1686 = vmatpush1.bf16.msra.mxu0 %v2542_v28  ;;  %1809 = vmatpush1.bf16.msra.mxu1 %v2545_v29  ;;  %v1881_v28 = vsub.s32 %v1878_v25, %v3162_v12 }
  0xea   : > { %1687 = vmatprep.subr.bf16.mxu0 %v2550_v30  ;;  %1810 = vmatprep.subr.bf16.mxu1 %v2553_v31 }
  0xed   : > { %1688 = vmatpush1.bf16.msra.mxu0 %v2548_v33  ;;  %1811 = vmatpush1.bf16.msra.mxu1 %v2551_v34 }
  0xee   : > { %1689 = vmatprep.subr.bf16.mxu0 %v2556_v35  ;;  %1812 = vmatprep.subr.bf16.mxu1 %v2559_v36 }
  0xf1   : > { %1690 = vmatpush1.bf16.msra.mxu0 %v2554_v37  ;;  %1813 = vmatpush1.bf16.msra.mxu1 %v2557_v38 }
  0xf2   : > { %1691 = vmatprep.subr.bf16.mxu0 %v2562_v39  ;;  %1814 = vmatprep.subr.bf16.mxu1 %v2565_v40  ;;  %v617_v40 = vld [vmem:[#allocation2] sm:$0xff] }
  0xf5   : > { %1692 = vmatpush1.bf16.msra.mxu0 %v2560_v41  ;;  %1815 = vmatpush1.bf16.msra.mxu1 %v2563_v42  ;;  %v1899_v42 = vld [vmem:[%s599_s15] sm:$0xf] (!%p2300_p13) }
  0xf6   : > { %1693 = vmatprep.subr.bf16.mxu0 %v2568_v43  ;;  %1816 = vmatprep.subr.bf16.mxu1 %v2571_v44  ;;  %v1903_v43 = vsub.s32 (!%p2300_p13), 0, %v3162_v12  ;;  %v1907_v44 = vsub.s32 (!%p2300_p13), 1, %v3162_v12 }
  0xf9   : > { %1694 = vmatpush1.bf16.msra.mxu0 %v2566_v45  ;;  %1817 = vmatpush1.bf16.msra.mxu1 %v2569_v46  ;;  %v1911_v45 = vsub.s32 (!%p2300_p13), 2, %v3162_v12  ;;  %v1915_v46 = vsub.s32 (!%p2300_p13), 3, %v3162_v12 }
  0xfa   : > { %1695 = vmatprep.subr.bf16.mxu0 %v2574_v47  ;;  %1818 = vmatprep.subr.bf16.mxu1 %v2577_v48  ;;  %v1936_v47 = vld [vmem:[%s604_s7] sm:$0xf] (!%p2300_p13)  ;;  %v1904_v48 = vrot.slane (!%p2300_p13), %v1899_v42, %v1903_v43 }
  0xfd   : > { %1696 = vmatpush1.bf16.msra.mxu0 %v2572_v50  ;;  %1819 = vmatpush1.bf16.msra.mxu1 %v2575_v51  ;;  %v1908_v50 = vrot.slane (!%p2300_p13), %v1899_v42, %v1907_v44  ;;  %v1912_v51 = vrot.slane (!%p2300_p13), %v1899_v42, %v1911_v45 }
  0xfe   : > { %1706 = vmatprep.subr.bf16.mxu0 %v2580_v52  ;;  %1829 = vmatprep.subr.bf16.mxu1 %v2583_v53  ;;  %v1941_v52 = vrot.slane (!%p2300_p13), %v1936_v47, %v1903_v43  ;;  %v1916_v53 = vrot.slane (!%p2300_p13), %v1899_v42, %v1915_v46 }
 0x100   : > { %1698 = vmatmul.mubr.bf16.vlgmr.msra.gmra.mrb[0].mxu0 %v817_v54  ;;  %1821 = vmatmul.mubr.bf16.vlgmr.msra.gmra.mrb[0].mxu1 %v817_v54  ;;  %v1945_v54 = vrot.slane (!%p2300_p13), %v1936_v47, %v1907_v44 }
 0x101   : > { %1707 = vmatpush1.bf16.msra.mxu0 %v2578_v55  ;;  %1830 = vmatpush1.bf16.msra.mxu1 %v2581_v56  ;;  %v1949_v55 = vrot.slane (!%p2300_p13), %v1936_v47, %v1911_v45  ;;  %v1953_v56 = vrot.slane (!%p2300_p13), %v1936_v47, %v1915_v46 }
 0x102   : > { %1708 = vmatprep.subr.bf16.mxu0 %v2586_v57  ;;  %1831 = vmatprep.subr.bf16.mxu1 %v2589_v58  ;;  %v1917_v57 = vcombine.low (!%p2300_p13), %v1904_v48, %v1908_v50  ;;  %v1918_v58 = vcombine.low (!%p2300_p13), %v1912_v51, %v1916_v53 }
 0x103   : > { %1738 = vmatprep.mubr.bf16.mxu0 %v2684_v62  ;;  %1861 = vmatprep.mubr.bf16.mxu1 %v2684_v62 }
 0x105   : > { %1709 = vmatpush1.bf16.msra.mxu0 %v2584_v59  ;;  %1832 = vmatpush1.bf16.msra.mxu1 %v2587_v49  ;;  %v1954_v59 = vcombine.low (!%p2300_p13), %v1941_v52, %v1945_v54  ;;  %v1955_v49 = vcombine.low (!%p2300_p13), %v1949_v55, %v1953_v56 }
 0x106   : > { %1710 = vmatprep.subr.bf16.mxu0 %v2592_v60  ;;  %1833 = vmatprep.subr.bf16.mxu1 %v2595_v61  ;;  %v1925_v60 = vrot.slane (!%p2300_p13), %v1917_v57, %v1881_v28  ;;  %v1932_v61 = vrot.slane (!%p2300_p13), %v1918_v58, %v1881_v28 }
 0x107   : > { %v1962_v12 = vrot.slane (!%p2300_p13), %v1954_v59, %v1881_v28  ;;  %v1969_v62 = vrot.slane (!%p2300_p13), %v1955_v49, %v1881_v28 }
 0x109   : > { %1711 = vmatpush1.bf16.msra.mxu0 %v2590_v63  ;;  %1834 = vmatpush1.bf16.msra.mxu1 %v2593_v0  ;;  %v1933_v0 = vcombine.low (!%p2300_p13), %v1925_v60, %v1932_v61 }
 0x10a   : > { %1712 = vmatprep.subr.bf16.mxu0 %v2598_v1  ;;  %1835 = vmatprep.subr.bf16.mxu1 %v2601_v2  ;;  %v1970_v1 = vcombine.low (!%p2300_p13), %v1962_v12, %v1969_v62 }
 0x10d   : > { %1713 = vmatpush1.bf16.msra.mxu0 %v2596_v3  ;;  %1836 = vmatpush1.bf16.msra.mxu1 %v2599_v4 }
 0x10e   : > { %1714 = vmatprep.subr.bf16.mxu0 %v2604_v5  ;;  %1837 = vmatprep.subr.bf16.mxu1 %v2607_v6 }
 0x111   : > { %1715 = vmatpush1.bf16.msra.mxu0 %v2602_v7  ;;  %1838 = vmatpush1.bf16.msra.mxu1 %v2605_v8 }
 0x112   : > { %1716 = vmatprep.subr.bf16.mxu0 %v2610_v9  ;;  %1839 = vmatprep.subr.bf16.mxu1 %v2613_v10 }
 0x115   : > { %1717 = vmatpush1.bf16.msra.mxu0 %v2608_v11  ;;  %1840 = vmatpush1.bf16.msra.mxu1 %v2611_v13 }
 0x116   : > { %1718 = vmatprep.subr.bf16.mxu0 %v2616_v14  ;;  %1841 = vmatprep.subr.bf16.mxu1 %v2619_v15 }
 0x119   : > { %1719 = vmatpush1.bf16.msra.mxu0 %v2614_v16  ;;  %1842 = vmatpush1.bf16.msra.mxu1 %v2617_v17 }
 0x11a   : > { %1720 = vmatprep.subr.bf16.mxu0 %v2622_v19  ;;  %1843 = vmatprep.subr.bf16.mxu1 %v2625_v20 }
 0x11d   : > { %1721 = vmatpush1.bf16.msra.mxu0 %v2620_v21  ;;  %1844 = vmatpush1.bf16.msra.mxu1 %v2623_v22 }
 0x120   : > { %1739 = vmatmul.mubr.bf16.vlgmr.msra.gmra.mrb[0].mxu0 %v3188_v32  ;;  %1862 = vmatmul.mubr.bf16.vlgmr.msra.gmra.mrb[0].mxu1 %v3188_v32 }
 0x1f3   : > { %v1740_v26 = vpop.f32.mrb[0].mxu0  ;;  %v1863_v27 = vpop.f32.mrb[0].mxu1 }
 0x1f4   : > { %v1742_v29 = vpop.f32.mrb[1].mxu0  ;;  %v1865_v30 = vpop.f32.mrb[1].mxu1 }
 0x1f5   : > { %v1874_v31 = vcombine.low %v1740_v26, %v1742_v29  ;;  %v1875_v33 = vcombine.low %v1863_v27, %v1865_v30  ;;  %v1744_v34 = vpop.f32.mrb[2].mxu0  ;;  %v1867_v35 = vpop.f32.mrb[2].mxu1 }
 0x1f6   : > { %v1745_v36 = vpop.f32.mrb[3].mxu0  ;;  %v1868_v37 = vpop.f32.mrb[3].mxu1 }
 0x1f7   : > { %v1882_v38 = vrot.slane %v1874_v31, %v1881_v28  ;;  %v1889_v39 = vrot.slane %v1875_v33, %v1881_v28  ;;  %1897 = sbr.rel (%p2300_p13) target bundleno = 536 (0x218), region = 67 }
 0x1f9   : > { %v1890_v41 = vcombine.low %v1882_v38, %v1889_v39 }
 0x1fb   : > { %v1892_v32 = vadd.f32 %v1890_v41, %v617_v40 }
 0x1fd   : > { %1893 = vst [vmem:[#allocation2] sm:$0xff] %v1892_v32 }
 0x204   : > { %v1898_v63 = vld [vmem:[#allocation2] sm:$0xff] }
 0x205   : > { %v1935_v2 = vmul.f32 %v1933_v0, %v1898_v63 }
 0x207   : > { %v1972_v3 = vadd.f32 %v1970_v1, %v1935_v2 }
 0x209   : > { %v1973_v4 = vmax.f32 %v1972_v3, 0.0 }
 0x20b   : > { %v1975_v5 = vcombine.high %v1973_v4, %v1973_v4  ;;  %v1982_v6 = vrot.slane %v1973_v4, %v1881_v28 }
 0x20d   : > { %v1989_v7 = vrot.slane %v1975_v5, %v1881_v28  ;;  %v1990_v8 = vcombine.high %v1982_v6, %v1982_v6 }
 0x20f   : > { %v1991_v9 = vcombine.high %v1989_v7, %v1989_v7  ;;  %v2301_v10 = vpack.c.bf16 %v1990_v8, %v1982_v6 }
 0x211   : > { %v2302_v11 = vpack.c.bf16 %v1991_v9, %v1989_v7  ;;  %v2012_v13 = vrot.slane %v2301_v10, %v3170_v18 }
 0x213   : > { %v2019_v14 = vrot.slane %v2302_v11, %v3170_v18 }
 0x215   : > { %v2020_v15 = vcombine.low %v2012_v13, %v2019_v14 }
 0x217   : > { %2303 = vst.sshfl [vmem:[%s609_s10] sm:$0x55 pattern:$0x73625140] %v2020_v15 }
 0x218 PF: > { %s14_s21 = sadd.s32 1, %s2680_s21   ;;  %s3357_s15 = smov %s2660_s16 }
 0x219   : > { %p11_p0 = scmp.ge.s32.totalorder %s14_s21, 22   ;;  %s3358_s16 = smov %s2762_s28 }
 0x21a   : > { %s3359_s17 = smov %s2672_s19  ;;  %s3360_s18 = smov %s2676_s20 }
 0x21b   : > { %s3361_s19 = smov %s3364_s22  ;;  %s3362_s20 = smov %s3368_s23 }
 0x21c   :  { %13 = sbr.rel (!%p11_p0) target bundleno = 4 (0x4), region = 111 }

// kernel: dann_forward.15
= control target key start
LH: loop header
LB: loop body
LE: loop exit
PB: predicated region body
PF: predicated region fallthrough
CT: control target
= control target key end

     0   :  { %v289_v28 = vlaneseq  ;;  %v2158_v36 = vmov 1966171168   ;;  %s2659_s0 = inlined_call_operand.vmem [shape: bf16[2,2048], index: 0, kind: input, shape index: {}]   ;;  %s2660_s1 = inlined_call_operand.vmem [shape: bf16[2048,128], index: 1, kind: input, shape index: {}]   ;;  %s2661_s2 = inlined_call_operand.vmem [shape: f32[1,128], index: 2, kind: input, shape index: {}]   ;;  %s2662_s3 = inlined_call_operand.vmem [shape: f32[1,128], index: 3, kind: input, shape index: {}]   ;;  %s2663_s4 = inlined_call_operand.vmem [shape: bf16[128,2], index: 4, kind: input, shape index: {}]   ;;  %s2664_s5 = inlined_call_operand.vmem [shape: f32[1,2], index: 5, kind: input, shape index: {}]   ;;  %s2665_s6 = inlined_call_operand.hbm [shape: f32[2,2], index: 6, kind: output, shape index: {}]  }
   0x1   :  { %v1992_v0 = vld [vmem:[%s2660_s1 + $0x40] sm:$0xff]   ;;  %v1996_v4 = vld [vmem:[%s2660_s1 + $0x48] sm:$0xff]   ;;  %v2000_v8 = vld [vmem:[%s2660_s1 + $0x50] sm:$0xff]   ;;  %v287_v37 = vunpack.c.l.s4 %v2158_v36 }
   0x2   :  { %v1993_v1 = vld [vmem:[%s2660_s1 + $0xc0] sm:$0xff]   ;;  %1783 = vmatprep.subr.bf16.mxu0 %v1992_v0  ;;  %v1997_v5 = vld [vmem:[%s2660_s1 + $0xc8] sm:$0xff]   ;;  %v2001_v9 = vld [vmem:[%s2660_s1 + $0xd0] sm:$0xff]   ;;  %v290_v33 = vshrl.u32 %v289_v28, 7 }
   0x3   :  { %v1994_v2 = vld [vmem:[%s2660_s1] sm:$0xff]   ;;  %1805 = vmatprep.subr.bf16.mxu1 %v1993_v1  ;;  %v1998_v6 = vld [vmem:[%s2660_s1 + $0x8] sm:$0xff]   ;;  %v2002_v10 = vld [vmem:[%s2660_s1 + $0x10] sm:$0xff]   ;;  %v288_v40 = vunpack.c.0.s8 %v287_v37 }
   0x4   :  { %v1995_v3 = vld [vmem:[%s2660_s1 + $0x80] sm:$0xff]   ;;  %1784 = vmatpush3.bf16.msra.mxu0 %v1994_v2  ;;  %v1999_v7 = vld [vmem:[%s2660_s1 + $0x88] sm:$0xff]   ;;  %v2003_v11 = vld [vmem:[%s2660_s1 + $0x90] sm:$0xff]  }
   0x5   :  { %1806 = vmatpush3.bf16.msra.mxu1 %v1995_v3  ;;  %1785 = vmatprep.subr.bf16.mxu0 %v1996_v4  ;;  %v2004_v12 = vld [vmem:[%s2660_s1 + $0x58] sm:$0xff]   ;;  %v2008_v16 = vld [vmem:[%s2660_s1 + $0x60] sm:$0xff]   ;;  %v2012_v20 = vld [vmem:[%s2660_s1 + $0x68] sm:$0xff]   ;;  %v2302_v41 = vsub.s32 %v288_v40, %v290_v33 }
   0x6   :  { %1807 = vmatprep.subr.bf16.mxu1 %v1997_v5  ;;  %v2005_v13 = vld [vmem:[%s2660_s1 + $0xd8] sm:$0xff]   ;;  %v2009_v17 = vld [vmem:[%s2660_s1 + $0xe0] sm:$0xff]   ;;  %v2013_v21 = vld [vmem:[%s2660_s1 + $0xe8] sm:$0xff]  }
   0x7   :  { %v2006_v14 = vld [vmem:[%s2660_s1 + $0x18] sm:$0xff]   ;;  %v2010_v18 = vld [vmem:[%s2660_s1 + $0x20] sm:$0xff]   ;;  %v2014_v22 = vld [vmem:[%s2660_s1 + $0x28] sm:$0xff]  }
   0x8   :  { %1786 = vmatpush3.bf16.msra.mxu0 %v1998_v6  ;;  %v2007_v15 = vld [vmem:[%s2660_s1 + $0x98] sm:$0xff]   ;;  %v2011_v19 = vld [vmem:[%s2660_s1 + $0xa0] sm:$0xff]   ;;  %v2015_v23 = vld [vmem:[%s2660_s1 + $0xa8] sm:$0xff]  }
   0x9   :  { %1808 = vmatpush3.bf16.msra.mxu1 %v1999_v7  ;;  %1787 = vmatprep.subr.bf16.mxu0 %v2000_v8  ;;  %v2016_v24 = vld [vmem:[%s2660_s1 + $0x70] sm:$0xff]   ;;  %v2020_v29 = vld [vmem:[%s2660_s1 + $0x78] sm:$0xff]   ;;  %v25_v34 = vld [vmem:[%s2659_s0] sm:$0xff] }
   0xa   :  { %1809 = vmatprep.subr.bf16.mxu1 %v2001_v9  ;;  %v2017_v25 = vld [vmem:[%s2660_s1 + $0xf0] sm:$0xff]   ;;  %v2021_v30 = vld [vmem:[%s2660_s1 + $0xf8] sm:$0xff]   ;;  %v2025_v35 = vld [vmem:[%s2660_s1 + $0x140] sm:$0xff]   ;;  %v285_v39 = vcombine.high %v25_v34, %v25_v34  ;;  %v292_v42 = vrot.slane %v25_v34, %v2302_v41 }
   0xb   :  { %v2018_v26 = vld [vmem:[%s2660_s1 + $0x30] sm:$0xff]   ;;  %v2022_v31 = vld [vmem:[%s2660_s1 + $0x38] sm:$0xff]   ;;  %v2026_v38 = vld [vmem:[%s2660_s1 + $0x1c0] sm:$0xff]  }
   0xc   :  { %1788 = vmatpush3.bf16.msra.mxu0 %v2002_v10  ;;  %v2019_v27 = vld [vmem:[%s2660_s1 + $0xb0] sm:$0xff]   ;;  %v2023_v32 = vld [vmem:[%s2660_s1 + $0xb8] sm:$0xff]   ;;  %v2306_v43 = vrot.slane %v285_v39, %v2302_v41  ;;  %v300_v44 = vcombine.high %v292_v42, %v292_v42  ;;  %v308_v45 = vrot.slane %v292_v42, %v2302_v41  ;;  %v2027_v47 = vld [vmem:[%s2660_s1 + $0x100] sm:$0xff]  }
   0xd   :  { %1810 = vmatpush3.bf16.msra.mxu1 %v2003_v11  ;;  %1789 = vmatprep.subr.bf16.mxu0 %v2004_v12  ;;  %v2028_v49 = vld [vmem:[%s2660_s1 + $0x180] sm:$0xff]   ;;  %v2029_v52 = vld [vmem:[%s2660_s1 + $0x148] sm:$0xff]   ;;  %v2033_v58 = vld [vmem:[%s2660_s1 + $0x150] sm:$0xff]  }
   0xe   :  { %1811 = vmatprep.subr.bf16.mxu1 %v2005_v13  ;;  %v301_v46 = vcombine.high %v2306_v43, %v2306_v43  ;;  %v322_v48 = vrot.slane %v300_v44, %v2302_v41  ;;  %v330_v51 = vcombine.high %v308_v45, %v308_v45  ;;  %v2030_v54 = vld [vmem:[%s2660_s1 + $0x1c8] sm:$0xff]   ;;  %v2034_v59 = vld [vmem:[%s2660_s1 + $0x1d0] sm:$0xff]   ;;  %v2037_v62 = vld [vmem:[%s2660_s1 + $0x158] sm:$0xff]  }
   0xf   :  { %v2031_v55 = vld [vmem:[%s2660_s1 + $0x108] sm:$0xff]   ;;  %v2035_v60 = vld [vmem:[%s2660_s1 + $0x110] sm:$0xff]   ;;  %v2038_v63 = vld [vmem:[%s2660_s1 + $0x1d8] sm:$0xff]  }
  0x10   :  { %1790 = vmatpush3.bf16.msra.mxu0 %v2006_v14  ;;  %v329_v50 = vrot.slane %v301_v46, %v2302_v41  ;;  %1199 = vmatprep.mubr.bf16.mxu0 %v322_v48  ;;  %v332_v53 = vcombine.high %v322_v48, %v322_v48  ;;  %v2032_v57 = vld [vmem:[%s2660_s1 + $0x188] sm:$0xff]   ;;  %v2036_v61 = vld [vmem:[%s2660_s1 + $0x190] sm:$0xff]   ;;  %v2039_v0 = vld [vmem:[%s2660_s1 + $0x118] sm:$0xff]  }
  0x11   :  { %1812 = vmatpush3.bf16.msra.mxu1 %v2007_v15  ;;  %1791 = vmatprep.subr.bf16.mxu0 %v2008_v16  ;;  %v2040_v1 = vld [vmem:[%s2660_s1 + $0x198] sm:$0xff]   ;;  %v2041_v2 = vld [vmem:[%s2660_s1 + $0x160] sm:$0xff]   ;;  %v2045_v6 = vld [vmem:[%s2660_s1 + $0x168] sm:$0xff]  }
  0x12   :  { %1813 = vmatprep.subr.bf16.mxu1 %v2009_v17  ;;  %v333_v56 = vcombine.high %v329_v50, %v329_v50  ;;  %1239 = vmatprep.mubr.bf16.mxu1 %v332_v53  ;;  %v2042_v3 = vld [vmem:[%s2660_s1 + $0x1e0] sm:$0xff]   ;;  %v2046_v7 = vld [vmem:[%s2660_s1 + $0x1e8] sm:$0xff]   ;;  %v2049_v10 = vld [vmem:[%s2660_s1 + $0x170] sm:$0xff]  }
  0x13   :  { %v2043_v4 = vld [vmem:[%s2660_s1 + $0x120] sm:$0xff]   ;;  %v2047_v8 = vld [vmem:[%s2660_s1 + $0x128] sm:$0xff]   ;;  %v2050_v11 = vld [vmem:[%s2660_s1 + $0x1f0] sm:$0xff]  }
  0x14   :  { %1792 = vmatpush3.bf16.msra.mxu0 %v2010_v18  ;;  %v2044_v5 = vld [vmem:[%s2660_s1 + $0x1a0] sm:$0xff]   ;;  %v2048_v9 = vld [vmem:[%s2660_s1 + $0x1a8] sm:$0xff]   ;;  %v2051_v12 = vld [vmem:[%s2660_s1 + $0x130] sm:$0xff]   ;;  %v315_v18 = vrot.slane %v2306_v43, %v2302_v41 }
  0x15   :  { %1814 = vmatpush3.bf16.msra.mxu1 %v2011_v19  ;;  %1793 = vmatprep.subr.bf16.mxu0 %v2012_v20  ;;  %v2052_v13 = vld [vmem:[%s2660_s1 + $0x1b0] sm:$0xff]   ;;  %v2053_v14 = vld [vmem:[%s2660_s1 + $0x178] sm:$0xff]   ;;  %v2057_v19 = vld [vmem:[%s2660_s1 + $0x240] sm:$0xff]  }
  0x16   :  { %1815 = vmatprep.subr.bf16.mxu1 %v2013_v21  ;;  %v2054_v15 = vld [vmem:[%s2660_s1 + $0x1f8] sm:$0xff]   ;;  %v2058_v20 = vld [vmem:[%s2660_s1 + $0x2c0] sm:$0xff]   ;;  %v2065_v28 = vld [vmem:[%s2660_s1 + $0x250] sm:$0xff]  }
  0x17   :  { %v2055_v16 = vld [vmem:[%s2660_s1 + $0x138] sm:$0xff]   ;;  %v2059_v21 = vld [vmem:[%s2660_s1 + $0x200] sm:$0xff]   ;;  %v2077_v40 = vld [vmem:[%s2660_s1 + $0x268] sm:$0xff]  }
  0x18   :  { %1794 = vmatpush3.bf16.msra.mxu0 %v2014_v22  ;;  %v2056_v17 = vld [vmem:[%s2660_s1 + $0x1b8] sm:$0xff]   ;;  %v2060_v22 = vld [vmem:[%s2660_s1 + $0x280] sm:$0xff]   ;;  %v2078_v42 = vld [vmem:[%s2660_s1 + $0x2e8] sm:$0xff]  }
  0x19   :  { %1816 = vmatpush3.bf16.msra.mxu1 %v2015_v23  ;;  %1795 = vmatprep.subr.bf16.mxu0 %v2016_v24  ;;  %v331_v23 = vcombine.high %v315_v18, %v315_v18  ;;  %v2061_v24 = vld [vmem:[%s2660_s1 + $0x248] sm:$0xff]   ;;  %v2070_v33 = vld [vmem:[%s2660_s1 + $0x2d8] sm:$0xff]   ;;  %v2073_v36 = vld [vmem:[%s2660_s1 + $0x260] sm:$0xff]  }
  0x1a   :  { %1817 = vmatprep.subr.bf16.mxu1 %v2017_v25  ;;  %v2062_v25 = vld [vmem:[%s2660_s1 + $0x2c8] sm:$0xff]   ;;  %v2071_v34 = vld [vmem:[%s2660_s1 + $0x218] sm:$0xff]   ;;  %v2074_v37 = vld [vmem:[%s2660_s1 + $0x2e0] sm:$0xff]  }
  0x1b   :  { %v2076_v39 = vld [vmem:[%s2660_s1 + $0x2a0] sm:$0xff]   ;;  %v2079_v43 = vld [vmem:[%s2660_s1 + $0x228] sm:$0xff]  }
  0x1c   :  { %1796 = vmatpush3.bf16.msra.mxu0 %v2018_v26  ;;  %v2063_v26 = vld [vmem:[%s2660_s1 + $0x208] sm:$0xff]  }
  0x1d   :  { %1818 = vmatpush3.bf16.msra.mxu1 %v2019_v27  ;;  %1797 = vmatprep.subr.bf16.mxu0 %v2020_v29  ;;  %v2064_v27 = vld [vmem:[%s2660_s1 + $0x288] sm:$0xff]   ;;  %v2066_v29 = vld [vmem:[%s2660_s1 + $0x2d0] sm:$0xff]  }
  0x1e   :  { %1819 = vmatprep.subr.bf16.mxu1 %v2021_v30  ;;  %v2067_v30 = vld [vmem:[%s2660_s1 + $0x210] sm:$0xff]   ;;  %v2080_v44 = vld [vmem:[%s2660_s1 + $0x2a8] sm:$0xff]  }
  0x1f   :  { %v26_v46 = vld [vmem:[%s2659_s0 + $0x8] sm:$0xff] }
  0x20   :  { %1798 = vmatpush3.bf16.msra.mxu0 %v2022_v31  ;;  %v2068_v31 = vld [vmem:[%s2660_s1 + $0x290] sm:$0xff]   ;;  %v341_v48 = vrot.slane %v26_v46, %v2302_v41 }
  0x21   :  { %1820 = vmatpush3.bf16.msra.mxu1 %v2023_v32  ;;  %1827 = vmatprep.subr.bf16.mxu0 %v2025_v35  ;;  %v2069_v32 = vld [vmem:[%s2660_s1 + $0x258] sm:$0xff]  }
  0x22   :  { %1849 = vmatprep.subr.bf16.mxu1 %v2026_v38  ;;  %v2072_v35 = vld [vmem:[%s2660_s1 + $0x298] sm:$0xff]   ;;  %v2075_v38 = vld [vmem:[%s2660_s1 + $0x220] sm:$0xff]  }
  0x23   :  { %1200 = vmatmul.mubr.bf16.vlgmr.msra.gmra.mrb[0].mxu0 %v308_v45  ;;  %v2081_v45 = vld [vmem:[%s2660_s1 + $0x270] sm:$0xff]  }
  0x24   :  { %1828 = vmatpush3.bf16.msra.mxu0 %v2027_v47  ;;  %1240 = vmatmul.mubr.bf16.vlgmr.msra.gmra.mrb[0].mxu1 %v330_v51  ;;  %v2082_v47 = vld [vmem:[%s2660_s1 + $0x2f0] sm:$0xff]  }
  0x25   :  { %1829 = vmatprep.subr.bf16.mxu0 %v2029_v52  ;;  %1850 = vmatpush3.bf16.msra.mxu1 %v2028_v49  ;;  %v334_v49 = vcombine.high %v26_v46, %v26_v46  ;;  %v2084_v51 = vld [vmem:[%s2660_s1 + $0x2b0] sm:$0xff]   ;;  %v349_v52 = vcombine.high %v341_v48, %v341_v48 }
  0x26   :  { %1279 = vmatprep.mubr.bf16.mxu0 %v329_v50  ;;  %1851 = vmatprep.subr.bf16.mxu1 %v2030_v54  ;;  %v2083_v50 = vld [vmem:[%s2660_s1 + $0x230] sm:$0xff]   ;;  %v2085_v54 = vld [vmem:[%s2660_s1 + $0x278] sm:$0xff]  }
  0x27   :  { %1319 = vmatprep.mubr.bf16.mxu1 %v333_v56  ;;  %v2494_v53 = vrot.slane %v334_v49, %v2302_v41  ;;  %v371_v56 = vrot.slane %v349_v52, %v2302_v41 }
  0x28   :  { %1830 = vmatpush3.bf16.msra.mxu0 %v2031_v55  ;;  %v2086_v55 = vld [vmem:[%s2660_s1 + $0x2f8] sm:$0xff]  }
  0x29   :  { %1831 = vmatprep.subr.bf16.mxu0 %v2033_v58  ;;  %1852 = vmatpush3.bf16.msra.mxu1 %v2032_v57  ;;  %v350_v57 = vcombine.high %v2494_v53, %v2494_v53  ;;  %v2087_v58 = vld [vmem:[%s2660_s1 + $0x238] sm:$0xff]  }
  0x2a   :  { %1853 = vmatprep.subr.bf16.mxu1 %v2034_v59  ;;  %v2088_v59 = vld [vmem:[%s2660_s1 + $0x2b8] sm:$0xff]  }
  0x2c   :  { %1832 = vmatpush3.bf16.msra.mxu0 %v2035_v60  ;;  %v381_v60 = vcombine.high %v371_v56, %v371_v56 }
  0x2d   :  { %1833 = vmatprep.subr.bf16.mxu0 %v2037_v62  ;;  %1854 = vmatpush3.bf16.msra.mxu1 %v2036_v61  ;;  %v357_v61 = vrot.slane %v341_v48, %v2302_v41  ;;  %v2089_v62 = vld [vmem:[%s2660_s1 + $0x340] sm:$0xff]  }
  0x2e   :  { %1855 = vmatprep.subr.bf16.mxu1 %v2038_v63  ;;  %v2090_v63 = vld [vmem:[%s2660_s1 + $0x3c0] sm:$0xff]  }
  0x30   :  { %1834 = vmatpush3.bf16.msra.mxu0 %v2039_v0  ;;  %v378_v0 = vrot.slane %v350_v57, %v2302_v41 }
  0x31   :  { %1835 = vmatprep.subr.bf16.mxu0 %v2041_v2  ;;  %1856 = vmatpush3.bf16.msra.mxu1 %v2040_v1  ;;  %v2091_v1 = vld [vmem:[%s2660_s1 + $0x300] sm:$0xff]  }
  0x32   :  { %1857 = vmatprep.subr.bf16.mxu1 %v2042_v3  ;;  %v2092_v2 = vld [vmem:[%s2660_s1 + $0x380] sm:$0xff]   ;;  %v379_v3 = vcombine.high %v357_v61, %v357_v61 }
  0x34   :  { %1836 = vmatpush3.bf16.msra.mxu0 %v2043_v4  ;;  %v2093_v4 = vld [vmem:[%s2660_s1 + $0x348] sm:$0xff]  }
  0x35   :  { %1837 = vmatprep.subr.bf16.mxu0 %v2045_v6  ;;  %1858 = vmatpush3.bf16.msra.mxu1 %v2044_v5  ;;  %v2094_v5 = vld [vmem:[%s2660_s1 + $0x3c8] sm:$0xff]   ;;  %v382_v6 = vcombine.high %v378_v0, %v378_v0 }
  0x36   :  { %1859 = vmatprep.subr.bf16.mxu1 %v2046_v7  ;;  %v2095_v7 = vld [vmem:[%s2660_s1 + $0x308] sm:$0xff]  }
  0x38   :  { %1838 = vmatpush3.bf16.msra.mxu0 %v2047_v8  ;;  %v2096_v8 = vld [vmem:[%s2660_s1 + $0x388] sm:$0xff]  }
  0x39   :  { %1839 = vmatprep.subr.bf16.mxu0 %v2049_v10  ;;  %1860 = vmatpush3.bf16.msra.mxu1 %v2048_v9  ;;  %v2097_v9 = vld [vmem:[%s2660_s1 + $0x350] sm:$0xff]  }
  0x3a   :  { %1861 = vmatprep.subr.bf16.mxu1 %v2050_v11  ;;  %v2098_v10 = vld [vmem:[%s2660_s1 + $0x3d0] sm:$0xff]  }
  0x3b   :  { %v2099_v11 = vld [vmem:[%s2660_s1 + $0x310] sm:$0xff]  }
  0x3c   :  { %1840 = vmatpush3.bf16.msra.mxu0 %v2051_v12  ;;  %v2100_v12 = vld [vmem:[%s2660_s1 + $0x390] sm:$0xff]  }
  0x3d   :  { %1841 = vmatprep.subr.bf16.mxu0 %v2053_v14  ;;  %1862 = vmatpush3.bf16.msra.mxu1 %v2052_v13  ;;  %v2101_v13 = vld [vmem:[%s2660_s1 + $0x358] sm:$0xff]  }
  0x3e   :  { %1863 = vmatprep.subr.bf16.mxu1 %v2054_v15  ;;  %v2102_v14 = vld [vmem:[%s2660_s1 + $0x3d8] sm:$0xff]  }
  0x3f   :  { %v2103_v15 = vld [vmem:[%s2660_s1 + $0x318] sm:$0xff]  }
  0x40   :  { %1842 = vmatpush3.bf16.msra.mxu0 %v2055_v16  ;;  %v2104_v16 = vld [vmem:[%s2660_s1 + $0x398] sm:$0xff]  }
  0x41   :  { %1871 = vmatprep.subr.bf16.mxu0 %v2057_v19  ;;  %1864 = vmatpush3.bf16.msra.mxu1 %v2056_v17  ;;  %v2105_v17 = vld [vmem:[%s2660_s1 + $0x360] sm:$0xff]  }
  0x42   :  { %1893 = vmatprep.subr.bf16.mxu1 %v2058_v20  ;;  %v2107_v19 = vld [vmem:[%s2660_s1 + $0x320] sm:$0xff]  }
  0x43   :  { %1280 = vmatmul.mubr.bf16.vlgmr.msra.gmra.mrb[4].mxu0 %v315_v18  ;;  %v2106_v18 = vld [vmem:[%s2660_s1 + $0x3e0] sm:$0xff]  }
  0x44   :  { %1872 = vmatpush3.bf16.msra.mxu0 %v2059_v21  ;;  %1320 = vmatmul.mubr.bf16.vlgmr.msra.gmra.mrb[4].mxu1 %v331_v23  ;;  %v2108_v20 = vld [vmem:[%s2660_s1 + $0x3a0] sm:$0xff]   ;;  %v2109_v21 = vld [vmem:[%s2660_s1 + $0x368] sm:$0xff]  }
  0x45   :  { %1873 = vmatprep.subr.bf16.mxu0 %v2061_v24  ;;  %1894 = vmatpush3.bf16.msra.mxu1 %v2060_v22  ;;  %v2110_v22 = vld [vmem:[%s2660_s1 + $0x3e8] sm:$0xff]  }
  0x46   :  { %1895 = vmatprep.subr.bf16.mxu1 %v2062_v25  ;;  %1359 = vmatprep.mubr.bf16.mxu0 %v371_v56  ;;  %v2111_v23 = vld [vmem:[%s2660_s1 + $0x328] sm:$0xff]   ;;  %v2113_v25 = vld [vmem:[%s2660_s1 + $0x370] sm:$0xff]  }
  0x47   :  { %1399 = vmatprep.mubr.bf16.mxu1 %v381_v60  ;;  %v2112_v24 = vld [vmem:[%s2660_s1 + $0x3a8] sm:$0xff]  }
  0x48   :  { %1874 = vmatpush3.bf16.msra.mxu0 %v2063_v26  ;;  %v2114_v26 = vld [vmem:[%s2660_s1 + $0x3f0] sm:$0xff]  }
  0x49   :  { %1875 = vmatprep.subr.bf16.mxu0 %v2065_v28  ;;  %1896 = vmatpush3.bf16.msra.mxu1 %v2064_v27  ;;  %v2115_v27 = vld [vmem:[%s2660_s1 + $0x330] sm:$0xff]   ;;  %v2117_v28 = vld [vmem:[%s2660_s1 + $0x378] sm:$0xff]  }
  0x4a   :  { %1897 = vmatprep.subr.bf16.mxu1 %v2066_v29  ;;  %v2116_v29 = vld [vmem:[%s2660_s1 + $0x3b0] sm:$0xff]  }
  0x4c   :  { %1876 = vmatpush3.bf16.msra.mxu0 %v2067_v30  ;;  %v2118_v30 = vld [vmem:[%s2660_s1 + $0x3f8] sm:$0xff]  }
  0x4d   :  { %1877 = vmatprep.subr.bf16.mxu0 %v2069_v32  ;;  %1898 = vmatpush3.bf16.msra.mxu1 %v2068_v31 }
  0x4e   :  { %1899 = vmatprep.subr.bf16.mxu1 %v2070_v33 }
  0x50   :  { %1878 = vmatpush3.bf16.msra.mxu0 %v2071_v34 }
  0x51   :  { %1879 = vmatprep.subr.bf16.mxu0 %v2073_v36  ;;  %1900 = vmatpush3.bf16.msra.mxu1 %v2072_v35 }
  0x52   :  { %1901 = vmatprep.subr.bf16.mxu1 %v2074_v37 }
  0x54   :  { %1880 = vmatpush3.bf16.msra.mxu0 %v2075_v38 }
  0x55   :  { %1881 = vmatprep.subr.bf16.mxu0 %v2077_v40  ;;  %1902 = vmatpush3.bf16.msra.mxu1 %v2076_v39 }
  0x56   :  { %1903 = vmatprep.subr.bf16.mxu1 %v2078_v42 }
  0x58   :  { %1882 = vmatpush3.bf16.msra.mxu0 %v2079_v43 }
  0x59   :  { %1883 = vmatprep.subr.bf16.mxu0 %v2081_v45  ;;  %1904 = vmatpush3.bf16.msra.mxu1 %v2080_v44 }
  0x5a   :  { %1905 = vmatprep.subr.bf16.mxu1 %v2082_v47 }
  0x5c   :  { %1884 = vmatpush3.bf16.msra.mxu0 %v2083_v50 }
  0x5d   :  { %1885 = vmatprep.subr.bf16.mxu0 %v2085_v54  ;;  %1906 = vmatpush3.bf16.msra.mxu1 %v2084_v51 }
  0x5e   :  { %1907 = vmatprep.subr.bf16.mxu1 %v2086_v55 }
  0x60   :  { %1886 = vmatpush3.bf16.msra.mxu0 %v2087_v58 }
  0x61   :  { %1915 = vmatprep.subr.bf16.mxu0 %v2089_v62  ;;  %1908 = vmatpush3.bf16.msra.mxu1 %v2088_v59 }
  0x62   :  { %1937 = vmatprep.subr.bf16.mxu1 %v2090_v63 }
  0x63   :  { %1360 = vmatmul.mubr.bf16.vlgmr.msra.gmra.mrb[8].mxu0 %v357_v61 }
  0x64   :  { %1916 = vmatpush3.bf16.msra.mxu0 %v2091_v1  ;;  %1439 = vmatprep.mubr.bf16.mxu0 %v378_v0 }
  0x65   :  { %1400 = vmatmul.mubr.bf16.vlgmr.msra.gmra.mrb[8].mxu1 %v379_v3  ;;  %1917 = vmatprep.subr.bf16.mxu0 %v2093_v4 }
  0x66   :  { %1938 = vmatpush3.bf16.msra.mxu1 %v2092_v2  ;;  %1479 = vmatprep.mubr.bf16.mxu1 %v382_v6 }
  0x67   :  { %1939 = vmatprep.subr.bf16.mxu1 %v2094_v5 }
  0x68   :  { %1918 = vmatpush3.bf16.msra.mxu0 %v2095_v7 }
  0x69   :  { %1919 = vmatprep.subr.bf16.mxu0 %v2097_v9 }
  0x6a   :  { %1940 = vmatpush3.bf16.msra.mxu1 %v2096_v8 }
  0x6b   :  { %1941 = vmatprep.subr.bf16.mxu1 %v2098_v10 }
  0x6c   :  { %1920 = vmatpush3.bf16.msra.mxu0 %v2099_v11 }
  0x6d   :  { %1921 = vmatprep.subr.bf16.mxu0 %v2101_v13 }
  0x6e   :  { %1942 = vmatpush3.bf16.msra.mxu1 %v2100_v12 }
  0x6f   :  { %1943 = vmatprep.subr.bf16.mxu1 %v2102_v14 }
  0x70   :  { %1922 = vmatpush3.bf16.msra.mxu0 %v2103_v15 }
  0x71   :  { %1923 = vmatprep.subr.bf16.mxu0 %v2105_v17 }
  0x72   :  { %1944 = vmatpush3.bf16.msra.mxu1 %v2104_v16 }
  0x73   :  { %1945 = vmatprep.subr.bf16.mxu1 %v2106_v18 }
  0x74   :  { %1924 = vmatpush3.bf16.msra.mxu0 %v2107_v19 }
  0x75   :  { %1925 = vmatprep.subr.bf16.mxu0 %v2109_v21 }
  0x76   :  { %1946 = vmatpush3.bf16.msra.mxu1 %v2108_v20 }
  0x77   :  { %1947 = vmatprep.subr.bf16.mxu1 %v2110_v22 }
  0x78   :  { %1926 = vmatpush3.bf16.msra.mxu0 %v2111_v23 }
  0x79   :  { %1927 = vmatprep.subr.bf16.mxu0 %v2113_v25 }
  0x7a   :  { %1948 = vmatpush3.bf16.msra.mxu1 %v2112_v24 }
  0x7b   :  { %1949 = vmatprep.subr.bf16.mxu1 %v2114_v26 }
  0x7c   :  { %11 = vsyncpa [#allocation3], 0  ;;  %1928 = vmatpush3.bf16.msra.mxu0 %v2115_v27  ;;  %v2119_v31 = vld [vmem:[%s2660_s1 + $0x338] sm:$0xff]   ;;  %v364_v32 = vrot.slane %v2494_v53, %v2302_v41  ;;  %v2122_v35 = vld [vmem:[%s2663_s4] sm:$0xff]   ;;  %v2159_v36 = vmov 0.0   ;;  %vm2160_vm0 = vmmov 0  }
  0x7d   :  { %1929 = vmatprep.subr.bf16.mxu0 %v2117_v28  ;;  %v2120_v33 = vld [vmem:[%s2660_s1 + $0x3b8] sm:$0xff]   ;;  %v2123_v41 = vld [vmem:[%s2663_s4 + $0x8] sm:$0xff]   ;;  %v2124_v37 = vld [vmem:[%s2663_s4 + $0x10] sm:$0xff]   ;;  %vm1616_vm1 = vcmask 9216  }
  0x7e   :  { %1950 = vmatpush3.bf16.msra.mxu1 %v2116_v29  ;;  %v380_v34 = vcombine.high %v364_v32, %v364_v32  ;;  %v2125_v38 = vld [vmem:[%s2663_s4 + $0x18] sm:$0xff]   ;;  %v2126_v39 = vld [vmem:[%s2663_s4 + $0x20] sm:$0xff]   ;;  %v2127_v40 = vld [vmem:[%s2663_s4 + $0x28] sm:$0xff]  }
  0x7f   :  { %1951 = vmatprep.subr.bf16.mxu1 %v2118_v30  ;;  %v2128_v42 = vld [vmem:[%s2663_s4 + $0x30] sm:$0xff]   ;;  %v2129_v43 = vld [vmem:[%s2663_s4 + $0x38] sm:$0xff]   ;;  %v1772_v25 = vld [vmem:[%s2661_s2] ss:$0 sm:$0xff]  ;;  %s2161_s2 = smov [#allocation2]  }
  0x80   :  { %1930 = vmatpush3.bf16.msra.mxu0 %v2119_v31  ;;  %v1773_v28 = vld [vmem:[%s2662_s3] ss:$0 sm:$0xff]  ;;  %s1636_s3 = sshll.u32 %s2161_s2, 4  ;;  %s1637_s3 = int_to_ptr.vmem [resolvable:$true] %s1636_s3 }
  0x81   :  { %1968 = vmatprep.subr.bf16.mxu0 %v2159_v36  ;;  %p2139_p1 = scmp.lt.s32.totalorder %s1637_s3, %s1637_s3 }
  0x82   :  { %1952 = vmatpush3.bf16.msra.mxu1 %v2120_v33  ;;  %v1774_v33 = vld [vmem:[%s2664_s5] ss:$0 sm:$0xff]  ;;  %s2134_s5 = scalar_lea.vmem %s1637_s3, 32 }
  0x83   :  { %1440 = vmatmul.mubr.bf16.vlgmr.msra.gmra.mrb[12].mxu0 %v364_v32  ;;  %p2135_p0 = scmp.ne.s32.totalorder %s1637_s3, %s2134_s5  ;;  %p2140_p2 = scmp.lt.s32.totalorder %s2134_s5, %s2134_s5 }
  0x84   :  { %1969 = vmatpush3.bf16.msra.mxu0 %v2122_v35  ;;  %1984 = vmatprep.mubr.msk.bf16.mxu0 %vm2160_vm0, %v2159_v36 }
  0x85   :  { %1480 = vmatmul.mubr.bf16.vlgmr.msra.gmra.mrb[12].mxu1 %v380_v34  ;;  %1970 = vmatprep.subr.bf16.mxu0 %v2159_v36  ;;  %p2141_p3 = por %p2140_p2, %p2139_p1 }
  0x87   :  { %p2142_p4 = pnand %p2141_p3, %p2135_p0 }
  0x88   :  { %1971 = vmatpush3.bf16.msra.mxu0 %v2123_v41 }
  0x89   :  { %1972 = vmatprep.subr.bf16.mxu0 %v2159_v36 }
  0x8c   :  { %1973 = vmatpush3.bf16.msra.mxu0 %v2124_v37 }
  0x8d   :  { %1974 = vmatprep.subr.bf16.mxu0 %v2159_v36 }
  0x90   :  { %1975 = vmatpush3.bf16.msra.mxu0 %v2125_v38 }
  0x91   :  { %1976 = vmatprep.subr.bf16.mxu0 %v2159_v36 }
  0x94   :  { %1977 = vmatpush3.bf16.msra.mxu0 %v2126_v39 }
  0x95   :  { %1978 = vmatprep.subr.bf16.mxu0 %v2159_v36 }
  0x98   :  { %1979 = vmatpush3.bf16.msra.mxu0 %v2127_v40 }
  0x99   :  { %1980 = vmatprep.subr.bf16.mxu0 %v2159_v36 }
  0x9c   :  { %1981 = vmatpush3.bf16.msra.mxu0 %v2128_v42 }
  0x9d   :  { %1982 = vmatprep.subr.bf16.mxu0 %v2159_v36 }
  0xa0   :  { %1983 = vmatpush3.bf16.msra.mxu0 %v2129_v43 }
  0xf6   :  { %v1799_v44 = vpop.f32.mrb[0].mxu0 }
  0xf7   :  { %v1800_v45 = vpop.f32.mrb[1].mxu0  ;;  %v1821_v46 = vpop.f32.mrb[0].mxu1 }
  0xf8   :  { %v1801_v47 = vadd.f32 %v1800_v45, %v1799_v44  ;;  %v1802_v48 = vpop.f32.mrb[2].mxu0  ;;  %v1822_v49 = vpop.f32.mrb[1].mxu1 }
  0xf9   :  { %v1803_v50 = vpop.f32.mrb[3].mxu0  ;;  %v1823_v51 = vadd.f32 %v1822_v49, %v1821_v46  ;;  %v1824_v52 = vpop.f32.mrb[2].mxu1 }
  0xfa   :  { %v1825_v53 = vpop.f32.mrb[3].mxu1 }
  0xfb   :  { %v1242_v54 = vadd.f32 %v1823_v51, %v1801_v47 }
 0x116   :  { %v1843_v55 = vpop.f32.mrb[4].mxu0 }
 0x117   :  { %v1844_v56 = vpop.f32.mrb[5].mxu0  ;;  %v1865_v57 = vpop.f32.mrb[4].mxu1 }
 0x118   :  { %v1845_v58 = vadd.f32 %v1844_v56, %v1843_v55  ;;  %v1846_v59 = vpop.f32.mrb[6].mxu0  ;;  %v1866_v60 = vpop.f32.mrb[5].mxu1 }
 0x119   :  { %v1847_v61 = vpop.f32.mrb[7].mxu0  ;;  %v1867_v63 = vadd.f32 %v1866_v60, %v1865_v57  ;;  %v1868_v0 = vpop.f32.mrb[6].mxu1 }
 0x11a   :  { %v1282_v62 = vadd.f32 %v1845_v58, %v1242_v54  ;;  %v1869_v1 = vpop.f32.mrb[7].mxu1 }
 0x11c   :  { %v1322_v2 = vadd.f32 %v1867_v63, %v1282_v62 }
 0x136   :  { %v1887_v3 = vpop.f32.mrb[8].mxu0 }
 0x137   :  { %v1888_v4 = vpop.f32.mrb[9].mxu0 }
 0x138   :  { %v1909_v5 = vpop.f32.mrb[8].mxu1  ;;  %v1889_v6 = vadd.f32 %v1888_v4, %v1887_v3  ;;  %v1890_v7 = vpop.f32.mrb[10].mxu0 }
 0x139   :  { %v1910_v8 = vpop.f32.mrb[9].mxu1  ;;  %v1891_v9 = vpop.f32.mrb[11].mxu0 }
 0x13a   :  { %v1362_v10 = vadd.f32 %v1889_v6, %v1322_v2  ;;  %v1911_v11 = vadd.f32 %v1910_v8, %v1909_v5  ;;  %v1912_v12 = vpop.f32.mrb[10].mxu1 }
 0x13b   :  { %v1913_v13 = vpop.f32.mrb[11].mxu1 }
 0x13c   :  { %v1402_v14 = vadd.f32 %v1911_v11, %v1362_v10 }
 0x156   :  { %v1931_v15 = vpop.f32.mrb[12].mxu0 }
 0x157   :  { %v1932_v16 = vpop.f32.mrb[13].mxu0 }
 0x158   :  { %v1953_v17 = vpop.f32.mrb[12].mxu1  ;;  %v1933_v18 = vadd.f32 %v1932_v16, %v1931_v15  ;;  %v1934_v19 = vpop.f32.mrb[14].mxu0 }
 0x159   :  { %v1954_v20 = vpop.f32.mrb[13].mxu1  ;;  %v1935_v21 = vpop.f32.mrb[15].mxu0 }
 0x15a   :  { %v1442_v22 = vadd.f32 %v1933_v18, %v1402_v14  ;;  %v1955_v23 = vadd.f32 %v1954_v20, %v1953_v17  ;;  %v1956_v24 = vpop.f32.mrb[14].mxu1 }
 0x15b   :  { %v1957_v26 = vpop.f32.mrb[15].mxu1 }
 0x15c   :  { %v1482_v27 = vadd.f32 %v1955_v23, %v1442_v22 }
 0x15e   :  { %v1494_v29 = vmul.f32 %v1772_v25, %v1482_v27 }
 0x160   :  { %v1502_v30 = vadd.f32 %v1773_v28, %v1494_v29 }
 0x162   :  { %v1503_v31 = vmax.f32 %v1502_v30, 0.0 }
 0x164   :  { %v1504_v32 = vpack.c.bf16 %v1503_v31, %v1503_v31 }
 0x166   :  { %1985 = vmatmul.mubr.bf16.vlgmr.msra.gmra.mrb[16].mxu0 %v1504_v32 }
 0x239   :  { %v1610_v34 = vpop.f32.mrb[16].mxu0 }
 0x23a   :  { %v1611_v35 = vadd.f32 %v1774_v33, %v1610_v34  ;;  %v1986_v36 = vpop.f32.mrb[17].mxu0 }
 0x23b   :  { %v1613_v41 = vpop.f32.mrb[18].mxu0 }
 0x23c   :  { %v1987_v37 = vpop.f32.mrb[19].mxu0  ;;  %v1617_v38 = vsel %vm1616_vm1, %v1611_v35, -inf }
 0x23d   :  { %1618 = vmax.xlane.f32.xlu0 %v1617_v38 }
 0x2ca   :  { %v1619_v39 = vpop.xlane.xlu0 %1618 }
 0x2cb   :  { %v1620_v40 = vsub.f32 %v1611_v35, %v1619_v39 }
 0x2cd   :  { %v1621_v42 = vmul.f32 1.442695, %v1620_v40 }
 0x2cf   :  { %2130 = vpow2.f32 %v1621_v42 }
 0x2d9   :  { %v2131_v43 = vpop.eup %2130 }
 0x2da   :  { %v1623_v44 = vsel %vm1616_vm1, %v2131_v43, 0.0 }
 0x2db   :  { %1624 = vadd.xlane.f32.xlu0 %v1623_v44 }
 0x368   :  { %v1625_v45 = vpop.xlane.xlu0 %1624 }
 0x369   :  { %2132 = vlog2.f32 %v1625_v45 }
 0x373   :  { %v2133_v46 = vpop.eup %2132 }
 0x374   :  { %v1627_v47 = vmul.f32 0.6931472, %v2133_v46 }
 0x376   :  { %v1628_v48 = vsub.f32 %v1620_v40, %v1627_v47 }
 0x378   :  { %1629 = vst.msk [vmem:[#allocation2] sm:$0x3] %vm1616_vm1, %v1628_v48 }
 0x379   :  { %2145 = shalt.err (!%p2142_p4)
}
 0x37a   :  { %s2146_s11 = scalar_lea.hbm %s2665_s6, 32 }
 0x37b   :  { %p2147_p5 = scmp.ne.s32.totalorder %s2665_s6, %s2146_s11  ;;  %p2150_p6 = scmp.lt.u32.totalorder %s2146_s11, %s2665_s6 }
 0x37d   :  { %p2152_p7 = pnand %p2150_p6, %p2147_p5 }
 0x37f   :  { %2155 = shalt.err (!%p2152_p7)
}
 0x380   :  { %1639 = dma.vmem_to_hbm [thread:$0]  %s1637_s3, 32, %s2665_s6, [#allocation3]  }
 0x381   :  { %2156 = dma.done.wait [#allocation3], 32  }
 0x382   :  { %2157 = vsyncadd [#allocation3], 4294967264 }
 0x383   :  { %1643 = vsyncpa [#allocation3], 1 }

// kernel: dann_forward.12
= control target key start
LH: loop header
LB: loop body
LE: loop exit
PB: predicated region body
PF: predicated region fallthrough
CT: control target
= control target key end

     0   :  { %s2711_s15 = smov 0   ;;  %s2713_s16 = smov 0   ;;  %s3352_s0 = inlined_call_operand.vmem [shape: bf16[2,3200], index: 0, kind: input, shape index: {}]   ;;  %s3353_s1 = inlined_call_operand.vmem [shape: bf16[3200,1024], index: 1, kind: input, shape index: {}]   ;;  %s3354_s2 = inlined_call_operand.vmem [shape: f32[1,1024], index: 2, kind: input, shape index: {}]   ;;  %s3355_s3 = inlined_call_operand.vmem [shape: f32[1,1024], index: 3, kind: input, shape index: {}]   ;;  %s3356_s4 = inlined_call_operand.vmem [shape: bf16[2,1024], index: 4, kind: output, shape index: {}]  }
   0x1   :  { %s2715_s17 = smov 0   ;;  %s2717_s18 = smov 0  }
   0x2   :  { %s2719_s19 = smov 0   ;;  %s2721_s20 = smov 0  }
   0x3   :  { %s2723_s21 = smov 0  }
   0x4 LB: > { %s23_s22 = sadd.s32 1, %s2672_s19  ;;  %s26_s23 = sadd.s32 1, %s2676_s20  ;;  %s2680_s21 = sphi %s2723_s21, %s14_s21   ;;  %s2676_s20 = sphi %s2721_s20, %s3362_s20   ;;  %s2672_s19 = sphi %s2719_s19, %s3361_s19   ;;  %s2668_s18 = sphi %s2717_s18, %s3360_s18   ;;  %s2664_s17 = sphi %s2715_s17, %s3359_s17   ;;  %s2660_s16 = sphi %s2713_s16, %s3358_s16   ;;  %s2656_s15 = sphi %s2711_s15, %s3357_s15  }
   0x5   : > { %p24_p0 = scmp.ge.s32.totalorder %s23_s22, 5  ;;  %p68_p1 = scmp.ne.s32.totalorder %s2660_s16, %s2656_s15 }
   0x6   : > { %p69_p2 = scmp.eq.s32.totalorder %s2680_s21, 0  ;;  %s61_s27 = sadd.s32 1, %s2660_s16 }
   0x7   : > { %s3364_s22 = smov (%p24_p0, %s23_s22), 0  ;;  %s3366_s23 = smov (!%p24_p0, %s26_s23), %s2676_s20 }
   0x8   : > { %p70_p3 = por %p69_p2, %p68_p1  ;;  %p28_p4 = scmp.ge.s32.totalorder %s3366_s23, 2 }
   0x9   : > { %s56_s24 = ssub.s32 %s2672_s19, %s3364_s22  ;;  %p2131_p6 = scmp.ge.s32.totalorder %s2680_s21, 10 }
   0xa   : > { %s3368_s23 = smov (%p28_p4, %s3366_s23), 0 }
   0xb   : > { %s57_s25 = ssub.s32 %s2676_s20, %s3368_s23  ;;  %172 = sbr.rel (%p2131_p6) target bundleno = 106 (0x6a), region = 16 }
   0xc   : > { %s58_s26 = sor.u32 %s57_s25, %s56_s24 }
   0xd   : > { %p59_p5 = scmp.eq.s32.totalorder %s58_s26, 0 }
   0xf   : > { %s2762_s28 = scalar_select %p59_p5, %s2660_s16, %s61_s27  }
  0x12   : > { %183 = sbr.rel (!%p70_p3) target bundleno = 106 (0x6a), region = 24  ;;  %s185_s29 = sand.u32 (%p70_p3), 1, %s2660_s16  }
  0x13   : > { %s2323_s30 = smul.u32 (%p70_p3), 1280, %s185_s29  ;;  %s2132_s5 = sshll.u32 (%p70_p3), %s2676_s20, 2 }
  0x14   : > { %s2306_s6 = smul.u32 (%p70_p3), 640, %s2672_s19 }
  0x15   : > { %s2776_s12 = scalar_lea.vmem (%p70_p3), [#allocation3], %s2323_s30 }
  0x16   : > { %s191_s7 = sadd.s32 (%p70_p3), %s2306_s6, %s2132_s5 }
  0x17   : > { %s2134_s8 = sshll.u32 (%p70_p3), %s191_s7, 2 }
  0x18   : > { %s2771_s11 = scalar_lea.vmem (%p70_p3), %s3353_s1, %s2134_s8 }
  0x19   : > { %v206_v0 = vld [vmem:[%s2771_s11] sm:$0xff]  ;;  %v208_v1 = vld [vmem:[%s2771_s11 + $0x8] sm:$0xff] }
  0x1a   : > { %v210_v2 = vld [vmem:[%s2771_s11 + $0x20] sm:$0xff]  ;;  %207 = vst [vmem:[%s2776_s12] sm:$0xff] %v206_v0  ;;  %209 = vst [vmem:[%s2776_s12 + $0x8] sm:$0xff] %v208_v1  ;;  %v212_v3 = vld [vmem:[%s2771_s11 + $0x28] sm:$0xff] }
  0x1b   : > { %211 = vst [vmem:[%s2776_s12 + $0x10] sm:$0xff] %v210_v2  ;;  %v214_v4 = vld [vmem:[%s2771_s11 + $0x40] sm:$0xff]  ;;  %v216_v5 = vld [vmem:[%s2771_s11 + $0x48] sm:$0xff]  ;;  %213 = vst [vmem:[%s2776_s12 + $0x18] sm:$0xff] %v212_v3 }
  0x1c   : > { %215 = vst [vmem:[%s2776_s12 + $0x20] sm:$0xff] %v214_v4  ;;  %217 = vst [vmem:[%s2776_s12 + $0x28] sm:$0xff] %v216_v5  ;;  %v218_v6 = vld [vmem:[%s2771_s11 + $0x60] sm:$0xff]  ;;  %v220_v7 = vld [vmem:[%s2771_s11 + $0x68] sm:$0xff] }
  0x1d   : > { %v222_v8 = vld [vmem:[%s2771_s11 + $0x80] sm:$0xff]  ;;  %219 = vst [vmem:[%s2776_s12 + $0x30] sm:$0xff] %v218_v6  ;;  %221 = vst [vmem:[%s2776_s12 + $0x38] sm:$0xff] %v220_v7  ;;  %v224_v9 = vld [vmem:[%s2771_s11 + $0x88] sm:$0xff] }
  0x1e   : > { %223 = vst [vmem:[%s2776_s12 + $0x40] sm:$0xff] %v222_v8  ;;  %v226_v10 = vld [vmem:[%s2771_s11 + $0xa0] sm:$0xff]  ;;  %v228_v11 = vld [vmem:[%s2771_s11 + $0xa8] sm:$0xff]  ;;  %225 = vst [vmem:[%s2776_s12 + $0x48] sm:$0xff] %v224_v9 }
  0x1f   : > { %227 = vst [vmem:[%s2776_s12 + $0x50] sm:$0xff] %v226_v10  ;;  %229 = vst [vmem:[%s2776_s12 + $0x58] sm:$0xff] %v228_v11  ;;  %v230_v12 = vld [vmem:[%s2771_s11 + $0xc0] sm:$0xff]  ;;  %v232_v13 = vld [vmem:[%s2771_s11 + $0xc8] sm:$0xff] }
  0x20   : > { %v234_v14 = vld [vmem:[%s2771_s11 + $0xe0] sm:$0xff]  ;;  %231 = vst [vmem:[%s2776_s12 + $0x60] sm:$0xff] %v230_v12  ;;  %233 = vst [vmem:[%s2776_s12 + $0x68] sm:$0xff] %v232_v13  ;;  %v236_v15 = vld [vmem:[%s2771_s11 + $0xe8] sm:$0xff] }
  0x21   : > { %235 = vst [vmem:[%s2776_s12 + $0x70] sm:$0xff] %v234_v14  ;;  %v238_v16 = vld [vmem:[%s2771_s11 + $0x100] sm:$0xff]  ;;  %v240_v17 = vld [vmem:[%s2771_s11 + $0x108] sm:$0xff]  ;;  %237 = vst [vmem:[%s2776_s12 + $0x78] sm:$0xff] %v236_v15 }
  0x22   : > { %239 = vst [vmem:[%s2776_s12 + $0x80] sm:$0xff] %v238_v16  ;;  %241 = vst [vmem:[%s2776_s12 + $0x88] sm:$0xff] %v240_v17  ;;  %v242_v18 = vld [vmem:[%s2771_s11 + $0x120] sm:$0xff]  ;;  %v244_v19 = vld [vmem:[%s2771_s11 + $0x128] sm:$0xff] }
  0x23   : > { %v246_v20 = vld [vmem:[%s2771_s11 + $0x140] sm:$0xff]  ;;  %243 = vst [vmem:[%s2776_s12 + $0x90] sm:$0xff] %v242_v18  ;;  %245 = vst [vmem:[%s2776_s12 + $0x98] sm:$0xff] %v244_v19  ;;  %v248_v21 = vld [vmem:[%s2771_s11 + $0x148] sm:$0xff] }
  0x24   : > { %247 = vst [vmem:[%s2776_s12 + $0xa0] sm:$0xff] %v246_v20  ;;  %v250_v22 = vld [vmem:[%s2771_s11 + $0x160] sm:$0xff]  ;;  %v252_v23 = vld [vmem:[%s2771_s11 + $0x168] sm:$0xff]  ;;  %249 = vst [vmem:[%s2776_s12 + $0xa8] sm:$0xff] %v248_v21 }
  0x25   : > { %251 = vst [vmem:[%s2776_s12 + $0xb0] sm:$0xff] %v250_v22  ;;  %253 = vst [vmem:[%s2776_s12 + $0xb8] sm:$0xff] %v252_v23  ;;  %v254_v24 = vld [vmem:[%s2771_s11 + $0x180] sm:$0xff]  ;;  %v256_v25 = vld [vmem:[%s2771_s11 + $0x188] sm:$0xff] }
  0x26   : > { %v258_v26 = vld [vmem:[%s2771_s11 + $0x1a0] sm:$0xff]  ;;  %255 = vst [vmem:[%s2776_s12 + $0xc0] sm:$0xff] %v254_v24  ;;  %257 = vst [vmem:[%s2776_s12 + $0xc8] sm:$0xff] %v256_v25  ;;  %v260_v27 = vld [vmem:[%s2771_s11 + $0x1a8] sm:$0xff] }
  0x27   : > { %259 = vst [vmem:[%s2776_s12 + $0xd0] sm:$0xff] %v258_v26  ;;  %v262_v28 = vld [vmem:[%s2771_s11 + $0x1c0] sm:$0xff]  ;;  %v264_v29 = vld [vmem:[%s2771_s11 + $0x1c8] sm:$0xff]  ;;  %261 = vst [vmem:[%s2776_s12 + $0xd8] sm:$0xff] %v260_v27 }
  0x28   : > { %263 = vst [vmem:[%s2776_s12 + $0xe0] sm:$0xff] %v262_v28  ;;  %265 = vst [vmem:[%s2776_s12 + $0xe8] sm:$0xff] %v264_v29  ;;  %v266_v30 = vld [vmem:[%s2771_s11 + $0x1e0] sm:$0xff]  ;;  %v268_v31 = vld [vmem:[%s2771_s11 + $0x1e8] sm:$0xff] }
  0x29   : > { %v270_v32 = vld [vmem:[%s2771_s11 + $0x200] sm:$0xff]  ;;  %267 = vst [vmem:[%s2776_s12 + $0xf0] sm:$0xff] %v266_v30  ;;  %269 = vst [vmem:[%s2776_s12 + $0xf8] sm:$0xff] %v268_v31  ;;  %v272_v33 = vld [vmem:[%s2771_s11 + $0x208] sm:$0xff] }
  0x2a   : > { %271 = vst [vmem:[%s2776_s12 + $0x100] sm:$0xff] %v270_v32  ;;  %v274_v34 = vld [vmem:[%s2771_s11 + $0x220] sm:$0xff]  ;;  %v276_v35 = vld [vmem:[%s2771_s11 + $0x228] sm:$0xff]  ;;  %273 = vst [vmem:[%s2776_s12 + $0x108] sm:$0xff] %v272_v33 }
  0x2b   : > { %275 = vst [vmem:[%s2776_s12 + $0x110] sm:$0xff] %v274_v34  ;;  %277 = vst [vmem:[%s2776_s12 + $0x118] sm:$0xff] %v276_v35  ;;  %v278_v36 = vld [vmem:[%s2771_s11 + $0x240] sm:$0xff]  ;;  %v280_v37 = vld [vmem:[%s2771_s11 + $0x248] sm:$0xff] }
  0x2c   : > { %v282_v38 = vld [vmem:[%s2771_s11 + $0x260] sm:$0xff]  ;;  %279 = vst [vmem:[%s2776_s12 + $0x120] sm:$0xff] %v278_v36  ;;  %281 = vst [vmem:[%s2776_s12 + $0x128] sm:$0xff] %v280_v37  ;;  %v284_v39 = vld [vmem:[%s2771_s11 + $0x268] sm:$0xff] }
  0x2d   : > { %283 = vst [vmem:[%s2776_s12 + $0x130] sm:$0xff] %v282_v38  ;;  %v286_v40 = vld [vmem:[%s2771_s11 + $0x280] sm:$0xff]  ;;  %v288_v41 = vld [vmem:[%s2771_s11 + $0x288] sm:$0xff]  ;;  %285 = vst [vmem:[%s2776_s12 + $0x138] sm:$0xff] %v284_v39 }
  0x2e   : > { %287 = vst [vmem:[%s2776_s12 + $0x140] sm:$0xff] %v286_v40  ;;  %289 = vst [vmem:[%s2776_s12 + $0x148] sm:$0xff] %v288_v41  ;;  %v290_v42 = vld [vmem:[%s2771_s11 + $0x2a0] sm:$0xff]  ;;  %v292_v43 = vld [vmem:[%s2771_s11 + $0x2a8] sm:$0xff] }
  0x2f   : > { %v294_v44 = vld [vmem:[%s2771_s11 + $0x2c0] sm:$0xff]  ;;  %291 = vst [vmem:[%s2776_s12 + $0x150] sm:$0xff] %v290_v42  ;;  %293 = vst [vmem:[%s2776_s12 + $0x158] sm:$0xff] %v292_v43  ;;  %v296_v45 = vld [vmem:[%s2771_s11 + $0x2c8] sm:$0xff] }
  0x30   : > { %295 = vst [vmem:[%s2776_s12 + $0x160] sm:$0xff] %v294_v44  ;;  %v298_v46 = vld [vmem:[%s2771_s11 + $0x2e0] sm:$0xff]  ;;  %v300_v47 = vld [vmem:[%s2771_s11 + $0x2e8] sm:$0xff]  ;;  %297 = vst [vmem:[%s2776_s12 + $0x168] sm:$0xff] %v296_v45 }
  0x31   : > { %299 = vst [vmem:[%s2776_s12 + $0x170] sm:$0xff] %v298_v46  ;;  %301 = vst [vmem:[%s2776_s12 + $0x178] sm:$0xff] %v300_v47  ;;  %v302_v48 = vld [vmem:[%s2771_s11 + $0x300] sm:$0xff]  ;;  %v304_v49 = vld [vmem:[%s2771_s11 + $0x308] sm:$0xff] }
  0x32   : > { %v306_v50 = vld [vmem:[%s2771_s11 + $0x320] sm:$0xff]  ;;  %303 = vst [vmem:[%s2776_s12 + $0x180] sm:$0xff] %v302_v48  ;;  %305 = vst [vmem:[%s2776_s12 + $0x188] sm:$0xff] %v304_v49  ;;  %v308_v51 = vld [vmem:[%s2771_s11 + $0x328] sm:$0xff] }
  0x33   : > { %307 = vst [vmem:[%s2776_s12 + $0x190] sm:$0xff] %v306_v50  ;;  %v310_v52 = vld [vmem:[%s2771_s11 + $0x340] sm:$0xff]  ;;  %v312_v53 = vld [vmem:[%s2771_s11 + $0x348] sm:$0xff]  ;;  %309 = vst [vmem:[%s2776_s12 + $0x198] sm:$0xff] %v308_v51 }
  0x34   : > { %311 = vst [vmem:[%s2776_s12 + $0x1a0] sm:$0xff] %v310_v52  ;;  %313 = vst [vmem:[%s2776_s12 + $0x1a8] sm:$0xff] %v312_v53  ;;  %v314_v54 = vld [vmem:[%s2771_s11 + $0x360] sm:$0xff]  ;;  %v316_v55 = vld [vmem:[%s2771_s11 + $0x368] sm:$0xff] }
  0x35   : > { %v318_v56 = vld [vmem:[%s2771_s11 + $0x380] sm:$0xff]  ;;  %315 = vst [vmem:[%s2776_s12 + $0x1b0] sm:$0xff] %v314_v54  ;;  %317 = vst [vmem:[%s2776_s12 + $0x1b8] sm:$0xff] %v316_v55  ;;  %v320_v57 = vld [vmem:[%s2771_s11 + $0x388] sm:$0xff] }
  0x36   : > { %319 = vst [vmem:[%s2776_s12 + $0x1c0] sm:$0xff] %v318_v56  ;;  %v322_v58 = vld [vmem:[%s2771_s11 + $0x3a0] sm:$0xff]  ;;  %v324_v59 = vld [vmem:[%s2771_s11 + $0x3a8] sm:$0xff]  ;;  %321 = vst [vmem:[%s2776_s12 + $0x1c8] sm:$0xff] %v320_v57 }
  0x37   : > { %323 = vst [vmem:[%s2776_s12 + $0x1d0] sm:$0xff] %v322_v58  ;;  %325 = vst [vmem:[%s2776_s12 + $0x1d8] sm:$0xff] %v324_v59  ;;  %v326_v60 = vld [vmem:[%s2771_s11 + $0x3c0] sm:$0xff]  ;;  %v328_v61 = vld [vmem:[%s2771_s11 + $0x3c8] sm:$0xff] }
  0x38   : > { %v330_v62 = vld [vmem:[%s2771_s11 + $0x3e0] sm:$0xff]  ;;  %327 = vst [vmem:[%s2776_s12 + $0x1e0] sm:$0xff] %v326_v60  ;;  %329 = vst [vmem:[%s2776_s12 + $0x1e8] sm:$0xff] %v328_v61  ;;  %v332_v63 = vld [vmem:[%s2771_s11 + $0x3e8] sm:$0xff] }
  0x39   : > { %331 = vst [vmem:[%s2776_s12 + $0x1f0] sm:$0xff] %v330_v62  ;;  %v334_v0 = vld [vmem:[%s2771_s11 + $0x400] sm:$0xff]  ;;  %v336_v1 = vld [vmem:[%s2771_s11 + $0x408] sm:$0xff]  ;;  %333 = vst [vmem:[%s2776_s12 + $0x1f8] sm:$0xff] %v332_v63 }
  0x3a   : > { %335 = vst [vmem:[%s2776_s12 + $0x200] sm:$0xff] %v334_v0  ;;  %337 = vst [vmem:[%s2776_s12 + $0x208] sm:$0xff] %v336_v1  ;;  %v338_v2 = vld [vmem:[%s2771_s11 + $0x420] sm:$0xff]  ;;  %v340_v3 = vld [vmem:[%s2771_s11 + $0x428] sm:$0xff] }
  0x3b   : > { %v342_v4 = vld [vmem:[%s2771_s11 + $0x440] sm:$0xff]  ;;  %339 = vst [vmem:[%s2776_s12 + $0x210] sm:$0xff] %v338_v2  ;;  %341 = vst [vmem:[%s2776_s12 + $0x218] sm:$0xff] %v340_v3  ;;  %v344_v5 = vld [vmem:[%s2771_s11 + $0x448] sm:$0xff] }
  0x3c   : > { %343 = vst [vmem:[%s2776_s12 + $0x220] sm:$0xff] %v342_v4  ;;  %v346_v6 = vld [vmem:[%s2771_s11 + $0x460] sm:$0xff]  ;;  %v348_v7 = vld [vmem:[%s2771_s11 + $0x468] sm:$0xff]  ;;  %345 = vst [vmem:[%s2776_s12 + $0x228] sm:$0xff] %v344_v5 }
  0x3d   : > { %347 = vst [vmem:[%s2776_s12 + $0x230] sm:$0xff] %v346_v6  ;;  %349 = vst [vmem:[%s2776_s12 + $0x238] sm:$0xff] %v348_v7  ;;  %v350_v8 = vld [vmem:[%s2771_s11 + $0x480] sm:$0xff]  ;;  %v352_v9 = vld [vmem:[%s2771_s11 + $0x488] sm:$0xff] }
  0x3e   : > { %v354_v10 = vld [vmem:[%s2771_s11 + $0x4a0] sm:$0xff]  ;;  %351 = vst [vmem:[%s2776_s12 + $0x240] sm:$0xff] %v350_v8  ;;  %353 = vst [vmem:[%s2776_s12 + $0x248] sm:$0xff] %v352_v9  ;;  %v356_v11 = vld [vmem:[%s2771_s11 + $0x4a8] sm:$0xff] }
  0x3f   : > { %355 = vst [vmem:[%s2776_s12 + $0x250] sm:$0xff] %v354_v10  ;;  %v358_v12 = vld [vmem:[%s2771_s11 + $0x4c0] sm:$0xff]  ;;  %v360_v13 = vld [vmem:[%s2771_s11 + $0x4c8] sm:$0xff]  ;;  %357 = vst [vmem:[%s2776_s12 + $0x258] sm:$0xff] %v356_v11 }
  0x40   : > { %359 = vst [vmem:[%s2776_s12 + $0x260] sm:$0xff] %v358_v12  ;;  %361 = vst [vmem:[%s2776_s12 + $0x268] sm:$0xff] %v360_v13  ;;  %v362_v14 = vld [vmem:[%s2771_s11 + $0x4e0] sm:$0xff]  ;;  %v364_v15 = vld [vmem:[%s2771_s11 + $0x4e8] sm:$0xff] }
  0x41   : > { %v366_v16 = vld [vmem:[%s2771_s11 + $0x500] sm:$0xff]  ;;  %363 = vst [vmem:[%s2776_s12 + $0x270] sm:$0xff] %v362_v14  ;;  %365 = vst [vmem:[%s2776_s12 + $0x278] sm:$0xff] %v364_v15  ;;  %v368_v17 = vld [vmem:[%s2771_s11 + $0x508] sm:$0xff] }
  0x42   : > { %367 = vst [vmem:[%s2776_s12 + $0x280] sm:$0xff] %v366_v16  ;;  %v370_v18 = vld [vmem:[%s2771_s11 + $0x520] sm:$0xff]  ;;  %v372_v19 = vld [vmem:[%s2771_s11 + $0x528] sm:$0xff]  ;;  %369 = vst [vmem:[%s2776_s12 + $0x288] sm:$0xff] %v368_v17 }
  0x43   : > { %371 = vst [vmem:[%s2776_s12 + $0x290] sm:$0xff] %v370_v18  ;;  %373 = vst [vmem:[%s2776_s12 + $0x298] sm:$0xff] %v372_v19  ;;  %v374_v20 = vld [vmem:[%s2771_s11 + $0x540] sm:$0xff]  ;;  %v376_v21 = vld [vmem:[%s2771_s11 + $0x548] sm:$0xff] }
  0x44   : > { %v378_v22 = vld [vmem:[%s2771_s11 + $0x560] sm:$0xff]  ;;  %375 = vst [vmem:[%s2776_s12 + $0x2a0] sm:$0xff] %v374_v20  ;;  %377 = vst [vmem:[%s2776_s12 + $0x2a8] sm:$0xff] %v376_v21  ;;  %v380_v23 = vld [vmem:[%s2771_s11 + $0x568] sm:$0xff] }
  0x45   : > { %379 = vst [vmem:[%s2776_s12 + $0x2b0] sm:$0xff] %v378_v22  ;;  %v382_v24 = vld [vmem:[%s2771_s11 + $0x580] sm:$0xff]  ;;  %v384_v25 = vld [vmem:[%s2771_s11 + $0x588] sm:$0xff]  ;;  %381 = vst [vmem:[%s2776_s12 + $0x2b8] sm:$0xff] %v380_v23 }
  0x46   : > { %383 = vst [vmem:[%s2776_s12 + $0x2c0] sm:$0xff] %v382_v24  ;;  %385 = vst [vmem:[%s2776_s12 + $0x2c8] sm:$0xff] %v384_v25  ;;  %v386_v26 = vld [vmem:[%s2771_s11 + $0x5a0] sm:$0xff]  ;;  %v388_v27 = vld [vmem:[%s2771_s11 + $0x5a8] sm:$0xff] }
  0x47   : > { %v390_v28 = vld [vmem:[%s2771_s11 + $0x5c0] sm:$0xff]  ;;  %387 = vst [vmem:[%s2776_s12 + $0x2d0] sm:$0xff] %v386_v26  ;;  %389 = vst [vmem:[%s2776_s12 + $0x2d8] sm:$0xff] %v388_v27  ;;  %v392_v29 = vld [vmem:[%s2771_s11 + $0x5c8] sm:$0xff] }
  0x48   : > { %391 = vst [vmem:[%s2776_s12 + $0x2e0] sm:$0xff] %v390_v28  ;;  %v394_v30 = vld [vmem:[%s2771_s11 + $0x5e0] sm:$0xff]  ;;  %v396_v31 = vld [vmem:[%s2771_s11 + $0x5e8] sm:$0xff]  ;;  %393 = vst [vmem:[%s2776_s12 + $0x2e8] sm:$0xff] %v392_v29 }
  0x49   : > { %395 = vst [vmem:[%s2776_s12 + $0x2f0] sm:$0xff] %v394_v30  ;;  %397 = vst [vmem:[%s2776_s12 + $0x2f8] sm:$0xff] %v396_v31  ;;  %v398_v32 = vld [vmem:[%s2771_s11 + $0x600] sm:$0xff]  ;;  %v400_v33 = vld [vmem:[%s2771_s11 + $0x608] sm:$0xff] }
  0x4a   : > { %v402_v34 = vld [vmem:[%s2771_s11 + $0x620] sm:$0xff]  ;;  %399 = vst [vmem:[%s2776_s12 + $0x300] sm:$0xff] %v398_v32  ;;  %401 = vst [vmem:[%s2776_s12 + $0x308] sm:$0xff] %v400_v33  ;;  %v404_v35 = vld [vmem:[%s2771_s11 + $0x628] sm:$0xff] }
  0x4b   : > { %403 = vst [vmem:[%s2776_s12 + $0x310] sm:$0xff] %v402_v34  ;;  %v406_v36 = vld [vmem:[%s2771_s11 + $0x640] sm:$0xff]  ;;  %v408_v37 = vld [vmem:[%s2771_s11 + $0x648] sm:$0xff]  ;;  %405 = vst [vmem:[%s2776_s12 + $0x318] sm:$0xff] %v404_v35 }
  0x4c   : > { %407 = vst [vmem:[%s2776_s12 + $0x320] sm:$0xff] %v406_v36  ;;  %409 = vst [vmem:[%s2776_s12 + $0x328] sm:$0xff] %v408_v37  ;;  %v410_v38 = vld [vmem:[%s2771_s11 + $0x660] sm:$0xff]  ;;  %v412_v39 = vld [vmem:[%s2771_s11 + $0x668] sm:$0xff] }
  0x4d   : > { %v414_v40 = vld [vmem:[%s2771_s11 + $0x680] sm:$0xff]  ;;  %411 = vst [vmem:[%s2776_s12 + $0x330] sm:$0xff] %v410_v38  ;;  %413 = vst [vmem:[%s2776_s12 + $0x338] sm:$0xff] %v412_v39  ;;  %v416_v41 = vld [vmem:[%s2771_s11 + $0x688] sm:$0xff] }
  0x4e   : > { %415 = vst [vmem:[%s2776_s12 + $0x340] sm:$0xff] %v414_v40  ;;  %v418_v42 = vld [vmem:[%s2771_s11 + $0x6a0] sm:$0xff]  ;;  %v420_v43 = vld [vmem:[%s2771_s11 + $0x6a8] sm:$0xff]  ;;  %417 = vst [vmem:[%s2776_s12 + $0x348] sm:$0xff] %v416_v41 }
  0x4f   : > { %419 = vst [vmem:[%s2776_s12 + $0x350] sm:$0xff] %v418_v42  ;;  %421 = vst [vmem:[%s2776_s12 + $0x358] sm:$0xff] %v420_v43  ;;  %v422_v44 = vld [vmem:[%s2771_s11 + $0x6c0] sm:$0xff]  ;;  %v424_v45 = vld [vmem:[%s2771_s11 + $0x6c8] sm:$0xff] }
  0x50   : > { %v426_v46 = vld [vmem:[%s2771_s11 + $0x6e0] sm:$0xff]  ;;  %423 = vst [vmem:[%s2776_s12 + $0x360] sm:$0xff] %v422_v44  ;;  %425 = vst [vmem:[%s2776_s12 + $0x368] sm:$0xff] %v424_v45  ;;  %v428_v47 = vld [vmem:[%s2771_s11 + $0x6e8] sm:$0xff] }
  0x51   : > { %427 = vst [vmem:[%s2776_s12 + $0x370] sm:$0xff] %v426_v46  ;;  %v430_v48 = vld [vmem:[%s2771_s11 + $0x700] sm:$0xff]  ;;  %v432_v49 = vld [vmem:[%s2771_s11 + $0x708] sm:$0xff]  ;;  %429 = vst [vmem:[%s2776_s12 + $0x378] sm:$0xff] %v428_v47 }
  0x52   : > { %431 = vst [vmem:[%s2776_s12 + $0x380] sm:$0xff] %v430_v48  ;;  %433 = vst [vmem:[%s2776_s12 + $0x388] sm:$0xff] %v432_v49  ;;  %v434_v50 = vld [vmem:[%s2771_s11 + $0x720] sm:$0xff]  ;;  %v436_v51 = vld [vmem:[%s2771_s11 + $0x728] sm:$0xff] }
  0x53   : > { %v438_v52 = vld [vmem:[%s2771_s11 + $0x740] sm:$0xff]  ;;  %435 = vst [vmem:[%s2776_s12 + $0x390] sm:$0xff] %v434_v50  ;;  %437 = vst [vmem:[%s2776_s12 + $0x398] sm:$0xff] %v436_v51  ;;  %v440_v53 = vld [vmem:[%s2771_s11 + $0x748] sm:$0xff] }
  0x54   : > { %439 = vst [vmem:[%s2776_s12 + $0x3a0] sm:$0xff] %v438_v52  ;;  %v442_v54 = vld [vmem:[%s2771_s11 + $0x760] sm:$0xff]  ;;  %v444_v55 = vld [vmem:[%s2771_s11 + $0x768] sm:$0xff]  ;;  %441 = vst [vmem:[%s2776_s12 + $0x3a8] sm:$0xff] %v440_v53 }
  0x55   : > { %443 = vst [vmem:[%s2776_s12 + $0x3b0] sm:$0xff] %v442_v54  ;;  %445 = vst [vmem:[%s2776_s12 + $0x3b8] sm:$0xff] %v444_v55  ;;  %v446_v56 = vld [vmem:[%s2771_s11 + $0x780] sm:$0xff]  ;;  %v448_v57 = vld [vmem:[%s2771_s11 + $0x788] sm:$0xff] }
  0x56   : > { %v450_v58 = vld [vmem:[%s2771_s11 + $0x7a0] sm:$0xff]  ;;  %447 = vst [vmem:[%s2776_s12 + $0x3c0] sm:$0xff] %v446_v56  ;;  %449 = vst [vmem:[%s2776_s12 + $0x3c8] sm:$0xff] %v448_v57  ;;  %v452_v59 = vld [vmem:[%s2771_s11 + $0x7a8] sm:$0xff] }
  0x57   : > { %451 = vst [vmem:[%s2776_s12 + $0x3d0] sm:$0xff] %v450_v58  ;;  %v454_v60 = vld [vmem:[%s2771_s11 + $0x7c0] sm:$0xff]  ;;  %v456_v61 = vld [vmem:[%s2771_s11 + $0x7c8] sm:$0xff]  ;;  %453 = vst [vmem:[%s2776_s12 + $0x3d8] sm:$0xff] %v452_v59 }
  0x58   : > { %455 = vst [vmem:[%s2776_s12 + $0x3e0] sm:$0xff] %v454_v60  ;;  %457 = vst [vmem:[%s2776_s12 + $0x3e8] sm:$0xff] %v456_v61  ;;  %v458_v62 = vld [vmem:[%s2771_s11 + $0x7e0] sm:$0xff]  ;;  %v460_v63 = vld [vmem:[%s2771_s11 + $0x7e8] sm:$0xff] }
  0x59   : > { %v462_v0 = vld [vmem:[%s2771_s11 + $0x800] sm:$0xff]  ;;  %459 = vst [vmem:[%s2776_s12 + $0x3f0] sm:$0xff] %v458_v62  ;;  %461 = vst [vmem:[%s2776_s12 + $0x3f8] sm:$0xff] %v460_v63  ;;  %v464_v1 = vld [vmem:[%s2771_s11 + $0x808] sm:$0xff] }
  0x5a   : > { %463 = vst [vmem:[%s2776_s12 + $0x400] sm:$0xff] %v462_v0  ;;  %v466_v2 = vld [vmem:[%s2771_s11 + $0x820] sm:$0xff]  ;;  %v468_v3 = vld [vmem:[%s2771_s11 + $0x828] sm:$0xff]  ;;  %465 = vst [vmem:[%s2776_s12 + $0x408] sm:$0xff] %v464_v1 }
  0x5b   : > { %467 = vst [vmem:[%s2776_s12 + $0x410] sm:$0xff] %v466_v2  ;;  %469 = vst [vmem:[%s2776_s12 + $0x418] sm:$0xff] %v468_v3  ;;  %v470_v4 = vld [vmem:[%s2771_s11 + $0x840] sm:$0xff]  ;;  %v472_v5 = vld [vmem:[%s2771_s11 + $0x848] sm:$0xff] }
  0x5c   : > { %v474_v6 = vld [vmem:[%s2771_s11 + $0x860] sm:$0xff]  ;;  %471 = vst [vmem:[%s2776_s12 + $0x420] sm:$0xff] %v470_v4  ;;  %473 = vst [vmem:[%s2776_s12 + $0x428] sm:$0xff] %v472_v5  ;;  %v476_v7 = vld [vmem:[%s2771_s11 + $0x868] sm:$0xff] }
  0x5d   : > { %475 = vst [vmem:[%s2776_s12 + $0x430] sm:$0xff] %v474_v6  ;;  %v478_v8 = vld [vmem:[%s2771_s11 + $0x880] sm:$0xff]  ;;  %v480_v9 = vld [vmem:[%s2771_s11 + $0x888] sm:$0xff]  ;;  %477 = vst [vmem:[%s2776_s12 + $0x438] sm:$0xff] %v476_v7 }
  0x5e   : > { %479 = vst [vmem:[%s2776_s12 + $0x440] sm:$0xff] %v478_v8  ;;  %481 = vst [vmem:[%s2776_s12 + $0x448] sm:$0xff] %v480_v9  ;;  %v482_v10 = vld [vmem:[%s2771_s11 + $0x8a0] sm:$0xff]  ;;  %v484_v11 = vld [vmem:[%s2771_s11 + $0x8a8] sm:$0xff] }
  0x5f   : > { %v486_v12 = vld [vmem:[%s2771_s11 + $0x8c0] sm:$0xff]  ;;  %483 = vst [vmem:[%s2776_s12 + $0x450] sm:$0xff] %v482_v10  ;;  %485 = vst [vmem:[%s2776_s12 + $0x458] sm:$0xff] %v484_v11  ;;  %v488_v13 = vld [vmem:[%s2771_s11 + $0x8c8] sm:$0xff] }
  0x60   : > { %487 = vst [vmem:[%s2776_s12 + $0x460] sm:$0xff] %v486_v12  ;;  %v490_v14 = vld [vmem:[%s2771_s11 + $0x8e0] sm:$0xff]  ;;  %v492_v15 = vld [vmem:[%s2771_s11 + $0x8e8] sm:$0xff]  ;;  %489 = vst [vmem:[%s2776_s12 + $0x468] sm:$0xff] %v488_v13 }
  0x61   : > { %491 = vst [vmem:[%s2776_s12 + $0x470] sm:$0xff] %v490_v14  ;;  %493 = vst [vmem:[%s2776_s12 + $0x478] sm:$0xff] %v492_v15  ;;  %v494_v16 = vld [vmem:[%s2771_s11 + $0x900] sm:$0xff]  ;;  %v496_v17 = vld [vmem:[%s2771_s11 + $0x908] sm:$0xff] }
  0x62   : > { %v498_v18 = vld [vmem:[%s2771_s11 + $0x920] sm:$0xff]  ;;  %495 = vst [vmem:[%s2776_s12 + $0x480] sm:$0xff] %v494_v16  ;;  %497 = vst [vmem:[%s2776_s12 + $0x488] sm:$0xff] %v496_v17  ;;  %v500_v19 = vld [vmem:[%s2771_s11 + $0x928] sm:$0xff] }
  0x63   : > { %499 = vst [vmem:[%s2776_s12 + $0x490] sm:$0xff] %v498_v18  ;;  %v502_v20 = vld [vmem:[%s2771_s11 + $0x940] sm:$0xff]  ;;  %v504_v21 = vld [vmem:[%s2771_s11 + $0x948] sm:$0xff]  ;;  %501 = vst [vmem:[%s2776_s12 + $0x498] sm:$0xff] %v500_v19 }
  0x64   : > { %503 = vst [vmem:[%s2776_s12 + $0x4a0] sm:$0xff] %v502_v20  ;;  %505 = vst [vmem:[%s2776_s12 + $0x4a8] sm:$0xff] %v504_v21  ;;  %v506_v22 = vld [vmem:[%s2771_s11 + $0x960] sm:$0xff]  ;;  %v508_v23 = vld [vmem:[%s2771_s11 + $0x968] sm:$0xff] }
  0x65   : > { %v510_v24 = vld [vmem:[%s2771_s11 + $0x980] sm:$0xff]  ;;  %507 = vst [vmem:[%s2776_s12 + $0x4b0] sm:$0xff] %v506_v22  ;;  %509 = vst [vmem:[%s2776_s12 + $0x4b8] sm:$0xff] %v508_v23  ;;  %v512_v25 = vld [vmem:[%s2771_s11 + $0x988] sm:$0xff] }
  0x66   : > { %511 = vst [vmem:[%s2776_s12 + $0x4c0] sm:$0xff] %v510_v24  ;;  %v514_v26 = vld [vmem:[%s2771_s11 + $0x9a0] sm:$0xff]  ;;  %v516_v27 = vld [vmem:[%s2771_s11 + $0x9a8] sm:$0xff]  ;;  %513 = vst [vmem:[%s2776_s12 + $0x4c8] sm:$0xff] %v512_v25 }
  0x67   : > { %515 = vst [vmem:[%s2776_s12 + $0x4d0] sm:$0xff] %v514_v26  ;;  %517 = vst [vmem:[%s2776_s12 + $0x4d8] sm:$0xff] %v516_v27  ;;  %v518_v28 = vld [vmem:[%s2771_s11 + $0x9c0] sm:$0xff]  ;;  %v520_v29 = vld [vmem:[%s2771_s11 + $0x9c8] sm:$0xff] }
  0x68   : > { %v522_v30 = vld [vmem:[%s2771_s11 + $0x9e0] sm:$0xff]  ;;  %519 = vst [vmem:[%s2776_s12 + $0x4e0] sm:$0xff] %v518_v28  ;;  %521 = vst [vmem:[%s2776_s12 + $0x4e8] sm:$0xff] %v520_v29  ;;  %v524_v31 = vld [vmem:[%s2771_s11 + $0x9e8] sm:$0xff] }
  0x69   : > { %523 = vst [vmem:[%s2776_s12 + $0x4f0] sm:$0xff] %v522_v30  ;;  %525 = vst [vmem:[%s2776_s12 + $0x4f8] sm:$0xff] %v524_v31 }
  0x6a PF: > { %p2135_p7 = scmp.ge.s32.totalorder %s2680_s21, 1  ;;  %p546_p8 = scmp.lt.s32.totalorder %s2680_s21, 11 }
  0x6c   : > { %p547_p9 = pnand %p2135_p7, %p546_p8 }
  0x6d   : > { %s553_s13 = sand.u32 (!%p547_p9), 1, %s2656_s15   ;;  %s589_s14 = smul.u32 (!%p547_p9), 5, %s2664_s17 }
  0x6e   : > { %550 = sbr.rel (%p547_p9) target bundleno = 536 (0x218), region = 55  ;;  %s2136_s25 = sshll.u32 (!%p547_p9), %s2668_s18, 2 }
  0x6f   : > { %s2324_s24 = smul.u32 (!%p547_p9), 1280, %s553_s13  ;;  %p590_p10 = scmp.lt.s32.totalorder (!%p547_p9), %s589_s14, 24 }
  0x70   : > { %p597_p11 = scmp.lt.s32.totalorder (!%p547_p9), %s2136_s25, 7  ;;  %p2139_p12 = scmp.ne.s32.totalorder (!%p547_p9), %s2664_s17, 0 }
  0x71   : > { %s3120_s11 = scalar_lea.vmem (!%p547_p9), [#allocation3], %s2324_s24 }
  0x75   : > { %s3370_s14 = smov (!%p590_p10, %s589_s14), 24  ;;  %s3372_s25 = smov (!%p597_p11, %s2136_s25), 7 }
  0x76   : > { %s592_s29 = scalar_lea.vmem %s3352_s0, %s3370_s14  ;;  %s599_s15 = scalar_lea.vmem %s3354_s2, %s3372_s25  ;;  %v2682_v32 = vmov (!%p2139_p12), 0.0  }
  0x77   : > { %s604_s7 = scalar_lea.vmem %s3355_s3, %s3372_s25  ;;  %s609_s10 = scalar_lea.vmem %s3356_s4, %s3372_s25  ;;  %616 = vst [vmem:[#allocation2] sm:$0xff] (!%p2139_p12), %v2682_v32 }
  0x78   : > { %615 = sbr.rel (%p2139_p12) target bundleno = 127 (0x7f), region = 63 }
  0x7f PF: > { %v2385_v33 = vld [vmem:[%s3120_s11 + $0x4] ss:$16 sps:$4 sm:$0xff]   ;;  %v2387_v34 = vld [vmem:[%s3120_s11 + $0xc] ss:$16 sps:$4 sm:$0xff]   ;;  %v2389_v35 = vld [vmem:[%s3120_s11] ss:$16 sps:$4 sm:$0xff]   ;;  %v784_v7 = vlaneseq }
  0x80   : > { %1624 = vmatprep.subr.bf16.mxu0 %v2385_v33  ;;  %v2390_v36 = vld [vmem:[%s3120_s11 + $0x8] ss:$16 sps:$4 sm:$0xff]   ;;  %1747 = vmatprep.subr.bf16.mxu1 %v2387_v34  ;;  %v2391_v37 = vld [vmem:[%s3120_s11 + $0x24] ss:$16 sps:$4 sm:$0xff]   ;;  %v2393_v38 = vld [vmem:[%s3120_s11 + $0x2c] ss:$16 sps:$4 sm:$0xff]  }
  0x81   : > { %1625 = vmatpush1.bf16.msra.mxu0 %v2389_v35  ;;  %1748 = vmatpush1.bf16.msra.mxu1 %v2390_v36  ;;  %v2395_v39 = vld [vmem:[%s3120_s11 + $0x20] ss:$16 sps:$4 sm:$0xff]   ;;  %v2396_v40 = vld [vmem:[%s3120_s11 + $0x28] ss:$16 sps:$4 sm:$0xff]   ;;  %v2397_v41 = vld [vmem:[%s3120_s11 + $0x44] ss:$16 sps:$4 sm:$0xff]  }
  0x82   : > { %1626 = vmatprep.subr.bf16.mxu0 %v2391_v37  ;;  %1749 = vmatprep.subr.bf16.mxu1 %v2393_v38  ;;  %v2399_v42 = vld [vmem:[%s3120_s11 + $0x4c] ss:$16 sps:$4 sm:$0xff]   ;;  %v2401_v43 = vld [vmem:[%s3120_s11 + $0x40] ss:$16 sps:$4 sm:$0xff]   ;;  %v2402_v44 = vld [vmem:[%s3120_s11 + $0x48] ss:$16 sps:$4 sm:$0xff]  }
  0x83   : > { %v2403_v45 = vld [vmem:[%s3120_s11 + $0x64] ss:$16 sps:$4 sm:$0xff]   ;;  %v2405_v46 = vld [vmem:[%s3120_s11 + $0x6c] ss:$16 sps:$4 sm:$0xff]   ;;  %v2407_v47 = vld [vmem:[%s3120_s11 + $0x60] ss:$16 sps:$4 sm:$0xff]  }
  0x84   : > { %v2408_v48 = vld [vmem:[%s3120_s11 + $0x68] ss:$16 sps:$4 sm:$0xff]   ;;  %v2409_v49 = vld [vmem:[%s3120_s11 + $0x84] ss:$16 sps:$4 sm:$0xff]   ;;  %v2411_v50 = vld [vmem:[%s3120_s11 + $0x8c] ss:$16 sps:$4 sm:$0xff]  }
  0x85   : > { %1627 = vmatpush1.bf16.msra.mxu0 %v2395_v39  ;;  %1750 = vmatpush1.bf16.msra.mxu1 %v2396_v40  ;;  %v2413_v51 = vld [vmem:[%s3120_s11 + $0x80] ss:$16 sps:$4 sm:$0xff]   ;;  %v2414_v52 = vld [vmem:[%s3120_s11 + $0x88] ss:$16 sps:$4 sm:$0xff]   ;;  %v2415_v53 = vld [vmem:[%s3120_s11 + $0xa4] ss:$16 sps:$4 sm:$0xff]  }
  0x86   : > { %1628 = vmatprep.subr.bf16.mxu0 %v2397_v41  ;;  %1751 = vmatprep.subr.bf16.mxu1 %v2399_v42  ;;  %v2417_v54 = vld [vmem:[%s3120_s11 + $0xac] ss:$16 sps:$4 sm:$0xff]   ;;  %v2419_v55 = vld [vmem:[%s3120_s11 + $0xa0] ss:$16 sps:$4 sm:$0xff]   ;;  %v2420_v56 = vld [vmem:[%s3120_s11 + $0xa8] ss:$16 sps:$4 sm:$0xff]  }
  0x87   : > { %v2421_v57 = vld [vmem:[%s3120_s11 + $0xc4] ss:$16 sps:$4 sm:$0xff]   ;;  %v2423_v58 = vld [vmem:[%s3120_s11 + $0xcc] ss:$16 sps:$4 sm:$0xff]   ;;  %v2425_v59 = vld [vmem:[%s3120_s11 + $0xc0] ss:$16 sps:$4 sm:$0xff]  }
  0x88   : > { %v2426_v60 = vld [vmem:[%s3120_s11 + $0xc8] ss:$16 sps:$4 sm:$0xff]   ;;  %v2427_v61 = vld [vmem:[%s3120_s11 + $0xe4] ss:$16 sps:$4 sm:$0xff]   ;;  %v2429_v62 = vld [vmem:[%s3120_s11 + $0xec] ss:$16 sps:$4 sm:$0xff]  }
  0x89   : > { %1629 = vmatpush1.bf16.msra.mxu0 %v2401_v43  ;;  %1752 = vmatpush1.bf16.msra.mxu1 %v2402_v44  ;;  %v2431_v63 = vld [vmem:[%s3120_s11 + $0xe0] ss:$16 sps:$4 sm:$0xff]   ;;  %v2432_v0 = vld [vmem:[%s3120_s11 + $0xe8] ss:$16 sps:$4 sm:$0xff]   ;;  %v2433_v1 = vld [vmem:[%s3120_s11 + $0x104] ss:$16 sps:$4 sm:$0xff]  }
  0x8a   : > { %1630 = vmatprep.subr.bf16.mxu0 %v2403_v45  ;;  %1753 = vmatprep.subr.bf16.mxu1 %v2405_v46  ;;  %v2435_v2 = vld [vmem:[%s3120_s11 + $0x10c] ss:$16 sps:$4 sm:$0xff]   ;;  %v2437_v3 = vld [vmem:[%s3120_s11 + $0x100] ss:$16 sps:$4 sm:$0xff]   ;;  %v2438_v4 = vld [vmem:[%s3120_s11 + $0x108] ss:$16 sps:$4 sm:$0xff]  }
  0x8b   : > { %v2683_v5 = vmov 1966171168   ;;  %v2439_v8 = vld [vmem:[%s3120_s11 + $0x124] ss:$16 sps:$4 sm:$0xff]   ;;  %v2441_v9 = vld [vmem:[%s3120_s11 + $0x12c] ss:$16 sps:$4 sm:$0xff]  }
  0x8c   : > { %v782_v6 = vunpack.c.l.s4 %v2683_v5  ;;  %v2443_v10 = vld [vmem:[%s3120_s11 + $0x120] ss:$16 sps:$4 sm:$0xff]   ;;  %v3162_v12 = vshrl.u32 %v784_v7, 7  ;;  %v2444_v13 = vld [vmem:[%s3120_s11 + $0x128] ss:$16 sps:$4 sm:$0xff]   ;;  %p2300_p13 = scmp.ne.s32.totalorder %s2664_s17, 4 }
  0x8d   : > { %1631 = vmatpush1.bf16.msra.mxu0 %v2407_v47  ;;  %1754 = vmatpush1.bf16.msra.mxu1 %v2408_v48  ;;  %v2445_v14 = vld [vmem:[%s3120_s11 + $0x144] ss:$16 sps:$4 sm:$0xff]   ;;  %v2447_v15 = vld [vmem:[%s3120_s11 + $0x14c] ss:$16 sps:$4 sm:$0xff]   ;;  %v2449_v16 = vld [vmem:[%s3120_s11 + $0x140] ss:$16 sps:$4 sm:$0xff]  }
  0x8e   : > { %1632 = vmatprep.subr.bf16.mxu0 %v2409_v49  ;;  %1755 = vmatprep.subr.bf16.mxu1 %v2411_v50  ;;  %v783_v11 = vunpack.c.0.s8 %v782_v6  ;;  %v2450_v17 = vld [vmem:[%s3120_s11 + $0x148] ss:$16 sps:$4 sm:$0xff]   ;;  %v2451_v19 = vld [vmem:[%s3120_s11 + $0x164] ss:$16 sps:$4 sm:$0xff]   ;;  %v2453_v20 = vld [vmem:[%s3120_s11 + $0x16c] ss:$16 sps:$4 sm:$0xff]  }
  0x8f   : > { %v618_v21 = vld [vmem:[%s592_s29] sm:$0x1f]  ;;  %v2455_v22 = vld [vmem:[%s3120_s11 + $0x160] ss:$16 sps:$4 sm:$0xff]   ;;  %v2457_v26 = vld [vmem:[%s3120_s11 + $0x184] ss:$16 sps:$4 sm:$0xff]  }
  0x90   : > { %v3170_v18 = vsub.s32 %v783_v11, %v3162_v12  ;;  %v780_v23 = vcombine.high %v618_v21, %v618_v21  ;;  %v2456_v25 = vld [vmem:[%s3120_s11 + $0x168] ss:$16 sps:$4 sm:$0xff]   ;;  %v2459_v27 = vld [vmem:[%s3120_s11 + $0x18c] ss:$16 sps:$4 sm:$0xff]   ;;  %v2461_v30 = vld [vmem:[%s3120_s11 + $0x180] ss:$16 sps:$4 sm:$0xff]  }
  0x91   : > { %1633 = vmatpush1.bf16.msra.mxu0 %v2413_v51  ;;  %1756 = vmatpush1.bf16.msra.mxu1 %v2414_v52  ;;  %v2462_v33 = vld [vmem:[%s3120_s11 + $0x188] ss:$16 sps:$4 sm:$0xff]   ;;  %v2463_v34 = vld [vmem:[%s3120_s11 + $0x1a4] ss:$16 sps:$4 sm:$0xff]   ;;  %v2465_v35 = vld [vmem:[%s3120_s11 + $0x1ac] ss:$16 sps:$4 sm:$0xff]  }
  0x92   : > { %1634 = vmatprep.subr.bf16.mxu0 %v2415_v53  ;;  %1757 = vmatprep.subr.bf16.mxu1 %v2417_v54  ;;  %v787_v24 = vrot.slane %v618_v21, %v3170_v18  ;;  %v794_v29 = vrot.slane %v780_v23, %v3170_v18  ;;  %v2467_v36 = vld [vmem:[%s3120_s11 + $0x1a0] ss:$16 sps:$4 sm:$0xff]   ;;  %v2468_v37 = vld [vmem:[%s3120_s11 + $0x1a8] ss:$16 sps:$4 sm:$0xff]   ;;  %v2469_v38 = vld [vmem:[%s3120_s11 + $0x1c4] ss:$16 sps:$4 sm:$0xff]  }
  0x93   : > { %v2471_v39 = vld [vmem:[%s3120_s11 + $0x1cc] ss:$16 sps:$4 sm:$0xff]   ;;  %v2473_v40 = vld [vmem:[%s3120_s11 + $0x1c0] ss:$16 sps:$4 sm:$0xff]   ;;  %v2474_v41 = vld [vmem:[%s3120_s11 + $0x1c8] ss:$16 sps:$4 sm:$0xff]  }
  0x94   : > { %v795_v28 = vcombine.high %v787_v24, %v787_v24  ;;  %v3188_v32 = vrot.slane %v794_v29, %v3170_v18  ;;  %v2475_v42 = vld [vmem:[%s3120_s11 + $0x1e4] ss:$16 sps:$4 sm:$0xff]   ;;  %v2477_v43 = vld [vmem:[%s3120_s11 + $0x1ec] ss:$16 sps:$4 sm:$0xff]   ;;  %v2479_v44 = vld [vmem:[%s3120_s11 + $0x1e0] ss:$16 sps:$4 sm:$0xff]   ;;  %v3207_v49 = vrot.slane %v787_v24, %v3170_v18 }
  0x95   : > { %1635 = vmatpush1.bf16.msra.mxu0 %v2419_v55  ;;  %1758 = vmatpush1.bf16.msra.mxu1 %v2420_v56  ;;  %v2480_v45 = vld [vmem:[%s3120_s11 + $0x1e8] ss:$16 sps:$4 sm:$0xff]   ;;  %v2484_v46 = vld [vmem:[%s3120_s11 + $0x204] ss:$16 sps:$4 sm:$0xff]   ;;  %v2487_v47 = vld [vmem:[%s3120_s11 + $0x20c] ss:$16 sps:$4 sm:$0xff]  }
  0x96   : > { %1636 = vmatprep.subr.bf16.mxu0 %v2421_v57  ;;  %1759 = vmatprep.subr.bf16.mxu1 %v2423_v58  ;;  %v816_v31 = vrot.slane %v795_v28, %v3170_v18  ;;  %v2482_v48 = vld [vmem:[%s3120_s11 + $0x200] ss:$16 sps:$4 sm:$0xff]   ;;  %v2485_v50 = vld [vmem:[%s3120_s11 + $0x208] ss:$16 sps:$4 sm:$0xff]   ;;  %v2490_v51 = vld [vmem:[%s3120_s11 + $0x224] ss:$16 sps:$4 sm:$0xff]  }
  0x97   : > { %v2493_v52 = vld [vmem:[%s3120_s11 + $0x22c] ss:$16 sps:$4 sm:$0xff]   ;;  %v2488_v54 = vld [vmem:[%s3120_s11 + $0x220] ss:$16 sps:$4 sm:$0xff]   ;;  %v2491_v55 = vld [vmem:[%s3120_s11 + $0x228] ss:$16 sps:$4 sm:$0xff]  }
  0x98   : > { %1656 = vmatprep.mubr.bf16.mxu0 %v816_v31  ;;  %1779 = vmatprep.mubr.bf16.mxu1 %v816_v31  ;;  %v818_v53 = vcombine.high %v816_v31, %v816_v31  ;;  %v2496_v56 = vld [vmem:[%s3120_s11 + $0x244] ss:$16 sps:$4 sm:$0xff]   ;;  %v2499_v57 = vld [vmem:[%s3120_s11 + $0x24c] ss:$16 sps:$4 sm:$0xff]   ;;  %v2494_v58 = vld [vmem:[%s3120_s11 + $0x240] ss:$16 sps:$4 sm:$0xff]  }
  0x99   : > { %1637 = vmatpush1.bf16.msra.mxu0 %v2425_v59  ;;  %1760 = vmatpush1.bf16.msra.mxu1 %v2426_v60  ;;  %v2497_v59 = vld [vmem:[%s3120_s11 + $0x248] ss:$16 sps:$4 sm:$0xff]   ;;  %v2502_v60 = vld [vmem:[%s3120_s11 + $0x264] ss:$16 sps:$4 sm:$0xff]   ;;  %v2517_v5 = vld [vmem:[%s3120_s11 + $0x2ac] ss:$16 sps:$4 sm:$0xff]  }
  0x9a   : > { %1638 = vmatprep.subr.bf16.mxu0 %v2427_v61  ;;  %1761 = vmatprep.subr.bf16.mxu1 %v2429_v62  ;;  %v2505_v61 = vld [vmem:[%s3120_s11 + $0x26c] ss:$16 sps:$4 sm:$0xff]   ;;  %v2500_v62 = vld [vmem:[%s3120_s11 + $0x260] ss:$16 sps:$4 sm:$0xff]   ;;  %v2515_v7 = vld [vmem:[%s3120_s11 + $0x2a8] ss:$16 sps:$4 sm:$0xff]  }
  0x9b   : > { %v2512_v6 = vld [vmem:[%s3120_s11 + $0x2a0] ss:$16 sps:$4 sm:$0xff]   ;;  %v2521_v11 = vld [vmem:[%s3120_s11 + $0x2c8] ss:$16 sps:$4 sm:$0xff]   ;;  %v2541_v23 = vld [vmem:[%s3120_s11 + $0x32c] ss:$16 sps:$4 sm:$0xff]  }
  0x9c   : > { %v2533_v21 = vld [vmem:[%s3120_s11 + $0x308] ss:$16 sps:$4 sm:$0xff]   ;;  %v2536_v24 = vld [vmem:[%s3120_s11 + $0x320] ss:$16 sps:$4 sm:$0xff]   ;;  %v2553_v31 = vld [vmem:[%s3120_s11 + $0x36c] ss:$16 sps:$4 sm:$0xff]  }
  0x9d   : > { %1639 = vmatpush1.bf16.msra.mxu0 %v2431_v63  ;;  %1762 = vmatpush1.bf16.msra.mxu1 %v2432_v0  ;;  %v2503_v63 = vld [vmem:[%s3120_s11 + $0x268] ss:$16 sps:$4 sm:$0xff]   ;;  %v2508_v0 = vld [vmem:[%s3120_s11 + $0x284] ss:$16 sps:$4 sm:$0xff]   ;;  %v2542_v28 = vld [vmem:[%s3120_s11 + $0x340] ss:$16 sps:$4 sm:$0xff]  }
  0x9e   : > { %1640 = vmatprep.subr.bf16.mxu0 %v2433_v1  ;;  %1763 = vmatprep.subr.bf16.mxu1 %v2435_v2  ;;  %v2511_v1 = vld [vmem:[%s3120_s11 + $0x28c] ss:$16 sps:$4 sm:$0xff]   ;;  %v2506_v2 = vld [vmem:[%s3120_s11 + $0x280] ss:$16 sps:$4 sm:$0xff]   ;;  %v2545_v29 = vld [vmem:[%s3120_s11 + $0x348] ss:$16 sps:$4 sm:$0xff]  }
  0xa1   : > { %1641 = vmatpush1.bf16.msra.mxu0 %v2437_v3  ;;  %1764 = vmatpush1.bf16.msra.mxu1 %v2438_v4  ;;  %v2509_v3 = vld [vmem:[%s3120_s11 + $0x288] ss:$16 sps:$4 sm:$0xff]   ;;  %v2514_v4 = vld [vmem:[%s3120_s11 + $0x2a4] ss:$16 sps:$4 sm:$0xff]  }
  0xa2   : > { %1642 = vmatprep.subr.bf16.mxu0 %v2439_v8  ;;  %1765 = vmatprep.subr.bf16.mxu1 %v2441_v9  ;;  %v2520_v8 = vld [vmem:[%s3120_s11 + $0x2c4] ss:$16 sps:$4 sm:$0xff]   ;;  %v2523_v9 = vld [vmem:[%s3120_s11 + $0x2cc] ss:$16 sps:$4 sm:$0xff]  }
  0xa5   : > { %1643 = vmatpush1.bf16.msra.mxu0 %v2443_v10  ;;  %1766 = vmatpush1.bf16.msra.mxu1 %v2444_v13  ;;  %v2518_v10 = vld [vmem:[%s3120_s11 + $0x2c0] ss:$16 sps:$4 sm:$0xff]   ;;  %v2526_v13 = vld [vmem:[%s3120_s11 + $0x2e4] ss:$16 sps:$4 sm:$0xff]  }
  0xa6   : > { %1644 = vmatprep.subr.bf16.mxu0 %v2445_v14  ;;  %1767 = vmatprep.subr.bf16.mxu1 %v2447_v15  ;;  %v2529_v14 = vld [vmem:[%s3120_s11 + $0x2ec] ss:$16 sps:$4 sm:$0xff]   ;;  %v2524_v15 = vld [vmem:[%s3120_s11 + $0x2e0] ss:$16 sps:$4 sm:$0xff]  }
  0xa9   : > { %1645 = vmatpush1.bf16.msra.mxu0 %v2449_v16  ;;  %1768 = vmatpush1.bf16.msra.mxu1 %v2450_v17  ;;  %v2527_v16 = vld [vmem:[%s3120_s11 + $0x2e8] ss:$16 sps:$4 sm:$0xff]   ;;  %v2532_v17 = vld [vmem:[%s3120_s11 + $0x304] ss:$16 sps:$4 sm:$0xff]  }
  0xaa   : > { %1646 = vmatprep.subr.bf16.mxu0 %v2451_v19  ;;  %1769 = vmatprep.subr.bf16.mxu1 %v2453_v20  ;;  %v2535_v19 = vld [vmem:[%s3120_s11 + $0x30c] ss:$16 sps:$4 sm:$0xff]   ;;  %v2530_v20 = vld [vmem:[%s3120_s11 + $0x300] ss:$16 sps:$4 sm:$0xff]  }
  0xad   : > { %1647 = vmatpush1.bf16.msra.mxu0 %v2455_v22  ;;  %1770 = vmatpush1.bf16.msra.mxu1 %v2456_v25  ;;  %v2538_v22 = vld [vmem:[%s3120_s11 + $0x324] ss:$16 sps:$4 sm:$0xff]   ;;  %v2539_v25 = vld [vmem:[%s3120_s11 + $0x328] ss:$16 sps:$4 sm:$0xff]  }
  0xae   : > { %1648 = vmatprep.subr.bf16.mxu0 %v2457_v26  ;;  %1771 = vmatprep.subr.bf16.mxu1 %v2459_v27  ;;  %v2544_v26 = vld [vmem:[%s3120_s11 + $0x344] ss:$16 sps:$4 sm:$0xff]   ;;  %v2547_v27 = vld [vmem:[%s3120_s11 + $0x34c] ss:$16 sps:$4 sm:$0xff]  }
  0xb1   : > { %1649 = vmatpush1.bf16.msra.mxu0 %v2461_v30  ;;  %1772 = vmatpush1.bf16.msra.mxu1 %v2462_v33  ;;  %v2550_v30 = vld [vmem:[%s3120_s11 + $0x364] ss:$16 sps:$4 sm:$0xff]   ;;  %v2548_v33 = vld [vmem:[%s3120_s11 + $0x360] ss:$16 sps:$4 sm:$0xff]  }
  0xb2   : > { %1650 = vmatprep.subr.bf16.mxu0 %v2463_v34  ;;  %1773 = vmatprep.subr.bf16.mxu1 %v2465_v35  ;;  %v2551_v34 = vld [vmem:[%s3120_s11 + $0x368] ss:$16 sps:$4 sm:$0xff]   ;;  %v2556_v35 = vld [vmem:[%s3120_s11 + $0x384] ss:$16 sps:$4 sm:$0xff]  }
  0xb5   : > { %1651 = vmatpush1.bf16.msra.mxu0 %v2467_v36  ;;  %1774 = vmatpush1.bf16.msra.mxu1 %v2468_v37  ;;  %v2559_v36 = vld [vmem:[%s3120_s11 + $0x38c] ss:$16 sps:$4 sm:$0xff]   ;;  %v2554_v37 = vld [vmem:[%s3120_s11 + $0x380] ss:$16 sps:$4 sm:$0xff]  }
  0xb6   : > { %1652 = vmatprep.subr.bf16.mxu0 %v2469_v38  ;;  %1775 = vmatprep.subr.bf16.mxu1 %v2471_v39  ;;  %v2557_v38 = vld [vmem:[%s3120_s11 + $0x388] ss:$16 sps:$4 sm:$0xff]   ;;  %v2562_v39 = vld [vmem:[%s3120_s11 + $0x3a4] ss:$16 sps:$4 sm:$0xff]  }
  0xb9   : > { %1653 = vmatpush1.bf16.msra.mxu0 %v2473_v40  ;;  %1776 = vmatpush1.bf16.msra.mxu1 %v2474_v41  ;;  %v2565_v40 = vld [vmem:[%s3120_s11 + $0x3ac] ss:$16 sps:$4 sm:$0xff]   ;;  %v2560_v41 = vld [vmem:[%s3120_s11 + $0x3a0] ss:$16 sps:$4 sm:$0xff]  }
  0xba   : > { %1654 = vmatprep.subr.bf16.mxu0 %v2475_v42  ;;  %1777 = vmatprep.subr.bf16.mxu1 %v2477_v43  ;;  %v2563_v42 = vld [vmem:[%s3120_s11 + $0x3a8] ss:$16 sps:$4 sm:$0xff]   ;;  %v2568_v43 = vld [vmem:[%s3120_s11 + $0x3c4] ss:$16 sps:$4 sm:$0xff]  }
  0xbd   : > { %1655 = vmatpush1.bf16.msra.mxu0 %v2479_v44  ;;  %1778 = vmatpush1.bf16.msra.mxu1 %v2480_v45  ;;  %v2571_v44 = vld [vmem:[%s3120_s11 + $0x3cc] ss:$16 sps:$4 sm:$0xff]   ;;  %v2566_v45 = vld [vmem:[%s3120_s11 + $0x3c0] ss:$16 sps:$4 sm:$0xff]  }
  0xbe   : > { %1665 = vmatprep.subr.bf16.mxu0 %v2484_v46  ;;  %1788 = vmatprep.subr.bf16.mxu1 %v2487_v47  ;;  %v2569_v46 = vld [vmem:[%s3120_s11 + $0x3c8] ss:$16 sps:$4 sm:$0xff]   ;;  %v2574_v47 = vld [vmem:[%s3120_s11 + $0x3e4] ss:$16 sps:$4 sm:$0xff]  }
  0xc0   : > { %1657 = vmatmul.mubr.bf16.vlgmr.msra.gmra.mrb[0].mxu0 %v3207_v49  ;;  %1780 = vmatmul.mubr.bf16.vlgmr.msra.gmra.mrb[0].mxu1 %v3207_v49 }
  0xc1   : > { %1666 = vmatpush1.bf16.msra.mxu0 %v2482_v48  ;;  %1789 = vmatpush1.bf16.msra.mxu1 %v2485_v50  ;;  %v2577_v48 = vld [vmem:[%s3120_s11 + $0x3ec] ss:$16 sps:$4 sm:$0xff]   ;;  %v2572_v50 = vld [vmem:[%s3120_s11 + $0x3e0] ss:$16 sps:$4 sm:$0xff]  }
  0xc2   : > { %1667 = vmatprep.subr.bf16.mxu0 %v2490_v51  ;;  %1790 = vmatprep.subr.bf16.mxu1 %v2493_v52  ;;  %v2575_v51 = vld [vmem:[%s3120_s11 + $0x3e8] ss:$16 sps:$4 sm:$0xff]   ;;  %v2580_v52 = vld [vmem:[%s3120_s11 + $0x404] ss:$16 sps:$4 sm:$0xff]  }
  0xc3   : > { %1697 = vmatprep.mubr.bf16.mxu0 %v818_v53  ;;  %1820 = vmatprep.mubr.bf16.mxu1 %v818_v53  ;;  %v2583_v53 = vld [vmem:[%s3120_s11 + $0x40c] ss:$16 sps:$4 sm:$0xff]  }
  0xc5   : > { %1668 = vmatpush1.bf16.msra.mxu0 %v2488_v54  ;;  %1791 = vmatpush1.bf16.msra.mxu1 %v2491_v55  ;;  %v817_v54 = vcombine.high %v3207_v49, %v3207_v49  ;;  %v2578_v55 = vld [vmem:[%s3120_s11 + $0x400] ss:$16 sps:$4 sm:$0xff]   ;;  %v2587_v49 = vld [vmem:[%s3120_s11 + $0x428] ss:$16 sps:$4 sm:$0xff]  }
  0xc6   : > { %1669 = vmatprep.subr.bf16.mxu0 %v2496_v56  ;;  %1792 = vmatprep.subr.bf16.mxu1 %v2499_v57  ;;  %v2581_v56 = vld [vmem:[%s3120_s11 + $0x408] ss:$16 sps:$4 sm:$0xff]   ;;  %v2586_v57 = vld [vmem:[%s3120_s11 + $0x424] ss:$16 sps:$4 sm:$0xff]  }
  0xc9   : > { %1670 = vmatpush1.bf16.msra.mxu0 %v2494_v58  ;;  %1793 = vmatpush1.bf16.msra.mxu1 %v2497_v59  ;;  %v2589_v58 = vld [vmem:[%s3120_s11 + $0x42c] ss:$16 sps:$4 sm:$0xff]   ;;  %v2584_v59 = vld [vmem:[%s3120_s11 + $0x420] ss:$16 sps:$4 sm:$0xff]  }
  0xca   : > { %1671 = vmatprep.subr.bf16.mxu0 %v2502_v60  ;;  %1794 = vmatprep.subr.bf16.mxu1 %v2505_v61  ;;  %v2592_v60 = vld [vmem:[%s3120_s11 + $0x444] ss:$16 sps:$4 sm:$0xff]   ;;  %v2595_v61 = vld [vmem:[%s3120_s11 + $0x44c] ss:$16 sps:$4 sm:$0xff]  }
  0xcd   : > { %1672 = vmatpush1.bf16.msra.mxu0 %v2500_v62  ;;  %1795 = vmatpush1.bf16.msra.mxu1 %v2503_v63  ;;  %v2684_v62 = vmov 0   ;;  %v2590_v63 = vld [vmem:[%s3120_s11 + $0x440] ss:$16 sps:$4 sm:$0xff]  }
  0xce   : > { %1673 = vmatprep.subr.bf16.mxu0 %v2508_v0  ;;  %1796 = vmatprep.subr.bf16.mxu1 %v2511_v1  ;;  %v2593_v0 = vld [vmem:[%s3120_s11 + $0x448] ss:$16 sps:$4 sm:$0xff]   ;;  %v2598_v1 = vld [vmem:[%s3120_s11 + $0x464] ss:$16 sps:$4 sm:$0xff]  }
  0xd1   : > { %1674 = vmatpush1.bf16.msra.mxu0 %v2506_v2  ;;  %1797 = vmatpush1.bf16.msra.mxu1 %v2509_v3  ;;  %v2601_v2 = vld [vmem:[%s3120_s11 + $0x46c] ss:$16 sps:$4 sm:$0xff]   ;;  %v2596_v3 = vld [vmem:[%s3120_s11 + $0x460] ss:$16 sps:$4 sm:$0xff]  }
  0xd2   : > { %1675 = vmatprep.subr.bf16.mxu0 %v2514_v4  ;;  %1798 = vmatprep.subr.bf16.mxu1 %v2517_v5  ;;  %v2599_v4 = vld [vmem:[%s3120_s11 + $0x468] ss:$16 sps:$4 sm:$0xff]   ;;  %v2604_v5 = vld [vmem:[%s3120_s11 + $0x484] ss:$16 sps:$4 sm:$0xff]  }
  0xd5   : > { %1676 = vmatpush1.bf16.msra.mxu0 %v2512_v6  ;;  %1799 = vmatpush1.bf16.msra.mxu1 %v2515_v7  ;;  %v2607_v6 = vld [vmem:[%s3120_s11 + $0x48c] ss:$16 sps:$4 sm:$0xff]   ;;  %v2602_v7 = vld [vmem:[%s3120_s11 + $0x480] ss:$16 sps:$4 sm:$0xff]  }
  0xd6   : > { %1677 = vmatprep.subr.bf16.mxu0 %v2520_v8  ;;  %1800 = vmatprep.subr.bf16.mxu1 %v2523_v9  ;;  %v2605_v8 = vld [vmem:[%s3120_s11 + $0x488] ss:$16 sps:$4 sm:$0xff]   ;;  %v2610_v9 = vld [vmem:[%s3120_s11 + $0x4a4] ss:$16 sps:$4 sm:$0xff]  }
  0xd9   : > { %1678 = vmatpush1.bf16.msra.mxu0 %v2518_v10  ;;  %1801 = vmatpush1.bf16.msra.mxu1 %v2521_v11  ;;  %v2613_v10 = vld [vmem:[%s3120_s11 + $0x4ac] ss:$16 sps:$4 sm:$0xff]   ;;  %v2608_v11 = vld [vmem:[%s3120_s11 + $0x4a0] ss:$16 sps:$4 sm:$0xff]  }
  0xda   : > { %1679 = vmatprep.subr.bf16.mxu0 %v2526_v13  ;;  %1802 = vmatprep.subr.bf16.mxu1 %v2529_v14  ;;  %v2611_v13 = vld [vmem:[%s3120_s11 + $0x4a8] ss:$16 sps:$4 sm:$0xff]   ;;  %v2616_v14 = vld [vmem:[%s3120_s11 + $0x4c4] ss:$16 sps:$4 sm:$0xff]  }
  0xdd   : > { %1680 = vmatpush1.bf16.msra.mxu0 %v2524_v15  ;;  %1803 = vmatpush1.bf16.msra.mxu1 %v2527_v16  ;;  %v2619_v15 = vld [vmem:[%s3120_s11 + $0x4cc] ss:$16 sps:$4 sm:$0xff]   ;;  %v2614_v16 = vld [vmem:[%s3120_s11 + $0x4c0] ss:$16 sps:$4 sm:$0xff]  }
  0xde   : > { %1681 = vmatprep.subr.bf16.mxu0 %v2532_v17  ;;  %1804 = vmatprep.subr.bf16.mxu1 %v2535_v19  ;;  %v2617_v17 = vld [vmem:[%s3120_s11 + $0x4c8] ss:$16 sps:$4 sm:$0xff]   ;;  %v2622_v19 = vld [vmem:[%s3120_s11 + $0x4e4] ss:$16 sps:$4 sm:$0xff]  }
  0xe1   : > { %1682 = vmatpush1.bf16.msra.mxu0 %v2530_v20  ;;  %1805 = vmatpush1.bf16.msra.mxu1 %v2533_v21  ;;  %v2625_v20 = vld [vmem:[%s3120_s11 + $0x4ec] ss:$16 sps:$4 sm:$0xff]   ;;  %v2620_v21 = vld [vmem:[%s3120_s11 + $0x4e0] ss:$16 sps:$4 sm:$0xff]  }
  0xe2   : > { %1683 = vmatprep.subr.bf16.mxu0 %v2538_v22  ;;  %1806 = vmatprep.subr.bf16.mxu1 %v2541_v23  ;;  %v2623_v22 = vld [vmem:[%s3120_s11 + $0x4e8] ss:$16 sps:$4 sm:$0xff]   ;;  %v2685_v23 = vmov 1983009808  }
  0xe5   : > { %1684 = vmatpush1.bf16.msra.mxu0 %v2536_v24  ;;  %1807 = vmatpush1.bf16.msra.mxu1 %v2539_v25  ;;  %v1877_v24 = vunpack.c.l.s4 %v2685_v23 }
  0xe6   : > { %1685 = vmatprep.subr.bf16.mxu0 %v2544_v26  ;;  %1808 = vmatprep.subr.bf16.mxu1 %v2547_v27 }
  0xe7   : > { %v1878_v25 = vunpack.c.0.s8 %v1877_v24 }
  0xe9   : > { %1686 = vmatpush1.bf16.msra.mxu0 %v2542_v28  ;;  %1809 = vmatpush1.bf16.msra.mxu1 %v2545_v29  ;;  %v1881_v28 = vsub.s32 %v1878_v25, %v3162_v12 }
  0xea   : > { %1687 = vmatprep.subr.bf16.mxu0 %v2550_v30  ;;  %1810 = vmatprep.subr.bf16.mxu1 %v2553_v31 }
  0xed   : > { %1688 = vmatpush1.bf16.msra.mxu0 %v2548_v33  ;;  %1811 = vmatpush1.bf16.msra.mxu1 %v2551_v34 }
  0xee   : > { %1689 = vmatprep.subr.bf16.mxu0 %v2556_v35  ;;  %1812 = vmatprep.subr.bf16.mxu1 %v2559_v36 }
  0xf1   : > { %1690 = vmatpush1.bf16.msra.mxu0 %v2554_v37  ;;  %1813 = vmatpush1.bf16.msra.mxu1 %v2557_v38 }
  0xf2   : > { %1691 = vmatprep.subr.bf16.mxu0 %v2562_v39  ;;  %1814 = vmatprep.subr.bf16.mxu1 %v2565_v40  ;;  %v617_v40 = vld [vmem:[#allocation2] sm:$0xff] }
  0xf5   : > { %1692 = vmatpush1.bf16.msra.mxu0 %v2560_v41  ;;  %1815 = vmatpush1.bf16.msra.mxu1 %v2563_v42  ;;  %v1899_v42 = vld [vmem:[%s599_s15] sm:$0xf] (!%p2300_p13) }
  0xf6   : > { %1693 = vmatprep.subr.bf16.mxu0 %v2568_v43  ;;  %1816 = vmatprep.subr.bf16.mxu1 %v2571_v44  ;;  %v1903_v43 = vsub.s32 (!%p2300_p13), 0, %v3162_v12  ;;  %v1907_v44 = vsub.s32 (!%p2300_p13), 1, %v3162_v12 }
  0xf9   : > { %1694 = vmatpush1.bf16.msra.mxu0 %v2566_v45  ;;  %1817 = vmatpush1.bf16.msra.mxu1 %v2569_v46  ;;  %v1911_v45 = vsub.s32 (!%p2300_p13), 2, %v3162_v12  ;;  %v1915_v46 = vsub.s32 (!%p2300_p13), 3, %v3162_v12 }
  0xfa   : > { %1695 = vmatprep.subr.bf16.mxu0 %v2574_v47  ;;  %1818 = vmatprep.subr.bf16.mxu1 %v2577_v48  ;;  %v1936_v47 = vld [vmem:[%s604_s7] sm:$0xf] (!%p2300_p13)  ;;  %v1904_v48 = vrot.slane (!%p2300_p13), %v1899_v42, %v1903_v43 }
  0xfd   : > { %1696 = vmatpush1.bf16.msra.mxu0 %v2572_v50  ;;  %1819 = vmatpush1.bf16.msra.mxu1 %v2575_v51  ;;  %v1908_v50 = vrot.slane (!%p2300_p13), %v1899_v42, %v1907_v44  ;;  %v1912_v51 = vrot.slane (!%p2300_p13), %v1899_v42, %v1911_v45 }
  0xfe   : > { %1706 = vmatprep.subr.bf16.mxu0 %v2580_v52  ;;  %1829 = vmatprep.subr.bf16.mxu1 %v2583_v53  ;;  %v1941_v52 = vrot.slane (!%p2300_p13), %v1936_v47, %v1903_v43  ;;  %v1916_v53 = vrot.slane (!%p2300_p13), %v1899_v42, %v1915_v46 }
 0x100   : > { %1698 = vmatmul.mubr.bf16.vlgmr.msra.gmra.mrb[0].mxu0 %v817_v54  ;;  %1821 = vmatmul.mubr.bf16.vlgmr.msra.gmra.mrb[0].mxu1 %v817_v54  ;;  %v1945_v54 = vrot.slane (!%p2300_p13), %v1936_v47, %v1907_v44 }
 0x101   : > { %1707 = vmatpush1.bf16.msra.mxu0 %v2578_v55  ;;  %1830 = vmatpush1.bf16.msra.mxu1 %v2581_v56  ;;  %v1949_v55 = vrot.slane (!%p2300_p13), %v1936_v47, %v1911_v45  ;;  %v1953_v56 = vrot.slane (!%p2300_p13), %v1936_v47, %v1915_v46 }
 0x102   : > { %1708 = vmatprep.subr.bf16.mxu0 %v2586_v57  ;;  %1831 = vmatprep.subr.bf16.mxu1 %v2589_v58  ;;  %v1917_v57 = vcombine.low (!%p2300_p13), %v1904_v48, %v1908_v50  ;;  %v1918_v58 = vcombine.low (!%p2300_p13), %v1912_v51, %v1916_v53 }
 0x103   : > { %1738 = vmatprep.mubr.bf16.mxu0 %v2684_v62  ;;  %1861 = vmatprep.mubr.bf16.mxu1 %v2684_v62 }
 0x105   : > { %1709 = vmatpush1.bf16.msra.mxu0 %v2584_v59  ;;  %1832 = vmatpush1.bf16.msra.mxu1 %v2587_v49  ;;  %v1954_v59 = vcombine.low (!%p2300_p13), %v1941_v52, %v1945_v54  ;;  %v1955_v49 = vcombine.low (!%p2300_p13), %v1949_v55, %v1953_v56 }
 0x106   : > { %1710 = vmatprep.subr.bf16.mxu0 %v2592_v60  ;;  %1833 = vmatprep.subr.bf16.mxu1 %v2595_v61  ;;  %v1925_v60 = vrot.slane (!%p2300_p13), %v1917_v57, %v1881_v28  ;;  %v1932_v61 = vrot.slane (!%p2300_p13), %v1918_v58, %v1881_v28 }
 0x107   : > { %v1962_v12 = vrot.slane (!%p2300_p13), %v1954_v59, %v1881_v28  ;;  %v1969_v62 = vrot.slane (!%p2300_p13), %v1955_v49, %v1881_v28 }
 0x109   : > { %1711 = vmatpush1.bf16.msra.mxu0 %v2590_v63  ;;  %1834 = vmatpush1.bf16.msra.mxu1 %v2593_v0  ;;  %v1933_v0 = vcombine.low (!%p2300_p13), %v1925_v60, %v1932_v61 }
 0x10a   : > { %1712 = vmatprep.subr.bf16.mxu0 %v2598_v1  ;;  %1835 = vmatprep.subr.bf16.mxu1 %v2601_v2  ;;  %v1970_v1 = vcombine.low (!%p2300_p13), %v1962_v12, %v1969_v62 }
 0x10d   : > { %1713 = vmatpush1.bf16.msra.mxu0 %v2596_v3  ;;  %1836 = vmatpush1.bf16.msra.mxu1 %v2599_v4 }
 0x10e   : > { %1714 = vmatprep.subr.bf16.mxu0 %v2604_v5  ;;  %1837 = vmatprep.subr.bf16.mxu1 %v2607_v6 }
 0x111   : > { %1715 = vmatpush1.bf16.msra.mxu0 %v2602_v7  ;;  %1838 = vmatpush1.bf16.msra.mxu1 %v2605_v8 }
 0x112   : > { %1716 = vmatprep.subr.bf16.mxu0 %v2610_v9  ;;  %1839 = vmatprep.subr.bf16.mxu1 %v2613_v10 }
 0x115   : > { %1717 = vmatpush1.bf16.msra.mxu0 %v2608_v11  ;;  %1840 = vmatpush1.bf16.msra.mxu1 %v2611_v13 }
 0x116   : > { %1718 = vmatprep.subr.bf16.mxu0 %v2616_v14  ;;  %1841 = vmatprep.subr.bf16.mxu1 %v2619_v15 }
 0x119   : > { %1719 = vmatpush1.bf16.msra.mxu0 %v2614_v16  ;;  %1842 = vmatpush1.bf16.msra.mxu1 %v2617_v17 }
 0x11a   : > { %1720 = vmatprep.subr.bf16.mxu0 %v2622_v19  ;;  %1843 = vmatprep.subr.bf16.mxu1 %v2625_v20 }
 0x11d   : > { %1721 = vmatpush1.bf16.msra.mxu0 %v2620_v21  ;;  %1844 = vmatpush1.bf16.msra.mxu1 %v2623_v22 }
 0x120   : > { %1739 = vmatmul.mubr.bf16.vlgmr.msra.gmra.mrb[0].mxu0 %v3188_v32  ;;  %1862 = vmatmul.mubr.bf16.vlgmr.msra.gmra.mrb[0].mxu1 %v3188_v32 }
 0x1f3   : > { %v1740_v26 = vpop.f32.mrb[0].mxu0  ;;  %v1863_v27 = vpop.f32.mrb[0].mxu1 }
 0x1f4   : > { %v1742_v29 = vpop.f32.mrb[1].mxu0  ;;  %v1865_v30 = vpop.f32.mrb[1].mxu1 }
 0x1f5   : > { %v1874_v31 = vcombine.low %v1740_v26, %v1742_v29  ;;  %v1875_v33 = vcombine.low %v1863_v27, %v1865_v30  ;;  %v1744_v34 = vpop.f32.mrb[2].mxu0  ;;  %v1867_v35 = vpop.f32.mrb[2].mxu1 }
 0x1f6   : > { %v1745_v36 = vpop.f32.mrb[3].mxu0  ;;  %v1868_v37 = vpop.f32.mrb[3].mxu1 }
 0x1f7   : > { %v1882_v38 = vrot.slane %v1874_v31, %v1881_v28  ;;  %v1889_v39 = vrot.slane %v1875_v33, %v1881_v28  ;;  %1897 = sbr.rel (%p2300_p13) target bundleno = 536 (0x218), region = 67 }
 0x1f9   : > { %v1890_v41 = vcombine.low %v1882_v38, %v1889_v39 }
 0x1fb   : > { %v1892_v32 = vadd.f32 %v1890_v41, %v617_v40 }
 0x1fd   : > { %1893 = vst [vmem:[#allocation2] sm:$0xff] %v1892_v32 }
 0x204   : > { %v1898_v63 = vld [vmem:[#allocation2] sm:$0xff] }
 0x205   : > { %v1935_v2 = vmul.f32 %v1933_v0, %v1898_v63 }
 0x207   : > { %v1972_v3 = vadd.f32 %v1970_v1, %v1935_v2 }
 0x209   : > { %v1973_v4 = vmax.f32 %v1972_v3, 0.0 }
 0x20b   : > { %v1975_v5 = vcombine.high %v1973_v4, %v1973_v4  ;;  %v1982_v6 = vrot.slane %v1973_v4, %v1881_v28 }
 0x20d   : > { %v1989_v7 = vrot.slane %v1975_v5, %v1881_v28  ;;  %v1990_v8 = vcombine.high %v1982_v6, %v1982_v6 }
 0x20f   : > { %v1991_v9 = vcombine.high %v1989_v7, %v1989_v7  ;;  %v2301_v10 = vpack.c.bf16 %v1990_v8, %v1982_v6 }
 0x211   : > { %v2302_v11 = vpack.c.bf16 %v1991_v9, %v1989_v7  ;;  %v2012_v13 = vrot.slane %v2301_v10, %v3170_v18 }
 0x213   : > { %v2019_v14 = vrot.slane %v2302_v11, %v3170_v18 }
 0x215   : > { %v2020_v15 = vcombine.low %v2012_v13, %v2019_v14 }
 0x217   : > { %2303 = vst.sshfl [vmem:[%s609_s10] sm:$0x55 pattern:$0x73625140] %v2020_v15 }
 0x218 PF: > { %s14_s21 = sadd.s32 1, %s2680_s21   ;;  %s3357_s15 = smov %s2660_s16 }
 0x219   : > { %p11_p0 = scmp.ge.s32.totalorder %s14_s21, 12   ;;  %s3358_s16 = smov %s2762_s28 }
 0x21a   : > { %s3359_s17 = smov %s2672_s19  ;;  %s3360_s18 = smov %s2676_s20 }
 0x21b   : > { %s3361_s19 = smov %s3364_s22  ;;  %s3362_s20 = smov %s3368_s23 }
 0x21c   :  { %13 = sbr.rel (!%p11_p0) target bundleno = 4 (0x4), region = 111 }

// kernel: dann_forward.13
= control target key start
LH: loop header
LB: loop body
LE: loop exit
PB: predicated region body
PF: predicated region fallthrough
CT: control target
= control target key end

     0   :  { %v159_v28 = vlaneseq  ;;  %v1210_v36 = vmov 1966171168   ;;  %s1505_s0 = inlined_call_operand.vmem [shape: bf16[2,1024], index: 0, kind: input, shape index: {}]   ;;  %s1506_s1 = inlined_call_operand.vmem [shape: bf16[1024,128], index: 1, kind: input, shape index: {}]   ;;  %s1507_s2 = inlined_call_operand.vmem [shape: f32[1,128], index: 2, kind: input, shape index: {}]   ;;  %s1508_s3 = inlined_call_operand.vmem [shape: f32[1,128], index: 3, kind: input, shape index: {}]   ;;  %s1509_s4 = inlined_call_operand.vmem [shape: bf16[128,2], index: 4, kind: input, shape index: {}]   ;;  %s1510_s5 = inlined_call_operand.vmem [shape: f32[1,2], index: 5, kind: input, shape index: {}]   ;;  %s1511_s6 = inlined_call_operand.hbm [shape: f32[2,2], index: 6, kind: output, shape index: {}]  }
   0x1   :  { %v1109_v0 = vld [vmem:[%s1506_s1 + $0x40] sm:$0xff]   ;;  %v1113_v4 = vld [vmem:[%s1506_s1 + $0x48] sm:$0xff]   ;;  %v1117_v8 = vld [vmem:[%s1506_s1 + $0x50] sm:$0xff]   ;;  %v157_v37 = vunpack.c.l.s4 %v1210_v36 }
   0x2   :  { %v1110_v1 = vld [vmem:[%s1506_s1 + $0xc0] sm:$0xff]   ;;  %988 = vmatprep.subr.bf16.mxu0 %v1109_v0  ;;  %v1114_v5 = vld [vmem:[%s1506_s1 + $0xc8] sm:$0xff]   ;;  %v1118_v9 = vld [vmem:[%s1506_s1 + $0xd0] sm:$0xff]   ;;  %v160_v33 = vshrl.u32 %v159_v28, 7 }
   0x3   :  { %v1111_v2 = vld [vmem:[%s1506_s1] sm:$0xff]   ;;  %1010 = vmatprep.subr.bf16.mxu1 %v1110_v1  ;;  %v1115_v6 = vld [vmem:[%s1506_s1 + $0x8] sm:$0xff]   ;;  %v1119_v10 = vld [vmem:[%s1506_s1 + $0x10] sm:$0xff]   ;;  %v158_v40 = vunpack.c.0.s8 %v157_v37 }
   0x4   :  { %v1112_v3 = vld [vmem:[%s1506_s1 + $0x80] sm:$0xff]   ;;  %989 = vmatpush3.bf16.msra.mxu0 %v1111_v2  ;;  %v1116_v7 = vld [vmem:[%s1506_s1 + $0x88] sm:$0xff]   ;;  %v1120_v11 = vld [vmem:[%s1506_s1 + $0x90] sm:$0xff]  }
   0x5   :  { %1011 = vmatpush3.bf16.msra.mxu1 %v1112_v3  ;;  %990 = vmatprep.subr.bf16.mxu0 %v1113_v4  ;;  %v1121_v12 = vld [vmem:[%s1506_s1 + $0x58] sm:$0xff]   ;;  %v1125_v16 = vld [vmem:[%s1506_s1 + $0x60] sm:$0xff]   ;;  %v1129_v20 = vld [vmem:[%s1506_s1 + $0x68] sm:$0xff]   ;;  %v1354_v41 = vsub.s32 %v158_v40, %v160_v33 }
   0x6   :  { %1012 = vmatprep.subr.bf16.mxu1 %v1114_v5  ;;  %v1122_v13 = vld [vmem:[%s1506_s1 + $0xd8] sm:$0xff]   ;;  %v1126_v17 = vld [vmem:[%s1506_s1 + $0xe0] sm:$0xff]   ;;  %v1130_v21 = vld [vmem:[%s1506_s1 + $0xe8] sm:$0xff]  }
   0x7   :  { %v1123_v14 = vld [vmem:[%s1506_s1 + $0x18] sm:$0xff]   ;;  %v1127_v18 = vld [vmem:[%s1506_s1 + $0x20] sm:$0xff]   ;;  %v1131_v22 = vld [vmem:[%s1506_s1 + $0x28] sm:$0xff]  }
   0x8   :  { %991 = vmatpush3.bf16.msra.mxu0 %v1115_v6  ;;  %v1124_v15 = vld [vmem:[%s1506_s1 + $0x98] sm:$0xff]   ;;  %v1128_v19 = vld [vmem:[%s1506_s1 + $0xa0] sm:$0xff]   ;;  %v1132_v23 = vld [vmem:[%s1506_s1 + $0xa8] sm:$0xff]  }
   0x9   :  { %1013 = vmatpush3.bf16.msra.mxu1 %v1116_v7  ;;  %992 = vmatprep.subr.bf16.mxu0 %v1117_v8  ;;  %v1133_v24 = vld [vmem:[%s1506_s1 + $0x70] sm:$0xff]   ;;  %v1137_v29 = vld [vmem:[%s1506_s1 + $0x78] sm:$0xff]   ;;  %v25_v34 = vld [vmem:[%s1505_s0] sm:$0xff] }
   0xa   :  { %1014 = vmatprep.subr.bf16.mxu1 %v1118_v9  ;;  %v1134_v25 = vld [vmem:[%s1506_s1 + $0xf0] sm:$0xff]   ;;  %v1138_v30 = vld [vmem:[%s1506_s1 + $0xf8] sm:$0xff]   ;;  %v1142_v35 = vld [vmem:[%s1506_s1 + $0x140] sm:$0xff]   ;;  %v155_v39 = vcombine.high %v25_v34, %v25_v34  ;;  %v162_v42 = vrot.slane %v25_v34, %v1354_v41 }
   0xb   :  { %v1135_v26 = vld [vmem:[%s1506_s1 + $0x30] sm:$0xff]   ;;  %v1139_v31 = vld [vmem:[%s1506_s1 + $0x38] sm:$0xff]   ;;  %v1143_v38 = vld [vmem:[%s1506_s1 + $0x1c0] sm:$0xff]  }
   0xc   :  { %993 = vmatpush3.bf16.msra.mxu0 %v1119_v10  ;;  %v1136_v27 = vld [vmem:[%s1506_s1 + $0xb0] sm:$0xff]   ;;  %v1140_v32 = vld [vmem:[%s1506_s1 + $0xb8] sm:$0xff]   ;;  %v1358_v43 = vrot.slane %v155_v39, %v1354_v41  ;;  %v170_v44 = vcombine.high %v162_v42, %v162_v42  ;;  %v178_v45 = vrot.slane %v162_v42, %v1354_v41  ;;  %v1144_v47 = vld [vmem:[%s1506_s1 + $0x100] sm:$0xff]  }
   0xd   :  { %1015 = vmatpush3.bf16.msra.mxu1 %v1120_v11  ;;  %994 = vmatprep.subr.bf16.mxu0 %v1121_v12  ;;  %v1145_v49 = vld [vmem:[%s1506_s1 + $0x180] sm:$0xff]   ;;  %v1146_v52 = vld [vmem:[%s1506_s1 + $0x148] sm:$0xff]   ;;  %v1150_v58 = vld [vmem:[%s1506_s1 + $0x150] sm:$0xff]  }
   0xe   :  { %1016 = vmatprep.subr.bf16.mxu1 %v1122_v13  ;;  %v171_v46 = vcombine.high %v1358_v43, %v1358_v43  ;;  %v192_v48 = vrot.slane %v170_v44, %v1354_v41  ;;  %v200_v51 = vcombine.high %v178_v45, %v178_v45  ;;  %v1147_v54 = vld [vmem:[%s1506_s1 + $0x1c8] sm:$0xff]   ;;  %v1151_v59 = vld [vmem:[%s1506_s1 + $0x1d0] sm:$0xff]   ;;  %v1154_v62 = vld [vmem:[%s1506_s1 + $0x158] sm:$0xff]  }
   0xf   :  { %v1148_v55 = vld [vmem:[%s1506_s1 + $0x108] sm:$0xff]   ;;  %v1152_v60 = vld [vmem:[%s1506_s1 + $0x110] sm:$0xff]   ;;  %v1155_v63 = vld [vmem:[%s1506_s1 + $0x1d8] sm:$0xff]  }
  0x10   :  { %995 = vmatpush3.bf16.msra.mxu0 %v1123_v14  ;;  %v199_v50 = vrot.slane %v171_v46, %v1354_v41  ;;  %628 = vmatprep.mubr.bf16.mxu0 %v192_v48  ;;  %v202_v53 = vcombine.high %v192_v48, %v192_v48  ;;  %v1149_v57 = vld [vmem:[%s1506_s1 + $0x188] sm:$0xff]   ;;  %v1153_v61 = vld [vmem:[%s1506_s1 + $0x190] sm:$0xff]   ;;  %v1156_v0 = vld [vmem:[%s1506_s1 + $0x118] sm:$0xff]  }
  0x11   :  { %1017 = vmatpush3.bf16.msra.mxu1 %v1124_v15  ;;  %996 = vmatprep.subr.bf16.mxu0 %v1125_v16  ;;  %v1157_v1 = vld [vmem:[%s1506_s1 + $0x198] sm:$0xff]   ;;  %v1158_v2 = vld [vmem:[%s1506_s1 + $0x160] sm:$0xff]   ;;  %v1162_v6 = vld [vmem:[%s1506_s1 + $0x168] sm:$0xff]  }
  0x12   :  { %1018 = vmatprep.subr.bf16.mxu1 %v1126_v17  ;;  %v203_v56 = vcombine.high %v199_v50, %v199_v50  ;;  %668 = vmatprep.mubr.bf16.mxu1 %v202_v53  ;;  %v1159_v3 = vld [vmem:[%s1506_s1 + $0x1e0] sm:$0xff]   ;;  %v1163_v7 = vld [vmem:[%s1506_s1 + $0x1e8] sm:$0xff]   ;;  %v1166_v10 = vld [vmem:[%s1506_s1 + $0x170] sm:$0xff]  }
  0x13   :  { %v1160_v4 = vld [vmem:[%s1506_s1 + $0x120] sm:$0xff]   ;;  %v1164_v8 = vld [vmem:[%s1506_s1 + $0x128] sm:$0xff]   ;;  %v1167_v11 = vld [vmem:[%s1506_s1 + $0x1f0] sm:$0xff]  }
  0x14   :  { %997 = vmatpush3.bf16.msra.mxu0 %v1127_v18  ;;  %v1161_v5 = vld [vmem:[%s1506_s1 + $0x1a0] sm:$0xff]   ;;  %v1165_v9 = vld [vmem:[%s1506_s1 + $0x1a8] sm:$0xff]   ;;  %v1168_v12 = vld [vmem:[%s1506_s1 + $0x130] sm:$0xff]  }
  0x15   :  { %1019 = vmatpush3.bf16.msra.mxu1 %v1128_v19  ;;  %998 = vmatprep.subr.bf16.mxu0 %v1129_v20  ;;  %v1170_v13 = vld [vmem:[%s1506_s1 + $0x178] sm:$0xff]   ;;  %v1169_v14 = vld [vmem:[%s1506_s1 + $0x1b0] sm:$0xff]  }
  0x16   :  { %1020 = vmatprep.subr.bf16.mxu1 %v1130_v21 }
  0x18   :  { %999 = vmatpush3.bf16.msra.mxu0 %v1131_v22 }
  0x19   :  { %1021 = vmatpush3.bf16.msra.mxu1 %v1132_v23  ;;  %1000 = vmatprep.subr.bf16.mxu0 %v1133_v24 }
  0x1a   :  { %1022 = vmatprep.subr.bf16.mxu1 %v1134_v25 }
  0x1c   :  { %1001 = vmatpush3.bf16.msra.mxu0 %v1135_v26 }
  0x1d   :  { %1023 = vmatpush3.bf16.msra.mxu1 %v1136_v27  ;;  %1002 = vmatprep.subr.bf16.mxu0 %v1137_v29 }
  0x1e   :  { %1024 = vmatprep.subr.bf16.mxu1 %v1138_v30 }
  0x20   :  { %1003 = vmatpush3.bf16.msra.mxu0 %v1139_v31 }
  0x21   :  { %1025 = vmatpush3.bf16.msra.mxu1 %v1140_v32  ;;  %1032 = vmatprep.subr.bf16.mxu0 %v1142_v35 }
  0x22   :  { %1054 = vmatprep.subr.bf16.mxu1 %v1143_v38 }
  0x23   :  { %629 = vmatmul.mubr.bf16.vlgmr.msra.gmra.mrb[0].mxu0 %v178_v45 }
  0x24   :  { %1033 = vmatpush3.bf16.msra.mxu0 %v1144_v47  ;;  %669 = vmatmul.mubr.bf16.vlgmr.msra.gmra.mrb[0].mxu1 %v200_v51 }
  0x25   :  { %1034 = vmatprep.subr.bf16.mxu0 %v1146_v52  ;;  %1055 = vmatpush3.bf16.msra.mxu1 %v1145_v49 }
  0x26   :  { %708 = vmatprep.mubr.bf16.mxu0 %v199_v50  ;;  %1056 = vmatprep.subr.bf16.mxu1 %v1147_v54 }
  0x27   :  { %748 = vmatprep.mubr.bf16.mxu1 %v203_v56 }
  0x28   :  { %1035 = vmatpush3.bf16.msra.mxu0 %v1148_v55 }
  0x29   :  { %1036 = vmatprep.subr.bf16.mxu0 %v1150_v58  ;;  %1057 = vmatpush3.bf16.msra.mxu1 %v1149_v57 }
  0x2a   :  { %1058 = vmatprep.subr.bf16.mxu1 %v1151_v59 }
  0x2c   :  { %1037 = vmatpush3.bf16.msra.mxu0 %v1152_v60 }
  0x2d   :  { %1038 = vmatprep.subr.bf16.mxu0 %v1154_v62  ;;  %1059 = vmatpush3.bf16.msra.mxu1 %v1153_v61 }
  0x2e   :  { %1060 = vmatprep.subr.bf16.mxu1 %v1155_v63 }
  0x30   :  { %1039 = vmatpush3.bf16.msra.mxu0 %v1156_v0 }
  0x31   :  { %1040 = vmatprep.subr.bf16.mxu0 %v1158_v2  ;;  %1061 = vmatpush3.bf16.msra.mxu1 %v1157_v1 }
  0x32   :  { %1062 = vmatprep.subr.bf16.mxu1 %v1159_v3 }
  0x34   :  { %1041 = vmatpush3.bf16.msra.mxu0 %v1160_v4 }
  0x35   :  { %1042 = vmatprep.subr.bf16.mxu0 %v1162_v6  ;;  %1063 = vmatpush3.bf16.msra.mxu1 %v1161_v5 }
  0x36   :  { %1064 = vmatprep.subr.bf16.mxu1 %v1163_v7 }
  0x38   :  { %1043 = vmatpush3.bf16.msra.mxu0 %v1164_v8 }
  0x39   :  { %1044 = vmatprep.subr.bf16.mxu0 %v1166_v10  ;;  %1065 = vmatpush3.bf16.msra.mxu1 %v1165_v9 }
  0x3a   :  { %11 = vsyncpa [#allocation3], 0  ;;  %1066 = vmatprep.subr.bf16.mxu1 %v1167_v11  ;;  %v1171_v15 = vld [vmem:[%s1506_s1 + $0x1f8] sm:$0xff]   ;;  %v185_v17 = vrot.slane %v1358_v43, %v1354_v41  ;;  %v1174_v20 = vld [vmem:[%s1509_s4] sm:$0xff]   ;;  %v1211_v21 = vmov 0.0   ;;  %vm1212_vm0 = vmmov 0  }
  0x3b   :  { %v1172_v16 = vld [vmem:[%s1506_s1 + $0x138] sm:$0xff]   ;;  %v1175_v22 = vld [vmem:[%s1509_s4 + $0x8] sm:$0xff]   ;;  %v1176_v23 = vld [vmem:[%s1509_s4 + $0x10] sm:$0xff]   ;;  %vm885_vm1 = vcmask 9216  }
  0x3c   :  { %1045 = vmatpush3.bf16.msra.mxu0 %v1168_v12  ;;  %v1173_v18 = vld [vmem:[%s1506_s1 + $0x1b8] sm:$0xff]   ;;  %v201_v19 = vcombine.high %v185_v17, %v185_v17  ;;  %v1178_v25 = vld [vmem:[%s1509_s4 + $0x20] sm:$0xff]   ;;  %v1179_v26 = vld [vmem:[%s1509_s4 + $0x28] sm:$0xff]  }
  0x3d   :  { %1046 = vmatprep.subr.bf16.mxu0 %v1170_v13  ;;  %1067 = vmatpush3.bf16.msra.mxu1 %v1169_v14  ;;  %v1177_v24 = vld [vmem:[%s1509_s4 + $0x18] sm:$0xff]   ;;  %v1180_v27 = vld [vmem:[%s1509_s4 + $0x30] sm:$0xff]   ;;  %v977_v50 = vld [vmem:[%s1507_s2] ss:$0 sm:$0xff]  ;;  %s1213_s2 = smov [#allocation2]  }
  0x3e   :  { %1068 = vmatprep.subr.bf16.mxu1 %v1171_v15  ;;  %v1181_v28 = vld [vmem:[%s1509_s4 + $0x38] sm:$0xff]   ;;  %v978_v53 = vld [vmem:[%s1508_s3] ss:$0 sm:$0xff]  ;;  %s905_s3 = sshll.u32 %s1213_s2, 4  ;;  %s906_s3 = int_to_ptr.vmem [resolvable:$true] %s905_s3 }
  0x3f   :  { %v979_v58 = vld [vmem:[%s1510_s5] ss:$0 sm:$0xff]  ;;  %s1186_s5 = scalar_lea.vmem %s906_s3, 32  ;;  %p1191_p1 = scmp.lt.s32.totalorder %s906_s3, %s906_s3 }
  0x40   :  { %1047 = vmatpush3.bf16.msra.mxu0 %v1172_v16  ;;  %p1187_p0 = scmp.ne.s32.totalorder %s906_s3, %s1186_s5  ;;  %p1192_p2 = scmp.lt.s32.totalorder %s1186_s5, %s1186_s5 }
  0x41   :  { %1069 = vmatpush3.bf16.msra.mxu1 %v1173_v18  ;;  %1085 = vmatprep.subr.bf16.mxu0 %v1211_v21 }
  0x42   :  { %p1193_p3 = por %p1192_p2, %p1191_p1 }
  0x43   :  { %709 = vmatmul.mubr.bf16.vlgmr.msra.gmra.mrb[4].mxu0 %v185_v17 }
  0x44   :  { %749 = vmatmul.mubr.bf16.vlgmr.msra.gmra.mrb[4].mxu1 %v201_v19  ;;  %1086 = vmatpush3.bf16.msra.mxu0 %v1174_v20  ;;  %p1194_p4 = pnand %p1193_p3, %p1187_p0 }
  0x45   :  { %1087 = vmatprep.subr.bf16.mxu0 %v1211_v21  ;;  %1101 = vmatprep.mubr.msk.bf16.mxu0 %vm1212_vm0, %v1211_v21 }
  0x48   :  { %1088 = vmatpush3.bf16.msra.mxu0 %v1175_v22 }
  0x49   :  { %1089 = vmatprep.subr.bf16.mxu0 %v1211_v21 }
  0x4c   :  { %1090 = vmatpush3.bf16.msra.mxu0 %v1176_v23 }
  0x4d   :  { %1091 = vmatprep.subr.bf16.mxu0 %v1211_v21 }
  0x50   :  { %1092 = vmatpush3.bf16.msra.mxu0 %v1177_v24 }
  0x51   :  { %1093 = vmatprep.subr.bf16.mxu0 %v1211_v21 }
  0x54   :  { %1094 = vmatpush3.bf16.msra.mxu0 %v1178_v25 }
  0x55   :  { %1095 = vmatprep.subr.bf16.mxu0 %v1211_v21 }
  0x58   :  { %1096 = vmatpush3.bf16.msra.mxu0 %v1179_v26 }
  0x59   :  { %1097 = vmatprep.subr.bf16.mxu0 %v1211_v21 }
  0x5c   :  { %1098 = vmatpush3.bf16.msra.mxu0 %v1180_v27 }
  0x5d   :  { %1099 = vmatprep.subr.bf16.mxu0 %v1211_v21 }
  0x60   :  { %1100 = vmatpush3.bf16.msra.mxu0 %v1181_v28 }
  0xf6   :  { %v1004_v29 = vpop.f32.mrb[0].mxu0 }
  0xf7   :  { %v1005_v30 = vpop.f32.mrb[1].mxu0  ;;  %v1026_v31 = vpop.f32.mrb[0].mxu1 }
  0xf8   :  { %v1006_v32 = vadd.f32 %v1005_v30, %v1004_v29  ;;  %v1007_v33 = vpop.f32.mrb[2].mxu0  ;;  %v1027_v34 = vpop.f32.mrb[1].mxu1 }
  0xf9   :  { %v1008_v35 = vpop.f32.mrb[3].mxu0  ;;  %v1028_v36 = vadd.f32 %v1027_v34, %v1026_v31  ;;  %v1029_v37 = vpop.f32.mrb[2].mxu1 }
  0xfa   :  { %v1030_v38 = vpop.f32.mrb[3].mxu1 }
  0xfb   :  { %v671_v39 = vadd.f32 %v1028_v36, %v1006_v32 }
 0x116   :  { %v1048_v40 = vpop.f32.mrb[4].mxu0 }
 0x117   :  { %v1049_v41 = vpop.f32.mrb[5].mxu0  ;;  %v1070_v42 = vpop.f32.mrb[4].mxu1 }
 0x118   :  { %v1050_v43 = vadd.f32 %v1049_v41, %v1048_v40  ;;  %v1051_v44 = vpop.f32.mrb[6].mxu0  ;;  %v1071_v45 = vpop.f32.mrb[5].mxu1 }
 0x119   :  { %v1052_v46 = vpop.f32.mrb[7].mxu0  ;;  %v1072_v48 = vadd.f32 %v1071_v45, %v1070_v42  ;;  %v1073_v49 = vpop.f32.mrb[6].mxu1 }
 0x11a   :  { %v711_v47 = vadd.f32 %v1050_v43, %v671_v39  ;;  %v1074_v51 = vpop.f32.mrb[7].mxu1 }
 0x11c   :  { %v751_v52 = vadd.f32 %v1072_v48, %v711_v47 }
 0x11e   :  { %v763_v54 = vmul.f32 %v977_v50, %v751_v52 }
 0x120   :  { %v771_v55 = vadd.f32 %v978_v53, %v763_v54 }
 0x122   :  { %v772_v56 = vmax.f32 %v771_v55, 0.0 }
 0x124   :  { %v773_v57 = vpack.c.bf16 %v772_v56, %v772_v56 }
 0x126   :  { %1102 = vmatmul.mubr.bf16.vlgmr.msra.gmra.mrb[8].mxu0 %v773_v57 }
 0x1f9   :  { %v879_v59 = vpop.f32.mrb[8].mxu0 }
 0x1fa   :  { %v880_v60 = vadd.f32 %v979_v58, %v879_v59  ;;  %v1103_v61 = vpop.f32.mrb[9].mxu0 }
 0x1fb   :  { %v882_v62 = vpop.f32.mrb[10].mxu0 }
 0x1fc   :  { %v1104_v63 = vpop.f32.mrb[11].mxu0  ;;  %v886_v0 = vsel %vm885_vm1, %v880_v60, -inf }
 0x1fd   :  { %887 = vmax.xlane.f32.xlu0 %v886_v0 }
 0x28a   :  { %v888_v1 = vpop.xlane.xlu0 %887 }
 0x28b   :  { %v889_v2 = vsub.f32 %v880_v60, %v888_v1 }
 0x28d   :  { %v890_v3 = vmul.f32 1.442695, %v889_v2 }
 0x28f   :  { %1182 = vpow2.f32 %v890_v3 }
 0x299   :  { %v1183_v4 = vpop.eup %1182 }
 0x29a   :  { %v892_v5 = vsel %vm885_vm1, %v1183_v4, 0.0 }
 0x29b   :  { %893 = vadd.xlane.f32.xlu0 %v892_v5 }
 0x328   :  { %v894_v6 = vpop.xlane.xlu0 %893 }
 0x329   :  { %1184 = vlog2.f32 %v894_v6 }
 0x333   :  { %v1185_v7 = vpop.eup %1184 }
 0x334   :  { %v896_v8 = vmul.f32 0.6931472, %v1185_v7 }
 0x336   :  { %v897_v9 = vsub.f32 %v889_v2, %v896_v8 }
 0x338   :  { %898 = vst.msk [vmem:[#allocation2] sm:$0x3] %vm885_vm1, %v897_v9 }
 0x339   :  { %1197 = shalt.err (!%p1194_p4)
}
 0x33a   :  { %s1198_s25 = scalar_lea.hbm %s1511_s6, 32 }
 0x33b   :  { %p1199_p5 = scmp.ne.s32.totalorder %s1511_s6, %s1198_s25  ;;  %p1202_p6 = scmp.lt.u32.totalorder %s1198_s25, %s1511_s6 }
 0x33d   :  { %p1204_p7 = pnand %p1202_p6, %p1199_p5 }
 0x33f   :  { %1207 = shalt.err (!%p1204_p7)
}
 0x340   :  { %908 = dma.vmem_to_hbm [thread:$0]  %s906_s3, 32, %s1511_s6, [#allocation3]  }
 0x341   :  { %1208 = dma.done.wait [#allocation3], 32  }
 0x342   :  { %1209 = vsyncadd [#allocation3], 4294967264 }
 0x343   :  { %912 = vsyncpa [#allocation3], 1 }

</bundles_post_ra>
